<compile_context>
chip_gen: v7x
topology: tpu7x:2x2x1
jax: 0.10.0
libtpu: 0.0.40
codegen_flags: <defaults>
</compile_context>

<pallas_src>
import math
import jax
import jax.numpy as jnp
from jax.experimental import pallas as pl
from jax.experimental.pallas import tpu as pltpu

# ---------------------------------------------------------------------------
# Irreps configuration
# ---------------------------------------------------------------------------
IN_MULS = {'0e': 8, '1o': 4, '1e': 4, '0o': 4}
OUT_MULS = {'0e': 8, '1o': 4, '1e': 4, '0o': 4}

IN_DIM = IN_MULS['0e'] + 3 * IN_MULS['1o'] + 3 * IN_MULS['1e'] + IN_MULS['0o']      # 36
OUT_DIM = OUT_MULS['0e'] + 3 * OUT_MULS['1o'] + 3 * OUT_MULS['1e'] + OUT_MULS['0o']  # 36

# dict order matters (matches the PyTorch module's weight slicing order)
WEIGHT_SHAPES = {
    '0e': (IN_MULS['0e'] + IN_MULS['1o'], OUT_MULS['0e']),                    # (12, 8)
    '1o': (IN_MULS['0e'] + IN_MULS['1o'] + IN_MULS['1e'], OUT_MULS['1o']),    # (16, 4)
    '1e': (IN_MULS['1o'] + IN_MULS['1e'] + IN_MULS['0o'], OUT_MULS['1e']),    # (12, 4)
    '0o': (IN_MULS['1e'] + IN_MULS['0o'], OUT_MULS['0o']),                    # ( 8, 4)
}
WEIGHT_NUMEL = sum(a * b for a, b in WEIGHT_SHAPES.values())                  # 240

# flat-lane offsets of each weight segment inside weight[:, :240]
_W_OFF = {}
_off = 0
for _k, (_i, _o) in WEIGHT_SHAPES.items():
    _W_OFF[_k] = _off
    _off += _i * _o

SQRT2 = math.sqrt(2.0)
SQRT3 = math.sqrt(3.0)
INV_SQRT2 = 1.0 / SQRT2
INV_SQRT3 = 1.0 / SQRT3
INV_FAN = {k: 1.0 / math.sqrt(v[0]) for k, v in WEIGHT_SHAPES.items()}

# lane offsets inside the flat e3nn input / output layouts (xyz fastest)
_IN_OFF_1O = IN_MULS['0e']                        # 8
_IN_OFF_1E = _IN_OFF_1O + 3 * IN_MULS['1o']       # 20
_IN_OFF_0O = _IN_OFF_1E + 3 * IN_MULS['1e']       # 32
_OUT_OFF_1O = OUT_MULS['0e']                      # 8
_OUT_OFF_1E = _OUT_OFF_1O + 3 * OUT_MULS['1o']    # 20
_OUT_OFF_0O = _OUT_OFF_1E + 3 * OUT_MULS['1e']    # 32


# ---------------------------------------------------------------------------
# Pallas kernel
# ---------------------------------------------------------------------------
def ftp_kernel(x_ref, sh_ref, w_ref, o_ref):
    # --- spherical-harmonic scalars (per node) ------------------------------
    sh0 = sh_ref[:, 0:1]
    s = [sh_ref[:, 1:2], sh_ref[:, 2:3], sh_ref[:, 3:4]]          # sh1 x, y, z

    # --- input columns: static lane slices, each loaded once ----------------
    x0e = [x_ref[:, j:j + 1] for j in range(IN_MULS['0e'])]
    x1o = [[x_ref[:, _IN_OFF_1O + 3 * j + c: _IN_OFF_1O + 3 * j + c + 1]
            for j in range(IN_MULS['1o'])] for c in range(3)]
    x1e = [[x_ref[:, _IN_OFF_1E + 3 * j + c: _IN_OFF_1E + 3 * j + c + 1]
            for j in range(IN_MULS['1e'])] for c in range(3)]
    x0o = [x_ref[:, _IN_OFF_0O + j: _IN_OFF_0O + j + 1] for j in range(IN_MULS['0o'])]

    def mac(cols, w_start, out_w):
        """sum_j cols[j] * weight[:, w_start + j*out_w : +out_w] -> [TN, out_w].

        Unrolled MAC over input columns; weight windows are contiguous static
        lane slices of the flat [TN, 240] per-node weight block (no 3-D temp,
        no concatenation, no relayout).
        """
        acc = cols[0] * w_ref[:, w_start: w_start + out_w]
        for j in range(1, len(cols)):
            a = w_start + j * out_w
            acc = acc + cols[j] * w_ref[:, a: a + out_w]
        return acc

    # --- 0e output:  w0e (In=12, Out=8) --------------------------------------
    w0, o0 = _W_OFF['0e'], OUT_MULS['0e']
    p_a = mac(x0e, w0, o0)                                   # rows 0..7  (x0e*sh0)
    p_b = [mac(x1o[c], w0 + 8 * o0, o0) for c in range(3)]   # rows 8..11 ((x1o.sh1)/sqrt3)
    out0e = (sh0 * p_a
             + (s[0] * p_b[0] + s[1] * p_b[1] + s[2] * p_b[2]) * INV_SQRT3
             ) * INV_FAN['0e']

    # --- 1o output:  w1o (In=16, Out=4), 3 Cartesian components --------------
    w1, o1 = _W_OFF['1o'], OUT_MULS['1o']
    a_ = mac(x0e, w1, o1)                                    # shared across x,y,z
    b_ = [mac(x1o[c], w1 + 8 * o1, o1) for c in range(3)]
    c_ = [mac(x1e[c], w1 + 12 * o1, o1) for c in range(3)]   # feeds cross(x1e, sh1)
    out1o = [
        (s[0] * a_ + sh0 * b_[0] + (s[2] * c_[1] - s[1] * c_[2]) * INV_SQRT2) * INV_FAN['1o'],
        (s[1] * a_ + sh0 * b_[1] + (s[0] * c_[2] - s[2] * c_[0]) * INV_SQRT2) * INV_FAN['1o'],
        (s[2] * a_ + sh0 * b_[2] + (s[1] * c_[0] - s[0] * c_[1]) * INV_SQRT2) * INV_FAN['1o'],
    ]

    # --- 1e output:  w1e (In=12, Out=4), 3 Cartesian components --------------
    w2, o2 = _W_OFF['1e'], OUT_MULS['1e']
    d_ = [mac(x1o[c], w2, o2) for c in range(3)]             # feeds cross(x1o, sh1)
    e_ = [mac(x1e[c], w2 + 4 * o2, o2) for c in range(3)]
    f_ = mac(x0o, w2 + 8 * o2, o2)                           # shared across x,y,z
    out1e = [
        ((s[2] * d_[1] - s[1] * d_[2]) * INV_SQRT2 + sh0 * e_[0] + s[0] * f_) * INV_FAN['1e'],
        ((s[0] * d_[2] - s[2] * d_[0]) * INV_SQRT2 + sh0 * e_[1] + s[1] * f_) * INV_FAN['1e'],
        ((s[1] * d_[0] - s[0] * d_[1]) * INV_SQRT2 + sh0 * e_[2] + s[2] * f_) * INV_FAN['1e'],
    ]

    # --- 0o output:  w0o (In=8, Out=4) ----------------------------------------
    w3, o3 = _W_OFF['0o'], OUT_MULS['0o']
    g_ = [mac(x1e[c], w3, o3) for c in range(3)]             # ((x1e.sh1)/sqrt3)
    h_ = mac(x0o, w3 + 4 * o3, o3)                           # (x0o*sh0)
    out0o = ((s[0] * g_[0] + s[1] * g_[1] + s[2] * g_[2]) * INV_SQRT3
             + sh0 * h_) * INV_FAN['0o']

    # --- write the final interleaved e3nn layout directly ---------------------
    o_ref[:, 0:OUT_MULS['0e']] = out0e
    o_ref[:, _OUT_OFF_0O:_OUT_OFF_0O + OUT_MULS['0o']] = out0o
    for o in range(OUT_MULS['1o']):
        for c in range(3):
            lane = _OUT_OFF_1O + 3 * o + c
            o_ref[:, lane:lane + 1] = out1o[c][:, o:o + 1]
    for o in range(OUT_MULS['1e']):
        for c in range(3):
            lane = _OUT_OFF_1E + 3 * o + c
            o_ref[:, lane:lane + 1] = out1e[c][:, o:o + 1]


# ---------------------------------------------------------------------------
# Wrapper: no glue passes -- flat arrays go straight into the kernel.
# ---------------------------------------------------------------------------
def faster_tensor_product(in_, sh, weight, *, tile_n=1024,
                          vmem_limit_bytes=32 * 1024 * 1024):
    N = in_.shape[0]
    assert in_.shape == (N, IN_DIM), in_.shape
    assert sh.shape == (N, 4), sh.shape
    assert weight.shape == (N, WEIGHT_NUMEL), weight.shape

    tn = min(int(tile_n), N)
    if tn < N:
        tn = max(8, (tn // 8) * 8)      # sublane-aligned blocks when tiling
    grid = (pl.cdiv(N, tn),)            # ragged N handled by masked last block

    def spec(d):
        return pl.BlockSpec((tn, d), lambda i: (i, 0))

    return pl.pallas_call(
        ftp_kernel,
        out_shape=jax.ShapeDtypeStruct((N, OUT_DIM), jnp.float32),
        grid_spec=pltpu.PrefetchScalarGridSpec(
            num_scalar_prefetch=0,
            grid=grid,
            in_specs=[spec(IN_DIM), spec(4), spec(WEIGHT_NUMEL)],
            out_specs=spec(OUT_DIM),
        ),
        compiler_params=pltpu.CompilerParams(
            dimension_semantics=("parallel",),
            vmem_limit_bytes=vmem_limit_bytes,
        ),
    )(in_, sh, weight)


# ---------------------------------------------------------------------------
# Pure-JAX reference (mirrors the PyTorch forward) for verification
# ---------------------------------------------------------------------------
def reference(in_, sh, weight):
    N = in_.shape[0]
    m0e, m1o, m1e, m0o = (IN_MULS[k] for k in ('0e', '1o', '1e', '0o'))
    off = 0
    x0e = in_[:, off:off + m0e]; off += m0e
    x1o = in_[:, off:off + 3 * m1o].reshape(N, m1o, 3); off += 3 * m1o
    x1e = in_[:, off:off + 3 * m1e].reshape(N, m1e, 3); off += 3 * m1e
    x0o = in_[:, off:off + m0o]; off += m0o
    sh0, sh1 = sh[:, 0], sh[:, 1:]

    f0e = jnp.concatenate(
        [x0e * sh0[:, None], (x1o * sh1[:, None, :]).sum(-1) / SQRT3], -1)
    f1o = jnp.concatenate(
        [x0e[:, :, None] * sh1[:, None, :],
         x1o * sh0[:, None, None],
         jnp.cross(x1e, sh1[:, None, :]) / SQRT2], axis=-2)
    f1e = jnp.concatenate(
        [jnp.cross(x1o, sh1[:, None, :]) / SQRT2,
         x1e * sh0[:, None, None],
         x0o[:, :, None] * sh1[:, None, :]], axis=-2)
    f0o = jnp.concatenate(
        [(x1e * sh1[:, None, :]).sum(-1) / SQRT3, x0o * sh0[:, None]], -1)

    wd, start = {}, 0
    for key, (i_, o_) in WEIGHT_SHAPES.items():
        wd[key] = weight[:, start:start + i_ * o_].reshape(N, i_, o_) / math.sqrt(i_)
        start += i_ * o_

    r0e = jnp.einsum('ni,nio->no', f0e, wd['0e'])
    r1o = jnp.einsum('nic,nio->noc', f1o, wd['1o']).reshape(N, -1)
    r1e = jnp.einsum('nic,nio->noc', f1e, wd['1e']).reshape(N, -1)
    r0o = jnp.einsum('ni,nio->no', f0o, wd['0o'])
    return jnp.concatenate([r0e, r1o, r1e, r0o], axis=-1)


if __name__ == "__main__":
    key = jax.random.PRNGKey(0)
    k1, k2, k3 = jax.random.split(key, 3)

    N = 256  # number of nodes / edges (small demo shape)
    in_ = jax.random.normal(k1, (N, IN_DIM), dtype=jnp.float32)
    sh = jax.random.normal(k2, (N, 4), dtype=jnp.float32)       # 1x0e + 1x1o
    weight = jax.random.normal(k3, (N, WEIGHT_NUMEL), dtype=jnp.float32)

    # small tile in the demo so the grid has several steps; production calls
    # should use the default tile_n=1024 (or larger on v6e).
    out = jax.block_until_ready(faster_tensor_product(in_, sh, weight, tile_n=64))
    ref = jax.block_until_ready(reference(in_, sh, weight))

    assert out.shape == (N, OUT_DIM), out.shape
    max_err = float(jnp.max(jnp.abs(out - ref)))
    assert jnp.allclose(out, ref, atol=2e-4, rtol=2e-4), max_err

    print("KERNEL_OK")
</pallas_src>

<mosaic_0001>
module attributes {stable_mosaic.version = 11 : i64} {
  func.func @ftp_kernel(%arg0: i32, %arg1: memref<64x36xf32, #tpu.memory_space<vmem>>, %arg2: memref<64x4xf32, #tpu.memory_space<vmem>>, %arg3: memref<64x240xf32, #tpu.memory_space<vmem>>, %arg4: memref<64x36xf32, #tpu.memory_space<vmem>>) attributes {dimension_semantics = [#tpu.dimension_semantics<parallel>], iteration_bounds = array<i64: 4>, scalar_prefetch = 0 : i64, scratch_operands = 0 : i64, tpu.core_type = #tpu.core_type<tc>, window_params = [{transform_indices = @transform_0, window_bounds = array<i64: 64, 36>}, {transform_indices = @transform_1, window_bounds = array<i64: 64, 4>}, {transform_indices = @transform_2, window_bounds = array<i64: 64, 240>}, {transform_indices = @transform_3, window_bounds = array<i64: 64, 36>}]} {
    %c0 = arith.constant 0 : index
    %c0_0 = arith.constant 0 : index
    %0 = vector.load %arg2[%c0, %c0_0] : memref<64x4xf32, #tpu.memory_space<vmem>>, vector<64x1xf32>
    %c0_1 = arith.constant 0 : index
    %c1 = arith.constant 1 : index
    %1 = vector.load %arg2[%c0_1, %c1] : memref<64x4xf32, #tpu.memory_space<vmem>>, vector<64x1xf32>
    %c0_2 = arith.constant 0 : index
    %c2 = arith.constant 2 : index
    %2 = vector.load %arg2[%c0_2, %c2] : memref<64x4xf32, #tpu.memory_space<vmem>>, vector<64x1xf32>
    %c0_3 = arith.constant 0 : index
    %c3 = arith.constant 3 : index
    %3 = vector.load %arg2[%c0_3, %c3] : memref<64x4xf32, #tpu.memory_space<vmem>>, vector<64x1xf32>
    %c0_4 = arith.constant 0 : index
    %c0_5 = arith.constant 0 : index
    %4 = vector.load %arg1[%c0_4, %c0_5] : memref<64x36xf32, #tpu.memory_space<vmem>>, vector<64x1xf32>
    %c0_6 = arith.constant 0 : index
    %c1_7 = arith.constant 1 : index
    %5 = vector.load %arg1[%c0_6, %c1_7] : memref<64x36xf32, #tpu.memory_space<vmem>>, vector<64x1xf32>
    %c0_8 = arith.constant 0 : index
    %c2_9 = arith.constant 2 : index
    %6 = vector.load %arg1[%c0_8, %c2_9] : memref<64x36xf32, #tpu.memory_space<vmem>>, vector<64x1xf32>
    %c0_10 = arith.constant 0 : index
    %c3_11 = arith.constant 3 : index
    %7 = vector.load %arg1[%c0_10, %c3_11] : memref<64x36xf32, #tpu.memory_space<vmem>>, vector<64x1xf32>
    %c0_12 = arith.constant 0 : index
    %c4 = arith.constant 4 : index
    %8 = vector.load %arg1[%c0_12, %c4] : memref<64x36xf32, #tpu.memory_space<vmem>>, vector<64x1xf32>
    %c0_13 = arith.constant 0 : index
    %c5 = arith.constant 5 : index
    %9 = vector.load %arg1[%c0_13, %c5] : memref<64x36xf32, #tpu.memory_space<vmem>>, vector<64x1xf32>
    %c0_14 = arith.constant 0 : index
    %c6 = arith.constant 6 : index
    %10 = vector.load %arg1[%c0_14, %c6] : memref<64x36xf32, #tpu.memory_space<vmem>>, vector<64x1xf32>
    %c0_15 = arith.constant 0 : index
    %c7 = arith.constant 7 : index
    %11 = vector.load %arg1[%c0_15, %c7] : memref<64x36xf32, #tpu.memory_space<vmem>>, vector<64x1xf32>
    %c0_16 = arith.constant 0 : index
    %c8 = arith.constant 8 : index
    %12 = vector.load %arg1[%c0_16, %c8] : memref<64x36xf32, #tpu.memory_space<vmem>>, vector<64x1xf32>
    %c0_17 = arith.constant 0 : index
    %c11 = arith.constant 11 : index
    %13 = vector.load %arg1[%c0_17, %c11] : memref<64x36xf32, #tpu.memory_space<vmem>>, vector<64x1xf32>
    %c0_18 = arith.constant 0 : index
    %c14 = arith.constant 14 : index
    %14 = vector.load %arg1[%c0_18, %c14] : memref<64x36xf32, #tpu.memory_space<vmem>>, vector<64x1xf32>
    %c0_19 = arith.constant 0 : index
    %c17 = arith.constant 17 : index
    %15 = vector.load %arg1[%c0_19, %c17] : memref<64x36xf32, #tpu.memory_space<vmem>>, vector<64x1xf32>
    %c0_20 = arith.constant 0 : index
    %c9 = arith.constant 9 : index
    %16 = vector.load %arg1[%c0_20, %c9] : memref<64x36xf32, #tpu.memory_space<vmem>>, vector<64x1xf32>
    %c0_21 = arith.constant 0 : index
    %c12 = arith.constant 12 : index
    %17 = vector.load %arg1[%c0_21, %c12] : memref<64x36xf32, #tpu.memory_space<vmem>>, vector<64x1xf32>
    %c0_22 = arith.constant 0 : index
    %c15 = arith.constant 15 : index
    %18 = vector.load %arg1[%c0_22, %c15] : memref<64x36xf32, #tpu.memory_space<vmem>>, vector<64x1xf32>
    %c0_23 = arith.constant 0 : index
    %c18 = arith.constant 18 : index
    %19 = vector.load %arg1[%c0_23, %c18] : memref<64x36xf32, #tpu.memory_space<vmem>>, vector<64x1xf32>
    %c0_24 = arith.constant 0 : index
    %c10 = arith.constant 10 : index
    %20 = vector.load %arg1[%c0_24, %c10] : memref<64x36xf32, #tpu.memory_space<vmem>>, vector<64x1xf32>
    %c0_25 = arith.constant 0 : index
    %c13 = arith.constant 13 : index
    %21 = vector.load %arg1[%c0_25, %c13] : memref<64x36xf32, #tpu.memory_space<vmem>>, vector<64x1xf32>
    %c0_26 = arith.constant 0 : index
    %c16 = arith.constant 16 : index
    %22 = vector.load %arg1[%c0_26, %c16] : memref<64x36xf32, #tpu.memory_space<vmem>>, vector<64x1xf32>
    %c0_27 = arith.constant 0 : index
    %c19 = arith.constant 19 : index
    %23 = vector.load %arg1[%c0_27, %c19] : memref<64x36xf32, #tpu.memory_space<vmem>>, vector<64x1xf32>
    %c0_28 = arith.constant 0 : index
    %c20 = arith.constant 20 : index
    %24 = vector.load %arg1[%c0_28, %c20] : memref<64x36xf32, #tpu.memory_space<vmem>>, vector<64x1xf32>
    %c0_29 = arith.constant 0 : index
    %c23 = arith.constant 23 : index
    %25 = vector.load %arg1[%c0_29, %c23] : memref<64x36xf32, #tpu.memory_space<vmem>>, vector<64x1xf32>
    %c0_30 = arith.constant 0 : index
    %c26 = arith.constant 26 : index
    %26 = vector.load %arg1[%c0_30, %c26] : memref<64x36xf32, #tpu.memory_space<vmem>>, vector<64x1xf32>
    %c0_31 = arith.constant 0 : index
    %c29 = arith.constant 29 : index
    %27 = vector.load %arg1[%c0_31, %c29] : memref<64x36xf32, #tpu.memory_space<vmem>>, vector<64x1xf32>
    %c0_32 = arith.constant 0 : index
    %c21 = arith.constant 21 : index
    %28 = vector.load %arg1[%c0_32, %c21] : memref<64x36xf32, #tpu.memory_space<vmem>>, vector<64x1xf32>
    %c0_33 = arith.constant 0 : index
    %c24 = arith.constant 24 : index
    %29 = vector.load %arg1[%c0_33, %c24] : memref<64x36xf32, #tpu.memory_space<vmem>>, vector<64x1xf32>
    %c0_34 = arith.constant 0 : index
    %c27 = arith.constant 27 : index
    %30 = vector.load %arg1[%c0_34, %c27] : memref<64x36xf32, #tpu.memory_space<vmem>>, vector<64x1xf32>
    %c0_35 = arith.constant 0 : index
    %c30 = arith.constant 30 : index
    %31 = vector.load %arg1[%c0_35, %c30] : memref<64x36xf32, #tpu.memory_space<vmem>>, vector<64x1xf32>
    %c0_36 = arith.constant 0 : index
    %c22 = arith.constant 22 : index
    %32 = vector.load %arg1[%c0_36, %c22] : memref<64x36xf32, #tpu.memory_space<vmem>>, vector<64x1xf32>
    %c0_37 = arith.constant 0 : index
    %c25 = arith.constant 25 : index
    %33 = vector.load %arg1[%c0_37, %c25] : memref<64x36xf32, #tpu.memory_space<vmem>>, vector<64x1xf32>
    %c0_38 = arith.constant 0 : index
    %c28 = arith.constant 28 : index
    %34 = vector.load %arg1[%c0_38, %c28] : memref<64x36xf32, #tpu.memory_space<vmem>>, vector<64x1xf32>
    %c0_39 = arith.constant 0 : index
    %c31 = arith.constant 31 : index
    %35 = vector.load %arg1[%c0_39, %c31] : memref<64x36xf32, #tpu.memory_space<vmem>>, vector<64x1xf32>
    %c0_40 = arith.constant 0 : index
    %c32 = arith.constant 32 : index
    %36 = vector.load %arg1[%c0_40, %c32] : memref<64x36xf32, #tpu.memory_space<vmem>>, vector<64x1xf32>
    %c0_41 = arith.constant 0 : index
    %c33 = arith.constant 33 : index
    %37 = vector.load %arg1[%c0_41, %c33] : memref<64x36xf32, #tpu.memory_space<vmem>>, vector<64x1xf32>
    %c0_42 = arith.constant 0 : index
    %c34 = arith.constant 34 : index
    %38 = vector.load %arg1[%c0_42, %c34] : memref<64x36xf32, #tpu.memory_space<vmem>>, vector<64x1xf32>
    %c0_43 = arith.constant 0 : index
    %c35 = arith.constant 35 : index
    %39 = vector.load %arg1[%c0_43, %c35] : memref<64x36xf32, #tpu.memory_space<vmem>>, vector<64x1xf32>
    %c0_44 = arith.constant 0 : index
    %c0_45 = arith.constant 0 : index
    %40 = vector.load %arg3[%c0_44, %c0_45] : memref<64x240xf32, #tpu.memory_space<vmem>>, vector<64x8xf32>
    %41 = vector.broadcast %4 : vector<64x1xf32> to vector<64x8xf32>
    %42 = arith.mulf %41, %40 : vector<64x8xf32>
    %c0_46 = arith.constant 0 : index
    %c8_47 = arith.constant 8 : index
    %43 = vector.load %arg3[%c0_46, %c8_47] : memref<64x240xf32, #tpu.memory_space<vmem>>, vector<64x8xf32>
    %44 = vector.broadcast %5 : vector<64x1xf32> to vector<64x8xf32>
    %45 = arith.mulf %44, %43 : vector<64x8xf32>
    %46 = arith.addf %42, %45 : vector<64x8xf32>
    %c0_48 = arith.constant 0 : index
    %c16_49 = arith.constant 16 : index
    %47 = vector.load %arg3[%c0_48, %c16_49] : memref<64x240xf32, #tpu.memory_space<vmem>>, vector<64x8xf32>
    %48 = vector.broadcast %6 : vector<64x1xf32> to vector<64x8xf32>
    %49 = arith.mulf %48, %47 : vector<64x8xf32>
    %50 = arith.addf %46, %49 : vector<64x8xf32>
    %c0_50 = arith.constant 0 : index
    %c24_51 = arith.constant 24 : index
    %51 = vector.load %arg3[%c0_50, %c24_51] : memref<64x240xf32, #tpu.memory_space<vmem>>, vector<64x8xf32>
    %52 = vector.broadcast %7 : vector<64x1xf32> to vector<64x8xf32>
    %53 = arith.mulf %52, %51 : vector<64x8xf32>
    %54 = arith.addf %50, %53 : vector<64x8xf32>
    %c0_52 = arith.constant 0 : index
    %c32_53 = arith.constant 32 : index
    %55 = vector.load %arg3[%c0_52, %c32_53] : memref<64x240xf32, #tpu.memory_space<vmem>>, vector<64x8xf32>
    %56 = vector.broadcast %8 : vector<64x1xf32> to vector<64x8xf32>
    %57 = arith.mulf %56, %55 : vector<64x8xf32>
    %58 = arith.addf %54, %57 : vector<64x8xf32>
    %c0_54 = arith.constant 0 : index
    %c40 = arith.constant 40 : index
    %59 = vector.load %arg3[%c0_54, %c40] : memref<64x240xf32, #tpu.memory_space<vmem>>, vector<64x8xf32>
    %60 = vector.broadcast %9 : vector<64x1xf32> to vector<64x8xf32>
    %61 = arith.mulf %60, %59 : vector<64x8xf32>
    %62 = arith.addf %58, %61 : vector<64x8xf32>
    %c0_55 = arith.constant 0 : index
    %c48 = arith.constant 48 : index
    %63 = vector.load %arg3[%c0_55, %c48] : memref<64x240xf32, #tpu.memory_space<vmem>>, vector<64x8xf32>
    %64 = vector.broadcast %10 : vector<64x1xf32> to vector<64x8xf32>
    %65 = arith.mulf %64, %63 : vector<64x8xf32>
    %66 = arith.addf %62, %65 : vector<64x8xf32>
    %c0_56 = arith.constant 0 : index
    %c56 = arith.constant 56 : index
    %67 = vector.load %arg3[%c0_56, %c56] : memref<64x240xf32, #tpu.memory_space<vmem>>, vector<64x8xf32>
    %68 = vector.broadcast %11 : vector<64x1xf32> to vector<64x8xf32>
    %69 = arith.mulf %68, %67 : vector<64x8xf32>
    %70 = arith.addf %66, %69 : vector<64x8xf32>
    %c0_57 = arith.constant 0 : index
    %c64 = arith.constant 64 : index
    %71 = vector.load %arg3[%c0_57, %c64] : memref<64x240xf32, #tpu.memory_space<vmem>>, vector<64x8xf32>
    %72 = vector.broadcast %12 : vector<64x1xf32> to vector<64x8xf32>
    %73 = arith.mulf %72, %71 : vector<64x8xf32>
    %c0_58 = arith.constant 0 : index
    %c72 = arith.constant 72 : index
    %74 = vector.load %arg3[%c0_58, %c72] : memref<64x240xf32, #tpu.memory_space<vmem>>, vector<64x8xf32>
    %75 = vector.broadcast %13 : vector<64x1xf32> to vector<64x8xf32>
    %76 = arith.mulf %75, %74 : vector<64x8xf32>
    %77 = arith.addf %73, %76 : vector<64x8xf32>
    %c0_59 = arith.constant 0 : index
    %c80 = arith.constant 80 : index
    %78 = vector.load %arg3[%c0_59, %c80] : memref<64x240xf32, #tpu.memory_space<vmem>>, vector<64x8xf32>
    %79 = vector.broadcast %14 : vector<64x1xf32> to vector<64x8xf32>
    %80 = arith.mulf %79, %78 : vector<64x8xf32>
    %81 = arith.addf %77, %80 : vector<64x8xf32>
    %c0_60 = arith.constant 0 : index
    %c88 = arith.constant 88 : index
    %82 = vector.load %arg3[%c0_60, %c88] : memref<64x240xf32, #tpu.memory_space<vmem>>, vector<64x8xf32>
    %83 = vector.broadcast %15 : vector<64x1xf32> to vector<64x8xf32>
    %84 = arith.mulf %83, %82 : vector<64x8xf32>
    %85 = arith.addf %81, %84 : vector<64x8xf32>
    %c0_61 = arith.constant 0 : index
    %c64_62 = arith.constant 64 : index
    %86 = vector.load %arg3[%c0_61, %c64_62] : memref<64x240xf32, #tpu.memory_space<vmem>>, vector<64x8xf32>
    %87 = vector.broadcast %16 : vector<64x1xf32> to vector<64x8xf32>
    %88 = arith.mulf %87, %86 : vector<64x8xf32>
    %c0_63 = arith.constant 0 : index
    %c72_64 = arith.constant 72 : index
    %89 = vector.load %arg3[%c0_63, %c72_64] : memref<64x240xf32, #tpu.memory_space<vmem>>, vector<64x8xf32>
    %90 = vector.broadcast %17 : vector<64x1xf32> to vector<64x8xf32>
    %91 = arith.mulf %90, %89 : vector<64x8xf32>
    %92 = arith.addf %88, %91 : vector<64x8xf32>
    %c0_65 = arith.constant 0 : index
    %c80_66 = arith.constant 80 : index
    %93 = vector.load %arg3[%c0_65, %c80_66] : memref<64x240xf32, #tpu.memory_space<vmem>>, vector<64x8xf32>
    %94 = vector.broadcast %18 : vector<64x1xf32> to vector<64x8xf32>
    %95 = arith.mulf %94, %93 : vector<64x8xf32>
    %96 = arith.addf %92, %95 : vector<64x8xf32>
    %c0_67 = arith.constant 0 : index
    %c88_68 = arith.constant 88 : index
    %97 = vector.load %arg3[%c0_67, %c88_68] : memref<64x240xf32, #tpu.memory_space<vmem>>, vector<64x8xf32>
    %98 = vector.broadcast %19 : vector<64x1xf32> to vector<64x8xf32>
    %99 = arith.mulf %98, %97 : vector<64x8xf32>
    %100 = arith.addf %96, %99 : vector<64x8xf32>
    %c0_69 = arith.constant 0 : index
    %c64_70 = arith.constant 64 : index
    %101 = vector.load %arg3[%c0_69, %c64_70] : memref<64x240xf32, #tpu.memory_space<vmem>>, vector<64x8xf32>
    %102 = vector.broadcast %20 : vector<64x1xf32> to vector<64x8xf32>
    %103 = arith.mulf %102, %101 : vector<64x8xf32>
    %c0_71 = arith.constant 0 : index
    %c72_72 = arith.constant 72 : index
    %104 = vector.load %arg3[%c0_71, %c72_72] : memref<64x240xf32, #tpu.memory_space<vmem>>, vector<64x8xf32>
    %105 = vector.broadcast %21 : vector<64x1xf32> to vector<64x8xf32>
    %106 = arith.mulf %105, %104 : vector<64x8xf32>
    %107 = arith.addf %103, %106 : vector<64x8xf32>
    %c0_73 = arith.constant 0 : index
    %c80_74 = arith.constant 80 : index
    %108 = vector.load %arg3[%c0_73, %c80_74] : memref<64x240xf32, #tpu.memory_space<vmem>>, vector<64x8xf32>
    %109 = vector.broadcast %22 : vector<64x1xf32> to vector<64x8xf32>
    %110 = arith.mulf %109, %108 : vector<64x8xf32>
    %111 = arith.addf %107, %110 : vector<64x8xf32>
    %c0_75 = arith.constant 0 : index
    %c88_76 = arith.constant 88 : index
    %112 = vector.load %arg3[%c0_75, %c88_76] : memref<64x240xf32, #tpu.memory_space<vmem>>, vector<64x8xf32>
    %113 = vector.broadcast %23 : vector<64x1xf32> to vector<64x8xf32>
    %114 = arith.mulf %113, %112 : vector<64x8xf32>
    %115 = arith.addf %111, %114 : vector<64x8xf32>
    %116 = vector.broadcast %0 : vector<64x1xf32> to vector<64x8xf32>
    %117 = arith.mulf %116, %70 : vector<64x8xf32>
    %118 = vector.broadcast %1 : vector<64x1xf32> to vector<64x8xf32>
    %119 = arith.mulf %118, %85 : vector<64x8xf32>
    %120 = vector.broadcast %2 : vector<64x1xf32> to vector<64x8xf32>
    %121 = arith.mulf %120, %100 : vector<64x8xf32>
    %122 = arith.addf %119, %121 : vector<64x8xf32>
    %123 = vector.broadcast %3 : vector<64x1xf32> to vector<64x8xf32>
    %124 = arith.mulf %123, %115 : vector<64x8xf32>
    %125 = arith.addf %122, %124 : vector<64x8xf32>
    %cst = arith.constant 0.577350259 : f32
    %126 = vector.broadcast %cst : f32 to vector<64x8xf32>
    %127 = arith.mulf %125, %126 : vector<64x8xf32>
    %128 = arith.addf %117, %127 : vector<64x8xf32>
    %cst_77 = arith.constant 0.288675129 : f32
    %129 = vector.broadcast %cst_77 : f32 to vector<64x8xf32>
    %130 = arith.mulf %128, %129 : vector<64x8xf32>
    %c0_78 = arith.constant 0 : index
    %c96 = arith.constant 96 : index
    %131 = vector.load %arg3[%c0_78, %c96] : memref<64x240xf32, #tpu.memory_space<vmem>>, vector<64x4xf32>
    %132 = vector.broadcast %4 : vector<64x1xf32> to vector<64x4xf32>
    %133 = arith.mulf %132, %131 : vector<64x4xf32>
    %c0_79 = arith.constant 0 : index
    %c100 = arith.constant 100 : index
    %134 = vector.load %arg3[%c0_79, %c100] : memref<64x240xf32, #tpu.memory_space<vmem>>, vector<64x4xf32>
    %135 = vector.broadcast %5 : vector<64x1xf32> to vector<64x4xf32>
    %136 = arith.mulf %135, %134 : vector<64x4xf32>
    %137 = arith.addf %133, %136 : vector<64x4xf32>
    %c0_80 = arith.constant 0 : index
    %c104 = arith.constant 104 : index
    %138 = vector.load %arg3[%c0_80, %c104] : memref<64x240xf32, #tpu.memory_space<vmem>>, vector<64x4xf32>
    %139 = vector.broadcast %6 : vector<64x1xf32> to vector<64x4xf32>
    %140 = arith.mulf %139, %138 : vector<64x4xf32>
    %141 = arith.addf %137, %140 : vector<64x4xf32>
    %c0_81 = arith.constant 0 : index
    %c108 = arith.constant 108 : index
    %142 = vector.load %arg3[%c0_81, %c108] : memref<64x240xf32, #tpu.memory_space<vmem>>, vector<64x4xf32>
    %143 = vector.broadcast %7 : vector<64x1xf32> to vector<64x4xf32>
    %144 = arith.mulf %143, %142 : vector<64x4xf32>
    %145 = arith.addf %141, %144 : vector<64x4xf32>
    %c0_82 = arith.constant 0 : index
    %c112 = arith.constant 112 : index
    %146 = vector.load %arg3[%c0_82, %c112] : memref<64x240xf32, #tpu.memory_space<vmem>>, vector<64x4xf32>
    %147 = vector.broadcast %8 : vector<64x1xf32> to vector<64x4xf32>
    %148 = arith.mulf %147, %146 : vector<64x4xf32>
    %149 = arith.addf %145, %148 : vector<64x4xf32>
    %c0_83 = arith.constant 0 : index
    %c116 = arith.constant 116 : index
    %150 = vector.load %arg3[%c0_83, %c116] : memref<64x240xf32, #tpu.memory_space<vmem>>, vector<64x4xf32>
    %151 = vector.broadcast %9 : vector<64x1xf32> to vector<64x4xf32>
    %152 = arith.mulf %151, %150 : vector<64x4xf32>
    %153 = arith.addf %149, %152 : vector<64x4xf32>
    %c0_84 = arith.constant 0 : index
    %c120 = arith.constant 120 : index
    %154 = vector.load %arg3[%c0_84, %c120] : memref<64x240xf32, #tpu.memory_space<vmem>>, vector<64x4xf32>
    %155 = vector.broadcast %10 : vector<64x1xf32> to vector<64x4xf32>
    %156 = arith.mulf %155, %154 : vector<64x4xf32>
    %157 = arith.addf %153, %156 : vector<64x4xf32>
    %c0_85 = arith.constant 0 : index
    %c124 = arith.constant 124 : index
    %158 = vector.load %arg3[%c0_85, %c124] : memref<64x240xf32, #tpu.memory_space<vmem>>, vector<64x4xf32>
    %159 = vector.broadcast %11 : vector<64x1xf32> to vector<64x4xf32>
    %160 = arith.mulf %159, %158 : vector<64x4xf32>
    %161 = arith.addf %157, %160 : vector<64x4xf32>
    %c0_86 = arith.constant 0 : index
    %c128 = arith.constant 128 : index
    %162 = vector.load %arg3[%c0_86, %c128] : memref<64x240xf32, #tpu.memory_space<vmem>>, vector<64x4xf32>
    %163 = vector.broadcast %12 : vector<64x1xf32> to vector<64x4xf32>
    %164 = arith.mulf %163, %162 : vector<64x4xf32>
    %c0_87 = arith.constant 0 : index
    %c132 = arith.constant 132 : index
    %165 = vector.load %arg3[%c0_87, %c132] : memref<64x240xf32, #tpu.memory_space<vmem>>, vector<64x4xf32>
    %166 = vector.broadcast %13 : vector<64x1xf32> to vector<64x4xf32>
    %167 = arith.mulf %166, %165 : vector<64x4xf32>
    %168 = arith.addf %164, %167 : vector<64x4xf32>
    %c0_88 = arith.constant 0 : index
    %c136 = arith.constant 136 : index
    %169 = vector.load %arg3[%c0_88, %c136] : memref<64x240xf32, #tpu.memory_space<vmem>>, vector<64x4xf32>
    %170 = vector.broadcast %14 : vector<64x1xf32> to vector<64x4xf32>
    %171 = arith.mulf %170, %169 : vector<64x4xf32>
    %172 = arith.addf %168, %171 : vector<64x4xf32>
    %c0_89 = arith.constant 0 : index
    %c140 = arith.constant 140 : index
    %173 = vector.load %arg3[%c0_89, %c140] : memref<64x240xf32, #tpu.memory_space<vmem>>, vector<64x4xf32>
    %174 = vector.broadcast %15 : vector<64x1xf32> to vector<64x4xf32>
    %175 = arith.mulf %174, %173 : vector<64x4xf32>
    %176 = arith.addf %172, %175 : vector<64x4xf32>
    %c0_90 = arith.constant 0 : index
    %c128_91 = arith.constant 128 : index
    %177 = vector.load %arg3[%c0_90, %c128_91] : memref<64x240xf32, #tpu.memory_space<vmem>>, vector<64x4xf32>
    %178 = vector.broadcast %16 : vector<64x1xf32> to vector<64x4xf32>
    %179 = arith.mulf %178, %177 : vector<64x4xf32>
    %c0_92 = arith.constant 0 : index
    %c132_93 = arith.constant 132 : index
    %180 = vector.load %arg3[%c0_92, %c132_93] : memref<64x240xf32, #tpu.memory_space<vmem>>, vector<64x4xf32>
    %181 = vector.broadcast %17 : vector<64x1xf32> to vector<64x4xf32>
    %182 = arith.mulf %181, %180 : vector<64x4xf32>
    %183 = arith.addf %179, %182 : vector<64x4xf32>
    %c0_94 = arith.constant 0 : index
    %c136_95 = arith.constant 136 : index
    %184 = vector.load %arg3[%c0_94, %c136_95] : memref<64x240xf32, #tpu.memory_space<vmem>>, vector<64x4xf32>
    %185 = vector.broadcast %18 : vector<64x1xf32> to vector<64x4xf32>
    %186 = arith.mulf %185, %184 : vector<64x4xf32>
    %187 = arith.addf %183, %186 : vector<64x4xf32>
    %c0_96 = arith.constant 0 : index
    %c140_97 = arith.constant 140 : index
    %188 = vector.load %arg3[%c0_96, %c140_97] : memref<64x240xf32, #tpu.memory_space<vmem>>, vector<64x4xf32>
    %189 = vector.broadcast %19 : vector<64x1xf32> to vector<64x4xf32>
    %190 = arith.mulf %189, %188 : vector<64x4xf32>
    %191 = arith.addf %187, %190 : vector<64x4xf32>
    %c0_98 = arith.constant 0 : index
    %c128_99 = arith.constant 128 : index
    %192 = vector.load %arg3[%c0_98, %c128_99] : memref<64x240xf32, #tpu.memory_space<vmem>>, vector<64x4xf32>
    %193 = vector.broadcast %20 : vector<64x1xf32> to vector<64x4xf32>
    %194 = arith.mulf %193, %192 : vector<64x4xf32>
    %c0_100 = arith.constant 0 : index
    %c132_101 = arith.constant 132 : index
    %195 = vector.load %arg3[%c0_100, %c132_101] : memref<64x240xf32, #tpu.memory_space<vmem>>, vector<64x4xf32>
    %196 = vector.broadcast %21 : vector<64x1xf32> to vector<64x4xf32>
    %197 = arith.mulf %196, %195 : vector<64x4xf32>
    %198 = arith.addf %194, %197 : vector<64x4xf32>
    %c0_102 = arith.constant 0 : index
    %c136_103 = arith.constant 136 : index
    %199 = vector.load %arg3[%c0_102, %c136_103] : memref<64x240xf32, #tpu.memory_space<vmem>>, vector<64x4xf32>
    %200 = vector.broadcast %22 : vector<64x1xf32> to vector<64x4xf32>
    %201 = arith.mulf %200, %199 : vector<64x4xf32>
    %202 = arith.addf %198, %201 : vector<64x4xf32>
    %c0_104 = arith.constant 0 : index
    %c140_105 = arith.constant 140 : index
    %203 = vector.load %arg3[%c0_104, %c140_105] : memref<64x240xf32, #tpu.memory_space<vmem>>, vector<64x4xf32>
    %204 = vector.broadcast %23 : vector<64x1xf32> to vector<64x4xf32>
    %205 = arith.mulf %204, %203 : vector<64x4xf32>
    %206 = arith.addf %202, %205 : vector<64x4xf32>
    %c0_106 = arith.constant 0 : index
    %c144 = arith.constant 144 : index
    %207 = vector.load %arg3[%c0_106, %c144] : memref<64x240xf32, #tpu.memory_space<vmem>>, vector<64x4xf32>
    %208 = vector.broadcast %24 : vector<64x1xf32> to vector<64x4xf32>
    %209 = arith.mulf %208, %207 : vector<64x4xf32>
    %c0_107 = arith.constant 0 : index
    %c148 = arith.constant 148 : index
    %210 = vector.load %arg3[%c0_107, %c148] : memref<64x240xf32, #tpu.memory_space<vmem>>, vector<64x4xf32>
    %211 = vector.broadcast %25 : vector<64x1xf32> to vector<64x4xf32>
    %212 = arith.mulf %211, %210 : vector<64x4xf32>
    %213 = arith.addf %209, %212 : vector<64x4xf32>
    %c0_108 = arith.constant 0 : index
    %c152 = arith.constant 152 : index
    %214 = vector.load %arg3[%c0_108, %c152] : memref<64x240xf32, #tpu.memory_space<vmem>>, vector<64x4xf32>
    %215 = vector.broadcast %26 : vector<64x1xf32> to vector<64x4xf32>
    %216 = arith.mulf %215, %214 : vector<64x4xf32>
    %217 = arith.addf %213, %216 : vector<64x4xf32>
    %c0_109 = arith.constant 0 : index
    %c156 = arith.constant 156 : index
    %218 = vector.load %arg3[%c0_109, %c156] : memref<64x240xf32, #tpu.memory_space<vmem>>, vector<64x4xf32>
    %219 = vector.broadcast %27 : vector<64x1xf32> to vector<64x4xf32>
    %220 = arith.mulf %219, %218 : vector<64x4xf32>
    %221 = arith.addf %217, %220 : vector<64x4xf32>
    %c0_110 = arith.constant 0 : index
    %c144_111 = arith.constant 144 : index
    %222 = vector.load %arg3[%c0_110, %c144_111] : memref<64x240xf32, #tpu.memory_space<vmem>>, vector<64x4xf32>
    %223 = vector.broadcast %28 : vector<64x1xf32> to vector<64x4xf32>
    %224 = arith.mulf %223, %222 : vector<64x4xf32>
    %c0_112 = arith.constant 0 : index
    %c148_113 = arith.constant 148 : index
    %225 = vector.load %arg3[%c0_112, %c148_113] : memref<64x240xf32, #tpu.memory_space<vmem>>, vector<64x4xf32>
    %226 = vector.broadcast %29 : vector<64x1xf32> to vector<64x4xf32>
    %227 = arith.mulf %226, %225 : vector<64x4xf32>
    %228 = arith.addf %224, %227 : vector<64x4xf32>
    %c0_114 = arith.constant 0 : index
    %c152_115 = arith.constant 152 : index
    %229 = vector.load %arg3[%c0_114, %c152_115] : memref<64x240xf32, #tpu.memory_space<vmem>>, vector<64x4xf32>
    %230 = vector.broadcast %30 : vector<64x1xf32> to vector<64x4xf32>
    %231 = arith.mulf %230, %229 : vector<64x4xf32>
    %232 = arith.addf %228, %231 : vector<64x4xf32>
    %c0_116 = arith.constant 0 : index
    %c156_117 = arith.constant 156 : index
    %233 = vector.load %arg3[%c0_116, %c156_117] : memref<64x240xf32, #tpu.memory_space<vmem>>, vector<64x4xf32>
    %234 = vector.broadcast %31 : vector<64x1xf32> to vector<64x4xf32>
    %235 = arith.mulf %234, %233 : vector<64x4xf32>
    %236 = arith.addf %232, %235 : vector<64x4xf32>
    %c0_118 = arith.constant 0 : index
    %c144_119 = arith.constant 144 : index
    %237 = vector.load %arg3[%c0_118, %c144_119] : memref<64x240xf32, #tpu.memory_space<vmem>>, vector<64x4xf32>
    %238 = vector.broadcast %32 : vector<64x1xf32> to vector<64x4xf32>
    %239 = arith.mulf %238, %237 : vector<64x4xf32>
    %c0_120 = arith.constant 0 : index
    %c148_121 = arith.constant 148 : index
    %240 = vector.load %arg3[%c0_120, %c148_121] : memref<64x240xf32, #tpu.memory_space<vmem>>, vector<64x4xf32>
    %241 = vector.broadcast %33 : vector<64x1xf32> to vector<64x4xf32>
    %242 = arith.mulf %241, %240 : vector<64x4xf32>
    %243 = arith.addf %239, %242 : vector<64x4xf32>
    %c0_122 = arith.constant 0 : index
    %c152_123 = arith.constant 152 : index
    %244 = vector.load %arg3[%c0_122, %c152_123] : memref<64x240xf32, #tpu.memory_space<vmem>>, vector<64x4xf32>
    %245 = vector.broadcast %34 : vector<64x1xf32> to vector<64x4xf32>
    %246 = arith.mulf %245, %244 : vector<64x4xf32>
    %247 = arith.addf %243, %246 : vector<64x4xf32>
    %c0_124 = arith.constant 0 : index
    %c156_125 = arith.constant 156 : index
    %248 = vector.load %arg3[%c0_124, %c156_125] : memref<64x240xf32, #tpu.memory_space<vmem>>, vector<64x4xf32>
    %249 = vector.broadcast %35 : vector<64x1xf32> to vector<64x4xf32>
    %250 = arith.mulf %249, %248 : vector<64x4xf32>
    %251 = arith.addf %247, %250 : vector<64x4xf32>
    %252 = vector.broadcast %1 : vector<64x1xf32> to vector<64x4xf32>
    %253 = arith.mulf %252, %161 : vector<64x4xf32>
    %254 = vector.broadcast %0 : vector<64x1xf32> to vector<64x4xf32>
    %255 = arith.mulf %254, %176 : vector<64x4xf32>
    %256 = arith.addf %253, %255 : vector<64x4xf32>
    %257 = vector.broadcast %3 : vector<64x1xf32> to vector<64x4xf32>
    %258 = arith.mulf %257, %236 : vector<64x4xf32>
    %259 = vector.broadcast %2 : vector<64x1xf32> to vector<64x4xf32>
    %260 = arith.mulf %259, %251 : vector<64x4xf32>
    %261 = arith.subf %258, %260 : vector<64x4xf32>
    %cst_126 = arith.constant 0.707106769 : f32
    %262 = vector.broadcast %cst_126 : f32 to vector<64x4xf32>
    %263 = arith.mulf %261, %262 : vector<64x4xf32>
    %264 = arith.addf %256, %263 : vector<64x4xf32>
    %cst_127 = arith.constant 2.500000e-01 : f32
    %265 = vector.broadcast %cst_127 : f32 to vector<64x4xf32>
    %266 = arith.mulf %264, %265 : vector<64x4xf32>
    %267 = vector.broadcast %2 : vector<64x1xf32> to vector<64x4xf32>
    %268 = arith.mulf %267, %161 : vector<64x4xf32>
    %269 = vector.broadcast %0 : vector<64x1xf32> to vector<64x4xf32>
    %270 = arith.mulf %269, %191 : vector<64x4xf32>
    %271 = arith.addf %268, %270 : vector<64x4xf32>
    %272 = vector.broadcast %1 : vector<64x1xf32> to vector<64x4xf32>
    %273 = arith.mulf %272, %251 : vector<64x4xf32>
    %274 = vector.broadcast %3 : vector<64x1xf32> to vector<64x4xf32>
    %275 = arith.mulf %274, %221 : vector<64x4xf32>
    %276 = arith.subf %273, %275 : vector<64x4xf32>
    %cst_128 = arith.constant 0.707106769 : f32
    %277 = vector.broadcast %cst_128 : f32 to vector<64x4xf32>
    %278 = arith.mulf %276, %277 : vector<64x4xf32>
    %279 = arith.addf %271, %278 : vector<64x4xf32>
    %cst_129 = arith.constant 2.500000e-01 : f32
    %280 = vector.broadcast %cst_129 : f32 to vector<64x4xf32>
    %281 = arith.mulf %279, %280 : vector<64x4xf32>
    %282 = vector.broadcast %3 : vector<64x1xf32> to vector<64x4xf32>
    %283 = arith.mulf %282, %161 : vector<64x4xf32>
    %284 = vector.broadcast %0 : vector<64x1xf32> to vector<64x4xf32>
    %285 = arith.mulf %284, %206 : vector<64x4xf32>
    %286 = arith.addf %283, %285 : vector<64x4xf32>
    %287 = vector.broadcast %2 : vector<64x1xf32> to vector<64x4xf32>
    %288 = arith.mulf %287, %221 : vector<64x4xf32>
    %289 = vector.broadcast %1 : vector<64x1xf32> to vector<64x4xf32>
    %290 = arith.mulf %289, %236 : vector<64x4xf32>
    %291 = arith.subf %288, %290 : vector<64x4xf32>
    %cst_130 = arith.constant 0.707106769 : f32
    %292 = vector.broadcast %cst_130 : f32 to vector<64x4xf32>
    %293 = arith.mulf %291, %292 : vector<64x4xf32>
    %294 = arith.addf %286, %293 : vector<64x4xf32>
    %cst_131 = arith.constant 2.500000e-01 : f32
    %295 = vector.broadcast %cst_131 : f32 to vector<64x4xf32>
    %296 = arith.mulf %294, %295 : vector<64x4xf32>
    %c0_132 = arith.constant 0 : index
    %c160 = arith.constant 160 : index
    %297 = vector.load %arg3[%c0_132, %c160] : memref<64x240xf32, #tpu.memory_space<vmem>>, vector<64x4xf32>
    %298 = vector.broadcast %12 : vector<64x1xf32> to vector<64x4xf32>
    %299 = arith.mulf %298, %297 : vector<64x4xf32>
    %c0_133 = arith.constant 0 : index
    %c164 = arith.constant 164 : index
    %300 = vector.load %arg3[%c0_133, %c164] : memref<64x240xf32, #tpu.memory_space<vmem>>, vector<64x4xf32>
    %301 = vector.broadcast %13 : vector<64x1xf32> to vector<64x4xf32>
    %302 = arith.mulf %301, %300 : vector<64x4xf32>
    %303 = arith.addf %299, %302 : vector<64x4xf32>
    %c0_134 = arith.constant 0 : index
    %c168 = arith.constant 168 : index
    %304 = vector.load %arg3[%c0_134, %c168] : memref<64x240xf32, #tpu.memory_space<vmem>>, vector<64x4xf32>
    %305 = vector.broadcast %14 : vector<64x1xf32> to vector<64x4xf32>
    %306 = arith.mulf %305, %304 : vector<64x4xf32>
    %307 = arith.addf %303, %306 : vector<64x4xf32>
    %c0_135 = arith.constant 0 : index
    %c172 = arith.constant 172 : index
    %308 = vector.load %arg3[%c0_135, %c172] : memref<64x240xf32, #tpu.memory_space<vmem>>, vector<64x4xf32>
    %309 = vector.broadcast %15 : vector<64x1xf32> to vector<64x4xf32>
    %310 = arith.mulf %309, %308 : vector<64x4xf32>
    %311 = arith.addf %307, %310 : vector<64x4xf32>
    %c0_136 = arith.constant 0 : index
    %c160_137 = arith.constant 160 : index
    %312 = vector.load %arg3[%c0_136, %c160_137] : memref<64x240xf32, #tpu.memory_space<vmem>>, vector<64x4xf32>
    %313 = vector.broadcast %16 : vector<64x1xf32> to vector<64x4xf32>
    %314 = arith.mulf %313, %312 : vector<64x4xf32>
    %c0_138 = arith.constant 0 : index
    %c164_139 = arith.constant 164 : index
    %315 = vector.load %arg3[%c0_138, %c164_139] : memref<64x240xf32, #tpu.memory_space<vmem>>, vector<64x4xf32>
    %316 = vector.broadcast %17 : vector<64x1xf32> to vector<64x4xf32>
    %317 = arith.mulf %316, %315 : vector<64x4xf32>
    %318 = arith.addf %314, %317 : vector<64x4xf32>
    %c0_140 = arith.constant 0 : index
    %c168_141 = arith.constant 168 : index
    %319 = vector.load %arg3[%c0_140, %c168_141] : memref<64x240xf32, #tpu.memory_space<vmem>>, vector<64x4xf32>
    %320 = vector.broadcast %18 : vector<64x1xf32> to vector<64x4xf32>
    %321 = arith.mulf %320, %319 : vector<64x4xf32>
    %322 = arith.addf %318, %321 : vector<64x4xf32>
    %c0_142 = arith.constant 0 : index
    %c172_143 = arith.constant 172 : index
    %323 = vector.load %arg3[%c0_142, %c172_143] : memref<64x240xf32, #tpu.memory_space<vmem>>, vector<64x4xf32>
    %324 = vector.broadcast %19 : vector<64x1xf32> to vector<64x4xf32>
    %325 = arith.mulf %324, %323 : vector<64x4xf32>
    %326 = arith.addf %322, %325 : vector<64x4xf32>
    %c0_144 = arith.constant 0 : index
    %c160_145 = arith.constant 160 : index
    %327 = vector.load %arg3[%c0_144, %c160_145] : memref<64x240xf32, #tpu.memory_space<vmem>>, vector<64x4xf32>
    %328 = vector.broadcast %20 : vector<64x1xf32> to vector<64x4xf32>
    %329 = arith.mulf %328, %327 : vector<64x4xf32>
    %c0_146 = arith.constant 0 : index
    %c164_147 = arith.constant 164 : index
    %330 = vector.load %arg3[%c0_146, %c164_147] : memref<64x240xf32, #tpu.memory_space<vmem>>, vector<64x4xf32>
    %331 = vector.broadcast %21 : vector<64x1xf32> to vector<64x4xf32>
    %332 = arith.mulf %331, %330 : vector<64x4xf32>
    %333 = arith.addf %329, %332 : vector<64x4xf32>
    %c0_148 = arith.constant 0 : index
    %c168_149 = arith.constant 168 : index
    %334 = vector.load %arg3[%c0_148, %c168_149] : memref<64x240xf32, #tpu.memory_space<vmem>>, vector<64x4xf32>
    %335 = vector.broadcast %22 : vector<64x1xf32> to vector<64x4xf32>
    %336 = arith.mulf %335, %334 : vector<64x4xf32>
    %337 = arith.addf %333, %336 : vector<64x4xf32>
    %c0_150 = arith.constant 0 : index
    %c172_151 = arith.constant 172 : index
    %338 = vector.load %arg3[%c0_150, %c172_151] : memref<64x240xf32, #tpu.memory_space<vmem>>, vector<64x4xf32>
    %339 = vector.broadcast %23 : vector<64x1xf32> to vector<64x4xf32>
    %340 = arith.mulf %339, %338 : vector<64x4xf32>
    %341 = arith.addf %337, %340 : vector<64x4xf32>
    %c0_152 = arith.constant 0 : index
    %c176 = arith.constant 176 : index
    %342 = vector.load %arg3[%c0_152, %c176] : memref<64x240xf32, #tpu.memory_space<vmem>>, vector<64x4xf32>
    %343 = vector.broadcast %24 : vector<64x1xf32> to vector<64x4xf32>
    %344 = arith.mulf %343, %342 : vector<64x4xf32>
    %c0_153 = arith.constant 0 : index
    %c180 = arith.constant 180 : index
    %345 = vector.load %arg3[%c0_153, %c180] : memref<64x240xf32, #tpu.memory_space<vmem>>, vector<64x4xf32>
    %346 = vector.broadcast %25 : vector<64x1xf32> to vector<64x4xf32>
    %347 = arith.mulf %346, %345 : vector<64x4xf32>
    %348 = arith.addf %344, %347 : vector<64x4xf32>
    %c0_154 = arith.constant 0 : index
    %c184 = arith.constant 184 : index
    %349 = vector.load %arg3[%c0_154, %c184] : memref<64x240xf32, #tpu.memory_space<vmem>>, vector<64x4xf32>
    %350 = vector.broadcast %26 : vector<64x1xf32> to vector<64x4xf32>
    %351 = arith.mulf %350, %349 : vector<64x4xf32>
    %352 = arith.addf %348, %351 : vector<64x4xf32>
    %c0_155 = arith.constant 0 : index
    %c188 = arith.constant 188 : index
    %353 = vector.load %arg3[%c0_155, %c188] : memref<64x240xf32, #tpu.memory_space<vmem>>, vector<64x4xf32>
    %354 = vector.broadcast %27 : vector<64x1xf32> to vector<64x4xf32>
    %355 = arith.mulf %354, %353 : vector<64x4xf32>
    %356 = arith.addf %352, %355 : vector<64x4xf32>
    %c0_156 = arith.constant 0 : index
    %c176_157 = arith.constant 176 : index
    %357 = vector.load %arg3[%c0_156, %c176_157] : memref<64x240xf32, #tpu.memory_space<vmem>>, vector<64x4xf32>
    %358 = vector.broadcast %28 : vector<64x1xf32> to vector<64x4xf32>
    %359 = arith.mulf %358, %357 : vector<64x4xf32>
    %c0_158 = arith.constant 0 : index
    %c180_159 = arith.constant 180 : index
    %360 = vector.load %arg3[%c0_158, %c180_159] : memref<64x240xf32, #tpu.memory_space<vmem>>, vector<64x4xf32>
    %361 = vector.broadcast %29 : vector<64x1xf32> to vector<64x4xf32>
    %362 = arith.mulf %361, %360 : vector<64x4xf32>
    %363 = arith.addf %359, %362 : vector<64x4xf32>
    %c0_160 = arith.constant 0 : index
    %c184_161 = arith.constant 184 : index
    %364 = vector.load %arg3[%c0_160, %c184_161] : memref<64x240xf32, #tpu.memory_space<vmem>>, vector<64x4xf32>
    %365 = vector.broadcast %30 : vector<64x1xf32> to vector<64x4xf32>
    %366 = arith.mulf %365, %364 : vector<64x4xf32>
    %367 = arith.addf %363, %366 : vector<64x4xf32>
    %c0_162 = arith.constant 0 : index
    %c188_163 = arith.constant 188 : index
    %368 = vector.load %arg3[%c0_162, %c188_163] : memref<64x240xf32, #tpu.memory_space<vmem>>, vector<64x4xf32>
    %369 = vector.broadcast %31 : vector<64x1xf32> to vector<64x4xf32>
    %370 = arith.mulf %369, %368 : vector<64x4xf32>
    %371 = arith.addf %367, %370 : vector<64x4xf32>
    %c0_164 = arith.constant 0 : index
    %c176_165 = arith.constant 176 : index
    %372 = vector.load %arg3[%c0_164, %c176_165] : memref<64x240xf32, #tpu.memory_space<vmem>>, vector<64x4xf32>
    %373 = vector.broadcast %32 : vector<64x1xf32> to vector<64x4xf32>
    %374 = arith.mulf %373, %372 : vector<64x4xf32>
    %c0_166 = arith.constant 0 : index
    %c180_167 = arith.constant 180 : index
    %375 = vector.load %arg3[%c0_166, %c180_167] : memref<64x240xf32, #tpu.memory_space<vmem>>, vector<64x4xf32>
    %376 = vector.broadcast %33 : vector<64x1xf32> to vector<64x4xf32>
    %377 = arith.mulf %376, %375 : vector<64x4xf32>
    %378 = arith.addf %374, %377 : vector<64x4xf32>
    %c0_168 = arith.constant 0 : index
    %c184_169 = arith.constant 184 : index
    %379 = vector.load %arg3[%c0_168, %c184_169] : memref<64x240xf32, #tpu.memory_space<vmem>>, vector<64x4xf32>
    %380 = vector.broadcast %34 : vector<64x1xf32> to vector<64x4xf32>
    %381 = arith.mulf %380, %379 : vector<64x4xf32>
    %382 = arith.addf %378, %381 : vector<64x4xf32>
    %c0_170 = arith.constant 0 : index
    %c188_171 = arith.constant 188 : index
    %383 = vector.load %arg3[%c0_170, %c188_171] : memref<64x240xf32, #tpu.memory_space<vmem>>, vector<64x4xf32>
    %384 = vector.broadcast %35 : vector<64x1xf32> to vector<64x4xf32>
    %385 = arith.mulf %384, %383 : vector<64x4xf32>
    %386 = arith.addf %382, %385 : vector<64x4xf32>
    %c0_172 = arith.constant 0 : index
    %c192 = arith.constant 192 : index
    %387 = vector.load %arg3[%c0_172, %c192] : memref<64x240xf32, #tpu.memory_space<vmem>>, vector<64x4xf32>
    %388 = vector.broadcast %36 : vector<64x1xf32> to vector<64x4xf32>
    %389 = arith.mulf %388, %387 : vector<64x4xf32>
    %c0_173 = arith.constant 0 : index
    %c196 = arith.constant 196 : index
    %390 = vector.load %arg3[%c0_173, %c196] : memref<64x240xf32, #tpu.memory_space<vmem>>, vector<64x4xf32>
    %391 = vector.broadcast %37 : vector<64x1xf32> to vector<64x4xf32>
    %392 = arith.mulf %391, %390 : vector<64x4xf32>
    %393 = arith.addf %389, %392 : vector<64x4xf32>
    %c0_174 = arith.constant 0 : index
    %c200 = arith.constant 200 : index
    %394 = vector.load %arg3[%c0_174, %c200] : memref<64x240xf32, #tpu.memory_space<vmem>>, vector<64x4xf32>
    %395 = vector.broadcast %38 : vector<64x1xf32> to vector<64x4xf32>
    %396 = arith.mulf %395, %394 : vector<64x4xf32>
    %397 = arith.addf %393, %396 : vector<64x4xf32>
    %c0_175 = arith.constant 0 : index
    %c204 = arith.constant 204 : index
    %398 = vector.load %arg3[%c0_175, %c204] : memref<64x240xf32, #tpu.memory_space<vmem>>, vector<64x4xf32>
    %399 = vector.broadcast %39 : vector<64x1xf32> to vector<64x4xf32>
    %400 = arith.mulf %399, %398 : vector<64x4xf32>
    %401 = arith.addf %397, %400 : vector<64x4xf32>
    %402 = vector.broadcast %3 : vector<64x1xf32> to vector<64x4xf32>
    %403 = arith.mulf %402, %326 : vector<64x4xf32>
    %404 = vector.broadcast %2 : vector<64x1xf32> to vector<64x4xf32>
    %405 = arith.mulf %404, %341 : vector<64x4xf32>
    %406 = arith.subf %403, %405 : vector<64x4xf32>
    %cst_176 = arith.constant 0.707106769 : f32
    %407 = vector.broadcast %cst_176 : f32 to vector<64x4xf32>
    %408 = arith.mulf %406, %407 : vector<64x4xf32>
    %409 = vector.broadcast %0 : vector<64x1xf32> to vector<64x4xf32>
    %410 = arith.mulf %409, %356 : vector<64x4xf32>
    %411 = arith.addf %408, %410 : vector<64x4xf32>
    %412 = vector.broadcast %1 : vector<64x1xf32> to vector<64x4xf32>
    %413 = arith.mulf %412, %401 : vector<64x4xf32>
    %414 = arith.addf %411, %413 : vector<64x4xf32>
    %cst_177 = arith.constant 0.288675129 : f32
    %415 = vector.broadcast %cst_177 : f32 to vector<64x4xf32>
    %416 = arith.mulf %414, %415 : vector<64x4xf32>
    %417 = vector.broadcast %1 : vector<64x1xf32> to vector<64x4xf32>
    %418 = arith.mulf %417, %341 : vector<64x4xf32>
    %419 = vector.broadcast %3 : vector<64x1xf32> to vector<64x4xf32>
    %420 = arith.mulf %419, %311 : vector<64x4xf32>
    %421 = arith.subf %418, %420 : vector<64x4xf32>
    %cst_178 = arith.constant 0.707106769 : f32
    %422 = vector.broadcast %cst_178 : f32 to vector<64x4xf32>
    %423 = arith.mulf %421, %422 : vector<64x4xf32>
    %424 = vector.broadcast %0 : vector<64x1xf32> to vector<64x4xf32>
    %425 = arith.mulf %424, %371 : vector<64x4xf32>
    %426 = arith.addf %423, %425 : vector<64x4xf32>
    %427 = vector.broadcast %2 : vector<64x1xf32> to vector<64x4xf32>
    %428 = arith.mulf %427, %401 : vector<64x4xf32>
    %429 = arith.addf %426, %428 : vector<64x4xf32>
    %cst_179 = arith.constant 0.288675129 : f32
    %430 = vector.broadcast %cst_179 : f32 to vector<64x4xf32>
    %431 = arith.mulf %429, %430 : vector<64x4xf32>
    %432 = vector.broadcast %2 : vector<64x1xf32> to vector<64x4xf32>
    %433 = arith.mulf %432, %311 : vector<64x4xf32>
    %434 = vector.broadcast %1 : vector<64x1xf32> to vector<64x4xf32>
    %435 = arith.mulf %434, %326 : vector<64x4xf32>
    %436 = arith.subf %433, %435 : vector<64x4xf32>
    %cst_180 = arith.constant 0.707106769 : f32
    %437 = vector.broadcast %cst_180 : f32 to vector<64x4xf32>
    %438 = arith.mulf %436, %437 : vector<64x4xf32>
    %439 = vector.broadcast %0 : vector<64x1xf32> to vector<64x4xf32>
    %440 = arith.mulf %439, %386 : vector<64x4xf32>
    %441 = arith.addf %438, %440 : vector<64x4xf32>
    %442 = vector.broadcast %3 : vector<64x1xf32> to vector<64x4xf32>
    %443 = arith.mulf %442, %401 : vector<64x4xf32>
    %444 = arith.addf %441, %443 : vector<64x4xf32>
    %cst_181 = arith.constant 0.288675129 : f32
    %445 = vector.broadcast %cst_181 : f32 to vector<64x4xf32>
    %446 = arith.mulf %444, %445 : vector<64x4xf32>
    %c0_182 = arith.constant 0 : index
    %c208 = arith.constant 208 : index
    %447 = vector.load %arg3[%c0_182, %c208] : memref<64x240xf32, #tpu.memory_space<vmem>>, vector<64x4xf32>
    %448 = vector.broadcast %24 : vector<64x1xf32> to vector<64x4xf32>
    %449 = arith.mulf %448, %447 : vector<64x4xf32>
    %c0_183 = arith.constant 0 : index
    %c212 = arith.constant 212 : index
    %450 = vector.load %arg3[%c0_183, %c212] : memref<64x240xf32, #tpu.memory_space<vmem>>, vector<64x4xf32>
    %451 = vector.broadcast %25 : vector<64x1xf32> to vector<64x4xf32>
    %452 = arith.mulf %451, %450 : vector<64x4xf32>
    %453 = arith.addf %449, %452 : vector<64x4xf32>
    %c0_184 = arith.constant 0 : index
    %c216 = arith.constant 216 : index
    %454 = vector.load %arg3[%c0_184, %c216] : memref<64x240xf32, #tpu.memory_space<vmem>>, vector<64x4xf32>
    %455 = vector.broadcast %26 : vector<64x1xf32> to vector<64x4xf32>
    %456 = arith.mulf %455, %454 : vector<64x4xf32>
    %457 = arith.addf %453, %456 : vector<64x4xf32>
    %c0_185 = arith.constant 0 : index
    %c220 = arith.constant 220 : index
    %458 = vector.load %arg3[%c0_185, %c220] : memref<64x240xf32, #tpu.memory_space<vmem>>, vector<64x4xf32>
    %459 = vector.broadcast %27 : vector<64x1xf32> to vector<64x4xf32>
    %460 = arith.mulf %459, %458 : vector<64x4xf32>
    %461 = arith.addf %457, %460 : vector<64x4xf32>
    %c0_186 = arith.constant 0 : index
    %c208_187 = arith.constant 208 : index
    %462 = vector.load %arg3[%c0_186, %c208_187] : memref<64x240xf32, #tpu.memory_space<vmem>>, vector<64x4xf32>
    %463 = vector.broadcast %28 : vector<64x1xf32> to vector<64x4xf32>
    %464 = arith.mulf %463, %462 : vector<64x4xf32>
    %c0_188 = arith.constant 0 : index
    %c212_189 = arith.constant 212 : index
    %465 = vector.load %arg3[%c0_188, %c212_189] : memref<64x240xf32, #tpu.memory_space<vmem>>, vector<64x4xf32>
    %466 = vector.broadcast %29 : vector<64x1xf32> to vector<64x4xf32>
    %467 = arith.mulf %466, %465 : vector<64x4xf32>
    %468 = arith.addf %464, %467 : vector<64x4xf32>
    %c0_190 = arith.constant 0 : index
    %c216_191 = arith.constant 216 : index
    %469 = vector.load %arg3[%c0_190, %c216_191] : memref<64x240xf32, #tpu.memory_space<vmem>>, vector<64x4xf32>
    %470 = vector.broadcast %30 : vector<64x1xf32> to vector<64x4xf32>
    %471 = arith.mulf %470, %469 : vector<64x4xf32>
    %472 = arith.addf %468, %471 : vector<64x4xf32>
    %c0_192 = arith.constant 0 : index
    %c220_193 = arith.constant 220 : index
    %473 = vector.load %arg3[%c0_192, %c220_193] : memref<64x240xf32, #tpu.memory_space<vmem>>, vector<64x4xf32>
    %474 = vector.broadcast %31 : vector<64x1xf32> to vector<64x4xf32>
    %475 = arith.mulf %474, %473 : vector<64x4xf32>
    %476 = arith.addf %472, %475 : vector<64x4xf32>
    %c0_194 = arith.constant 0 : index
    %c208_195 = arith.constant 208 : index
    %477 = vector.load %arg3[%c0_194, %c208_195] : memref<64x240xf32, #tpu.memory_space<vmem>>, vector<64x4xf32>
    %478 = vector.broadcast %32 : vector<64x1xf32> to vector<64x4xf32>
    %479 = arith.mulf %478, %477 : vector<64x4xf32>
    %c0_196 = arith.constant 0 : index
    %c212_197 = arith.constant 212 : index
    %480 = vector.load %arg3[%c0_196, %c212_197] : memref<64x240xf32, #tpu.memory_space<vmem>>, vector<64x4xf32>
    %481 = vector.broadcast %33 : vector<64x1xf32> to vector<64x4xf32>
    %482 = arith.mulf %481, %480 : vector<64x4xf32>
    %483 = arith.addf %479, %482 : vector<64x4xf32>
    %c0_198 = arith.constant 0 : index
    %c216_199 = arith.constant 216 : index
    %484 = vector.load %arg3[%c0_198, %c216_199] : memref<64x240xf32, #tpu.memory_space<vmem>>, vector<64x4xf32>
    %485 = vector.broadcast %34 : vector<64x1xf32> to vector<64x4xf32>
    %486 = arith.mulf %485, %484 : vector<64x4xf32>
    %487 = arith.addf %483, %486 : vector<64x4xf32>
    %c0_200 = arith.constant 0 : index
    %c220_201 = arith.constant 220 : index
    %488 = vector.load %arg3[%c0_200, %c220_201] : memref<64x240xf32, #tpu.memory_space<vmem>>, vector<64x4xf32>
    %489 = vector.broadcast %35 : vector<64x1xf32> to vector<64x4xf32>
    %490 = arith.mulf %489, %488 : vector<64x4xf32>
    %491 = arith.addf %487, %490 : vector<64x4xf32>
    %c0_202 = arith.constant 0 : index
    %c224 = arith.constant 224 : index
    %492 = vector.load %arg3[%c0_202, %c224] : memref<64x240xf32, #tpu.memory_space<vmem>>, vector<64x4xf32>
    %493 = vector.broadcast %36 : vector<64x1xf32> to vector<64x4xf32>
    %494 = arith.mulf %493, %492 : vector<64x4xf32>
    %c0_203 = arith.constant 0 : index
    %c228 = arith.constant 228 : index
    %495 = vector.load %arg3[%c0_203, %c228] : memref<64x240xf32, #tpu.memory_space<vmem>>, vector<64x4xf32>
    %496 = vector.broadcast %37 : vector<64x1xf32> to vector<64x4xf32>
    %497 = arith.mulf %496, %495 : vector<64x4xf32>
    %498 = arith.addf %494, %497 : vector<64x4xf32>
    %c0_204 = arith.constant 0 : index
    %c232 = arith.constant 232 : index
    %499 = vector.load %arg3[%c0_204, %c232] : memref<64x240xf32, #tpu.memory_space<vmem>>, vector<64x4xf32>
    %500 = vector.broadcast %38 : vector<64x1xf32> to vector<64x4xf32>
    %501 = arith.mulf %500, %499 : vector<64x4xf32>
    %502 = arith.addf %498, %501 : vector<64x4xf32>
    %c0_205 = arith.constant 0 : index
    %c236 = arith.constant 236 : index
    %503 = vector.load %arg3[%c0_205, %c236] : memref<64x240xf32, #tpu.memory_space<vmem>>, vector<64x4xf32>
    %504 = vector.broadcast %39 : vector<64x1xf32> to vector<64x4xf32>
    %505 = arith.mulf %504, %503 : vector<64x4xf32>
    %506 = arith.addf %502, %505 : vector<64x4xf32>
    %507 = vector.broadcast %1 : vector<64x1xf32> to vector<64x4xf32>
    %508 = arith.mulf %507, %461 : vector<64x4xf32>
    %509 = vector.broadcast %2 : vector<64x1xf32> to vector<64x4xf32>
    %510 = arith.mulf %509, %476 : vector<64x4xf32>
    %511 = arith.addf %508, %510 : vector<64x4xf32>
    %512 = vector.broadcast %3 : vector<64x1xf32> to vector<64x4xf32>
    %513 = arith.mulf %512, %491 : vector<64x4xf32>
    %514 = arith.addf %511, %513 : vector<64x4xf32>
    %cst_206 = arith.constant 0.577350259 : f32
    %515 = vector.broadcast %cst_206 : f32 to vector<64x4xf32>
    %516 = arith.mulf %514, %515 : vector<64x4xf32>
    %517 = vector.broadcast %0 : vector<64x1xf32> to vector<64x4xf32>
    %518 = arith.mulf %517, %506 : vector<64x4xf32>
    %519 = arith.addf %516, %518 : vector<64x4xf32>
    %cst_207 = arith.constant 0.353553385 : f32
    %520 = vector.broadcast %cst_207 : f32 to vector<64x4xf32>
    %521 = arith.mulf %519, %520 : vector<64x4xf32>
    %c0_208 = arith.constant 0 : index
    %c0_209 = arith.constant 0 : index
    %522 = vector.load %arg4[%c0_208, %c0_209] : memref<64x36xf32, #tpu.memory_space<vmem>>, vector<64x8xf32>
    tpu.vector_store %arg4[%c0_208, %c0_209], %130 {strides = array<i32>} : memref<64x36xf32, #tpu.memory_space<vmem>>, vector<64x8xf32>,
    %c0_210 = arith.constant 0 : index
    %c32_211 = arith.constant 32 : index
    %523 = vector.load %arg4[%c0_210, %c32_211] : memref<64x36xf32, #tpu.memory_space<vmem>>, vector<64x4xf32>
    tpu.vector_store %arg4[%c0_210, %c32_211], %521 {strides = array<i32>} : memref<64x36xf32, #tpu.memory_space<vmem>>, vector<64x4xf32>,
    %524 = vector.extract_strided_slice %266 {offsets = [0, 0], sizes = [64, 1], strides = [1, 1]} : vector<64x4xf32> to vector<64x1xf32>
    %c0_212 = arith.constant 0 : index
    %c8_213 = arith.constant 8 : index
    %525 = vector.load %arg4[%c0_212, %c8_213] : memref<64x36xf32, #tpu.memory_space<vmem>>, vector<64x1xf32>
    tpu.vector_store %arg4[%c0_212, %c8_213], %524 {strides = array<i32>} : memref<64x36xf32, #tpu.memory_space<vmem>>, vector<64x1xf32>,
    %526 = vector.extract_strided_slice %281 {offsets = [0, 0], sizes = [64, 1], strides = [1, 1]} : vector<64x4xf32> to vector<64x1xf32>
    %c0_214 = arith.constant 0 : index
    %c9_215 = arith.constant 9 : index
    %527 = vector.load %arg4[%c0_214, %c9_215] : memref<64x36xf32, #tpu.memory_space<vmem>>, vector<64x1xf32>
    tpu.vector_store %arg4[%c0_214, %c9_215], %526 {strides = array<i32>} : memref<64x36xf32, #tpu.memory_space<vmem>>, vector<64x1xf32>,
    %528 = vector.extract_strided_slice %296 {offsets = [0, 0], sizes = [64, 1], strides = [1, 1]} : vector<64x4xf32> to vector<64x1xf32>
    %c0_216 = arith.constant 0 : index
    %c10_217 = arith.constant 10 : index
    %529 = vector.load %arg4[%c0_216, %c10_217] : memref<64x36xf32, #tpu.memory_space<vmem>>, vector<64x1xf32>
    tpu.vector_store %arg4[%c0_216, %c10_217], %528 {strides = array<i32>} : memref<64x36xf32, #tpu.memory_space<vmem>>, vector<64x1xf32>,
    %530 = vector.extract_strided_slice %266 {offsets = [0, 1], sizes = [64, 1], strides = [1, 1]} : vector<64x4xf32> to vector<64x1xf32>
    %c0_218 = arith.constant 0 : index
    %c11_219 = arith.constant 11 : index
    %531 = vector.load %arg4[%c0_218, %c11_219] : memref<64x36xf32, #tpu.memory_space<vmem>>, vector<64x1xf32>
    tpu.vector_store %arg4[%c0_218, %c11_219], %530 {strides = array<i32>} : memref<64x36xf32, #tpu.memory_space<vmem>>, vector<64x1xf32>,
    %532 = vector.extract_strided_slice %281 {offsets = [0, 1], sizes = [64, 1], strides = [1, 1]} : vector<64x4xf32> to vector<64x1xf32>
    %c0_220 = arith.constant 0 : index
    %c12_221 = arith.constant 12 : index
    %533 = vector.load %arg4[%c0_220, %c12_221] : memref<64x36xf32, #tpu.memory_space<vmem>>, vector<64x1xf32>
    tpu.vector_store %arg4[%c0_220, %c12_221], %532 {strides = array<i32>} : memref<64x36xf32, #tpu.memory_space<vmem>>, vector<64x1xf32>,
    %534 = vector.extract_strided_slice %296 {offsets = [0, 1], sizes = [64, 1], strides = [1, 1]} : vector<64x4xf32> to vector<64x1xf32>
    %c0_222 = arith.constant 0 : index
    %c13_223 = arith.constant 13 : index
    %535 = vector.load %arg4[%c0_222, %c13_223] : memref<64x36xf32, #tpu.memory_space<vmem>>, vector<64x1xf32>
    tpu.vector_store %arg4[%c0_222, %c13_223], %534 {strides = array<i32>} : memref<64x36xf32, #tpu.memory_space<vmem>>, vector<64x1xf32>,
    %536 = vector.extract_strided_slice %266 {offsets = [0, 2], sizes = [64, 1], strides = [1, 1]} : vector<64x4xf32> to vector<64x1xf32>
    %c0_224 = arith.constant 0 : index
    %c14_225 = arith.constant 14 : index
    %537 = vector.load %arg4[%c0_224, %c14_225] : memref<64x36xf32, #tpu.memory_space<vmem>>, vector<64x1xf32>
    tpu.vector_store %arg4[%c0_224, %c14_225], %536 {strides = array<i32>} : memref<64x36xf32, #tpu.memory_space<vmem>>, vector<64x1xf32>,
    %538 = vector.extract_strided_slice %281 {offsets = [0, 2], sizes = [64, 1], strides = [1, 1]} : vector<64x4xf32> to vector<64x1xf32>
    %c0_226 = arith.constant 0 : index
    %c15_227 = arith.constant 15 : index
    %539 = vector.load %arg4[%c0_226, %c15_227] : memref<64x36xf32, #tpu.memory_space<vmem>>, vector<64x1xf32>
    tpu.vector_store %arg4[%c0_226, %c15_227], %538 {strides = array<i32>} : memref<64x36xf32, #tpu.memory_space<vmem>>, vector<64x1xf32>,
    %540 = vector.extract_strided_slice %296 {offsets = [0, 2], sizes = [64, 1], strides = [1, 1]} : vector<64x4xf32> to vector<64x1xf32>
    %c0_228 = arith.constant 0 : index
    %c16_229 = arith.constant 16 : index
    %541 = vector.load %arg4[%c0_228, %c16_229] : memref<64x36xf32, #tpu.memory_space<vmem>>, vector<64x1xf32>
    tpu.vector_store %arg4[%c0_228, %c16_229], %540 {strides = array<i32>} : memref<64x36xf32, #tpu.memory_space<vmem>>, vector<64x1xf32>,
    %542 = vector.extract_strided_slice %266 {offsets = [0, 3], sizes = [64, 1], strides = [1, 1]} : vector<64x4xf32> to vector<64x1xf32>
    %c0_230 = arith.constant 0 : index
    %c17_231 = arith.constant 17 : index
    %543 = vector.load %arg4[%c0_230, %c17_231] : memref<64x36xf32, #tpu.memory_space<vmem>>, vector<64x1xf32>
    tpu.vector_store %arg4[%c0_230, %c17_231], %542 {strides = array<i32>} : memref<64x36xf32, #tpu.memory_space<vmem>>, vector<64x1xf32>,
    %544 = vector.extract_strided_slice %281 {offsets = [0, 3], sizes = [64, 1], strides = [1, 1]} : vector<64x4xf32> to vector<64x1xf32>
    %c0_232 = arith.constant 0 : index
    %c18_233 = arith.constant 18 : index
    %545 = vector.load %arg4[%c0_232, %c18_233] : memref<64x36xf32, #tpu.memory_space<vmem>>, vector<64x1xf32>
    tpu.vector_store %arg4[%c0_232, %c18_233], %544 {strides = array<i32>} : memref<64x36xf32, #tpu.memory_space<vmem>>, vector<64x1xf32>,
    %546 = vector.extract_strided_slice %296 {offsets = [0, 3], sizes = [64, 1], strides = [1, 1]} : vector<64x4xf32> to vector<64x1xf32>
    %c0_234 = arith.constant 0 : index
    %c19_235 = arith.constant 19 : index
    %547 = vector.load %arg4[%c0_234, %c19_235] : memref<64x36xf32, #tpu.memory_space<vmem>>, vector<64x1xf32>
    tpu.vector_store %arg4[%c0_234, %c19_235], %546 {strides = array<i32>} : memref<64x36xf32, #tpu.memory_space<vmem>>, vector<64x1xf32>,
    %548 = vector.extract_strided_slice %416 {offsets = [0, 0], sizes = [64, 1], strides = [1, 1]} : vector<64x4xf32> to vector<64x1xf32>
    %c0_236 = arith.constant 0 : index
    %c20_237 = arith.constant 20 : index
    %549 = vector.load %arg4[%c0_236, %c20_237] : memref<64x36xf32, #tpu.memory_space<vmem>>, vector<64x1xf32>
    tpu.vector_store %arg4[%c0_236, %c20_237], %548 {strides = array<i32>} : memref<64x36xf32, #tpu.memory_space<vmem>>, vector<64x1xf32>,
    %550 = vector.extract_strided_slice %431 {offsets = [0, 0], sizes = [64, 1], strides = [1, 1]} : vector<64x4xf32> to vector<64x1xf32>
    %c0_238 = arith.constant 0 : index
    %c21_239 = arith.constant 21 : index
    %551 = vector.load %arg4[%c0_238, %c21_239] : memref<64x36xf32, #tpu.memory_space<vmem>>, vector<64x1xf32>
    tpu.vector_store %arg4[%c0_238, %c21_239], %550 {strides = array<i32>} : memref<64x36xf32, #tpu.memory_space<vmem>>, vector<64x1xf32>,
    %552 = vector.extract_strided_slice %446 {offsets = [0, 0], sizes = [64, 1], strides = [1, 1]} : vector<64x4xf32> to vector<64x1xf32>
    %c0_240 = arith.constant 0 : index
    %c22_241 = arith.constant 22 : index
    %553 = vector.load %arg4[%c0_240, %c22_241] : memref<64x36xf32, #tpu.memory_space<vmem>>, vector<64x1xf32>
    tpu.vector_store %arg4[%c0_240, %c22_241], %552 {strides = array<i32>} : memref<64x36xf32, #tpu.memory_space<vmem>>, vector<64x1xf32>,
    %554 = vector.extract_strided_slice %416 {offsets = [0, 1], sizes = [64, 1], strides = [1, 1]} : vector<64x4xf32> to vector<64x1xf32>
    %c0_242 = arith.constant 0 : index
    %c23_243 = arith.constant 23 : index
    %555 = vector.load %arg4[%c0_242, %c23_243] : memref<64x36xf32, #tpu.memory_space<vmem>>, vector<64x1xf32>
    tpu.vector_store %arg4[%c0_242, %c23_243], %554 {strides = array<i32>} : memref<64x36xf32, #tpu.memory_space<vmem>>, vector<64x1xf32>,
    %556 = vector.extract_strided_slice %431 {offsets = [0, 1], sizes = [64, 1], strides = [1, 1]} : vector<64x4xf32> to vector<64x1xf32>
    %c0_244 = arith.constant 0 : index
    %c24_245 = arith.constant 24 : index
    %557 = vector.load %arg4[%c0_244, %c24_245] : memref<64x36xf32, #tpu.memory_space<vmem>>, vector<64x1xf32>
    tpu.vector_store %arg4[%c0_244, %c24_245], %556 {strides = array<i32>} : memref<64x36xf32, #tpu.memory_space<vmem>>, vector<64x1xf32>,
    %558 = vector.extract_strided_slice %446 {offsets = [0, 1], sizes = [64, 1], strides = [1, 1]} : vector<64x4xf32> to vector<64x1xf32>
    %c0_246 = arith.constant 0 : index
    %c25_247 = arith.constant 25 : index
    %559 = vector.load %arg4[%c0_246, %c25_247] : memref<64x36xf32, #tpu.memory_space<vmem>>, vector<64x1xf32>
    tpu.vector_store %arg4[%c0_246, %c25_247], %558 {strides = array<i32>} : memref<64x36xf32, #tpu.memory_space<vmem>>, vector<64x1xf32>,
    %560 = vector.extract_strided_slice %416 {offsets = [0, 2], sizes = [64, 1], strides = [1, 1]} : vector<64x4xf32> to vector<64x1xf32>
    %c0_248 = arith.constant 0 : index
    %c26_249 = arith.constant 26 : index
    %561 = vector.load %arg4[%c0_248, %c26_249] : memref<64x36xf32, #tpu.memory_space<vmem>>, vector<64x1xf32>
    tpu.vector_store %arg4[%c0_248, %c26_249], %560 {strides = array<i32>} : memref<64x36xf32, #tpu.memory_space<vmem>>, vector<64x1xf32>,
    %562 = vector.extract_strided_slice %431 {offsets = [0, 2], sizes = [64, 1], strides = [1, 1]} : vector<64x4xf32> to vector<64x1xf32>
    %c0_250 = arith.constant 0 : index
    %c27_251 = arith.constant 27 : index
    %563 = vector.load %arg4[%c0_250, %c27_251] : memref<64x36xf32, #tpu.memory_space<vmem>>, vector<64x1xf32>
    tpu.vector_store %arg4[%c0_250, %c27_251], %562 {strides = array<i32>} : memref<64x36xf32, #tpu.memory_space<vmem>>, vector<64x1xf32>,
    %564 = vector.extract_strided_slice %446 {offsets = [0, 2], sizes = [64, 1], strides = [1, 1]} : vector<64x4xf32> to vector<64x1xf32>
    %c0_252 = arith.constant 0 : index
    %c28_253 = arith.constant 28 : index
    %565 = vector.load %arg4[%c0_252, %c28_253] : memref<64x36xf32, #tpu.memory_space<vmem>>, vector<64x1xf32>
    tpu.vector_store %arg4[%c0_252, %c28_253], %564 {strides = array<i32>} : memref<64x36xf32, #tpu.memory_space<vmem>>, vector<64x1xf32>,
    %566 = vector.extract_strided_slice %416 {offsets = [0, 3], sizes = [64, 1], strides = [1, 1]} : vector<64x4xf32> to vector<64x1xf32>
    %c0_254 = arith.constant 0 : index
    %c29_255 = arith.constant 29 : index
    %567 = vector.load %arg4[%c0_254, %c29_255] : memref<64x36xf32, #tpu.memory_space<vmem>>, vector<64x1xf32>
    tpu.vector_store %arg4[%c0_254, %c29_255], %566 {strides = array<i32>} : memref<64x36xf32, #tpu.memory_space<vmem>>, vector<64x1xf32>,
    %568 = vector.extract_strided_slice %431 {offsets = [0, 3], sizes = [64, 1], strides = [1, 1]} : vector<64x4xf32> to vector<64x1xf32>
    %c0_256 = arith.constant 0 : index
    %c30_257 = arith.constant 30 : index
    %569 = vector.load %arg4[%c0_256, %c30_257] : memref<64x36xf32, #tpu.memory_space<vmem>>, vector<64x1xf32>
    tpu.vector_store %arg4[%c0_256, %c30_257], %568 {strides = array<i32>} : memref<64x36xf32, #tpu.memory_space<vmem>>, vector<64x1xf32>,
    %570 = vector.extract_strided_slice %446 {offsets = [0, 3], sizes = [64, 1], strides = [1, 1]} : vector<64x4xf32> to vector<64x1xf32>
    %c0_258 = arith.constant 0 : index
    %c31_259 = arith.constant 31 : index
    %571 = vector.load %arg4[%c0_258, %c31_259] : memref<64x36xf32, #tpu.memory_space<vmem>>, vector<64x1xf32>
    tpu.vector_store %arg4[%c0_258, %c31_259], %570 {strides = array<i32>} : memref<64x36xf32, #tpu.memory_space<vmem>>, vector<64x1xf32>,
    return
  }
  func.func @transform_0(%arg0: i32) -> (i32, i32) {
    %c0_i32 = arith.constant 0 : i32
    %c0_i32_0 = arith.constant 0 : i32
    return %arg0, %c0_i32 : i32, i32
  }
  func.func @transform_1(%arg0: i32) -> (i32, i32) {
    %c0_i32 = arith.constant 0 : i32
    %c0_i32_0 = arith.constant 0 : i32
    return %arg0, %c0_i32 : i32, i32
  }
  func.func @transform_2(%arg0: i32) -> (i32, i32) {
    %c0_i32 = arith.constant 0 : i32
    %c0_i32_0 = arith.constant 0 : i32
    return %arg0, %c0_i32 : i32, i32
  }
  func.func @transform_3(%arg0: i32) -> (i32, i32) {
    %c0_i32 = arith.constant 0 : i32
    %c0_i32_0 = arith.constant 0 : i32
    return %arg0, %c0_i32 : i32, i32
  }
}

</mosaic_0001>

<bundles_post_ra>
// kernel: tpu_custom_call.1
= control target key start
LH: loop header
LB: loop body
LE: loop exit
PB: predicated region body
PF: predicated region fallthrough
CT: control target
= control target key end

     0   :  { %s5944_s12 = smov 0   ;;  %s10990_s0 = inlined_call_operand.vmem [shape: f32[256,36], index: 0, kind: input, shape index: {}]   ;;  %s10991_s1 = inlined_call_operand.vmem [shape: f32[256,4], index: 1, kind: input, shape index: {}]   ;;  %s10992_s2 = inlined_call_operand.vmem [shape: f32[256,240], index: 2, kind: input, shape index: {}]   ;;  %s10993_s3 = inlined_call_operand.vmem [shape: f32[256,36], index: 3, kind: output, shape index: {}]  }
   0x1 LB: > { %s5631_s13 = sadd.s32 4294967295, %s5859_s12   ;;  %p5635_p0 = scmp.ge.s32.totalorder %s5859_s12, 1  ;;  %s5859_s12 = sphi %s5944_s12, %s13_s12  }
   0x2   : > { %p161_p1 = scmp.lt.s32.totalorder %s5859_s12, 5 }
   0x4   : > { %p162_p2 = pnand %p5635_p0, %p161_p1 }
   0x6   : > { %165 = sbr.rel (%p162_p2) target bundleno = 5391 (0x150f), region = 32 }
   0xd   : > { %s5636_s14 = sshll.u32 %s5631_s13, 3  ;;  %v11000_v0 = vmov 0   ;;  %v10998_v1 = vmov 1   ;;  %v10996_v8 = vmov 2   ;;  %v10994_v11 = vmov 3   ;;  %s5867_s23 = smov 120  }
   0xe   : > { %5719 = vset.pattern.permute.xlu1 %v11000_v0  ;;  %p197_p3 = scmp.lt.s32.totalorder %s5636_s14, 31  ;;  %5720 = vset.pattern.permute.xlu0 %v10998_v1  ;;  %v5865_v12 = vmov 4   ;;  %v5866_v13 = vmov 5   ;;  %s5868_s24 = smov 112   ;;  %vm4661_vm0 = vcmask 64512   ;;  %vm4702_vm1 = vcmask 294144  }
   0xf   : > { %s5869_s25 = smov 104   ;;  %s5870_s26 = smov 96   ;;  %vm4743_vm2 = vcmask 72768   ;;  %vm4784_vm3 = vcmask 80968   ;;  %vm4825_vm4 = vcmask 89168   ;;  %vm4858_vm5 = vcmask 97368  }
  0x10   : > { %s12686_s14 = smov (!%p197_p3, %s5636_s14), 31  ;;  %s5872_s27 = smov 88   ;;  %vm4891_vm6 = vcmask 105568   ;;  %vm4924_vm7 = vcmask 113768   ;;  %vm4957_vm8 = vcmask 121968   ;;  %vm4990_vm9 = vcmask 130168  }
  0x11   : > { %s5957_s15 = sshll.u32 %s12686_s14, 3  ;;  %s5647_s19 = sshll.u32 %s12686_s14, 4  ;;  %vm5023_vm10 = vcmask 138368   ;;  %vm5056_vm11 = vcmask 146568   ;;  %vm5089_vm12 = vcmask 154768   ;;  %vm5122_vm13 = vcmask 162968  }
  0x12   : > { %s5963_s18 = scalar_lea.vmem %s10990_s0, %s5957_s15  ;;  %s6034_s22 = scalar_lea.vmem %s10992_s2, %s5647_s19  ;;  %vm5163_vm14 = vcmask 171168   ;;  %vm5204_vm15 = vcmask 179368  }
  0x13   : > { %v5966_v2 = vld [vmem:[%s5963_s18 + $0x10] sm:$0xff]  ;;  %v5970_v3 = vld [vmem:[%s5963_s18] sm:$0xff]  ;;  %v5973_v4 = vld [vmem:[%s5963_s18 + $0x18] sm:$0xff]  ;;  %s5874_s28 = smov 80   ;;  %s5876_s29 = smov 72  }
  0x14   : > { %257 = vperm.xlu1 %5719, %v5966_v2   ;;  %294 = vperm.xlu0 %5720, %v5970_v3   ;;  %v5978_v5 = vld [vmem:[%s5963_s18 + $0x28] sm:$0xff]  ;;  %v5983_v6 = vld [vmem:[%s5963_s18 + $0x38] sm:$0xff]  ;;  %v5997_v9 = vld [vmem:[%s5963_s18 + $0x20] sm:$0xff]  ;;  %s206_s5 = scalar_lea.vmem %s10991_s1, %s5957_s15  ;;  %s5888_s6 = smov 64  }
  0x15   : > { %v5989_v7 = vld [vmem:[%s5963_s18 + $0x8] sm:$0xff]  ;;  %v6002_v10 = vld [vmem:[%s5963_s18 + $0x30] sm:$0xff]  ;;  %v6037_v14 = vld [vmem:[%s6034_s22] sm:$0xff]  ;;  %s5889_s7 = smov 124   ;;  %s5890_s8 = smov 116  }
  0x16   : > { %v6053_v22 = vld [vmem:[%s6034_s22 + $0x10] sm:$0xff]  ;;  %v6067_v28 = vld [vmem:[%s6034_s22 + $0x20] sm:$0xff]  ;;  %s5891_s9 = smov 108   ;;  %s7531_s13 = scalar_lea.vmem %s10993_s3, %s5957_s15 }
  0x17   : > { %v6059_v25 = vld [vmem:[%s6034_s22 + $0x30] sm:$0xff]  ;;  %v6076_v32 = vld [vmem:[%s6034_s22 + $0x40] sm:$0xff]  ;;  %s5892_s14 = smov 100   ;;  %s5909_s15 = smov 40  }
  0x18   : > { %262 = vperm.xlu1 %5719, %v5973_v4   ;;  %306 = vperm.xlu0 %5720, %v5973_v4   ;;  %v6073_v31 = vld [vmem:[%s6034_s22 + $0x50] sm:$0xff]  ;;  %v6089_v37 = vld [vmem:[%s6034_s22 + $0x60] sm:$0xff]  ;;  %s5910_s16 = smov 41   ;;  %s5911_s17 = smov 42  }
  0x19   : > { %v6096_v38 = vld [vmem:[%s6034_s22 + $0x70] sm:$0xff]  ;;  %s5913_s19 = smov 44   ;;  %s5914_s20 = smov 45  }
  0x1a   : > { %s5915_s21 = smov 46  }
  0x1c   : > { %272 = vperm.xlu1 %5719, %v5978_v5   ;;  %314 = vperm.xlu0 %5720, %v5978_v5  }
  0x20   : > { %282 = vperm.xlu1 %5719, %v5983_v6   ;;  %322 = vperm.xlu0 %5720, %v5983_v6  }
  0x24   : > { %5721 = vset.pattern.permute.xlu1 %v10998_v1  ;;  %5723 = vset.pattern.permute.xlu0 %v10996_v8 }
  0x25   : > { %298 = vperm.xlu1 %5721, %v5989_v7   ;;  %378 = vperm.xlu0 %5723, %v5989_v7  }
  0x29   : > { %302 = vperm.xlu1 %5721, %v5966_v2   ;;  %390 = vperm.xlu0 %5723, %v5997_v9  }
  0x2d   : > { %310 = vperm.xlu1 %5721, %v5997_v9   ;;  %398 = vperm.xlu0 %5723, %v6002_v10  }
  0x31   : > { %318 = vperm.xlu1 %5721, %v6002_v10   ;;  %5724 = vset.pattern.permute.xlu0 %v10994_v11 }
  0x32   : > { %454 = vperm.xlu0 %5724, %v5970_v3  }
  0x35   : > { %5722 = vset.pattern.permute.xlu1 %v10996_v8 }
  0x36   : > { %374 = vperm.xlu1 %5722, %v5970_v3   ;;  %466 = vperm.xlu0 %5724, %v5973_v4  }
  0x3a   : > { %382 = vperm.xlu1 %5722, %v5966_v2   ;;  %474 = vperm.xlu0 %5724, %v5978_v5  }
  0x3e   : > { %386 = vperm.xlu1 %5722, %v5973_v4   ;;  %482 = vperm.xlu0 %5724, %v5983_v6  }
  0x42   : > { %394 = vperm.xlu1 %5722, %v5978_v5   ;;  %5727 = vset.pattern.permute.xlu0 %v5865_v12 }
  0x43   : > { %538 = vperm.xlu0 %5727, %v5989_v7  }
  0x46   : > { %402 = vperm.xlu1 %5722, %v5983_v6  }
  0x47   : > { %550 = vperm.xlu0 %5727, %v5997_v9  }
  0x4a   : > { %5725 = vset.pattern.permute.xlu1 %v10994_v11 }
  0x4b   : > { %458 = vperm.xlu1 %5725, %v5989_v7   ;;  %558 = vperm.xlu0 %5727, %v6002_v10  }
  0x4f   : > { %462 = vperm.xlu1 %5725, %v5966_v2   ;;  %5728 = vset.pattern.permute.xlu0 %v5866_v13 }
  0x53   : > { %470 = vperm.xlu1 %5725, %v5997_v9  }
  0x57   : > { %478 = vperm.xlu1 %5725, %v6002_v10  }
  0x5b   : > { %5726 = vset.pattern.permute.xlu1 %v5865_v12 }
  0x5c   : > { %534 = vperm.xlu1 %5726, %v5970_v3  }
  0x60   : > { %542 = vperm.xlu1 %5726, %v5966_v2  }
  0x64   : > { %546 = vperm.xlu1 %5726, %v5973_v4  }
  0x68   : > { %554 = vperm.xlu1 %5726, %v5978_v5  }
  0x6c   : > { %562 = vperm.xlu1 %5726, %v5983_v6  }
  0x70   : > { %5729 = vset.pattern.permute.xlu1 %v5866_v13 }
  0x93   : > { %v6039_v15 = vpop.permute.xlu1 %257  ;;  %v295_v16 = vpop.permute.xlu0 %294 }
  0x94   : > { %11390 = vst [vmem:[#allocation2_spill] sm:$0xff] %v6039_v15  ;;  %v6042_v17 = vmul.f32 %v295_v16, %v6037_v14 }
  0x96   : > { %11391 = vst [vmem:[#allocation3_spill] sm:$0xff] %v6042_v17  ;;  %341 = vrot.lane.b32.xlu1 %v6042_v17, %s5867_s23 }
  0x97   : > { %v6044_v18 = vpop.permute.xlu1 %262  ;;  %v307_v21 = vpop.permute.xlu0 %306 }
  0x98   : > { %11392 = vst [vmem:[#allocation4_spill] sm:$0xff] %v6044_v18  ;;  %v6062_v27 = vmul.f32 %v307_v21, %v6059_v25 }
  0x9a   : > { %11396 = vst [vmem:[#allocation8_spill] sm:$0xff] %v6062_v27 }
  0x9b   : > { %v6048_v19 = vpop.permute.xlu1 %272  ;;  %v315_v26 = vpop.permute.xlu0 %314 }
  0x9c   : > { %11393 = vst [vmem:[#allocation5_spill] sm:$0xff] %v6048_v19  ;;  %v6079_v33 = vmul.f32 %v315_v26, %v6073_v31 }
  0x9e   : > { %11398 = vst [vmem:[#allocation10_spill] sm:$0xff] %v6079_v33 }
  0x9f   : > { %v6050_v20 = vpop.permute.xlu1 %282  ;;  %v323_v35 = vpop.permute.xlu0 %322 }
  0xa0   : > { %11394 = vst [vmem:[#allocation6_spill] sm:$0xff] %v6050_v20  ;;  %v6099_v41 = vmul.f32 %v323_v35, %v6096_v38 }
  0xa2   : > { %11400 = vst [vmem:[#allocation12_spill] sm:$0xff] %v6099_v41 }
  0xa4   : > { %v299_v23 = vpop.permute.xlu1 %298  ;;  %v379_v40 = vpop.permute.xlu0 %378 }
  0xa5   : > { %v6056_v24 = vmul.f32 %v299_v23, %v6053_v22  ;;  %v6109_v43 = vmul.f32 %v379_v40, %v6053_v22 }
  0xa7   : > { %11395 = vst [vmem:[#allocation7_spill] sm:$0xff] %v6056_v24  ;;  %343 = vrot.lane.b32.xlu0 %v6056_v24, %s5867_s23  ;;  %11402 = vst [vmem:[#allocation14_spill] sm:$0xff] %v6109_v43 }
  0xa8   : > { %v303_v29 = vpop.permute.xlu1 %302  ;;  %v391_v46 = vpop.permute.xlu0 %390 }
  0xa9   : > { %v6070_v30 = vmul.f32 %v303_v29, %v6067_v28  ;;  %v6122_v49 = vmul.f32 %v391_v46, %v6076_v32 }
  0xab   : > { %11397 = vst [vmem:[#allocation9_spill] sm:$0xff] %v6070_v30  ;;  %345 = vrot.lane.b32.xlu1 %v6070_v30, %s5867_s23  ;;  %347 = vrot.lane.b32.xlu0 %v6062_v27, %s5867_s23  ;;  %11405 = vst [vmem:[#allocation17_spill] sm:$0xff] %v6122_v49 }
  0xac   : > { %v311_v34 = vpop.permute.xlu1 %310  ;;  %v399_v50 = vpop.permute.xlu0 %398 }
  0xad   : > { %v6086_v36 = vmul.f32 %v311_v34, %v6076_v32  ;;  %v6134_v54 = vmul.f32 %v399_v50, %v6089_v37 }
  0xaf   : > { %11399 = vst [vmem:[#allocation11_spill] sm:$0xff] %v6086_v36  ;;  %349 = vrot.lane.b32.xlu1 %v6086_v36, %s5867_s23  ;;  %351 = vrot.lane.b32.xlu0 %v6079_v33, %s5867_s23  ;;  %11407 = vst [vmem:[#allocation19_spill] sm:$0xff] %v6134_v54 }
  0xb0   : > { %v319_v39 = vpop.permute.xlu1 %318 }
  0xb1   : > { %v6102_v42 = vmul.f32 %v319_v39, %v6089_v37  ;;  %v455_v56 = vpop.permute.xlu0 %454 }
  0xb2   : > { %v6147_v59 = vmul.f32 %v455_v56, %v6037_v14 }
  0xb3   : > { %11401 = vst [vmem:[#allocation13_spill] sm:$0xff] %v6102_v42  ;;  %353 = vrot.lane.b32.xlu1 %v6102_v42, %s5867_s23  ;;  %355 = vrot.lane.b32.xlu0 %v6099_v41, %s5867_s23 }
  0xb4   : > { %11410 = vst [vmem:[#allocation22_spill] sm:$0xff] %v6147_v59 }
  0xb5   : > { %v375_v44 = vpop.permute.xlu1 %374  ;;  %v467_v60 = vpop.permute.xlu0 %466 }
  0xb6   : > { %v6112_v45 = vmul.f32 %v375_v44, %v6037_v14  ;;  %v6157_v63 = vmul.f32 %v467_v60, %v6059_v25 }
  0xb7   : > { %423 = vrot.lane.b32.xlu1 %v6109_v43, %s5868_s24 }
  0xb8   : > { %11403 = vst [vmem:[#allocation15_spill] sm:$0xff] %v6112_v45  ;;  %421 = vrot.lane.b32.xlu0 %v6112_v45, %s5868_s24  ;;  %11412 = vst [vmem:[#allocation24_spill] sm:$0xff] %v6157_v63 }
  0xb9   : > { %v383_v47 = vpop.permute.xlu1 %382  ;;  %v475_v12 = vpop.permute.xlu0 %474 }
  0xba   : > { %v6119_v48 = vmul.f32 %v383_v47, %v6067_v28  ;;  %v6169_v23 = vmul.f32 %v475_v12, %v6073_v31 }
  0xbc   : > { %11404 = vst [vmem:[#allocation16_spill] sm:$0xff] %v6119_v48  ;;  %425 = vrot.lane.b32.xlu0 %v6119_v48, %s5868_s24  ;;  %11414 = vst [vmem:[#allocation26_spill] sm:$0xff] %v6169_v23 }
  0xbd   : > { %v387_v51 = vpop.permute.xlu1 %386  ;;  %v483_v29 = vpop.permute.xlu0 %482 }
  0xbe   : > { %v6127_v52 = vmul.f32 %v387_v51, %v6059_v25  ;;  %v6179_v35 = vmul.f32 %v483_v29, %v6096_v38 }
  0xc0   : > { %11406 = vst [vmem:[#allocation18_spill] sm:$0xff] %v6127_v52  ;;  %427 = vrot.lane.b32.xlu1 %v6127_v52, %s5868_s24  ;;  %429 = vrot.lane.b32.xlu0 %v6122_v49, %s5868_s24  ;;  %11416 = vst [vmem:[#allocation28_spill] sm:$0xff] %v6179_v35 }
  0xc1   : > { %v395_v53 = vpop.permute.xlu1 %394 }
  0xc2   : > { %v6137_v55 = vmul.f32 %v395_v53, %v6073_v31  ;;  %v539_v40 = vpop.permute.xlu0 %538 }
  0xc3   : > { %v6185_v44 = vmul.f32 %v539_v40, %v6053_v22  ;;  %v5871_v40 = vmov 6  }
  0xc4   : > { %11408 = vst [vmem:[#allocation20_spill] sm:$0xff] %v6137_v55  ;;  %431 = vrot.lane.b32.xlu1 %v6137_v55, %s5868_s24  ;;  %433 = vrot.lane.b32.xlu0 %v6134_v54, %s5868_s24 }
  0xc5   : > { %v403_v57 = vpop.permute.xlu1 %402  ;;  %11418 = vst [vmem:[#allocation30_spill] sm:$0xff] %v6185_v44 }
  0xc6   : > { %v6144_v58 = vmul.f32 %v403_v57, %v6096_v38  ;;  %v551_v50 = vpop.permute.xlu0 %550 }
  0xc7   : > { %v6204_v57 = vmul.f32 %v551_v50, %v6076_v32 }
  0xc8   : > { %11409 = vst [vmem:[#allocation21_spill] sm:$0xff] %v6144_v58  ;;  %435 = vrot.lane.b32.xlu1 %v6144_v58, %s5868_s24 }
  0xc9   : > { %11421 = vst [vmem:[#allocation33_spill] sm:$0xff] %v6204_v57 }
  0xca   : > { %v459_v61 = vpop.permute.xlu1 %458 }
  0xcb   : > { %v6152_v62 = vmul.f32 %v459_v61, %v6053_v22  ;;  %v559_v61 = vpop.permute.xlu0 %558 }
  0xcc   : > { %501 = vrot.lane.b32.xlu1 %v6147_v59, %s5869_s25 }
  0xcd   : > { %11411 = vst [vmem:[#allocation23_spill] sm:$0xff] %v6152_v62  ;;  %503 = vrot.lane.b32.xlu0 %v6152_v62, %s5869_s25 }
  0xce   : > { %v463_v13 = vpop.permute.xlu1 %462 }
  0xcf   : > { %v6162_v16 = vmul.f32 %v463_v13, %v6067_v28  ;;  %v6214_v13 = vmul.f32 %v559_v61, %v6089_v37 }
  0xd1   : > { %11413 = vst [vmem:[#allocation25_spill] sm:$0xff] %v6162_v16  ;;  %505 = vrot.lane.b32.xlu1 %v6162_v16, %s5869_s25  ;;  %507 = vrot.lane.b32.xlu0 %v6157_v63, %s5869_s25  ;;  %11423 = vst [vmem:[#allocation35_spill] sm:$0xff] %v6214_v13 }
  0xd2   : > { %v471_v21 = vpop.permute.xlu1 %470 }
  0xd3   : > { %v6172_v26 = vmul.f32 %v471_v21, %v6076_v32 }
  0xd5   : > { %11415 = vst [vmem:[#allocation27_spill] sm:$0xff] %v6172_v26  ;;  %509 = vrot.lane.b32.xlu1 %v6172_v26, %s5869_s25  ;;  %511 = vrot.lane.b32.xlu0 %v6169_v23, %s5869_s25 }
  0xd6   : > { %v479_v34 = vpop.permute.xlu1 %478 }
  0xd7   : > { %v6182_v39 = vmul.f32 %v479_v34, %v6089_v37 }
  0xd9   : > { %11417 = vst [vmem:[#allocation29_spill] sm:$0xff] %v6182_v39  ;;  %513 = vrot.lane.b32.xlu1 %v6182_v39, %s5869_s25  ;;  %515 = vrot.lane.b32.xlu0 %v6179_v35, %s5869_s25 }
  0xdb   : > { %v535_v46 = vpop.permute.xlu1 %534 }
  0xdc   : > { %v6192_v47 = vmul.f32 %v535_v46, %v6037_v14 }
  0xdd   : > { %583 = vrot.lane.b32.xlu1 %v6185_v44, %s5870_s26 }
  0xde   : > { %11419 = vst [vmem:[#allocation31_spill] sm:$0xff] %v6192_v47  ;;  %581 = vrot.lane.b32.xlu0 %v6192_v47, %s5870_s26 }
  0xdf   : > { %v543_v51 = vpop.permute.xlu1 %542 }
  0xe0   : > { %v6199_v53 = vmul.f32 %v543_v51, %v6067_v28 }
  0xe2   : > { %11420 = vst [vmem:[#allocation32_spill] sm:$0xff] %v6199_v53  ;;  %585 = vrot.lane.b32.xlu0 %v6199_v53, %s5870_s26 }
  0xe3   : > { %v547_v56 = vpop.permute.xlu1 %546 }
  0xe4   : > { %v6207_v60 = vmul.f32 %v547_v56, %v6059_v25 }
  0xe6   : > { %11422 = vst [vmem:[#allocation34_spill] sm:$0xff] %v6207_v60  ;;  %587 = vrot.lane.b32.xlu1 %v6207_v60, %s5870_s26  ;;  %589 = vrot.lane.b32.xlu0 %v6204_v57, %s5870_s26 }
  0xe7   : > { %v555_v12 = vpop.permute.xlu1 %554 }
  0xe8   : > { %v6217_v21 = vmul.f32 %v555_v12, %v6073_v31 }
  0xea   : > { %11424 = vst [vmem:[#allocation36_spill] sm:$0xff] %v6217_v21  ;;  %591 = vrot.lane.b32.xlu1 %v6217_v21, %s5870_s26  ;;  %593 = vrot.lane.b32.xlu0 %v6214_v13, %s5870_s26 }
  0xeb   : > { %v563_v29 = vpop.permute.xlu1 %562 }
  0xec   : > { %v6224_v34 = vmul.f32 %v563_v29, %v6096_v38 }
  0xee   : > { %11425 = vst [vmem:[#allocation37_spill] sm:$0xff] %v6224_v34  ;;  %595 = vrot.lane.b32.xlu1 %v6224_v34, %s5870_s26  ;;  %614 = vperm.xlu0 %5728, %v5970_v3  }
  0xf2   : > { %618 = vperm.xlu1 %5729, %v5989_v7   ;;  %626 = vperm.xlu0 %5728, %v5973_v4  }
  0xf6   : > { %622 = vperm.xlu1 %5729, %v5966_v2   ;;  %634 = vperm.xlu0 %5728, %v5978_v5  }
  0xfa   : > { %630 = vperm.xlu1 %5729, %v5997_v9   ;;  %642 = vperm.xlu0 %5728, %v5983_v6  }
  0xfe   : > { %638 = vperm.xlu1 %5729, %v6002_v10   ;;  %5731 = vset.pattern.permute.xlu0 %v5871_v40 }
 0x102   : > { %5730 = vset.pattern.permute.xlu1 %v5871_v40 }
 0x108   : > { %v6236_v46 = vpop.permute.xlu1 %341 }
 0x109   : > { %11426 = vst [vmem:[#allocation38_spill] sm:$0xff] %v6236_v46 }
 0x119   : > { %v6238_v50 = vpop.permute.xlu0 %343 }
 0x11a   : > { %11427 = vst [vmem:[#allocation39_spill] sm:$0xff] %v6238_v50 }
 0x11d   : > { %v6240_v51 = vpop.permute.xlu1 %345  ;;  %v6242_v56 = vpop.permute.xlu0 %347 }
 0x11e   : > { %11428 = vst [vmem:[#allocation40_spill] sm:$0xff] %v6240_v51  ;;  %11429 = vst [vmem:[#allocation41_spill] sm:$0xff] %v6242_v56 }
 0x121   : > { %v6244_v61 = vpop.permute.xlu0 %351  ;;  %v6246_v12 = vpop.permute.xlu1 %349 }
 0x122   : > { %11430 = vst [vmem:[#allocation42_spill] sm:$0xff] %v6244_v61  ;;  %11431 = vst [vmem:[#allocation43_spill] sm:$0xff] %v6246_v12 }
 0x125   : > { %v6248_v29 = vpop.permute.xlu0 %355  ;;  %v6250_v11 = vpop.permute.xlu1 %353 }
 0x126   : > { %11432 = vst [vmem:[#allocation44_spill] sm:$0xff] %v6248_v29  ;;  %11433 = vst [vmem:[#allocation45_spill] sm:$0xff] %v6250_v11 }
 0x129   : > { %v6254_v1 = vpop.permute.xlu1 %423 }
 0x12a   : > { %v6252_v8 = vpop.permute.xlu0 %421  ;;  %11435 = vst [vmem:[#allocation47_spill] sm:$0xff] %v6254_v1 }
 0x12b   : > { %11434 = vst [vmem:[#allocation46_spill] sm:$0xff] %v6252_v8 }
 0x12e   : > { %v6256_v40 = vpop.permute.xlu0 %425 }
 0x12f   : > { %11436 = vst [vmem:[#allocation48_spill] sm:$0xff] %v6256_v40 }
 0x132   : > { %v6258_v0 = vpop.permute.xlu1 %427  ;;  %v6260_v20 = vpop.permute.xlu0 %429 }
 0x133   : > { %11437 = vst [vmem:[#allocation49_spill] sm:$0xff] %v6258_v0  ;;  %11438 = vst [vmem:[#allocation50_spill] sm:$0xff] %v6260_v20 }
 0x136   : > { %v6262_v19 = vpop.permute.xlu1 %431  ;;  %v6264_v56 = vpop.permute.xlu0 %433 }
 0x137   : > { %11439 = vst [vmem:[#allocation51_spill] sm:$0xff] %v6262_v19  ;;  %11440 = vst [vmem:[#allocation52_spill] sm:$0xff] %v6264_v56 }
 0x13a   : > { %v6266_v61 = vpop.permute.xlu1 %435 }
 0x13b   : > { %11441 = vst [vmem:[#allocation53_spill] sm:$0xff] %v6266_v61 }
 0x13e   : > { %v6270_v29 = vpop.permute.xlu1 %501 }
 0x13f   : > { %v6268_v51 = vpop.permute.xlu0 %503  ;;  %11443 = vst [vmem:[#allocation55_spill] sm:$0xff] %v6270_v29 }
 0x140   : > { %11442 = vst [vmem:[#allocation54_spill] sm:$0xff] %v6268_v51 }
 0x143   : > { %v6272_v18 = vpop.permute.xlu0 %507  ;;  %v6274_v15 = vpop.permute.xlu1 %505 }
 0x144   : > { %11444 = vst [vmem:[#allocation56_spill] sm:$0xff] %v6272_v18  ;;  %11445 = vst [vmem:[#allocation57_spill] sm:$0xff] %v6274_v15 }
 0x147   : > { %v6276_v11 = vpop.permute.xlu0 %511  ;;  %v6278_v40 = vpop.permute.xlu1 %509 }
 0x148   : > { %11446 = vst [vmem:[#allocation58_spill] sm:$0xff] %v6276_v11  ;;  %11447 = vst [vmem:[#allocation59_spill] sm:$0xff] %v6278_v40 }
 0x14b   : > { %v6280_v0 = vpop.permute.xlu0 %515  ;;  %v6282_v20 = vpop.permute.xlu1 %513 }
 0x14c   : > { %11448 = vst [vmem:[#allocation60_spill] sm:$0xff] %v6280_v0  ;;  %11449 = vst [vmem:[#allocation61_spill] sm:$0xff] %v6282_v20 }
 0x14f   : > { %v6286_v56 = vpop.permute.xlu1 %583 }
 0x150   : > { %v6284_v19 = vpop.permute.xlu0 %581  ;;  %11451 = vst [vmem:[#allocation63_spill] sm:$0xff] %v6286_v56 }
 0x151   : > { %11450 = vst [vmem:[#allocation62_spill] sm:$0xff] %v6284_v19 }
 0x154   : > { %v6288_v61 = vpop.permute.xlu0 %585 }
 0x155   : > { %11452 = vst [vmem:[#allocation64_spill] sm:$0xff] %v6288_v61 }
 0x158   : > { %v6290_v12 = vpop.permute.xlu1 %587  ;;  %v6292_v51 = vpop.permute.xlu0 %589 }
 0x159   : > { %11453 = vst [vmem:[#allocation65_spill] sm:$0xff] %v6290_v12  ;;  %11454 = vst [vmem:[#allocation66_spill] sm:$0xff] %v6292_v51 }
 0x15c   : > { %v6294_v18 = vpop.permute.xlu1 %591  ;;  %v6296_v15 = vpop.permute.xlu0 %593 }
 0x15d   : > { %11455 = vst [vmem:[#allocation67_spill] sm:$0xff] %v6294_v18  ;;  %11456 = vst [vmem:[#allocation68_spill] sm:$0xff] %v6296_v15 }
 0x160   : > { %v6298_v11 = vpop.permute.xlu1 %595 }
 0x161   : > { %11457 = vst [vmem:[#allocation69_spill] sm:$0xff] %v6298_v11 }
 0x16d   : > { %v615_v40 = vpop.permute.xlu0 %614 }
 0x16e   : > { %v6301_v0 = vmul.f32 %v615_v40, %v6037_v14 }
 0x170   : > { %11458 = vst [vmem:[#allocation70_spill] sm:$0xff] %v6301_v0  ;;  %661 = vrot.lane.b32.xlu1 %v6301_v0, %s5872_s27 }
 0x171   : > { %v619_v20 = vpop.permute.xlu1 %618  ;;  %v627_v56 = vpop.permute.xlu0 %626 }
 0x172   : > { %v6305_v61 = vmul.f32 %v619_v20, %v6053_v22  ;;  %v6309_v15 = vmul.f32 %v627_v56, %v6059_v25 }
 0x174   : > { %11459 = vst [vmem:[#allocation71_spill] sm:$0xff] %v6305_v61  ;;  %663 = vrot.lane.b32.xlu0 %v6305_v61, %s5872_s27  ;;  %11460 = vst [vmem:[#allocation72_spill] sm:$0xff] %v6309_v15 }
 0x175   : > { %v623_v12 = vpop.permute.xlu1 %622  ;;  %v635_v18 = vpop.permute.xlu0 %634 }
 0x176   : > { %v6312_v11 = vmul.f32 %v623_v12, %v6067_v28  ;;  %v6317_v51 = vmul.f32 %v635_v18, %v6073_v31 }
 0x178   : > { %11461 = vst [vmem:[#allocation73_spill] sm:$0xff] %v6312_v11  ;;  %665 = vrot.lane.b32.xlu1 %v6312_v11, %s5872_s27  ;;  %667 = vrot.lane.b32.xlu0 %v6309_v15, %s5872_s27  ;;  %11462 = vst [vmem:[#allocation74_spill] sm:$0xff] %v6317_v51 }
 0x179   : > { %v631_v40 = vpop.permute.xlu1 %630  ;;  %v643_v1 = vpop.permute.xlu0 %642 }
 0x17a   : > { %v6320_v20 = vmul.f32 %v631_v40, %v6076_v32  ;;  %v6325_v12 = vmul.f32 %v643_v1, %v6096_v38  ;;  %v5873_v1 = vmov 7  }
 0x17c   : > { %11463 = vst [vmem:[#allocation75_spill] sm:$0xff] %v6320_v20  ;;  %669 = vrot.lane.b32.xlu1 %v6320_v20, %s5872_s27  ;;  %671 = vrot.lane.b32.xlu0 %v6317_v51, %s5872_s27  ;;  %11464 = vst [vmem:[#allocation76_spill] sm:$0xff] %v6325_v12 }
 0x17d   : > { %v639_v56 = vpop.permute.xlu1 %638 }
 0x17e   : > { %v6328_v50 = vmul.f32 %v639_v56, %v6089_v37 }
 0x180   : > { %11465 = vst [vmem:[#allocation77_spill] sm:$0xff] %v6328_v50  ;;  %673 = vrot.lane.b32.xlu1 %v6328_v50, %s5872_s27  ;;  %675 = vrot.lane.b32.xlu0 %v6325_v12, %s5872_s27  ;;  %s5920_s27 = smov 119  }
 0x184   : > { %694 = vperm.xlu1 %5730, %v5970_v3   ;;  %698 = vperm.xlu0 %5731, %v5989_v7  }
 0x188   : > { %702 = vperm.xlu1 %5730, %v5966_v2   ;;  %710 = vperm.xlu0 %5731, %v5997_v9  }
 0x18c   : > { %706 = vperm.xlu1 %5730, %v5973_v4   ;;  %718 = vperm.xlu0 %5731, %v6002_v10  }
 0x190   : > { %714 = vperm.xlu1 %5730, %v5978_v5   ;;  %5732 = vset.pattern.permute.xlu0 %v5873_v1 }
 0x194   : > { %722 = vperm.xlu1 %5730, %v5983_v6  }
 0x198   : > { %5733 = vset.pattern.permute.xlu1 %v5873_v1 }
 0x1e2   : > { %v6340_v18 = vpop.permute.xlu1 %661 }
 0x1e3   : > { %11466 = vst [vmem:[#allocation78_spill] sm:$0xff] %v6340_v18 }
 0x1e6   : > { %v6342_v40 = vpop.permute.xlu0 %663 }
 0x1e7   : > { %11467 = vst [vmem:[#allocation79_spill] sm:$0xff] %v6342_v40 }
 0x1ea   : > { %v6344_v56 = vpop.permute.xlu1 %665  ;;  %v6346_v12 = vpop.permute.xlu0 %667 }
 0x1eb   : > { %11468 = vst [vmem:[#allocation80_spill] sm:$0xff] %v6344_v56  ;;  %11469 = vst [vmem:[#allocation81_spill] sm:$0xff] %v6346_v12 }
 0x1ee   : > { %v6348_v50 = vpop.permute.xlu1 %669  ;;  %v6350_v51 = vpop.permute.xlu0 %671 }
 0x1ef   : > { %11470 = vst [vmem:[#allocation82_spill] sm:$0xff] %v6348_v50  ;;  %11471 = vst [vmem:[#allocation83_spill] sm:$0xff] %v6350_v51 }
 0x1f2   : > { %v6352_v20 = vpop.permute.xlu1 %673  ;;  %v6354_v15 = vpop.permute.xlu0 %675 }
 0x1f3   : > { %11472 = vst [vmem:[#allocation84_spill] sm:$0xff] %v6352_v20  ;;  %11473 = vst [vmem:[#allocation85_spill] sm:$0xff] %v6354_v15 }
 0x203   : > { %v695_v11 = vpop.permute.xlu1 %694  ;;  %v699_v19 = vpop.permute.xlu0 %698 }
 0x204   : > { %v6357_v1 = vmul.f32 %v695_v11, %v6037_v14  ;;  %v6360_v18 = vmul.f32 %v699_v19, %v6053_v22 }
 0x206   : > { %11474 = vst [vmem:[#allocation86_spill] sm:$0xff] %v6357_v1  ;;  %11475 = vst [vmem:[#allocation87_spill] sm:$0xff] %v6360_v18  ;;  %741 = vrot.lane.b32.xlu0 %v6357_v1, %s5874_s28  ;;  %743 = vrot.lane.b32.xlu1 %v6360_v18, %s5874_s28 }
 0x207   : > { %v703_v51 = vpop.permute.xlu1 %702  ;;  %v711_v50 = vpop.permute.xlu0 %710 }
 0x208   : > { %v6367_v20 = vmul.f32 %v703_v51, %v6067_v28  ;;  %v6372_v15 = vmul.f32 %v711_v50, %v6076_v32 }
 0x20a   : > { %11476 = vst [vmem:[#allocation88_spill] sm:$0xff] %v6367_v20  ;;  %745 = vrot.lane.b32.xlu0 %v6367_v20, %s5874_s28  ;;  %11477 = vst [vmem:[#allocation89_spill] sm:$0xff] %v6372_v15 }
 0x20b   : > { %v707_v11 = vpop.permute.xlu1 %706  ;;  %v719_v12 = vpop.permute.xlu0 %718 }
 0x20c   : > { %v6375_v19 = vmul.f32 %v707_v11, %v6059_v25  ;;  %v6382_v51 = vmul.f32 %v719_v12, %v6089_v37  ;;  %v5875_v12 = vmov 8  }
 0x20e   : > { %11478 = vst [vmem:[#allocation90_spill] sm:$0xff] %v6375_v19  ;;  %747 = vrot.lane.b32.xlu1 %v6375_v19, %s5874_s28  ;;  %749 = vrot.lane.b32.xlu0 %v6372_v15, %s5874_s28  ;;  %11479 = vst [vmem:[#allocation91_spill] sm:$0xff] %v6382_v51 }
 0x20f   : > { %v715_v56 = vpop.permute.xlu1 %714 }
 0x210   : > { %v6385_v40 = vmul.f32 %v715_v56, %v6073_v31 }
 0x212   : > { %11480 = vst [vmem:[#allocation92_spill] sm:$0xff] %v6385_v40  ;;  %751 = vrot.lane.b32.xlu1 %v6385_v40, %s5874_s28  ;;  %753 = vrot.lane.b32.xlu0 %v6382_v51, %s5874_s28 }
 0x213   : > { %v723_v50 = vpop.permute.xlu1 %722 }
 0x214   : > { %v6392_v11 = vmul.f32 %v723_v50, %v6096_v38 }
 0x216   : > { %11481 = vst [vmem:[#allocation93_spill] sm:$0xff] %v6392_v11  ;;  %755 = vrot.lane.b32.xlu1 %v6392_v11, %s5874_s28  ;;  %774 = vperm.xlu0 %5732, %v5970_v3  }
 0x21a   : > { %778 = vperm.xlu1 %5733, %v5989_v7   ;;  %786 = vperm.xlu0 %5732, %v5973_v4  }
 0x21e   : > { %782 = vperm.xlu1 %5733, %v5966_v2   ;;  %794 = vperm.xlu0 %5732, %v5978_v5  }
 0x222   : > { %790 = vperm.xlu1 %5733, %v5997_v9   ;;  %802 = vperm.xlu0 %5732, %v5983_v6  }
 0x226   : > { %798 = vperm.xlu1 %5733, %v6002_v10   ;;  %5735 = vset.pattern.permute.xlu0 %v5875_v12 }
 0x22a   : > { %5734 = vset.pattern.permute.xlu1 %v5875_v12 }
 0x278   : > { %v6404_v56 = vpop.permute.xlu0 %741  ;;  %v6406_v50 = vpop.permute.xlu1 %743 }
 0x279   : > { %11482 = vst [vmem:[#allocation94_spill] sm:$0xff] %v6404_v56  ;;  %11483 = vst [vmem:[#allocation95_spill] sm:$0xff] %v6406_v50 }
 0x27c   : > { %v6408_v11 = vpop.permute.xlu0 %745 }
 0x27d   : > { %11484 = vst [vmem:[#allocation96_spill] sm:$0xff] %v6408_v11 }
 0x280   : > { %v6410_v51 = vpop.permute.xlu1 %747  ;;  %v6412_v40 = vpop.permute.xlu0 %749 }
 0x281   : > { %11485 = vst [vmem:[#allocation97_spill] sm:$0xff] %v6410_v51  ;;  %11486 = vst [vmem:[#allocation98_spill] sm:$0xff] %v6412_v40 }
 0x284   : > { %v6414_v15 = vpop.permute.xlu1 %751  ;;  %v6416_v19 = vpop.permute.xlu0 %753 }
 0x285   : > { %11487 = vst [vmem:[#allocation99_spill] sm:$0xff] %v6414_v15  ;;  %11488 = vst [vmem:[#allocation100_spill] sm:$0xff] %v6416_v19 }
 0x288   : > { %v6418_v20 = vpop.permute.xlu1 %755 }
 0x289   : > { %11489 = vst [vmem:[#allocation101_spill] sm:$0xff] %v6418_v20 }
 0x295   : > { %v775_v18 = vpop.permute.xlu0 %774 }
 0x296   : > { %v6421_v1 = vmul.f32 %v775_v18, %v6037_v14 }
 0x298   : > { %11490 = vst [vmem:[#allocation102_spill] sm:$0xff] %v6421_v1  ;;  %821 = vrot.lane.b32.xlu1 %v6421_v1, %s5876_s29 }
 0x299   : > { %v779_v12 = vpop.permute.xlu1 %778  ;;  %v787_v50 = vpop.permute.xlu0 %786 }
 0x29a   : > { %v6425_v11 = vmul.f32 %v779_v12, %v6053_v22  ;;  %v6429_v19 = vmul.f32 %v787_v50, %v6059_v25 }
 0x29c   : > { %11491 = vst [vmem:[#allocation103_spill] sm:$0xff] %v6425_v11  ;;  %823 = vrot.lane.b32.xlu0 %v6425_v11, %s5876_s29  ;;  %11492 = vst [vmem:[#allocation104_spill] sm:$0xff] %v6429_v19 }
 0x29d   : > { %v783_v40 = vpop.permute.xlu1 %782  ;;  %v795_v15 = vpop.permute.xlu0 %794 }
 0x29e   : > { %v6432_v20 = vmul.f32 %v783_v40, %v6067_v28  ;;  %v6437_v51 = vmul.f32 %v795_v15, %v6073_v31  ;;  %v5877_v15 = vmov 11  }
 0x2a0   : > { %11493 = vst [vmem:[#allocation105_spill] sm:$0xff] %v6432_v20  ;;  %825 = vrot.lane.b32.xlu1 %v6432_v20, %s5876_s29  ;;  %827 = vrot.lane.b32.xlu0 %v6429_v19, %s5876_s29  ;;  %11494 = vst [vmem:[#allocation106_spill] sm:$0xff] %v6437_v51 }
 0x2a1   : > { %v791_v18 = vpop.permute.xlu1 %790  ;;  %v803_v11 = vpop.permute.xlu0 %802 }
 0x2a2   : > { %v6440_v12 = vmul.f32 %v791_v18, %v6076_v32  ;;  %v6445_v40 = vmul.f32 %v803_v11, %v6096_v38  ;;  %v5878_v11 = vmov 14  }
 0x2a4   : > { %11495 = vst [vmem:[#allocation107_spill] sm:$0xff] %v6440_v12  ;;  %829 = vrot.lane.b32.xlu1 %v6440_v12, %s5876_s29  ;;  %831 = vrot.lane.b32.xlu0 %v6437_v51, %s5876_s29  ;;  %11496 = vst [vmem:[#allocation108_spill] sm:$0xff] %v6445_v40 }
 0x2a5   : > { %v799_v50 = vpop.permute.xlu1 %798 }
 0x2a6   : > { %v6448_v20 = vmul.f32 %v799_v50, %v6089_v37 }
 0x2a8   : > { %11497 = vst [vmem:[#allocation109_spill] sm:$0xff] %v6448_v20  ;;  %833 = vrot.lane.b32.xlu1 %v6448_v20, %s5876_s29  ;;  %835 = vrot.lane.b32.xlu0 %v6445_v40, %s5876_s29  ;;  %s5923_s29 = smov 123  }
 0x2ac   : > { %854 = vperm.xlu1 %5734, %v5970_v3   ;;  %858 = vperm.xlu0 %5735, %v5989_v7  }
 0x2b0   : > { %862 = vperm.xlu1 %5734, %v5966_v2   ;;  %870 = vperm.xlu0 %5735, %v5997_v9  }
 0x2b4   : > { %866 = vperm.xlu1 %5734, %v5973_v4   ;;  %878 = vperm.xlu0 %5735, %v6002_v10  }
 0x2b8   : > { %874 = vperm.xlu1 %5734, %v5978_v5   ;;  %5736 = vset.pattern.permute.xlu0 %v5877_v15 }
 0x2b9   : > { %894 = vperm.xlu0 %5736, %v5970_v3  }
 0x2bc   : > { %882 = vperm.xlu1 %5734, %v5983_v6  }
 0x2bd   : > { %906 = vperm.xlu0 %5736, %v5973_v4  }
 0x2c0   : > { %5737 = vset.pattern.permute.xlu1 %v5877_v15 }
 0x2c1   : > { %898 = vperm.xlu1 %5737, %v5989_v7   ;;  %914 = vperm.xlu0 %5736, %v5978_v5  }
 0x2c5   : > { %902 = vperm.xlu1 %5737, %v5966_v2   ;;  %922 = vperm.xlu0 %5736, %v5983_v6  }
 0x2c9   : > { %910 = vperm.xlu1 %5737, %v5997_v9   ;;  %5739 = vset.pattern.permute.xlu0 %v5878_v11 }
 0x2cd   : > { %918 = vperm.xlu1 %5737, %v6002_v10  }
 0x2d1   : > { %5738 = vset.pattern.permute.xlu1 %v5878_v11 }
 0x30a   : > { %v6468_v18 = vpop.permute.xlu1 %821 }
 0x30b   : > { %11498 = vst [vmem:[#allocation110_spill] sm:$0xff] %v6468_v18 }
 0x30e   : > { %v6470_v50 = vpop.permute.xlu0 %823 }
 0x30f   : > { %11499 = vst [vmem:[#allocation111_spill] sm:$0xff] %v6470_v50 }
 0x312   : > { %v6472_v15 = vpop.permute.xlu1 %825  ;;  %v6474_v40 = vpop.permute.xlu0 %827 }
 0x313   : > { %11500 = vst [vmem:[#allocation112_spill] sm:$0xff] %v6472_v15  ;;  %11501 = vst [vmem:[#allocation113_spill] sm:$0xff] %v6474_v40 }
 0x316   : > { %v6476_v20 = vpop.permute.xlu1 %829  ;;  %v6478_v51 = vpop.permute.xlu0 %831 }
 0x317   : > { %11502 = vst [vmem:[#allocation114_spill] sm:$0xff] %v6476_v20  ;;  %11503 = vst [vmem:[#allocation115_spill] sm:$0xff] %v6478_v51 }
 0x31a   : > { %v6480_v12 = vpop.permute.xlu1 %833  ;;  %v6482_v19 = vpop.permute.xlu0 %835 }
 0x31b   : > { %11504 = vst [vmem:[#allocation116_spill] sm:$0xff] %v6480_v12  ;;  %11505 = vst [vmem:[#allocation117_spill] sm:$0xff] %v6482_v19 }
 0x32b   : > { %v6484_v1 = vpop.permute.xlu1 %854  ;;  %v6486_v56 = vpop.permute.xlu0 %858 }
 0x32c   : > { %11506 = vst [vmem:[#allocation118_spill] sm:$0xff] %v6484_v1 }
 0x32f   : > { %v6488_v11 = vpop.permute.xlu1 %862  ;;  %v6490_v18 = vpop.permute.xlu0 %870 }
 0x330   : > { %11507 = vst [vmem:[#allocation119_spill] sm:$0xff] %v6488_v11  ;;  %11508 = vst [vmem:[#allocation120_spill] sm:$0xff] %v6490_v18 }
 0x333   : > { %v6492_v50 = vpop.permute.xlu1 %866  ;;  %v6494_v15 = vpop.permute.xlu0 %878 }
 0x334   : > { %11509 = vst [vmem:[#allocation121_spill] sm:$0xff] %v6492_v50  ;;  %11510 = vst [vmem:[#allocation122_spill] sm:$0xff] %v6494_v15 }
 0x337   : > { %v6496_v40 = vpop.permute.xlu1 %874 }
 0x338   : > { %11511 = vst [vmem:[#allocation123_spill] sm:$0xff] %v6496_v40  ;;  %v6498_v20 = vpop.permute.xlu0 %894 }
 0x339   : > { %11512 = vst [vmem:[#allocation124_spill] sm:$0xff] %v6498_v20  ;;  %v925_v12 = vmul.f32 %v6498_v20, %v6037_v14 }
 0x33b   : > { %v6502_v19 = vpop.permute.xlu1 %882  ;;  %941 = vrot.lane.b32.xlu1 %v925_v12, %s5867_s23 }
 0x33c   : > { %11513 = vst [vmem:[#allocation125_spill] sm:$0xff] %v6502_v19  ;;  %v6505_v51 = vpop.permute.xlu0 %906 }
 0x33d   : > { %11514 = vst [vmem:[#allocation126_spill] sm:$0xff] %v6505_v51  ;;  %v928_v20 = vmul.f32 %v6505_v51, %v6059_v25 }
 0x340   : > { %v6507_v61 = vpop.permute.xlu1 %898  ;;  %v6512_v29 = vpop.permute.xlu0 %914 }
 0x341   : > { %11515 = vst [vmem:[#allocation127_spill] sm:$0xff] %v6507_v61  ;;  %v926_v0 = vmul.f32 %v6507_v61, %v6053_v22  ;;  %11516 = vst [vmem:[#allocation128_spill] sm:$0xff] %v6512_v29  ;;  %v930_v61 = vmul.f32 %v6512_v29, %v6073_v31 }
 0x343   : > { %943 = vrot.lane.b32.xlu0 %v926_v0, %s5867_s23 }
 0x344   : > { %v6514_v34 = vpop.permute.xlu1 %902  ;;  %v6528_v8 = vpop.permute.xlu0 %922 }
 0x345   : > { %11517 = vst [vmem:[#allocation129_spill] sm:$0xff] %v6514_v34  ;;  %v927_v13 = vmul.f32 %v6514_v34, %v6067_v28  ;;  %11519 = vst [vmem:[#allocation131_spill] sm:$0xff] %v6528_v8 }
 0x347   : > { %945 = vrot.lane.b32.xlu1 %v927_v13, %s5867_s23  ;;  %947 = vrot.lane.b32.xlu0 %v928_v20, %s5867_s23  ;;  %v932_v13 = vmul.f32 %v6528_v8, %v6096_v38 }
 0x348   : > { %v6522_v12 = vpop.permute.xlu1 %910 }
 0x349   : > { %11518 = vst [vmem:[#allocation130_spill] sm:$0xff] %v6522_v12  ;;  %v929_v0 = vmul.f32 %v6522_v12, %v6076_v32 }
 0x34b   : > { %949 = vrot.lane.b32.xlu1 %v929_v0, %s5867_s23  ;;  %951 = vrot.lane.b32.xlu0 %v930_v61, %s5867_s23  ;;  %v5879_v61 = vmov 17  }
 0x34c   : > { %v6532_v51 = vpop.permute.xlu1 %918 }
 0x34d   : > { %11520 = vst [vmem:[#allocation132_spill] sm:$0xff] %v6532_v51  ;;  %v931_v20 = vmul.f32 %v6532_v51, %v6089_v37 }
 0x34f   : > { %953 = vrot.lane.b32.xlu1 %v931_v20, %s5867_s23  ;;  %955 = vrot.lane.b32.xlu0 %v932_v13, %s5867_s23 }
 0x353   : > { %974 = vperm.xlu1 %5738, %v5970_v3   ;;  %978 = vperm.xlu0 %5739, %v5989_v7  }
 0x357   : > { %982 = vperm.xlu1 %5738, %v5966_v2   ;;  %990 = vperm.xlu0 %5739, %v5997_v9  }
 0x35b   : > { %986 = vperm.xlu1 %5738, %v5973_v4   ;;  %998 = vperm.xlu0 %5739, %v6002_v10  }
 0x35f   : > { %994 = vperm.xlu1 %5738, %v5978_v5   ;;  %5740 = vset.pattern.permute.xlu0 %v5879_v61 }
 0x363   : > { %1002 = vperm.xlu1 %5738, %v5983_v6  }
 0x367   : > { %5741 = vset.pattern.permute.xlu1 %v5879_v61 }
 0x3ad   : > { %v6550_v13 = vpop.permute.xlu1 %941 }
 0x3b5   : > { %v6548_v0 = vpop.permute.xlu0 %943 }
 0x3b9   : > { %v6552_v20 = vpop.permute.xlu1 %945  ;;  %v6554_v51 = vpop.permute.xlu0 %947 }
 0x3bd   : > { %v6556_v8 = vpop.permute.xlu1 %949  ;;  %v6558_v12 = vpop.permute.xlu0 %951 }
 0x3c1   : > { %v6560_v29 = vpop.permute.xlu1 %953  ;;  %v6562_v34 = vpop.permute.xlu0 %955 }
 0x3d2   : > { %v6564_v21 = vpop.permute.xlu1 %974  ;;  %v6566_v57 = vpop.permute.xlu0 %978 }
 0x3d3   : > { %11521 = vst [vmem:[#allocation133_spill] sm:$0xff] %v6564_v21  ;;  %11522 = vst [vmem:[#allocation134_spill] sm:$0xff] %v6566_v57  ;;  %v1005_v61 = vmul.f32 %v6564_v21, %v6037_v14  ;;  %v1006_v46 = vmul.f32 %v6566_v57, %v6053_v22 }
 0x3d5   : > { %1021 = vrot.lane.b32.xlu0 %v1005_v61, %s5868_s24  ;;  %1023 = vrot.lane.b32.xlu1 %v1006_v46, %s5868_s24 }
 0x3d6   : > { %v6574_v60 = vpop.permute.xlu1 %982  ;;  %v6576_v53 = vpop.permute.xlu0 %990 }
 0x3d7   : > { %11523 = vst [vmem:[#allocation135_spill] sm:$0xff] %v6574_v60  ;;  %11524 = vst [vmem:[#allocation136_spill] sm:$0xff] %v6576_v53  ;;  %v1007_v44 = vmul.f32 %v6574_v60, %v6067_v28  ;;  %v1009_v21 = vmul.f32 %v6576_v53, %v6076_v32 }
 0x3d9   : > { %1025 = vrot.lane.b32.xlu0 %v1007_v44, %s5868_s24 }
 0x3da   : > { %v6581_v47 = vpop.permute.xlu1 %986  ;;  %v6587_v61 = vpop.permute.xlu0 %998 }
 0x3db   : > { %11525 = vst [vmem:[#allocation137_spill] sm:$0xff] %v6581_v47  ;;  %v1008_v57 = vmul.f32 %v6581_v47, %v6059_v25  ;;  %11526 = vst [vmem:[#allocation138_spill] sm:$0xff] %v6587_v61  ;;  %v1011_v60 = vmul.f32 %v6587_v61, %v6089_v37 }
 0x3dd   : > { %1027 = vrot.lane.b32.xlu1 %v1008_v57, %s5868_s24  ;;  %1029 = vrot.lane.b32.xlu0 %v1009_v21, %s5868_s24  ;;  %v5880_v57 = vmov 9  }
 0x3de   : > { %v6591_v46 = vpop.permute.xlu1 %994 }
 0x3df   : > { %11527 = vst [vmem:[#allocation139_spill] sm:$0xff] %v6591_v46  ;;  %v1010_v44 = vmul.f32 %v6591_v46, %v6073_v31 }
 0x3e1   : > { %1031 = vrot.lane.b32.xlu1 %v1010_v44, %s5868_s24  ;;  %1033 = vrot.lane.b32.xlu0 %v1011_v60, %s5868_s24 }
 0x3e2   : > { %v6599_v53 = vpop.permute.xlu1 %1002 }
 0x3e3   : > { %11528 = vst [vmem:[#allocation140_spill] sm:$0xff] %v6599_v53  ;;  %v1012_v47 = vmul.f32 %v6599_v53, %v6096_v38 }
 0x3e5   : > { %1035 = vrot.lane.b32.xlu1 %v1012_v47, %s5868_s24  ;;  %1054 = vperm.xlu0 %5740, %v5970_v3  }
 0x3e9   : > { %1058 = vperm.xlu1 %5741, %v5989_v7   ;;  %1066 = vperm.xlu0 %5740, %v5973_v4  }
 0x3ed   : > { %1062 = vperm.xlu1 %5741, %v5966_v2   ;;  %1074 = vperm.xlu0 %5740, %v5978_v5  }
 0x3f1   : > { %1070 = vperm.xlu1 %5741, %v5997_v9   ;;  %1082 = vperm.xlu0 %5740, %v5983_v6  }
 0x3f5   : > { %1078 = vperm.xlu1 %5741, %v6002_v10   ;;  %5743 = vset.pattern.permute.xlu0 %v5880_v57 }
 0x3f9   : > { %5742 = vset.pattern.permute.xlu1 %v5880_v57 }
 0x447   : > { %v6612_v47 = vpop.permute.xlu0 %1021  ;;  %v6614_v60 = vpop.permute.xlu1 %1023 }
 0x44b   : > { %v6616_v21 = vpop.permute.xlu0 %1025 }
 0x44f   : > { %v6618_v44 = vpop.permute.xlu1 %1027  ;;  %v6620_v53 = vpop.permute.xlu0 %1029 }
 0x453   : > { %v6622_v61 = vpop.permute.xlu1 %1031  ;;  %v6624_v46 = vpop.permute.xlu0 %1033 }
 0x457   : > { %v6626_v35 = vpop.permute.xlu1 %1035 }
 0x464   : > { %v6628_v39 = vpop.permute.xlu0 %1054 }
 0x465   : > { %11529 = vst [vmem:[#allocation141_spill] sm:$0xff] %v6628_v39  ;;  %v1085_v57 = vmul.f32 %v6628_v39, %v6037_v14 }
 0x467   : > { %1101 = vrot.lane.b32.xlu1 %v1085_v57, %s5869_s25 }
 0x468   : > { %v6633_v23 = vpop.permute.xlu1 %1058  ;;  %v6635_v26 = vpop.permute.xlu0 %1066 }
 0x469   : > { %11530 = vst [vmem:[#allocation142_spill] sm:$0xff] %v6633_v23  ;;  %11531 = vst [vmem:[#allocation143_spill] sm:$0xff] %v6635_v26  ;;  %v1086_v63 = vmul.f32 %v6633_v23, %v6053_v22  ;;  %v1088_v59 = vmul.f32 %v6635_v26, %v6059_v25 }
 0x46b   : > { %1103 = vrot.lane.b32.xlu0 %v1086_v63, %s5869_s25 }
 0x46c   : > { %v6640_v16 = vpop.permute.xlu1 %1062  ;;  %v6642_v62 = vpop.permute.xlu0 %1074 }
 0x46d   : > { %11532 = vst [vmem:[#allocation144_spill] sm:$0xff] %v6640_v16  ;;  %11533 = vst [vmem:[#allocation145_spill] sm:$0xff] %v6642_v62  ;;  %v1087_v39 = vmul.f32 %v6640_v16, %v6067_v28  ;;  %v1090_v23 = vmul.f32 %v6642_v62, %v6073_v31 }
 0x46f   : > { %1105 = vrot.lane.b32.xlu1 %v1087_v39, %s5869_s25  ;;  %1107 = vrot.lane.b32.xlu0 %v1088_v59, %s5869_s25 }
 0x470   : > { %v6650_v57 = vpop.permute.xlu1 %1070  ;;  %v6656_v58 = vpop.permute.xlu0 %1082 }
 0x471   : > { %11534 = vst [vmem:[#allocation146_spill] sm:$0xff] %v6650_v57  ;;  %v1089_v63 = vmul.f32 %v6650_v57, %v6076_v32  ;;  %11535 = vst [vmem:[#allocation147_spill] sm:$0xff] %v6656_v58  ;;  %v1092_v39 = vmul.f32 %v6656_v58, %v6096_v38 }
 0x473   : > { %1109 = vrot.lane.b32.xlu1 %v1089_v63, %s5869_s25  ;;  %1111 = vrot.lane.b32.xlu0 %v1090_v23, %s5869_s25  ;;  %v5881_v23 = vmov 12   ;;  %v5882_v63 = vmov 15  }
 0x474   : > { %v6660_v26 = vpop.permute.xlu1 %1078 }
 0x475   : > { %11536 = vst [vmem:[#allocation148_spill] sm:$0xff] %v6660_v26  ;;  %v1091_v59 = vmul.f32 %v6660_v26, %v6089_v37 }
 0x477   : > { %1113 = vrot.lane.b32.xlu1 %v1091_v59, %s5869_s25  ;;  %1115 = vrot.lane.b32.xlu0 %v1092_v39, %s5869_s25 }
 0x47b   : > { %1134 = vperm.xlu1 %5742, %v5970_v3   ;;  %1138 = vperm.xlu0 %5743, %v5989_v7  }
 0x47f   : > { %1142 = vperm.xlu1 %5742, %v5966_v2   ;;  %1150 = vperm.xlu0 %5743, %v5997_v9  }
 0x483   : > { %1146 = vperm.xlu1 %5742, %v5973_v4   ;;  %1158 = vperm.xlu0 %5743, %v6002_v10  }
 0x487   : > { %1154 = vperm.xlu1 %5742, %v5978_v5   ;;  %5744 = vset.pattern.permute.xlu0 %v5881_v23 }
 0x488   : > { %1174 = vperm.xlu0 %5744, %v5970_v3  }
 0x48b   : > { %1162 = vperm.xlu1 %5742, %v5983_v6  }
 0x48c   : > { %1186 = vperm.xlu0 %5744, %v5973_v4  }
 0x48f   : > { %5745 = vset.pattern.permute.xlu1 %v5881_v23 }
 0x490   : > { %1178 = vperm.xlu1 %5745, %v5989_v7   ;;  %1194 = vperm.xlu0 %5744, %v5978_v5  }
 0x494   : > { %1182 = vperm.xlu1 %5745, %v5966_v2   ;;  %1202 = vperm.xlu0 %5744, %v5983_v6  }
 0x498   : > { %1190 = vperm.xlu1 %5745, %v5997_v9   ;;  %5747 = vset.pattern.permute.xlu0 %v5882_v63 }
 0x49c   : > { %1198 = vperm.xlu1 %5745, %v6002_v10  }
 0x4a0   : > { %5746 = vset.pattern.permute.xlu1 %v5882_v63 }
 0x4d9   : > { %v6686_v39 = vpop.permute.xlu1 %1101 }
 0x4dd   : > { %v6684_v3 = vpop.permute.xlu0 %1103 }
 0x4e1   : > { %v6688_v4 = vpop.permute.xlu1 %1105  ;;  %v6690_v7 = vpop.permute.xlu0 %1107 }
 0x4e5   : > { %v6692_v5 = vpop.permute.xlu1 %1109  ;;  %v6694_v2 = vpop.permute.xlu0 %1111 }
 0x4e9   : > { %v6696_v6 = vpop.permute.xlu1 %1113  ;;  %v6698_v9 = vpop.permute.xlu0 %1115 }
 0x4ea   : > { %11537 = vst [vmem:[#allocation149_spill] sm:$0xff] %v6696_v6  ;;  %11538 = vst [vmem:[#allocation150_spill] sm:$0xff] %v6698_v9 }
 0x4fa   : > { %v6700_v10 = vpop.permute.xlu1 %1134  ;;  %v6702_v59 = vpop.permute.xlu0 %1138 }
 0x4fb   : > { %11539 = vst [vmem:[#allocation151_spill] sm:$0xff] %v6700_v10 }
 0x4fe   : > { %v6704_v23 = vpop.permute.xlu1 %1142  ;;  %v6706_v63 = vpop.permute.xlu0 %1150 }
 0x4ff   : > { %11540 = vst [vmem:[#allocation152_spill] sm:$0xff] %v6706_v63 }
 0x502   : > { %v6708_v26 = vpop.permute.xlu1 %1146  ;;  %v6710_v58 = vpop.permute.xlu0 %1158 }
 0x503   : > { %11541 = vst [vmem:[#allocation153_spill] sm:$0xff] %v6708_v26  ;;  %11542 = vst [vmem:[#allocation154_spill] sm:$0xff] %v6710_v58 }
 0x506   : > { %v6712_v57 = vpop.permute.xlu1 %1154 }
 0x507   : > { %11543 = vst [vmem:[#allocation155_spill] sm:$0xff] %v6712_v57  ;;  %v6714_v62 = vpop.permute.xlu0 %1174 }
 0x508   : > { %11544 = vst [vmem:[#allocation156_spill] sm:$0xff] %v6714_v62  ;;  %v1205_v16 = vmul.f32 %v6714_v62, %v6037_v14 }
 0x50a   : > { %v6718_v54 = vpop.permute.xlu1 %1162  ;;  %1221 = vrot.lane.b32.xlu1 %v1205_v16, %s5867_s23 }
 0x50b   : > { %11545 = vst [vmem:[#allocation157_spill] sm:$0xff] %v6718_v54  ;;  %v6721_v55 = vpop.permute.xlu0 %1186 }
 0x50c   : > { %11546 = vst [vmem:[#allocation158_spill] sm:$0xff] %v6721_v55  ;;  %v1208_v62 = vmul.f32 %v6721_v55, %v6059_v25  ;;  %v5883_v55 = vmov 18  }
 0x50f   : > { %v6723_v49 = vpop.permute.xlu1 %1178  ;;  %v6728_v48 = vpop.permute.xlu0 %1194 }
 0x510   : > { %11547 = vst [vmem:[#allocation159_spill] sm:$0xff] %v6723_v49  ;;  %v1206_v52 = vmul.f32 %v6723_v49, %v6053_v22  ;;  %11548 = vst [vmem:[#allocation160_spill] sm:$0xff] %v6728_v48 }
 0x512   : > { %1223 = vrot.lane.b32.xlu0 %v1206_v52, %s5867_s23  ;;  %v1210_v52 = vmul.f32 %v6728_v48, %v6073_v31 }
 0x513   : > { %v6730_v43 = vpop.permute.xlu1 %1182  ;;  %v6744_v41 = vpop.permute.xlu0 %1202 }
 0x514   : > { %11549 = vst [vmem:[#allocation161_spill] sm:$0xff] %v6730_v43  ;;  %v1207_v16 = vmul.f32 %v6730_v43, %v6067_v28  ;;  %11551 = vst [vmem:[#allocation163_spill] sm:$0xff] %v6744_v41  ;;  %v6785_v43 = vld [vmem:[%s5963_s18 + $0x38] sm:$0xff] }
 0x516   : > { %1225 = vrot.lane.b32.xlu1 %v1207_v16, %s5867_s23  ;;  %1227 = vrot.lane.b32.xlu0 %v1208_v62, %s5867_s23  ;;  %v1212_v62 = vmul.f32 %v6744_v41, %v6096_v38  ;;  %v6769_v41 = vld [vmem:[%s5963_s18 + $0x20] sm:$0xff] }
 0x517   : > { %v6738_v49 = vpop.permute.xlu1 %1190 }
 0x518   : > { %11550 = vst [vmem:[#allocation162_spill] sm:$0xff] %v6738_v49  ;;  %v1209_v45 = vmul.f32 %v6738_v49, %v6076_v32  ;;  %v6757_v49 = vld [vmem:[%s5963_s18] sm:$0xff] }
 0x51a   : > { %1229 = vrot.lane.b32.xlu1 %v1209_v45, %s5867_s23  ;;  %1231 = vrot.lane.b32.xlu0 %v1210_v52, %s5867_s23  ;;  %v6761_v45 = vld [vmem:[%s5963_s18 + $0x8] sm:$0xff]  ;;  %v6765_v52 = vld [vmem:[%s5963_s18 + $0x10] sm:$0xff] }
 0x51b   : > { %v6748_v16 = vpop.permute.xlu1 %1198 }
 0x51c   : > { %11552 = vst [vmem:[#allocation164_spill] sm:$0xff] %v6748_v16  ;;  %v1211_v48 = vmul.f32 %v6748_v16, %v6089_v37  ;;  %v6781_v16 = vld [vmem:[%s5963_s18 + $0x28] sm:$0xff] }
 0x51e   : > { %1233 = vrot.lane.b32.xlu1 %v1211_v48, %s5867_s23  ;;  %1235 = vrot.lane.b32.xlu0 %v1212_v62, %s5867_s23  ;;  %v6773_v48 = vld [vmem:[%s5963_s18 + $0x18] sm:$0xff]  ;;  %v6777_v62 = vld [vmem:[%s5963_s18 + $0x30] sm:$0xff] }
 0x522   : > { %1254 = vperm.xlu1 %5746, %v6757_v49   ;;  %1258 = vperm.xlu0 %5747, %v6761_v45  }
 0x526   : > { %1262 = vperm.xlu1 %5746, %v6765_v52   ;;  %1270 = vperm.xlu0 %5747, %v6769_v41  }
 0x52a   : > { %1266 = vperm.xlu1 %5746, %v6773_v48   ;;  %1278 = vperm.xlu0 %5747, %v6777_v62  }
 0x52e   : > { %1274 = vperm.xlu1 %5746, %v6781_v16   ;;  %5748 = vset.pattern.permute.xlu0 %v5883_v55 }
 0x532   : > { %1282 = vperm.xlu1 %5746, %v6785_v43  }
 0x536   : > { %5749 = vset.pattern.permute.xlu1 %v5883_v55 }
 0x57c   : > { %v6790_v33 = vpop.permute.xlu1 %1221 }
 0x584   : > { %v6788_v42 = vpop.permute.xlu0 %1223 }
 0x585   : > { %11553 = vst [vmem:[#allocation165_spill] sm:$0xff] %v6788_v42 }
 0x588   : > { %v6792_v36 = vpop.permute.xlu1 %1225  ;;  %v6794_v27 = vpop.permute.xlu0 %1227 }
 0x589   : > { %11554 = vst [vmem:[#allocation166_spill] sm:$0xff] %v6792_v36  ;;  %11555 = vst [vmem:[#allocation167_spill] sm:$0xff] %v6794_v27 }
 0x58c   : > { %v6796_v30 = vpop.permute.xlu1 %1229  ;;  %v6798_v24 = vpop.permute.xlu0 %1231 }
 0x58d   : > { %11556 = vst [vmem:[#allocation168_spill] sm:$0xff] %v6796_v30  ;;  %11557 = vst [vmem:[#allocation169_spill] sm:$0xff] %v6798_v24 }
 0x590   : > { %v6800_v17 = vpop.permute.xlu1 %1233  ;;  %v6802_v6 = vpop.permute.xlu0 %1235 }
 0x591   : > { %11558 = vst [vmem:[#allocation170_spill] sm:$0xff] %v6800_v17  ;;  %11559 = vst [vmem:[#allocation171_spill] sm:$0xff] %v6802_v6 }
 0x5a1   : > { %v6804_v9 = vpop.permute.xlu1 %1254  ;;  %v6806_v54 = vpop.permute.xlu0 %1258 }
 0x5a2   : > { %11560 = vst [vmem:[#allocation172_spill] sm:$0xff] %v6804_v9  ;;  %11561 = vst [vmem:[#allocation173_spill] sm:$0xff] %v6806_v54  ;;  %v1285_v55 = vmul.f32 %v6804_v9, %v6037_v14  ;;  %v1286_v36 = vmul.f32 %v6806_v54, %v6053_v22 }
 0x5a4   : > { %1301 = vrot.lane.b32.xlu0 %v1285_v55, %s5868_s24  ;;  %1303 = vrot.lane.b32.xlu1 %v1286_v36, %s5868_s24 }
 0x5a5   : > { %v6814_v30 = vpop.permute.xlu1 %1262  ;;  %v6816_v24 = vpop.permute.xlu0 %1270 }
 0x5a6   : > { %11562 = vst [vmem:[#allocation174_spill] sm:$0xff] %v6814_v30  ;;  %11563 = vst [vmem:[#allocation175_spill] sm:$0xff] %v6816_v24  ;;  %v1287_v6 = vmul.f32 %v6814_v30, %v6067_v28  ;;  %v1289_v14 = vmul.f32 %v6816_v24, %v6076_v32  ;;  %v6881_v30 = vld [vmem:[%s6034_s22 + $0x10] sm:$0xff] }
 0x5a8   : > { %1305 = vrot.lane.b32.xlu0 %v1287_v6, %s5868_s24 }
 0x5a9   : > { %v6821_v17 = vpop.permute.xlu1 %1266  ;;  %v6827_v55 = vpop.permute.xlu0 %1278 }
 0x5aa   : > { %11564 = vst [vmem:[#allocation176_spill] sm:$0xff] %v6821_v17  ;;  %v1288_v22 = vmul.f32 %v6821_v17, %v6059_v25  ;;  %11565 = vst [vmem:[#allocation177_spill] sm:$0xff] %v6827_v55  ;;  %v1291_v28 = vmul.f32 %v6827_v55, %v6089_v37 }
 0x5ac   : > { %1307 = vrot.lane.b32.xlu1 %v1288_v22, %s5868_s24  ;;  %1309 = vrot.lane.b32.xlu0 %v1289_v14, %s5868_s24 }
 0x5ad   : > { %v6831_v36 = vpop.permute.xlu1 %1274 }
 0x5ae   : > { %11566 = vst [vmem:[#allocation178_spill] sm:$0xff] %v6831_v36  ;;  %v1290_v6 = vmul.f32 %v6831_v36, %v6073_v31  ;;  %v5884_v31 = vmov 10  }
 0x5b0   : > { %1311 = vrot.lane.b32.xlu1 %v1290_v6, %s5868_s24  ;;  %1313 = vrot.lane.b32.xlu0 %v1291_v28, %s5868_s24 }
 0x5b1   : > { %v6839_v32 = vpop.permute.xlu1 %1282 }
 0x5b2   : > { %11567 = vst [vmem:[#allocation179_spill] sm:$0xff] %v6839_v32  ;;  %v1292_v25 = vmul.f32 %v6839_v32, %v6096_v38 }
 0x5b4   : > { %1315 = vrot.lane.b32.xlu1 %v1292_v25, %s5868_s24  ;;  %1334 = vperm.xlu0 %5748, %v6757_v49  }
 0x5b8   : > { %1338 = vperm.xlu1 %5749, %v6761_v45   ;;  %1346 = vperm.xlu0 %5748, %v6773_v48  }
 0x5bc   : > { %1342 = vperm.xlu1 %5749, %v6765_v52   ;;  %1354 = vperm.xlu0 %5748, %v6781_v16  }
 0x5c0   : > { %1350 = vperm.xlu1 %5749, %v6769_v41   ;;  %1362 = vperm.xlu0 %5748, %v6785_v43  }
 0x5c4   : > { %1358 = vperm.xlu1 %5749, %v6777_v62   ;;  %5751 = vset.pattern.permute.xlu0 %v5884_v31 }
 0x5c8   : > { %5750 = vset.pattern.permute.xlu1 %v5884_v31  ;;  %v6871_v31 = vld [vmem:[%s6034_s22] sm:$0xff] }
 0x616   : > { %v6852_v37 = vpop.permute.xlu0 %1301  ;;  %v6854_v38 = vpop.permute.xlu1 %1303 }
 0x617   : > { %11568 = vst [vmem:[#allocation180_spill] sm:$0xff] %v6854_v38  ;;  %v6926_v38 = vld [vmem:[%s6034_s22 + $0x60] sm:$0xff] }
 0x61a   : > { %v6856_v14 = vpop.permute.xlu0 %1305 }
 0x61b   : > { %11569 = vst [vmem:[#allocation181_spill] sm:$0xff] %v6856_v14 }
 0x61e   : > { %v6858_v22 = vpop.permute.xlu1 %1307  ;;  %v6860_v28 = vpop.permute.xlu0 %1309 }
 0x61f   : > { %11570 = vst [vmem:[#allocation182_spill] sm:$0xff] %v6858_v22  ;;  %11571 = vst [vmem:[#allocation183_spill] sm:$0xff] %v6860_v28  ;;  %v6910_v22 = vld [vmem:[%s6034_s22 + $0x40] sm:$0xff] }
 0x622   : > { %v6862_v6 = vpop.permute.xlu1 %1311  ;;  %v6864_v25 = vpop.permute.xlu0 %1313 }
 0x623   : > { %11572 = vst [vmem:[#allocation184_spill] sm:$0xff] %v6862_v6  ;;  %11573 = vst [vmem:[#allocation185_spill] sm:$0xff] %v6864_v25  ;;  %v6896_v25 = vld [vmem:[%s6034_s22 + $0x20] sm:$0xff] }
 0x626   : > { %v6866_v32 = vpop.permute.xlu1 %1315 }
 0x627   : > { %11574 = vst [vmem:[#allocation186_spill] sm:$0xff] %v6866_v32 }
 0x633   : > { %v6868_v55 = vpop.permute.xlu0 %1334 }
 0x634   : > { %11575 = vst [vmem:[#allocation187_spill] sm:$0xff] %v6868_v55  ;;  %v1365_v36 = vmul.f32 %v6871_v31, %v6868_v55  ;;  %v6891_v55 = vld [vmem:[%s6034_s22 + $0x30] sm:$0xff] }
 0x636   : > { %1381 = vrot.lane.b32.xlu1 %v1365_v36, %s5869_s25 }
 0x637   : > { %v6876_v24 = vpop.permute.xlu1 %1338  ;;  %v6878_v17 = vpop.permute.xlu0 %1346 }
 0x638   : > { %11576 = vst [vmem:[#allocation188_spill] sm:$0xff] %v6876_v24  ;;  %11577 = vst [vmem:[#allocation189_spill] sm:$0xff] %v6878_v17  ;;  %v1366_v54 = vmul.f32 %v6881_v30, %v6876_v24  ;;  %v1368_v36 = vmul.f32 %v6891_v55, %v6878_v17  ;;  %v6905_v24 = vld [vmem:[%s6034_s22 + $0x50] sm:$0xff] }
 0x63a   : > { %1383 = vrot.lane.b32.xlu0 %v1366_v54, %s5869_s25 }
 0x63b   : > { %v6886_v9 = vpop.permute.xlu1 %1342  ;;  %v6888_v32 = vpop.permute.xlu0 %1354 }
 0x63c   : > { %11578 = vst [vmem:[#allocation190_spill] sm:$0xff] %v6886_v9  ;;  %11579 = vst [vmem:[#allocation191_spill] sm:$0xff] %v6888_v32  ;;  %v1367_v6 = vmul.f32 %v6896_v25, %v6886_v9  ;;  %v1370_v28 = vmul.f32 %v6905_v24, %v6888_v32 }
 0x63e   : > { %1385 = vrot.lane.b32.xlu1 %v1367_v6, %s5869_s25  ;;  %1387 = vrot.lane.b32.xlu0 %v1368_v36, %s5869_s25  ;;  %v6921_v36 = vld [vmem:[%s6034_s22 + $0x70] sm:$0xff] }
 0x63f   : > { %v6902_v54 = vpop.permute.xlu1 %1350  ;;  %v6914_v14 = vpop.permute.xlu0 %1362 }
 0x640   : > { %11580 = vst [vmem:[#allocation192_spill] sm:$0xff] %v6902_v54  ;;  %v1369_v17 = vmul.f32 %v6910_v22, %v6902_v54  ;;  %11581 = vst [vmem:[#allocation193_spill] sm:$0xff] %v6914_v14  ;;  %v1372_v9 = vmul.f32 %v6921_v36, %v6914_v14 }
 0x642   : > { %1389 = vrot.lane.b32.xlu1 %v1369_v17, %s5869_s25  ;;  %1391 = vrot.lane.b32.xlu0 %v1370_v28, %s5869_s25  ;;  %v5885_v17 = vmov 13  }
 0x643   : > { %v6918_v6 = vpop.permute.xlu1 %1358 }
 0x644   : > { %11582 = vst [vmem:[#allocation194_spill] sm:$0xff] %v6918_v6  ;;  %v1371_v32 = vmul.f32 %v6926_v38, %v6918_v6 }
 0x646   : > { %1393 = vrot.lane.b32.xlu1 %v1371_v32, %s5869_s25  ;;  %1395 = vrot.lane.b32.xlu0 %v1372_v9, %s5869_s25  ;;  %v5886_v9 = vmov 16  }
 0x64a   : > { %1414 = vperm.xlu1 %5750, %v6757_v49   ;;  %1418 = vperm.xlu0 %5751, %v6761_v45  }
 0x64e   : > { %1422 = vperm.xlu1 %5750, %v6765_v52   ;;  %1430 = vperm.xlu0 %5751, %v6769_v41  }
 0x652   : > { %1426 = vperm.xlu1 %5750, %v6773_v48   ;;  %1438 = vperm.xlu0 %5751, %v6777_v62  }
 0x656   : > { %1434 = vperm.xlu1 %5750, %v6781_v16   ;;  %5752 = vset.pattern.permute.xlu0 %v5885_v17 }
 0x657   : > { %1454 = vperm.xlu0 %5752, %v6757_v49  }
 0x65a   : > { %1442 = vperm.xlu1 %5750, %v6785_v43  }
 0x65b   : > { %1466 = vperm.xlu0 %5752, %v6773_v48  }
 0x65e   : > { %5753 = vset.pattern.permute.xlu1 %v5885_v17 }
 0x65f   : > { %1458 = vperm.xlu1 %5753, %v6761_v45   ;;  %1474 = vperm.xlu0 %5752, %v6781_v16  }
 0x663   : > { %1462 = vperm.xlu1 %5753, %v6765_v52   ;;  %1482 = vperm.xlu0 %5752, %v6785_v43  }
 0x667   : > { %1470 = vperm.xlu1 %5753, %v6769_v41   ;;  %5755 = vset.pattern.permute.xlu0 %v5886_v9 }
 0x66b   : > { %1478 = vperm.xlu1 %5753, %v6777_v62  }
 0x66f   : > { %5754 = vset.pattern.permute.xlu1 %v5886_v9 }
 0x6a8   : > { %v6950_v28 = vpop.permute.xlu1 %1381 }
 0x6ac   : > { %v6948_v32 = vpop.permute.xlu0 %1383 }
 0x6ad   : > { %11583 = vst [vmem:[#allocation195_spill] sm:$0xff] %v6948_v32 }
 0x6b0   : > { %v6952_v17 = vpop.permute.xlu1 %1385  ;;  %v6954_v6 = vpop.permute.xlu0 %1387 }
 0x6b1   : > { %11584 = vst [vmem:[#allocation196_spill] sm:$0xff] %v6952_v17  ;;  %11585 = vst [vmem:[#allocation197_spill] sm:$0xff] %v6954_v6 }
 0x6b4   : > { %v6956_v14 = vpop.permute.xlu1 %1389  ;;  %v6958_v54 = vpop.permute.xlu0 %1391 }
 0x6b5   : > { %11586 = vst [vmem:[#allocation198_spill] sm:$0xff] %v6956_v14  ;;  %11587 = vst [vmem:[#allocation199_spill] sm:$0xff] %v6958_v54 }
 0x6b8   : > { %v6960_v27 = vpop.permute.xlu1 %1393  ;;  %v6962_v42 = vpop.permute.xlu0 %1395 }
 0x6b9   : > { %11588 = vst [vmem:[#allocation200_spill] sm:$0xff] %v6960_v27  ;;  %11589 = vst [vmem:[#allocation201_spill] sm:$0xff] %v6962_v42 }
 0x6c9   : > { %v6964_v57 = vpop.permute.xlu1 %1414  ;;  %v6966_v58 = vpop.permute.xlu0 %1418 }
 0x6ca   : > { %11590 = vst [vmem:[#allocation202_spill] sm:$0xff] %v6964_v57  ;;  %11591 = vst [vmem:[#allocation203_spill] sm:$0xff] %v6966_v58 }
 0x6cd   : > { %v6968_v9 = vpop.permute.xlu1 %1422  ;;  %v6970_v32 = vpop.permute.xlu0 %1430 }
 0x6ce   : > { %11592 = vst [vmem:[#allocation204_spill] sm:$0xff] %v6968_v9  ;;  %11593 = vst [vmem:[#allocation205_spill] sm:$0xff] %v6970_v32 }
 0x6d1   : > { %v6972_v26 = vpop.permute.xlu1 %1426  ;;  %v6974_v17 = vpop.permute.xlu0 %1438 }
 0x6d2   : > { %11594 = vst [vmem:[#allocation206_spill] sm:$0xff] %v6972_v26  ;;  %11595 = vst [vmem:[#allocation207_spill] sm:$0xff] %v6974_v17 }
 0x6d5   : > { %v6976_v6 = vpop.permute.xlu1 %1434 }
 0x6d6   : > { %11596 = vst [vmem:[#allocation208_spill] sm:$0xff] %v6976_v6  ;;  %v6978_v14 = vpop.permute.xlu0 %1454 }
 0x6d7   : > { %11597 = vst [vmem:[#allocation209_spill] sm:$0xff] %v6978_v14  ;;  %v1485_v27 = vmul.f32 %v6871_v31, %v6978_v14 }
 0x6d9   : > { %v6982_v42 = vpop.permute.xlu1 %1442  ;;  %1501 = vrot.lane.b32.xlu1 %v1485_v27, %s5867_s23 }
 0x6da   : > { %11598 = vst [vmem:[#allocation210_spill] sm:$0xff] %v6982_v42  ;;  %v6985_v54 = vpop.permute.xlu0 %1466 }
 0x6db   : > { %11599 = vst [vmem:[#allocation211_spill] sm:$0xff] %v6985_v54  ;;  %v1488_v14 = vmul.f32 %v6891_v55, %v6985_v54 }
 0x6de   : > { %v6987_v9 = vpop.permute.xlu1 %1458  ;;  %v6992_v17 = vpop.permute.xlu0 %1474 }
 0x6df   : > { %11600 = vst [vmem:[#allocation212_spill] sm:$0xff] %v6987_v9  ;;  %v1486_v32 = vmul.f32 %v6881_v30, %v6987_v9  ;;  %11601 = vst [vmem:[#allocation213_spill] sm:$0xff] %v6992_v17  ;;  %v1490_v9 = vmul.f32 %v6905_v24, %v6992_v17 }
 0x6e1   : > { %1503 = vrot.lane.b32.xlu0 %v1486_v32, %s5867_s23 }
 0x6e2   : > { %v6994_v6 = vpop.permute.xlu1 %1462  ;;  %v7008_v58 = vpop.permute.xlu0 %1482 }
 0x6e3   : > { %11602 = vst [vmem:[#allocation214_spill] sm:$0xff] %v6994_v6  ;;  %v1487_v42 = vmul.f32 %v6896_v25, %v6994_v6  ;;  %11604 = vst [vmem:[#allocation216_spill] sm:$0xff] %v7008_v58 }
 0x6e5   : > { %1505 = vrot.lane.b32.xlu1 %v1487_v42, %s5867_s23  ;;  %1507 = vrot.lane.b32.xlu0 %v1488_v14, %s5867_s23  ;;  %v1492_v42 = vmul.f32 %v6921_v36, %v7008_v58 }
 0x6e6   : > { %v7002_v27 = vpop.permute.xlu1 %1470 }
 0x6e7   : > { %11603 = vst [vmem:[#allocation215_spill] sm:$0xff] %v7002_v27  ;;  %v1489_v32 = vmul.f32 %v6910_v22, %v7002_v27 }
 0x6e9   : > { %1509 = vrot.lane.b32.xlu1 %v1489_v32, %s5867_s23  ;;  %1511 = vrot.lane.b32.xlu0 %v1490_v9, %s5867_s23  ;;  %v5887_v9 = vmov 19  }
 0x6ea   : > { %v7012_v54 = vpop.permute.xlu1 %1478 }
 0x6eb   : > { %11605 = vst [vmem:[#allocation217_spill] sm:$0xff] %v7012_v54  ;;  %v1491_v14 = vmul.f32 %v6926_v38, %v7012_v54 }
 0x6ed   : > { %1513 = vrot.lane.b32.xlu1 %v1491_v14, %s5867_s23  ;;  %1515 = vrot.lane.b32.xlu0 %v1492_v42, %s5867_s23 }
 0x6f1   : > { %1534 = vperm.xlu1 %5754, %v6757_v49   ;;  %1538 = vperm.xlu0 %5755, %v6761_v45  }
 0x6f5   : > { %1542 = vperm.xlu1 %5754, %v6765_v52   ;;  %1550 = vperm.xlu0 %5755, %v6769_v41  }
 0x6f9   : > { %1546 = vperm.xlu1 %5754, %v6773_v48   ;;  %1558 = vperm.xlu0 %5755, %v6777_v62  }
 0x6fd   : > { %1554 = vperm.xlu1 %5754, %v6781_v16   ;;  %5756 = vset.pattern.permute.xlu0 %v5887_v9 }
 0x701   : > { %1562 = vperm.xlu1 %5754, %v6785_v43  }
 0x705   : > { %5757 = vset.pattern.permute.xlu1 %v5887_v9 }
 0x74b   : > { %v7030_v42 = vpop.permute.xlu1 %1501 }
 0x753   : > { %v7028_v32 = vpop.permute.xlu0 %1503 }
 0x757   : > { %v7032_v14 = vpop.permute.xlu1 %1505  ;;  %v7034_v54 = vpop.permute.xlu0 %1507 }
 0x758   : > { %11606 = vst [vmem:[#allocation218_spill] sm:$0xff] %v7032_v14 }
 0x75b   : > { %v7036_v58 = vpop.permute.xlu1 %1509  ;;  %v7038_v27 = vpop.permute.xlu0 %1511 }
 0x75c   : > { %11607 = vst [vmem:[#allocation219_spill] sm:$0xff] %v7036_v58  ;;  %11608 = vst [vmem:[#allocation220_spill] sm:$0xff] %v7038_v27 }
 0x75f   : > { %v7040_v17 = vpop.permute.xlu1 %1513  ;;  %v7042_v6 = vpop.permute.xlu0 %1515 }
 0x760   : > { %11609 = vst [vmem:[#allocation221_spill] sm:$0xff] %v7040_v17  ;;  %11610 = vst [vmem:[#allocation222_spill] sm:$0xff] %v7042_v6 }
 0x770   : > { %v7044_v26 = vpop.permute.xlu1 %1534  ;;  %v7046_v63 = vpop.permute.xlu0 %1538 }
 0x771   : > { %11611 = vst [vmem:[#allocation223_spill] sm:$0xff] %v7044_v26  ;;  %11612 = vst [vmem:[#allocation224_spill] sm:$0xff] %v7046_v63  ;;  %v1565_v9 = vmul.f32 %v6871_v31, %v7044_v26  ;;  %v1566_v14 = vmul.f32 %v6881_v30, %v7046_v63 }
 0x773   : > { %1581 = vrot.lane.b32.xlu0 %v1565_v9, %s5868_s24  ;;  %1583 = vrot.lane.b32.xlu1 %v1566_v14, %s5868_s24 }
 0x774   : > { %v7054_v58 = vpop.permute.xlu1 %1542  ;;  %v7056_v27 = vpop.permute.xlu0 %1550 }
 0x775   : > { %11613 = vst [vmem:[#allocation225_spill] sm:$0xff] %v7054_v58  ;;  %11614 = vst [vmem:[#allocation226_spill] sm:$0xff] %v7056_v27  ;;  %v1567_v17 = vmul.f32 %v6896_v25, %v7054_v58  ;;  %v1569_v26 = vmul.f32 %v6910_v22, %v7056_v27 }
 0x777   : > { %1585 = vrot.lane.b32.xlu0 %v1567_v17, %s5868_s24 }
 0x778   : > { %v7061_v6 = vpop.permute.xlu1 %1546  ;;  %v7067_v9 = vpop.permute.xlu0 %1558 }
 0x779   : > { %11615 = vst [vmem:[#allocation227_spill] sm:$0xff] %v7061_v6  ;;  %v1568_v63 = vmul.f32 %v6891_v55, %v7061_v6  ;;  %11616 = vst [vmem:[#allocation228_spill] sm:$0xff] %v7067_v9  ;;  %v1571_v58 = vmul.f32 %v6926_v38, %v7067_v9 }
 0x77b   : > { %1587 = vrot.lane.b32.xlu1 %v1568_v63, %s5868_s24  ;;  %1589 = vrot.lane.b32.xlu0 %v1569_v26, %s5868_s24 }
 0x77c   : > { %v7071_v14 = vpop.permute.xlu1 %1554 }
 0x77d   : > { %11617 = vst [vmem:[#allocation229_spill] sm:$0xff] %v7071_v14  ;;  %v1570_v17 = vmul.f32 %v6905_v24, %v7071_v14 }
 0x77f   : > { %1591 = vrot.lane.b32.xlu1 %v1570_v17, %s5868_s24  ;;  %1593 = vrot.lane.b32.xlu0 %v1571_v58, %s5868_s24  ;;  %v11619_v58 = vmov 0  }
 0x780   : > { %v7079_v27 = vpop.permute.xlu1 %1562 }
 0x781   : > { %11618 = vst [vmem:[#allocation230_spill] sm:$0xff] %v7079_v27  ;;  %v1572_v6 = vmul.f32 %v6921_v36, %v7079_v27 }
 0x783   : > { %1595 = vrot.lane.b32.xlu1 %v1572_v6, %s5868_s24  ;;  %1614 = vperm.xlu0 %5756, %v6757_v49  }
 0x787   : > { %1618 = vperm.xlu1 %5757, %v6761_v45   ;;  %1626 = vperm.xlu0 %5756, %v6773_v48  }
 0x78b   : > { %1622 = vperm.xlu1 %5757, %v6765_v52   ;;  %1634 = vperm.xlu0 %5756, %v6781_v16  }
 0x78f   : > { %1630 = vperm.xlu1 %5757, %v6769_v41   ;;  %1642 = vperm.xlu0 %5756, %v6785_v43  }
 0x793   : > { %1638 = vperm.xlu1 %5757, %v6777_v62   ;;  %5758 = vset.pattern.permute.xlu0 %v11619_v58 }
 0x794   : > { %247 = vperm.xlu0 %5758, %v6757_v49  }
 0x797   : > { %5759 = vset.pattern.permute.xlu1 %v11619_v58 }
 0x798   : > { %252 = vperm.xlu0 %5758, %v6761_v45  }
 0x79c   : > { %267 = vperm.xlu0 %5758, %v6769_v41  }
 0x7a0   : > { %277 = vperm.xlu0 %5758, %v6777_v62  }
 0x7e5   : > { %v7098_v26 = vpop.permute.xlu0 %1581  ;;  %v7100_v63 = vpop.permute.xlu1 %1583 }
 0x7e9   : > { %v7102_v16 = vpop.permute.xlu0 %1585 }
 0x7ea   : > { %11620 = vst [vmem:[#allocation231_spill] sm:$0xff] %v7102_v16 }
 0x7ed   : > { %v7104_v43 = vpop.permute.xlu1 %1587  ;;  %v7106_v52 = vpop.permute.xlu0 %1589 }
 0x7ee   : > { %11621 = vst [vmem:[#allocation232_spill] sm:$0xff] %v7106_v52  ;;  %v11635_v52 = vmov 3  }
 0x7f1   : > { %v7108_v48 = vpop.permute.xlu1 %1591  ;;  %v7110_v49 = vpop.permute.xlu0 %1593 }
 0x7f2   : > { %11622 = vst [vmem:[#allocation233_spill] sm:$0xff] %v7108_v48  ;;  %11623 = vst [vmem:[#allocation234_spill] sm:$0xff] %v7110_v49 }
 0x7f5   : > { %v7112_v6 = vpop.permute.xlu1 %1595 }
 0x7f6   : > { %11624 = vst [vmem:[#allocation235_spill] sm:$0xff] %v7112_v6  ;;  %v11633_v6 = vmov 1  }
 0x802   : > { %v7114_v45 = vpop.permute.xlu0 %1614 }
 0x803   : > { %11625 = vst [vmem:[#allocation236_spill] sm:$0xff] %v7114_v45  ;;  %v1645_v41 = vmul.f32 %v6871_v31, %v7114_v45 }
 0x805   : > { %1661 = vrot.lane.b32.xlu1 %v1645_v41, %s5869_s25 }
 0x806   : > { %v7119_v62 = vpop.permute.xlu1 %1618  ;;  %v7121_v17 = vpop.permute.xlu0 %1626 }
 0x807   : > { %11626 = vst [vmem:[#allocation237_spill] sm:$0xff] %v7119_v62  ;;  %11627 = vst [vmem:[#allocation238_spill] sm:$0xff] %v7121_v17  ;;  %v1646_v58 = vmul.f32 %v6881_v30, %v7119_v62  ;;  %v1648_v14 = vmul.f32 %v6891_v55, %v7121_v17 }
 0x809   : > { %1663 = vrot.lane.b32.xlu0 %v1646_v58, %s5869_s25 }
 0x80a   : > { %v7126_v27 = vpop.permute.xlu1 %1622  ;;  %v7128_v9 = vpop.permute.xlu0 %1634 }
 0x80b   : > { %11628 = vst [vmem:[#allocation239_spill] sm:$0xff] %v7126_v27  ;;  %11629 = vst [vmem:[#allocation240_spill] sm:$0xff] %v7128_v9  ;;  %v1647_v41 = vmul.f32 %v6896_v25, %v7126_v27  ;;  %v1650_v58 = vmul.f32 %v6905_v24, %v7128_v9  ;;  %v225_v9 = vld [vmem:[%s206_s5 + $0x20] sm:$0xff]  ;;  %v227_v27 = vld [vmem:[%s206_s5 + $0x30] sm:$0xff] }
 0x80d   : > { %1665 = vrot.lane.b32.xlu1 %v1647_v41, %s5869_s25  ;;  %1667 = vrot.lane.b32.xlu0 %v1648_v14, %s5869_s25 }
 0x80e   : > { %v7136_v45 = vpop.permute.xlu1 %1630  ;;  %v7142_v49 = vpop.permute.xlu0 %1642 }
 0x80f   : > { %11630 = vst [vmem:[#allocation241_spill] sm:$0xff] %v7136_v45  ;;  %v1649_v62 = vmul.f32 %v6910_v22, %v7136_v45  ;;  %11631 = vst [vmem:[#allocation242_spill] sm:$0xff] %v7142_v49  ;;  %v1652_v41 = vmul.f32 %v6921_v36, %v7142_v49  ;;  %v221_v45 = vld [vmem:[%s206_s5] sm:$0xff]  ;;  %v224_v49 = vld [vmem:[%s206_s5 + $0x18] sm:$0xff] }
 0x811   : > { %1669 = vrot.lane.b32.xlu1 %v1649_v62, %s5869_s25  ;;  %1671 = vrot.lane.b32.xlu0 %v1650_v58, %s5869_s25  ;;  %v222_v62 = vld [vmem:[%s206_s5 + $0x8] sm:$0xff]  ;;  %v223_v58 = vld [vmem:[%s206_s5 + $0x10] sm:$0xff] }
 0x812   : > { %v7146_v17 = vpop.permute.xlu1 %1638 }
 0x813   : > { %11632 = vst [vmem:[#allocation243_spill] sm:$0xff] %v7146_v17  ;;  %v1651_v14 = vmul.f32 %v6926_v38, %v7146_v17  ;;  %v226_v17 = vld [vmem:[%s206_s5 + $0x28] sm:$0xff] }
 0x815   : > { %1673 = vrot.lane.b32.xlu1 %v1651_v14, %s5869_s25  ;;  %1675 = vrot.lane.b32.xlu0 %v1652_v41, %s5869_s25  ;;  %v228_v14 = vld [vmem:[%s206_s5 + $0x38] sm:$0xff]  ;;  %v11634_v41 = vmov 2  }
 0x819   : > { %1695 = vperm.xlu1 %5759, %v221_v45   ;;  %1700 = vperm.xlu0 %5758, %v222_v62  }
 0x81d   : > { %1705 = vperm.xlu1 %5759, %v223_v58   ;;  %1715 = vperm.xlu0 %5758, %v225_v9  }
 0x821   : > { %1710 = vperm.xlu1 %5759, %v224_v49   ;;  %1725 = vperm.xlu0 %5758, %v227_v27  }
 0x825   : > { %1720 = vperm.xlu1 %5759, %v226_v17   ;;  %5760 = vset.pattern.permute.xlu0 %v11633_v6 }
 0x826   : > { %1742 = vperm.xlu0 %5760, %v221_v45  }
 0x829   : > { %1730 = vperm.xlu1 %5759, %v228_v14  }
 0x82a   : > { %1754 = vperm.xlu0 %5760, %v224_v49  }
 0x82d   : > { %5761 = vset.pattern.permute.xlu1 %v11633_v6  ;;  %v7164_v6 = vpop.permute.xlu0 %247 }
 0x82e   : > { %1746 = vperm.xlu1 %5761, %v222_v62   ;;  %1762 = vperm.xlu0 %5760, %v226_v17   ;;  %11636 = vst [vmem:[#allocation244_spill] sm:$0xff] %v7164_v6 }
 0x832   : > { %1750 = vperm.xlu1 %5761, %v223_v58   ;;  %1770 = vperm.xlu0 %5760, %v228_v14  }
 0x836   : > { %1758 = vperm.xlu1 %5761, %v225_v9   ;;  %5763 = vset.pattern.permute.xlu0 %v11634_v41 }
 0x837   : > { %1786 = vperm.xlu0 %5763, %v222_v62  }
 0x83a   : > { %1766 = vperm.xlu1 %5761, %v227_v27  }
 0x83b   : > { %1798 = vperm.xlu0 %5763, %v225_v9  }
 0x83e   : > { %5762 = vset.pattern.permute.xlu1 %v11634_v41  ;;  %v7166_v41 = vpop.permute.xlu0 %252 }
 0x83f   : > { %1782 = vperm.xlu1 %5762, %v221_v45   ;;  %1806 = vperm.xlu0 %5763, %v227_v27   ;;  %11637 = vst [vmem:[#allocation245_spill] sm:$0xff] %v7166_v41 }
 0x842   : > { %v7168_v16 = vpop.permute.xlu0 %267 }
 0x843   : > { %1790 = vperm.xlu1 %5762, %v223_v58   ;;  %5764 = vset.pattern.permute.xlu0 %v11635_v52  ;;  %11638 = vst [vmem:[#allocation246_spill] sm:$0xff] %v7168_v16 }
 0x844   : > { %1830 = vperm.xlu0 %5764, %v221_v45  }
 0x846   : > { %v7170_v48 = vpop.permute.xlu0 %277 }
 0x847   : > { %1794 = vperm.xlu1 %5762, %v224_v49   ;;  %11639 = vst [vmem:[#allocation247_spill] sm:$0xff] %v7170_v48 }
 0x848   : > { %1842 = vperm.xlu0 %5764, %v224_v49  }
 0x84b   : > { %1802 = vperm.xlu1 %5762, %v226_v17  }
 0x84c   : > { %1850 = vperm.xlu0 %5764, %v226_v17  }
 0x84f   : > { %1810 = vperm.xlu1 %5762, %v228_v14  }
 0x850   : > { %1858 = vperm.xlu0 %5764, %v228_v14  }
 0x853   : > { %5765 = vset.pattern.permute.xlu1 %v11635_v52 }
 0x854   : > { %1834 = vperm.xlu1 %5765, %v222_v62  }
 0x858   : > { %1838 = vperm.xlu1 %5765, %v223_v58  }
 0x85c   : > { %1846 = vperm.xlu1 %5765, %v225_v9  }
 0x860   : > { %1854 = vperm.xlu1 %5765, %v227_v27  }
 0x877   : > { %v1662_v49 = vpop.permute.xlu1 %1661 }
 0x87b   : > { %v7172_v45 = vpop.permute.xlu0 %1663 }
 0x87c   : > { %11640 = vst [vmem:[#allocation248_spill] sm:$0xff] %v7172_v45 }
 0x87f   : > { %v7174_v17 = vpop.permute.xlu1 %1665  ;;  %v7176_v14 = vpop.permute.xlu0 %1667 }
 0x880   : > { %11641 = vst [vmem:[#allocation249_spill] sm:$0xff] %v7174_v17 }
 0x883   : > { %v7178_v52 = vpop.permute.xlu1 %1669  ;;  %v7180_v62 = vpop.permute.xlu0 %1671 }
 0x884   : > { %11642 = vst [vmem:[#allocation250_spill] sm:$0xff] %v7178_v52  ;;  %11643 = vst [vmem:[#allocation251_spill] sm:$0xff] %v7180_v62 }
 0x887   : > { %v7182_v27 = vpop.permute.xlu1 %1673  ;;  %v7184_v9 = vpop.permute.xlu0 %1675 }
 0x888   : > { %11644 = vst [vmem:[#allocation252_spill] sm:$0xff] %v7182_v27  ;;  %11645 = vst [vmem:[#allocation253_spill] sm:$0xff] %v7184_v9 }
 0x898   : > { %v7186_v58 = vpop.permute.xlu1 %1695  ;;  %v7188_v16 = vpop.permute.xlu0 %1700 }
 0x899   : > { %11646 = vst [vmem:[#allocation254_spill] sm:$0xff] %v7186_v58  ;;  %11647 = vst [vmem:[#allocation255_spill] sm:$0xff] %v7188_v16 }
 0x89c   : > { %v7190_v48 = vpop.permute.xlu1 %1705  ;;  %v7192_v41 = vpop.permute.xlu0 %1715 }
 0x89d   : > { %11648 = vst [vmem:[#allocation256_spill] sm:$0xff] %v7190_v48  ;;  %11649 = vst [vmem:[#allocation257_spill] sm:$0xff] %v7192_v41 }
 0x8a0   : > { %v7194_v6 = vpop.permute.xlu1 %1710  ;;  %v7196_v17 = vpop.permute.xlu0 %1725 }
 0x8a1   : > { %11650 = vst [vmem:[#allocation258_spill] sm:$0xff] %v7194_v6  ;;  %11651 = vst [vmem:[#allocation259_spill] sm:$0xff] %v7196_v17  ;;  %v1165_v17 = vmul.f32 %v6871_v31, %v6700_v10  ;;  %v887_v10 = vmul.f32 %v6896_v25, %v6488_v11  ;;  %v890_v11 = vmul.f32 %v6905_v24, %v6496_v40 }
 0x8a4   : > { %v7198_v45 = vpop.permute.xlu1 %1720 }
 0x8a5   : > { %11652 = vst [vmem:[#allocation260_spill] sm:$0xff] %v7198_v45  ;;  %v7200_v52 = vpop.permute.xlu0 %1742 }
 0x8a6   : > { %11653 = vst [vmem:[#allocation261_spill] sm:$0xff] %v7200_v52 }
 0x8a8   : > { %v7202_v62 = vpop.permute.xlu1 %1730 }
 0x8a9   : > { %11654 = vst [vmem:[#allocation262_spill] sm:$0xff] %v7202_v62  ;;  %v7204_v27 = vpop.permute.xlu0 %1754  ;;  %v885_v62 = vmul.f32 %v6871_v31, %v6484_v1  ;;  %v889_v1 = vmul.f32 %v6910_v22, %v6490_v18  ;;  %v892_v18 = vmul.f32 %v6921_v36, %v6502_v19 }
 0x8aa   : > { %11655 = vst [vmem:[#allocation263_spill] sm:$0xff] %v7204_v27 }
 0x8ab   : > { %v972_v19 = vadd.f32 %v6562_v34, %v892_v18 }
 0x8ad   : > { %v7206_v9 = vpop.permute.xlu1 %1746  ;;  %v7208_v58 = vpop.permute.xlu0 %1762  ;;  %v1052_v34 = vadd.f32 %v6626_v35, %v972_v19  ;;  %v1167_v35 = vmul.f32 %v6896_v25, %v6704_v23 }
 0x8ae   : > { %11656 = vst [vmem:[#allocation264_spill] sm:$0xff] %v7206_v9  ;;  %11657 = vst [vmem:[#allocation265_spill] sm:$0xff] %v7208_v58  ;;  %v1245_v9 = vadd.f32 %v6790_v33, %v1165_v17  ;;  %v886_v58 = vmul.f32 %v6881_v30, %v6486_v56  ;;  %v888_v33 = vmul.f32 %v6891_v55, %v6492_v50 }
 0x8b0   : > { %v966_v50 = vadd.f32 %v6548_v0, %v886_v58 }
 0x8b1   : > { %v7210_v16 = vpop.permute.xlu1 %1750  ;;  %v7212_v48 = vpop.permute.xlu0 %1770 }
 0x8b2   : > { %11658 = vst [vmem:[#allocation266_spill] sm:$0xff] %v7210_v16  ;;  %11659 = vst [vmem:[#allocation267_spill] sm:$0xff] %v7212_v48  ;;  %v965_v16 = vadd.f32 %v6550_v13, %v885_v62  ;;  %v1325_v48 = vadd.f32 %v6852_v37, %v1245_v9  ;;  %v1046_v0 = vadd.f32 %v6614_v60, %v966_v50 }
 0x8b4   : > { %v1045_v17 = vadd.f32 %v6612_v47, %v965_v16  ;;  %v1405_v13 = vadd.f32 %v6950_v28, %v1325_v48  ;;  %v967_v47 = vadd.f32 %v6552_v20, %v887_v10  ;;  %v968_v48 = vadd.f32 %v6554_v51, %v888_v33  ;;  %v11674_v33 = vld [vmem:[#allocation165_spill] sm:$0xff] }
 0x8b5   : > { %v7214_v41 = vpop.permute.xlu1 %1758 }
 0x8b6   : > { %11660 = vst [vmem:[#allocation268_spill] sm:$0xff] %v7214_v41  ;;  %v7216_v6 = vpop.permute.xlu0 %1786  ;;  %v1445_v41 = vmul.f32 %v6871_v31, %v6964_v57  ;;  %v891_v57 = vmul.f32 %v6926_v38, %v6494_v15  ;;  %v1125_v28 = vadd.f32 %v6686_v39, %v1045_v17  ;;  %v970_v15 = vadd.f32 %v6558_v12, %v890_v11 }
 0x8b7   : > { %11661 = vst [vmem:[#allocation269_spill] sm:$0xff] %v7216_v6  ;;  %v1047_v10 = vadd.f32 %v6616_v21, %v967_v47  ;;  %v1126_v11 = vadd.f32 %v6684_v3, %v1046_v0  ;;  %v11671_v3 = vld [vmem:[#allocation154_spill] sm:$0xff] }
 0x8b8   : > { %v1525_v37 = vadd.f32 %v7030_v42, %v1445_v41  ;;  %v969_v41 = vadd.f32 %v6556_v8, %v889_v1  ;;  %v971_v40 = vadd.f32 %v6560_v29, %v891_v57  ;;  %v1773_v39 = vmul.f32 %v7200_v52, %v1125_v28  ;;  %v11676_v28 = vld [vmem:[#allocation150_spill] sm:$0xff] }
 0x8b9   : > { %v7220_v45 = vpop.permute.xlu1 %1766  ;;  %v1050_v8 = vadd.f32 %v6622_v61, %v970_v15  ;;  %v7279_v12 = vadd.f32 %v6688_v4, %v1047_v10  ;;  %v1171_v4 = vmul.f32 %v6926_v38, %v11671_v3  ;;  %v11680_v10 = vld [vmem:[#allocation170_spill] sm:$0xff] }
 0x8ba   : > { %11662 = vst [vmem:[#allocation270_spill] sm:$0xff] %v7220_v45  ;;  %v7225_v27 = vpop.permute.xlu0 %1798  ;;  %v1605_v42 = vadd.f32 %v7098_v26, %v1525_v37  ;;  %v1048_v26 = vadd.f32 %v6618_v44, %v968_v48  ;;  %v1049_v51 = vadd.f32 %v6620_v53, %v969_v41  ;;  %v7273_v29 = vadd.f32 %v6624_v46, %v971_v40  ;;  %v11669_v46 = vld [vmem:[#allocation152_spill] sm:$0xff]  ;;  %v11670_v44 = vld [vmem:[#allocation153_spill] sm:$0xff] }
 0x8bb   : > { %11663 = vst [vmem:[#allocation271_spill] sm:$0xff] %v7225_v27  ;;  %v7286_v15 = vadd.f32 %v6694_v2, %v1050_v8  ;;  %v1166_v40 = vmul.f32 %v6881_v30, %v6702_v59  ;;  %v1169_v21 = vmul.f32 %v6910_v22, %v11669_v46  ;;  %v1168_v57 = vmul.f32 %v6891_v55, %v11670_v44  ;;  %v11673_v2 = vld [vmem:[#allocation157_spill] sm:$0xff]  ;;  %v11678_v41 = vld [vmem:[#allocation168_spill] sm:$0xff] }
 0x8bc   : > { %v1685_v58 = vadd.f32 %v1662_v49, %v1605_v42  ;;  %v1128_v60 = vadd.f32 %v6690_v7, %v1048_v26  ;;  %v7283_v53 = vadd.f32 %v6692_v5, %v1049_v51  ;;  %v11672_v7 = vld [vmem:[#allocation155_spill] sm:$0xff]  ;;  %v1172_v49 = vmul.f32 %v6921_v36, %v11673_v2  ;;  %v11712_v2 = vld [vmem:[#allocation233_spill] sm:$0xff] }
 0x8bd   : > { %v1170_v5 = vmul.f32 %v6905_v24, %v11672_v7  ;;  %v1246_v17 = vadd.f32 %v11674_v33, %v1166_v40  ;;  %v7307_v42 = vadd.f32 %v11676_v28, %v1052_v34  ;;  %v1249_v0 = vadd.f32 %v11678_v41, %v1169_v21  ;;  %v11681_v51 = vld [vmem:[#allocation171_spill] sm:$0xff]  ;;  %v11685_v34 = vld [vmem:[#allocation182_spill] sm:$0xff]  ;;  %v11687_v21 = vld [vmem:[#allocation184_spill] sm:$0xff] }
 0x8be   : > { %v7242_v62 = vpop.permute.xlu1 %1782  ;;  %v7244_v9 = vpop.permute.xlu0 %1806  ;;  %v1251_v26 = vadd.f32 %v11680_v10, %v1171_v4  ;;  %v1252_v8 = vadd.f32 %v11681_v51, %v1172_v49  ;;  %v11689_v28 = vld [vmem:[#allocation185_spill] sm:$0xff]  ;;  %v11691_v41 = vld [vmem:[#allocation195_spill] sm:$0xff]  ;;  %v11693_v10 = vld [vmem:[#allocation196_spill] sm:$0xff] }
 0x8bf   : > { %11664 = vst [vmem:[#allocation272_spill] sm:$0xff] %v7242_v62  ;;  %11665 = vst [vmem:[#allocation273_spill] sm:$0xff] %v7244_v9  ;;  %v1813_v16 = vmul.f32 %v7242_v62, %v1405_v13  ;;  %v11675_v13 = vld [vmem:[#allocation166_spill] sm:$0xff]  ;;  %v11694_v51 = vld [vmem:[#allocation197_spill] sm:$0xff] }
 0x8c0   : > { %v1247_v37 = vadd.f32 %v11675_v13, %v1167_v35  ;;  %v1331_v49 = vadd.f32 %v11689_v28, %v1251_v26  ;;  %v11698_v26 = vld [vmem:[#allocation201_spill] sm:$0xff]  ;;  %v11711_v62 = vld [vmem:[#allocation264_spill] sm:$0xff] }
 0x8c1   : > { %v1821_v18 = vadd.f32 %v1813_v16, %v1773_v39  ;;  %v11677_v16 = vld [vmem:[#allocation167_spill] sm:$0xff] }
 0x8c2   : > { %v7263_v20 = vpop.permute.xlu1 %1790  ;;  %v1248_v48 = vadd.f32 %v11677_v16, %v1168_v57  ;;  %v11690_v16 = vld [vmem:[#allocation186_spill] sm:$0xff] }
 0x8c3   : > { %11666 = vst [vmem:[#allocation274_spill] sm:$0xff] %v7263_v20  ;;  %v7270_v1 = vpop.permute.xlu0 %1830 }
 0x8c4   : > { %11667 = vst [vmem:[#allocation275_spill] sm:$0xff] %v7270_v1  ;;  %v1861_v50 = vmul.f32 %v7270_v1, %v1685_v58  ;;  %v11679_v58 = vld [vmem:[#allocation169_spill] sm:$0xff]  ;;  %v1328_v35 = vadd.f32 %v11685_v34, %v1248_v48 }
 0x8c5   : > { %v1250_v39 = vadd.f32 %v11679_v58, %v1170_v5  ;;  %v11683_v1 = vld [vmem:[#allocation181_spill] sm:$0xff]  ;;  %v11688_v5 = vld [vmem:[#allocation206_spill] sm:$0xff] }
 0x8c6   : > { %v7292_v19 = vpop.permute.xlu1 %1794  ;;  %v1869_v61 = vadd.f32 %v1861_v50, %v1821_v18  ;;  %v11682_v18 = vld [vmem:[#allocation180_spill] sm:$0xff]  ;;  %v1327_v40 = vadd.f32 %v11683_v1, %v1247_v37  ;;  %v1448_v4 = vmul.f32 %v6891_v55, %v11688_v5  ;;  %v11692_v37 = vld [vmem:[#allocation203_spill] sm:$0xff]  ;;  %v1408_v48 = vadd.f32 %v11694_v51, %v1328_v35  ;;  %v11704_v51 = vld [vmem:[#allocation210_spill] sm:$0xff] }
 0x8c7   : > { %11668 = vst [vmem:[#allocation276_spill] sm:$0xff] %v7292_v19  ;;  %v1326_v50 = vadd.f32 %v11682_v18, %v1246_v17  ;;  %v1330_v13 = vadd.f32 %v11687_v21, %v1250_v39  ;;  %v1332_v17 = vadd.f32 %v11690_v16, %v1252_v8  ;;  %v1446_v58 = vmul.f32 %v6881_v30, %v11692_v37  ;;  %v11695_v18 = vld [vmem:[#allocation198_spill] sm:$0xff]  ;;  %v7333_v34 = vpop.permute.xlu0 %1842  ;;  %v11699_v8 = vld [vmem:[#allocation204_spill] sm:$0xff] }
 0x8c8   : > { %v1877_v47 = vmul.f32 0.57735026, %v1869_v61  ;;  %v11686_v61 = vld [vmem:[#allocation183_spill] sm:$0xff]  ;;  %v1528_v39 = vadd.f32 %v7034_v54, %v1448_v4  ;;  %11696 = vst [vmem:[#allocation153_spill] sm:$0xff] %v7333_v34  ;;  %v1816_v4 = vmul.f32 %v7292_v19, %v1408_v48  ;;  %v11709_v37 = vld [vmem:[#allocation222_spill] sm:$0xff] }
 0x8c9   : > { %v1329_v57 = vadd.f32 %v11686_v61, %v1249_v0  ;;  %v1406_v1 = vadd.f32 %v11691_v41, %v1326_v50  ;;  %v11697_v61 = vld [vmem:[#allocation199_spill] sm:$0xff]  ;;  %v1412_v28 = vadd.f32 %v11698_v26, %v1332_v17  ;;  %v1447_v50 = vmul.f32 %v6896_v25, %v11699_v8 }
 0x8ca   : > { %v7316_v33 = vpop.permute.xlu1 %1802  ;;  %1893 = vrot.lane.b32.xlu1 %v1877_v47, %s5888_s6  ;;  %v1407_v47 = vadd.f32 %v11693_v10, %v1327_v40  ;;  %v1410_v21 = vadd.f32 %v11697_v61, %v1330_v13  ;;  %v1526_v16 = vadd.f32 %v7028_v32, %v1446_v58  ;;  %v11701_v40 = vld [vmem:[#allocation205_spill] sm:$0xff]  ;;  %v11702_v10 = vld [vmem:[#allocation208_spill] sm:$0xff]  ;;  %v1608_v54 = vadd.f32 %v7104_v43, %v1528_v39  ;;  %v11703_v13 = vld [vmem:[#allocation207_spill] sm:$0xff] }
 0x8cb   : > { %11684 = vst [vmem:[#allocation152_spill] sm:$0xff] %v7316_v33  ;;  %v1409_v0 = vadd.f32 %v11695_v18, %v1329_v57  ;;  %v1449_v35 = vmul.f32 %v6910_v22, %v11701_v40  ;;  %v1450_v57 = vmul.f32 %v6905_v24, %v11702_v10  ;;  %v1451_v17 = vmul.f32 %v6926_v38, %v11703_v13  ;;  %v11705_v61 = vld [vmem:[#allocation218_spill] sm:$0xff]  ;;  %v11706_v40 = vld [vmem:[#allocation220_spill] sm:$0xff]  ;;  %v11707_v8 = vld [vmem:[#allocation263_spill] sm:$0xff] }
 0x8cc   : > { %v1452_v18 = vmul.f32 %v6921_v36, %v11704_v51  ;;  %v1606_v32 = vadd.f32 %v7100_v63, %v1526_v16  ;;  %v1814_v58 = vmul.f32 %v7216_v6, %v1406_v1  ;;  %v1527_v26 = vadd.f32 %v11705_v61, %v1447_v50  ;;  %v11708_v39 = vld [vmem:[#allocation219_spill] sm:$0xff]  ;;  %v11710_v13 = vld [vmem:[#allocation248_spill] sm:$0xff]  ;;  %v7363_v16 = vpop.permute.xlu0 %1850  ;;  %v11719_v61 = vld [vmem:[#allocation265_spill] sm:$0xff] }
 0x8cd   : > { %v1530_v5 = vadd.f32 %v11706_v40, %v1450_v57  ;;  %v1688_v10 = vadd.f32 %v7176_v14, %v1608_v54  ;;  %v1776_v43 = vmul.f32 %v11707_v8, %v1128_v60  ;;  %v1529_v48 = vadd.f32 %v11708_v39, %v1449_v35  ;;  %11713 = vst [vmem:[#allocation155_spill] sm:$0xff] %v7363_v16  ;;  %v11715_v60 = vld [vmem:[#allocation231_spill] sm:$0xff]  ;;  %v11721_v39 = vld [vmem:[#allocation249_spill] sm:$0xff] }
 0x8ce   : > { %v7340_v41 = vpop.permute.xlu1 %1810  ;;  %v1532_v19 = vadd.f32 %v11709_v37, %v1452_v18  ;;  %v1686_v52 = vadd.f32 %v11710_v13, %v1606_v32  ;;  %v1774_v51 = vmul.f32 %v11711_v62, %v1126_v11  ;;  %v1818_v14 = vmul.f32 %v7316_v33, %v1410_v21  ;;  %v11716_v13 = vld [vmem:[#allocation221_spill] sm:$0xff]  ;;  %v11717_v18 = vld [vmem:[#allocation232_spill] sm:$0xff] }
 0x8cf   : > { %11700 = vst [vmem:[#allocation154_spill] sm:$0xff] %v7340_v41  ;;  %v1610_v63 = vadd.f32 %v11712_v2, %v1530_v5  ;;  %v1824_v50 = vadd.f32 %v1816_v4, %v1776_v43  ;;  %v1864_v40 = vmul.f32 %v7333_v34, %v1688_v10  ;;  %v1607_v57 = vadd.f32 %v11715_v60, %v1527_v26  ;;  %v11718_v5 = vld [vmem:[#allocation251_spill] sm:$0xff]  ;;  %v12020_v33 = vld [vmem:[#allocation120_spill] sm:$0xff] }
 0x8d0   : > { %v1822_v35 = vadd.f32 %v1814_v58, %v1774_v51  ;;  %v1815_v54 = vmul.f32 %v7263_v20, %v1407_v47  ;;  %v1531_v11 = vadd.f32 %v11716_v13, %v1451_v17  ;;  %v1609_v2 = vadd.f32 %v11717_v18, %v1529_v48  ;;  %v11720_v43 = vld [vmem:[#allocation235_spill] sm:$0xff]  ;;  %v11722_v51 = vld [vmem:[#allocation266_spill] sm:$0xff] }
 0x8d1   : > { %v1690_v32 = vadd.f32 %v11718_v5, %v1610_v63  ;;  %v1778_v4 = vmul.f32 %v11719_v61, %v7286_v15  ;;  %v1612_v10 = vadd.f32 %v11720_v43, %v1532_v19  ;;  %v1687_v21 = vadd.f32 %v11721_v39, %v1607_v57  ;;  %v11724_v57 = vld [vmem:[#allocation149_spill] sm:$0xff]  ;;  %v7391_v5 = vpop.permute.xlu0 %1858 }
 0x8d2   : > { %v1775_v58 = vmul.f32 %v11722_v51, %v7279_v12  ;;  %v1872_v47 = vadd.f32 %v1864_v40, %v1824_v50  ;;  %v1817_v17 = vmul.f32 %v7225_v27, %v1409_v0  ;;  %v1820_v19 = vmul.f32 %v7340_v41, %v1412_v28  ;;  %v11726_v12 = vld [vmem:[#allocation234_spill] sm:$0xff]  ;;  %11727 = vst [vmem:[#allocation150_spill] sm:$0xff] %v7391_v5  ;;  %v11728_v0 = vld [vmem:[#allocation268_spill] sm:$0xff]  ;;  %v11731_v28 = vld [vmem:[#allocation267_spill] sm:$0xff] }
 0x8d3   : > { %v7365_v1 = vpop.permute.xlu1 %1834  ;;  %v1826_v26 = vadd.f32 %v1818_v14, %v1778_v4  ;;  %v1866_v48 = vmul.f32 %v7363_v16, %v1690_v32  ;;  %v1611_v18 = vadd.f32 %v11726_v12, %v1531_v11  ;;  %v1777_v50 = vmul.f32 %v11728_v0, %v7283_v53  ;;  %v11729_v40 = vld [vmem:[#allocation250_spill] sm:$0xff]  ;;  %v11736_v12 = vld [vmem:[#allocation7_spill] sm:$0xff]  ;;  %v8076_v16 = vld [vmem:[%s5963_s18 + $0x38] sm:$0xff] }
 0x8d4   : > { %11714 = vst [vmem:[#allocation165_spill] sm:$0xff] %v7365_v1  ;;  %v1862_v37 = vmul.f32 %v7365_v1, %v1686_v52  ;;  %v1823_v60 = vadd.f32 %v1815_v54, %v1775_v58  ;;  %v1689_v14 = vadd.f32 %v11729_v40, %v1609_v2  ;;  %v1780_v4 = vmul.f32 %v11731_v28, %v7307_v42  ;;  %v11739_v40 = vld [vmem:[#allocation11_spill] sm:$0xff]  ;;  %v12018_v0 = vld [vmem:[#allocation118_spill] sm:$0xff] }
 0x8d5   : > { %v1825_v43 = vadd.f32 %v1817_v17, %v1777_v50  ;;  %v1874_v11 = vadd.f32 %v1866_v48, %v1826_v26  ;;  %v11738_v50 = vld [vmem:[#allocation8_spill] sm:$0xff] }
 0x8d6   : > { %v1870_v34 = vadd.f32 %v1862_v37, %v1822_v35  ;;  %v1131_v35 = vadd.f32 %v11724_v57, %v7273_v29  ;;  %v11725_v37 = vld [vmem:[#allocation200_spill] sm:$0xff]  ;;  %v1828_v58 = vadd.f32 %v1820_v19, %v1780_v4  ;;  %v11744_v4 = vld [vmem:[#allocation14_spill] sm:$0xff] }
 0x8d7   : > { %v7381_v52 = vpop.permute.xlu1 %1838  ;;  %v1411_v13 = vadd.f32 %v11725_v37, %v1331_v49  ;;  %v1880_v49 = vmul.f32 0.57735026, %v1872_v47  ;;  %v1882_v48 = vmul.f32 0.57735026, %v1874_v11  ;;  %v11747_v11 = vld [vmem:[#allocation17_spill] sm:$0xff] }
 0x8d8   : > { %11723 = vst [vmem:[#allocation166_spill] sm:$0xff] %v7381_v52  ;;  %v1878_v63 = vmul.f32 0.57735026, %v1870_v34  ;;  %v1863_v15 = vmul.f32 %v7381_v52, %v1687_v21  ;;  %v11730_v34 = vld [vmem:[#allocation253_spill] sm:$0xff] }
 0x8d9   : > { %v1692_v54 = vadd.f32 %v11730_v34, %v1612_v10  ;;  %v1819_v39 = vmul.f32 %v7244_v9, %v1411_v13  ;;  %v1779_v10 = vmul.f32 %v7220_v45, %v1131_v35  ;;  %v11735_v13 = vld [vmem:[#allocation3_spill] sm:$0xff]  ;;  %v11741_v34 = vld [vmem:[#allocation13_spill] sm:$0xff] }
 0x8da   : > { %1895 = vrot.lane.b32.xlu0 %v1878_v63, %s5888_s6  ;;  %v1871_v32 = vadd.f32 %v1863_v15, %v1823_v60  ;;  %v11733_v63 = vld [vmem:[#allocation252_spill] sm:$0xff] }
 0x8db   : > { %v7400_v29 = vpop.permute.xlu1 %1846  ;;  %v1868_v2 = vmul.f32 %v7391_v5, %v1692_v54  ;;  %v1691_v60 = vadd.f32 %v11733_v63, %v1611_v18  ;;  %v1827_v17 = vadd.f32 %v1819_v39, %v1779_v10  ;;  %v11737_v18 = vld [vmem:[#allocation9_spill] sm:$0xff]  ;;  %v11742_v54 = vld [vmem:[#allocation12_spill] sm:$0xff] }
 0x8dc   : > { %11732 = vst [vmem:[#allocation167_spill] sm:$0xff] %v7400_v29  ;;  %v1879_v21 = vmul.f32 0.57735026, %v1871_v32  ;;  %v1865_v53 = vmul.f32 %v7400_v29, %v1689_v14  ;;  %v11740_v14 = vld [vmem:[#allocation10_spill] sm:$0xff]  ;;  %v11743_v32 = vld [vmem:[#allocation15_spill] sm:$0xff]  ;;  %v11748_v39 = vld [vmem:[#allocation20_spill] sm:$0xff] }
 0x8dd   : > { %v1876_v57 = vadd.f32 %v1868_v2, %v1828_v58  ;;  %v11751_v58 = vld [vmem:[#allocation22_spill] sm:$0xff]  ;;  %v11752_v2 = vld [vmem:[#allocation23_spill] sm:$0xff]  ;;  %v11753_v10 = vld [vmem:[#allocation25_spill] sm:$0xff] }
 0x8de   : > { %1897 = vrot.lane.b32.xlu1 %v1879_v21, %s5888_s6  ;;  %1899 = vrot.lane.b32.xlu0 %v1880_v49, %s5888_s6  ;;  %v1873_v42 = vadd.f32 %v1865_v53, %v1825_v43  ;;  %v11745_v49 = vld [vmem:[#allocation16_spill] sm:$0xff]  ;;  %v11746_v43 = vld [vmem:[#allocation18_spill] sm:$0xff]  ;;  %v11749_v21 = vld [vmem:[#allocation19_spill] sm:$0xff] }
 0x8df   : > { %v7409_v47 = vpop.permute.xlu1 %1854  ;;  %v1884_v37 = vmul.f32 0.57735026, %v1876_v57  ;;  %v11750_v53 = vld [vmem:[#allocation21_spill] sm:$0xff]  ;;  %v11754_v63 = vld [vmem:[#allocation24_spill] sm:$0xff] }
 0x8e0   : > { %11734 = vst [vmem:[#allocation168_spill] sm:$0xff] %v7409_v47  ;;  %v1881_v26 = vmul.f32 0.57735026, %v1873_v42  ;;  %v1867_v15 = vmul.f32 %v7409_v47, %v1691_v60  ;;  %v11755_v60 = vld [vmem:[#allocation27_spill] sm:$0xff]  ;;  %v11756_v42 = vld [vmem:[#allocation26_spill] sm:$0xff]  ;;  %v11761_v57 = vld [vmem:[#allocation244_spill] sm:$0xff] }
 0x8e2   : > { %1901 = vrot.lane.b32.xlu1 %v1881_v26, %s5888_s6  ;;  %1903 = vrot.lane.b32.xlu0 %v1882_v48, %s5888_s6  ;;  %v1875_v19 = vadd.f32 %v1867_v15, %v1827_v17  ;;  %v11757_v17 = vld [vmem:[#allocation29_spill] sm:$0xff]  ;;  %v11758_v26 = vld [vmem:[#allocation28_spill] sm:$0xff]  ;;  %v11759_v48 = vld [vmem:[#allocation31_spill] sm:$0xff] }
 0x8e3   : > { %v11760_v15 = vld [vmem:[#allocation30_spill] sm:$0xff] }
 0x8e4   : > { %v1883_v35 = vmul.f32 0.57735026, %v1875_v19  ;;  %v7470_v19 = vmul.f32 %v6871_v31, %v11761_v57  ;;  %v11769_v31 = vld [vmem:[#allocation35_spill] sm:$0xff] }
 0x8e6   : > { %1905 = vrot.lane.b32.xlu1 %v1883_v35, %s5888_s6  ;;  %1907 = vrot.lane.b32.xlu0 %v1884_v37, %s5888_s6  ;;  %11762 = vst [vmem:[#allocation169_spill] sm:$0xff] %v7470_v19  ;;  %v11763_v35 = vld [vmem:[#allocation32_spill] sm:$0xff]  ;;  %v11764_v37 = vld [vmem:[#allocation34_spill] sm:$0xff] }
 0x8ea   : > { %1933 = vrot.lane.b32.xlu1 %v11735_v13, %s5889_s7  ;;  %1935 = vrot.lane.b32.xlu0 %v11736_v12, %s5889_s7  ;;  %v11765_v13 = vld [vmem:[#allocation38_spill] sm:$0xff] }
 0x8eb   : > { %v365_v12 = vadd.f32 %v11765_v13, %v7470_v19  ;;  %v11788_v13 = vld [vmem:[#allocation76_spill] sm:$0xff] }
 0x8ec   : > { %v8043_v19 = vld [vmem:[%s5963_s18 + $0x10] sm:$0xff] }
 0x8ee   : > { %1937 = vrot.lane.b32.xlu1 %v11737_v18, %s5889_s7  ;;  %1939 = vrot.lane.b32.xlu0 %v11738_v50, %s5889_s7  ;;  %v11766_v18 = vld [vmem:[#allocation33_spill] sm:$0xff]  ;;  %v11767_v50 = vld [vmem:[#allocation36_spill] sm:$0xff] }
 0x8f2   : > { %1941 = vrot.lane.b32.xlu1 %v11739_v40, %s5889_s7  ;;  %1943 = vrot.lane.b32.xlu0 %v11740_v14, %s5889_s7  ;;  %v11768_v40 = vld [vmem:[#allocation46_spill] sm:$0xff] }
 0x8f3   : > { %v445_v14 = vadd.f32 %v11768_v40, %v365_v12  ;;  %v11789_v12 = vld [vmem:[#allocation54_spill] sm:$0xff] }
 0x8f6   : > { %1945 = vrot.lane.b32.xlu1 %v11741_v34, %s5889_s7  ;;  %1947 = vrot.lane.b32.xlu0 %v11742_v54, %s5889_s7  ;;  %v11770_v34 = vld [vmem:[#allocation37_spill] sm:$0xff]  ;;  %v11771_v54 = vld [vmem:[#allocation55_spill] sm:$0xff] }
 0x8fa   : > { %1965 = vrot.lane.b32.xlu1 %v11743_v32, %s5867_s23  ;;  %1967 = vrot.lane.b32.xlu0 %v11744_v4, %s5867_s23  ;;  %v525_v32 = vadd.f32 %v11771_v54, %v445_v14  ;;  %v11772_v4 = vld [vmem:[#allocation70_spill] sm:$0xff]  ;;  %v11791_v14 = vld [vmem:[#allocation247_spill] sm:$0xff] }
 0x8fe   : > { %1969 = vrot.lane.b32.xlu1 %v11745_v49, %s5867_s23  ;;  %1971 = vrot.lane.b32.xlu0 %v11746_v43, %s5867_s23  ;;  %v11773_v49 = vld [vmem:[#allocation71_spill] sm:$0xff]  ;;  %v11774_v43 = vld [vmem:[#allocation62_spill] sm:$0xff] }
 0x8ff   : > { %12007 = vst [vmem:[#allocation62_spill] sm:$0xff] %v8043_v19 }
 0x902   : > { %1973 = vrot.lane.b32.xlu1 %v11747_v11, %s5867_s23  ;;  %1975 = vrot.lane.b32.xlu0 %v11748_v39, %s5867_s23  ;;  %v605_v11 = vadd.f32 %v11774_v43, %v525_v32  ;;  %v11775_v39 = vld [vmem:[#allocation245_spill] sm:$0xff]  ;;  %v11795_v32 = vld [vmem:[#allocation87_spill] sm:$0xff] }
 0x906   : > { %1977 = vrot.lane.b32.xlu1 %v11749_v21, %s5867_s23  ;;  %1979 = vrot.lane.b32.xlu0 %v11750_v53, %s5867_s23  ;;  %v7493_v21 = vmul.f32 %v6881_v30, %v11775_v39  ;;  %v11777_v53 = vld [vmem:[#allocation73_spill] sm:$0xff]  ;;  %v11786_v30 = vld [vmem:[#allocation94_spill] sm:$0xff] }
 0x908   : > { %11776 = vst [vmem:[#allocation170_spill] sm:$0xff] %v7493_v21 }
 0x90a   : > { %1997 = vrot.lane.b32.xlu1 %v11751_v58, %s5890_s8  ;;  %1999 = vrot.lane.b32.xlu0 %v11752_v2, %s5890_s8  ;;  %v11778_v58 = vld [vmem:[#allocation72_spill] sm:$0xff]  ;;  %v11779_v2 = vld [vmem:[#allocation39_spill] sm:$0xff] }
 0x90e   : > { %2001 = vrot.lane.b32.xlu1 %v11753_v10, %s5890_s8  ;;  %2003 = vrot.lane.b32.xlu0 %v11754_v63, %s5890_s8  ;;  %v366_v10 = vadd.f32 %v11779_v2, %v7493_v21  ;;  %v11780_v63 = vld [vmem:[#allocation78_spill] sm:$0xff]  ;;  %v11799_v2 = vld [vmem:[#allocation45_spill] sm:$0xff] }
 0x912   : > { %2005 = vrot.lane.b32.xlu1 %v11755_v60, %s5890_s8  ;;  %2007 = vrot.lane.b32.xlu0 %v11756_v42, %s5890_s8  ;;  %v685_v60 = vadd.f32 %v11780_v63, %v605_v11  ;;  %v11781_v42 = vld [vmem:[#allocation75_spill] sm:$0xff]  ;;  %v11800_v63 = vld [vmem:[#allocation2_spill] sm:$0xff] }
 0x913   : > { %v11797_v11 = vld [vmem:[#allocation63_spill] sm:$0xff] }
 0x916   : > { %2009 = vrot.lane.b32.xlu1 %v11757_v17, %s5890_s8  ;;  %2011 = vrot.lane.b32.xlu0 %v11758_v26, %s5890_s8  ;;  %v11782_v17 = vld [vmem:[#allocation74_spill] sm:$0xff]  ;;  %v11783_v26 = vld [vmem:[#allocation47_spill] sm:$0xff] }
 0x917   : > { %12014 = vst [vmem:[#allocation74_spill] sm:$0xff] %v8076_v16 }
 0x91a   : > { %2029 = vrot.lane.b32.xlu1 %v11759_v48, %s5868_s24  ;;  %2031 = vrot.lane.b32.xlu0 %v11760_v15, %s5868_s24  ;;  %v446_v48 = vadd.f32 %v11783_v26, %v366_v10  ;;  %v11784_v15 = vld [vmem:[#allocation246_spill] sm:$0xff]  ;;  %v11804_v26 = vld [vmem:[#allocation4_spill] sm:$0xff] }
 0x91b   : > { %v7505_v57 = vmul.f32 %v6910_v22, %v11784_v15  ;;  %v11794_v22 = vld [vmem:[#allocation86_spill] sm:$0xff] }
 0x91d   : > { %11785 = vst [vmem:[#allocation171_spill] sm:$0xff] %v7505_v57 }
 0x91e   : > { %2033 = vrot.lane.b32.xlu1 %v11763_v35, %s5868_s24  ;;  %2035 = vrot.lane.b32.xlu0 %v11764_v37, %s5868_s24  ;;  %v765_v35 = vadd.f32 %v11786_v30, %v685_v60  ;;  %v11787_v37 = vld [vmem:[#allocation77_spill] sm:$0xff]  ;;  %v7535_v60 = vmul.f32 %v6896_v25, %v11800_v63  ;;  %v11806_v30 = vld [vmem:[#allocation40_spill] sm:$0xff]  ;;  %v11808_v25 = vld [vmem:[#allocation59_spill] sm:$0xff] }
 0x91f   : > { %v11820_v63 = vld [vmem:[#allocation66_spill] sm:$0xff] }
 0x920   : > { %11801 = vst [vmem:[#allocation181_spill] sm:$0xff] %v7535_v60 }
 0x922   : > { %2037 = vrot.lane.b32.xlu1 %v11766_v18, %s5868_s24  ;;  %2039 = vrot.lane.b32.xlu0 %v11767_v50, %s5868_s24  ;;  %v526_v18 = vadd.f32 %v11789_v12, %v446_v48  ;;  %v11790_v50 = vld [vmem:[#allocation43_spill] sm:$0xff]  ;;  %v7543_v48 = vmul.f32 %v6891_v55, %v11804_v26  ;;  %v11813_v55 = vld [vmem:[#allocation48_spill] sm:$0xff] }
 0x923   : > { %v369_v40 = vadd.f32 %v11790_v50, %v7505_v57  ;;  %v11822_v26 = vld [vmem:[#allocation95_spill] sm:$0xff] }
 0x924   : > { %v606_v39 = vadd.f32 %v11797_v11, %v526_v18  ;;  %11805 = vst [vmem:[#allocation182_spill] sm:$0xff] %v7543_v48  ;;  %v11809_v18 = vld [vmem:[#allocation52_spill] sm:$0xff] }
 0x926   : > { %2041 = vrot.lane.b32.xlu1 %v11769_v31, %s5868_s24  ;;  %2043 = vrot.lane.b32.xlu0 %v11770_v34, %s5868_s24  ;;  %v7515_v31 = vmul.f32 %v6926_v38, %v11791_v14  ;;  %v11793_v34 = vld [vmem:[#allocation110_spill] sm:$0xff] }
 0x927   : > { %v845_v54 = vadd.f32 %v11793_v34, %v765_v35  ;;  %v367_v35 = vadd.f32 %v11806_v30, %v7535_v60  ;;  %v11811_v34 = vld [vmem:[#allocation5_spill] sm:$0xff]  ;;  %v11823_v30 = vld [vmem:[#allocation6_spill] sm:$0xff] }
 0x928   : > { %11792 = vst [vmem:[#allocation180_spill] sm:$0xff] %v7515_v31  ;;  %v371_v10 = vadd.f32 %v11799_v2, %v7515_v31  ;;  %v11818_v2 = vld [vmem:[#allocation57_spill] sm:$0xff]  ;;  %v5893_v31 = vmov 20  }
 0x929   : > { %5766 = vset.pattern.permute.xlu1 %v5893_v31  ;;  %5767 = vset.pattern.permute.xlu0 %v5893_v31  ;;  %v12000_v60 = vld [vmem:[#allocation241_spill] sm:$0xff] }
 0x92a   : > { %2061 = vrot.lane.b32.xlu1 %v11772_v4, %s5891_s9  ;;  %2063 = vrot.lane.b32.xlu0 %v11773_v49, %s5891_s9  ;;  %v11796_v4 = vld [vmem:[#allocation254_spill] sm:$0xff]  ;;  %v451_v50 = vadd.f32 %v11809_v18, %v371_v10 }
 0x92b   : > { %v1733_v49 = vmul.f32 %v11796_v4, %v845_v54  ;;  %v7556_v54 = vmul.f32 %v6905_v24, %v11811_v34  ;;  %v11828_v34 = vld [vmem:[#allocation93_spill] sm:$0xff]  ;;  %v5894_v4 = vmov 23  }
 0x92d   : > { %11812 = vst [vmem:[#allocation183_spill] sm:$0xff] %v7556_v54 }
 0x92e   : > { %2065 = vrot.lane.b32.xlu1 %v11777_v53, %s5891_s9  ;;  %2067 = vrot.lane.b32.xlu0 %v11778_v58, %s5891_s9  ;;  %v11798_v53 = vld [vmem:[#allocation50_spill] sm:$0xff] }
 0x92f   : > { %v449_v58 = vadd.f32 %v11798_v53, %v369_v40  ;;  %v11810_v40 = vld [vmem:[#allocation79_spill] sm:$0xff]  ;;  %v11817_v53 = vld [vmem:[#allocation42_spill] sm:$0xff] }
 0x930   : > { %v686_v14 = vadd.f32 %v11810_v40, %v606_v39  ;;  %v11819_v39 = vld [vmem:[#allocation56_spill] sm:$0xff]  ;;  %v11827_v40 = vld [vmem:[#allocation91_spill] sm:$0xff] }
 0x931   : > { %v529_v12 = vadd.f32 %v11808_v25, %v449_v58  ;;  %v370_v58 = vadd.f32 %v11817_v53, %v7556_v54  ;;  %v11834_v53 = vld [vmem:[#allocation68_spill] sm:$0xff] }
 0x932   : > { %2069 = vrot.lane.b32.xlu1 %v11781_v42, %s5891_s9  ;;  %2071 = vrot.lane.b32.xlu0 %v11782_v17, %s5891_s9  ;;  %v11802_v42 = vld [vmem:[#allocation88_spill] sm:$0xff]  ;;  %v11803_v17 = vld [vmem:[#allocation90_spill] sm:$0xff] }
 0x933   : > { %v609_v24 = vadd.f32 %v11820_v63, %v529_v12 }
 0x936   : > { %2073 = vrot.lane.b32.xlu1 %v11787_v37, %s5891_s9  ;;  %2075 = vrot.lane.b32.xlu0 %v11788_v13, %s5891_s9  ;;  %v11807_v37 = vld [vmem:[#allocation41_spill] sm:$0xff] }
 0x937   : > { %v368_v13 = vadd.f32 %v11807_v37, %v7543_v48  ;;  %v11825_v37 = vld [vmem:[#allocation51_spill] sm:$0xff] }
 0x938   : > { %v450_v25 = vadd.f32 %v11825_v37, %v370_v58 }
 0x93a   : > { %2093 = vrot.lane.b32.xlu1 %v11794_v22, %s5869_s25  ;;  %2095 = vrot.lane.b32.xlu0 %v11795_v32, %s5869_s25  ;;  %v447_v22 = vadd.f32 %v11813_v55, %v367_v35  ;;  %v11814_v32 = vld [vmem:[#allocation89_spill] sm:$0xff]  ;;  %v7573_v35 = vmul.f32 %v6921_v36, %v11823_v30  ;;  %v11838_v30 = vld [vmem:[#allocation67_spill] sm:$0xff] }
 0x93b   : > { %v11829_v55 = vld [vmem:[#allocation65_spill] sm:$0xff] }
 0x93c   : > { %v1894_v43 = vpop.permute.xlu1 %1893  ;;  %v527_v10 = vadd.f32 %v11818_v2, %v447_v22  ;;  %11824 = vst [vmem:[#allocation184_spill] sm:$0xff] %v7573_v35  ;;  %v11835_v2 = vld [vmem:[#allocation111_spill] sm:$0xff] }
 0x93d   : > { %v1917_v38 = vadd.f32 %v1894_v43, %v1733_v49  ;;  %v11815_v49 = vld [vmem:[#allocation92_spill] sm:$0xff]  ;;  %v11816_v43 = vld [vmem:[#allocation49_spill] sm:$0xff] }
 0x93e   : > { %2097 = vrot.lane.b32.xlu1 %v11802_v42, %s5869_s25  ;;  %2099 = vrot.lane.b32.xlu0 %v11803_v17, %s5869_s25  ;;  %v448_v11 = vadd.f32 %v11816_v43, %v368_v13  ;;  %v11821_v42 = vld [vmem:[#allocation61_spill] sm:$0xff]  ;;  %v11826_v13 = vld [vmem:[#allocation64_spill] sm:$0xff] }
 0x93f   : > { %v1925_v15 = vmul.f32 0.28867513, %v1917_v38  ;;  %v531_v17 = vadd.f32 %v11821_v42, %v451_v50  ;;  %v607_v18 = vadd.f32 %v11826_v13, %v527_v10  ;;  %v11830_v50 = vld [vmem:[#allocation44_spill] sm:$0xff]  ;;  %v11833_v43 = vld [vmem:[#allocation81_spill] sm:$0xff] }
 0x940   : > { %v528_v38 = vadd.f32 %v11819_v39, %v448_v11  ;;  %v372_v22 = vadd.f32 %v11830_v50, %v7573_v35  ;;  %v11836_v39 = vld [vmem:[#allocation82_spill] sm:$0xff]  ;;  %v11837_v42 = vld [vmem:[#allocation53_spill] sm:$0xff] }
 0x941   : > { %4662 = vst.msk [vmem:[%s7531_s13] sm:$0xff] %vm4661_vm0, %v1925_v15  ;;  %v766_v15 = vadd.f32 %v11822_v26, %v686_v14  ;;  %v11831_v14 = vld [vmem:[#allocation58_spill] sm:$0xff]  ;;  %v611_v58 = vadd.f32 %v11834_v53, %v531_v17  ;;  %v689_v63 = vadd.f32 %v11836_v39, %v609_v24  ;;  %v11843_v17 = vld [vmem:[#allocation255_spill] sm:$0xff]  ;;  %v11849_v39 = vld [vmem:[#allocation84_spill] sm:$0xff] }
 0x942   : > { %2101 = vrot.lane.b32.xlu1 %v11814_v32, %s5869_s25  ;;  %2103 = vrot.lane.b32.xlu0 %v11815_v49, %s5869_s25  ;;  %v608_v12 = vadd.f32 %v11829_v55, %v528_v38  ;;  %v530_v32 = vadd.f32 %v11831_v14, %v450_v25  ;;  %v11832_v49 = vld [vmem:[#allocation80_spill] sm:$0xff]  ;;  %v452_v26 = vadd.f32 %v11837_v42, %v372_v22  ;;  %v11841_v25 = vld [vmem:[#allocation103_spill] sm:$0xff]  ;;  %v11848_v53 = vld [vmem:[#allocation98_spill] sm:$0xff] }
 0x943   : > { %v687_v36 = vadd.f32 %v11832_v49, %v607_v18  ;;  %v846_v10 = vadd.f32 %v11835_v2, %v766_v15  ;;  %v11839_v38 = vld [vmem:[#allocation96_spill] sm:$0xff]  ;;  %v11842_v18 = vld [vmem:[#allocation97_spill] sm:$0xff]  ;;  %v11845_v24 = vld [vmem:[#allocation83_spill] sm:$0xff]  ;;  %v769_v2 = vadd.f32 %v11848_v53, %v689_v63  ;;  %v691_v42 = vadd.f32 %v11849_v39, %v611_v58 }
 0x944   : > { %v688_v11 = vadd.f32 %v11833_v43, %v608_v12  ;;  %v610_v37 = vadd.f32 %v11838_v30, %v530_v32  ;;  %v11844_v15 = vld [vmem:[#allocation60_spill] sm:$0xff]  ;;  %v11847_v49 = vld [vmem:[#allocation113_spill] sm:$0xff]  ;;  %v11857_v63 = vld [vmem:[#allocation115_spill] sm:$0xff] }
 0x945   : > { %v767_v13 = vadd.f32 %v11839_v38, %v687_v36  ;;  %v1734_v55 = vmul.f32 %v11843_v17, %v846_v10  ;;  %v532_v12 = vadd.f32 %v11844_v15, %v452_v26  ;;  %v11846_v22 = vld [vmem:[#allocation112_spill] sm:$0xff]  ;;  %v11850_v30 = vld [vmem:[#allocation69_spill] sm:$0xff]  ;;  %v8067_v17 = vld [vmem:[%s5963_s18 + $0x28] sm:$0xff] }
 0x946   : > { %2105 = vrot.lane.b32.xlu1 %v11827_v40, %s5869_s25  ;;  %2107 = vrot.lane.b32.xlu0 %v11828_v34, %s5869_s25  ;;  %v11840_v40 = vld [vmem:[#allocation102_spill] sm:$0xff]  ;;  %v768_v34 = vadd.f32 %v11842_v18, %v688_v11  ;;  %v690_v50 = vadd.f32 %v11845_v24, %v610_v37  ;;  %v11851_v11 = vld [vmem:[#allocation99_spill] sm:$0xff]  ;;  %v11852_v10 = vld [vmem:[#allocation105_spill] sm:$0xff]  ;;  %12011 = vst [vmem:[#allocation39_spill] sm:$0xff] %v8067_v17  ;;  %s5918_s25 = smov 117  }
 0x947   : > { %v847_v14 = vadd.f32 %v11846_v22, %v767_v13  ;;  %v612_v38 = vadd.f32 %v11850_v30, %v532_v12  ;;  %v11853_v26 = vld [vmem:[#allocation104_spill] sm:$0xff]  ;;  %v11855_v18 = vld [vmem:[#allocation258_spill] sm:$0xff]  ;;  %v11860_v39 = vld [vmem:[#allocation101_spill] sm:$0xff] }
 0x948   : > { %v848_v36 = vadd.f32 %v11847_v49, %v768_v34  ;;  %v11854_v13 = vld [vmem:[#allocation256_spill] sm:$0xff]  ;;  %v11862_v30 = vld [vmem:[#allocation106_spill] sm:$0xff] }
 0x949   : > { %v11859_v53 = vld [vmem:[#allocation100_spill] sm:$0xff] }
 0x94a   : > { %2125 = vrot.lane.b32.xlu1 %v11840_v40, %s5892_s14  ;;  %2127 = vrot.lane.b32.xlu0 %v11841_v25, %s5892_s14  ;;  %v770_v40 = vadd.f32 %v11851_v11, %v690_v50  ;;  %v1735_v25 = vmul.f32 %v11854_v13, %v847_v14  ;;  %v1736_v34 = vmul.f32 %v11855_v18, %v848_v36  ;;  %v11861_v36 = vld [vmem:[#allocation107_spill] sm:$0xff] }
 0x94c   : > { %v1896_v32 = vpop.permute.xlu0 %1895  ;;  %v850_v24 = vadd.f32 %v11857_v63, %v770_v40  ;;  %v11863_v40 = vld [vmem:[#allocation257_spill] sm:$0xff]  ;;  %v11866_v63 = vld [vmem:[#allocation116_spill] sm:$0xff] }
 0x94d   : > { %v1918_v43 = vadd.f32 %v1896_v32, %v1734_v55  ;;  %v11856_v55 = vld [vmem:[#allocation85_spill] sm:$0xff]  ;;  %v11858_v32 = vld [vmem:[#allocation114_spill] sm:$0xff] }
 0x94e   : > { %2129 = vrot.lane.b32.xlu1 %v11852_v10, %s5892_s14  ;;  %2131 = vrot.lane.b32.xlu0 %v11853_v26, %s5892_s14  ;;  %v692_v15 = vadd.f32 %v11856_v55, %v612_v38  ;;  %v849_v49 = vadd.f32 %v11858_v32, %v769_v2  ;;  %v11864_v26 = vld [vmem:[#allocation260_spill] sm:$0xff] }
 0x94f   : > { %v1926_v37 = vmul.f32 0.28867513, %v1918_v43  ;;  %v771_v43 = vadd.f32 %v11859_v53, %v691_v42  ;;  %v11871_v53 = vld [vmem:[#allocation259_spill] sm:$0xff] }
 0x950   : > { %v1898_v58 = vpop.permute.xlu1 %1897  ;;  %v1900_v22 = vpop.permute.xlu0 %1899  ;;  %v772_v14 = vadd.f32 %v11860_v39, %v692_v15  ;;  %v1737_v10 = vmul.f32 %v11863_v40, %v849_v49  ;;  %v8059_v40 = vld [vmem:[%s5963_s18 + $0x30] sm:$0xff] }
 0x951   : > { %4663 = vst.msk [vmem:[%s7531_s13 + $0x8] sm:$0xff] %vm4661_vm0, %v1926_v37  ;;  %v1919_v12 = vadd.f32 %v1898_v58, %v1735_v25  ;;  %v1920_v50 = vadd.f32 %v1900_v22, %v1736_v34  ;;  %v1738_v37 = vmul.f32 %v11864_v26, %v850_v24  ;;  %v11865_v34 = vld [vmem:[#allocation117_spill] sm:$0xff]  ;;  %v851_v58 = vadd.f32 %v11866_v63, %v771_v43  ;;  %v7637_v24 = vld [vmem:[%s6034_s22 + $0x8] sm:$0xff]  ;;  %v11876_v63 = vld [vmem:[#allocation126_spill] sm:$0xff] }
 0x952   : > { %2133 = vrot.lane.b32.xlu1 %v11861_v36, %s5892_s14  ;;  %2135 = vrot.lane.b32.xlu0 %v11862_v30, %s5892_s14  ;;  %v852_v42 = vadd.f32 %v11865_v34, %v772_v14  ;;  %v11867_v22 = vld [vmem:[#allocation109_spill] sm:$0xff]  ;;  %11869 = vst [vmem:[#allocation185_spill] sm:$0xff] %v7637_v24  ;;  %v11872_v14 = vld [vmem:[#allocation262_spill] sm:$0xff]  ;;  %v11873_v30 = vld [vmem:[#allocation124_spill] sm:$0xff] }
 0x953   : > { %v1927_v38 = vmul.f32 0.28867513, %v1919_v12  ;;  %v1928_v11 = vmul.f32 0.28867513, %v1920_v50  ;;  %v11868_v12 = vld [vmem:[#allocation108_spill] sm:$0xff]  ;;  %v7640_v50 = vld [vmem:[%s6034_s22 + $0x18] sm:$0xff]  ;;  %v1739_v39 = vmul.f32 %v11871_v53, %v851_v58  ;;  %v2173_v43 = vmul.f32 %v7637_v24, %v11873_v30 }
 0x954   : > { %v1902_v25 = vpop.permute.xlu1 %1901  ;;  %v1904_v2 = vpop.permute.xlu0 %1903  ;;  %11870 = vst [vmem:[#allocation186_spill] sm:$0xff] %v7640_v50  ;;  %v1740_v36 = vmul.f32 %v11872_v14, %v852_v42  ;;  %v7655_v34 = vld [vmem:[%s6034_s22 + $0x28] sm:$0xff]  ;;  %v7658_v42 = vld [vmem:[%s6034_s22 + $0x38] sm:$0xff]  ;;  %v11881_v30 = vld [vmem:[#allocation128_spill] sm:$0xff] }
 0x955   : > { %4664 = vst.msk [vmem:[%s7531_s13 + $0x10] sm:$0xff] %vm4661_vm0, %v1927_v38  ;;  %4665 = vst.msk [vmem:[%s7531_s13 + $0x18] sm:$0xff] %vm4661_vm0, %v1928_v11  ;;  %v1921_v55 = vadd.f32 %v1902_v25, %v1737_v10  ;;  %v1922_v15 = vadd.f32 %v1904_v2, %v1738_v37  ;;  %v11874_v38 = vld [vmem:[#allocation127_spill] sm:$0xff]  ;;  %v2176_v58 = vmul.f32 %v7658_v42, %v11876_v63  ;;  %v11886_v63 = vld [vmem:[#allocation132_spill] sm:$0xff] }
 0x956   : > { %2137 = vrot.lane.b32.xlu1 %v11867_v22, %s5892_s14  ;;  %2139 = vrot.lane.b32.xlu0 %v11868_v12, %s5892_s14  ;;  %v2174_v11 = vmul.f32 %v7640_v50, %v11874_v38  ;;  %11875 = vst [vmem:[#allocation195_spill] sm:$0xff] %v7655_v34  ;;  %v11877_v22 = vld [vmem:[#allocation129_spill] sm:$0xff]  ;;  %v11882_v38 = vld [vmem:[#allocation130_spill] sm:$0xff]  ;;  %12010 = vst [vmem:[#allocation72_spill] sm:$0xff] %v8059_v40 }
 0x957   : > { %v1929_v32 = vmul.f32 0.28867513, %v1921_v55  ;;  %v1930_v49 = vmul.f32 0.28867513, %v1922_v15  ;;  %v2175_v12 = vmul.f32 %v7655_v34, %v11877_v22  ;;  %v8055_v26 = vld [vmem:[%s5963_s18 + $0x18] sm:$0xff] }
 0x958   : > { %v1906_v10 = vpop.permute.xlu1 %1905  ;;  %v1908_v37 = vpop.permute.xlu0 %1907  ;;  %12009 = vst [vmem:[#allocation73_spill] sm:$0xff] %v8055_v26 }
 0x959   : > { %4666 = vst.msk [vmem:[%s7531_s13 + $0x20] sm:$0xff] %vm4661_vm0, %v1929_v32  ;;  %4667 = vst.msk [vmem:[%s7531_s13 + $0x28] sm:$0xff] %vm4661_vm0, %v1930_v49  ;;  %v1923_v25 = vadd.f32 %v1906_v10, %v1739_v39  ;;  %v1924_v2 = vadd.f32 %v1908_v37, %v1740_v36  ;;  %v7675_v39 = vld [vmem:[%s6034_s22 + $0x48] sm:$0xff]  ;;  %v7678_v36 = vld [vmem:[%s6034_s22 + $0x58] sm:$0xff] }
 0x95a   : > { %2189 = vrot.lane.b32.xlu1 %v2173_v43, %s5889_s7  ;;  %2191 = vrot.lane.b32.xlu0 %v2174_v11, %s5889_s7  ;;  %11880 = vst [vmem:[#allocation198_spill] sm:$0xff] %v7675_v39  ;;  %v2178_v43 = vmul.f32 %v7678_v36, %v11881_v30  ;;  %v2177_v11 = vmul.f32 %v7675_v39, %v11882_v38  ;;  %v11889_v30 = vld [vmem:[#allocation133_spill] sm:$0xff]  ;;  %v11890_v38 = vld [vmem:[#allocation134_spill] sm:$0xff] }
 0x95b   : > { %v1931_v55 = vmul.f32 0.28867513, %v1923_v25  ;;  %v1932_v15 = vmul.f32 0.28867513, %v1924_v2  ;;  %v7691_v25 = vld [vmem:[%s6034_s22 + $0x68] sm:$0xff]  ;;  %v7694_v2 = vld [vmem:[%s6034_s22 + $0x78] sm:$0xff]  ;;  %v2169_v27 = vmul.f32 %v7675_v39, %v12020_v33 }
 0x95c   : > { %v7664_v32 = vpop.permute.xlu1 %1933  ;;  %v7666_v49 = vpop.permute.xlu0 %1935  ;;  %v12025_v33 = vld [vmem:[#allocation125_spill] sm:$0xff] }
 0x95d   : > { %11878 = vst [vmem:[#allocation196_spill] sm:$0xff] %v7664_v32  ;;  %11879 = vst [vmem:[#allocation197_spill] sm:$0xff] %v7666_v49 }
 0x95e   : > { %4668 = vst.msk [vmem:[%s7531_s13 + $0x30] sm:$0xff] %vm4661_vm0, %v1931_v55  ;;  %4669 = vst.msk [vmem:[%s7531_s13 + $0x38] sm:$0xff] %vm4661_vm0, %v1932_v15  ;;  %2193 = vrot.lane.b32.xlu1 %v2175_v12, %s5889_s7  ;;  %2195 = vrot.lane.b32.xlu0 %v2176_v58, %s5889_s7  ;;  %v11885_v55 = vld [vmem:[#allocation131_spill] sm:$0xff]  ;;  %v2179_v58 = vmul.f32 %v7691_v25, %v11886_v63  ;;  %vm5245_vm0 = vcmask 187568  }
 0x95f   : > { %v2180_v15 = vmul.f32 %v7694_v2, %v11885_v55  ;;  %v11893_v63 = vld [vmem:[#allocation135_spill] sm:$0xff] }
 0x960   : > { %v7684_v10 = vpop.permute.xlu1 %1937  ;;  %v7686_v37 = vpop.permute.xlu0 %1939 }
 0x961   : > { %11883 = vst [vmem:[#allocation199_spill] sm:$0xff] %v7684_v10  ;;  %11884 = vst [vmem:[#allocation201_spill] sm:$0xff] %v7686_v37 }
 0x962   : > { %2197 = vrot.lane.b32.xlu1 %v2177_v11, %s5889_s7  ;;  %2199 = vrot.lane.b32.xlu0 %v2178_v43, %s5889_s7  ;;  %v2221_v43 = vmul.f32 %v7637_v24, %v11889_v30  ;;  %v2222_v11 = vmul.f32 %v7640_v50, %v11890_v38 }
 0x964   : > { %v7700_v22 = vpop.permute.xlu1 %1941  ;;  %v7702_v12 = vpop.permute.xlu0 %1943 }
 0x965   : > { %11887 = vst [vmem:[#allocation218_spill] sm:$0xff] %v7700_v22  ;;  %11888 = vst [vmem:[#allocation220_spill] sm:$0xff] %v7702_v12 }
 0x966   : > { %2201 = vrot.lane.b32.xlu1 %v2179_v58, %s5889_s7  ;;  %2203 = vrot.lane.b32.xlu0 %v2180_v15, %s5889_s7  ;;  %v2223_v15 = vmul.f32 %v7655_v34, %v11893_v63  ;;  %v11894_v58 = vld [vmem:[#allocation137_spill] sm:$0xff] }
 0x967   : > { %v2224_v30 = vmul.f32 %v7658_v42, %v11894_v58  ;;  %v11901_v58 = vld [vmem:[#allocation138_spill] sm:$0xff] }
 0x968   : > { %v7710_v35 = vpop.permute.xlu1 %1945  ;;  %v7712_v55 = vpop.permute.xlu0 %1947 }
 0x969   : > { %11891 = vst [vmem:[#allocation219_spill] sm:$0xff] %v7710_v35  ;;  %11892 = vst [vmem:[#allocation222_spill] sm:$0xff] %v7712_v55  ;;  %v11897_v55 = vld [vmem:[#allocation136_spill] sm:$0xff] }
 0x96a   : > { %2237 = vrot.lane.b32.xlu1 %v2221_v43, %s5867_s23  ;;  %2239 = vrot.lane.b32.xlu0 %v2222_v11, %s5867_s23  ;;  %v2225_v31 = vmul.f32 %v7675_v39, %v11897_v55  ;;  %v11898_v43 = vld [vmem:[#allocation139_spill] sm:$0xff] }
 0x96b   : > { %v2226_v11 = vmul.f32 %v7678_v36, %v11898_v43  ;;  %v11905_v43 = vld [vmem:[#allocation141_spill] sm:$0xff] }
 0x96c   : > { %v7720_v12 = vpop.permute.xlu1 %1965  ;;  %v7722_v38 = vpop.permute.xlu0 %1967 }
 0x96d   : > { %11895 = vst [vmem:[#allocation248_spill] sm:$0xff] %v7720_v12  ;;  %11896 = vst [vmem:[#allocation233_spill] sm:$0xff] %v7722_v38  ;;  %v2227_v38 = vmul.f32 %v7691_v25, %v11901_v58 }
 0x96e   : > { %2241 = vrot.lane.b32.xlu1 %v2223_v15, %s5867_s23  ;;  %2243 = vrot.lane.b32.xlu0 %v2224_v30, %s5867_s23  ;;  %v11902_v15 = vld [vmem:[#allocation140_spill] sm:$0xff] }
 0x96f   : > { %v2228_v30 = vmul.f32 %v7694_v2, %v11902_v15  ;;  %v11909_v15 = vld [vmem:[#allocation143_spill] sm:$0xff] }
 0x970   : > { %v7730_v35 = vpop.permute.xlu1 %1969  ;;  %v7732_v63 = vpop.permute.xlu0 %1971 }
 0x971   : > { %11899 = vst [vmem:[#allocation231_spill] sm:$0xff] %v7730_v35  ;;  %11900 = vst [vmem:[#allocation221_spill] sm:$0xff] %v7732_v63  ;;  %v2269_v63 = vmul.f32 %v7637_v24, %v11905_v43 }
 0x972   : > { %2245 = vrot.lane.b32.xlu1 %v2225_v31, %s5867_s23  ;;  %2247 = vrot.lane.b32.xlu0 %v2226_v11, %s5867_s23  ;;  %v11906_v31 = vld [vmem:[#allocation142_spill] sm:$0xff] }
 0x973   : > { %v2270_v11 = vmul.f32 %v7640_v50, %v11906_v31  ;;  %v11913_v31 = vld [vmem:[#allocation145_spill] sm:$0xff] }
 0x974   : > { %v7740_v12 = vpop.permute.xlu1 %1973  ;;  %v7742_v55 = vpop.permute.xlu0 %1975 }
 0x975   : > { %11903 = vst [vmem:[#allocation232_spill] sm:$0xff] %v7740_v12  ;;  %11904 = vst [vmem:[#allocation251_spill] sm:$0xff] %v7742_v55  ;;  %v2272_v55 = vmul.f32 %v7658_v42, %v11909_v15 }
 0x976   : > { %2249 = vrot.lane.b32.xlu1 %v2227_v38, %s5867_s23  ;;  %2251 = vrot.lane.b32.xlu0 %v2228_v30, %s5867_s23  ;;  %v11910_v38 = vld [vmem:[#allocation144_spill] sm:$0xff] }
 0x977   : > { %v2271_v30 = vmul.f32 %v7655_v34, %v11910_v38  ;;  %v11917_v38 = vld [vmem:[#allocation147_spill] sm:$0xff] }
 0x978   : > { %v7750_v35 = vpop.permute.xlu1 %1977  ;;  %v7752_v58 = vpop.permute.xlu0 %1979 }
 0x979   : > { %11907 = vst [vmem:[#allocation235_spill] sm:$0xff] %v7750_v35  ;;  %11908 = vst [vmem:[#allocation249_spill] sm:$0xff] %v7752_v58  ;;  %v2274_v58 = vmul.f32 %v7678_v36, %v11913_v31 }
 0x97a   : > { %2285 = vrot.lane.b32.xlu1 %v2269_v63, %s5890_s8  ;;  %2287 = vrot.lane.b32.xlu0 %v2270_v11, %s5890_s8  ;;  %v11914_v63 = vld [vmem:[#allocation146_spill] sm:$0xff] }
 0x97b   : > { %v2273_v11 = vmul.f32 %v7675_v39, %v11914_v63  ;;  %v11921_v63 = vld [vmem:[#allocation156_spill] sm:$0xff] }
 0x97c   : > { %v7760_v12 = vpop.permute.xlu1 %1997  ;;  %v7762_v43 = vpop.permute.xlu0 %1999 }
 0x97d   : > { %11911 = vst [vmem:[#allocation149_spill] sm:$0xff] %v7760_v12  ;;  %11912 = vst [vmem:[#allocation200_spill] sm:$0xff] %v7762_v43  ;;  %v2276_v43 = vmul.f32 %v7694_v2, %v11917_v38 }
 0x97e   : > { %2289 = vrot.lane.b32.xlu1 %v2271_v30, %s5890_s8  ;;  %2291 = vrot.lane.b32.xlu0 %v2272_v55, %s5890_s8  ;;  %v11918_v30 = vld [vmem:[#allocation148_spill] sm:$0xff] }
 0x97f   : > { %v2275_v55 = vmul.f32 %v7691_v25, %v11918_v30  ;;  %v11925_v30 = vld [vmem:[#allocation158_spill] sm:$0xff] }
 0x980   : > { %v7770_v35 = vpop.permute.xlu1 %2001  ;;  %v7772_v15 = vpop.permute.xlu0 %2003 }
 0x981   : > { %11915 = vst [vmem:[#allocation234_spill] sm:$0xff] %v7770_v35  ;;  %11916 = vst [vmem:[#allocation250_spill] sm:$0xff] %v7772_v15  ;;  %v2325_v15 = vmul.f32 %v7637_v24, %v11921_v63 }
 0x982   : > { %2293 = vrot.lane.b32.xlu1 %v2273_v11, %s5890_s8  ;;  %2295 = vrot.lane.b32.xlu0 %v2274_v58, %s5890_s8  ;;  %v11922_v11 = vld [vmem:[#allocation159_spill] sm:$0xff] }
 0x983   : > { %v2326_v58 = vmul.f32 %v7640_v50, %v11922_v11  ;;  %v11929_v11 = vld [vmem:[#allocation160_spill] sm:$0xff] }
 0x984   : > { %v7780_v12 = vpop.permute.xlu1 %2005  ;;  %v7782_v31 = vpop.permute.xlu0 %2007 }
 0x985   : > { %11919 = vst [vmem:[#allocation253_spill] sm:$0xff] %v7780_v12  ;;  %11920 = vst [vmem:[#allocation252_spill] sm:$0xff] %v7782_v31  ;;  %v2328_v31 = vmul.f32 %v7658_v42, %v11925_v30 }
 0x986   : > { %2297 = vrot.lane.b32.xlu1 %v2275_v55, %s5890_s8  ;;  %2299 = vrot.lane.b32.xlu0 %v2276_v43, %s5890_s8  ;;  %v11926_v55 = vld [vmem:[#allocation161_spill] sm:$0xff] }
 0x987   : > { %v2327_v43 = vmul.f32 %v7655_v34, %v11926_v55  ;;  %v11933_v55 = vld [vmem:[#allocation163_spill] sm:$0xff] }
 0x988   : > { %v7790_v35 = vpop.permute.xlu1 %2009  ;;  %v7792_v38 = vpop.permute.xlu0 %2011 }
 0x989   : > { %11923 = vst [vmem:[#allocation3_spill] sm:$0xff] %v7790_v35  ;;  %11924 = vst [vmem:[#allocation7_spill] sm:$0xff] %v7792_v38  ;;  %v2330_v38 = vmul.f32 %v7678_v36, %v11929_v11 }
 0x98a   : > { %2341 = vrot.lane.b32.xlu1 %v2325_v15, %s5889_s7  ;;  %2343 = vrot.lane.b32.xlu0 %v2326_v58, %s5889_s7  ;;  %v11930_v15 = vld [vmem:[#allocation162_spill] sm:$0xff] }
 0x98b   : > { %v2329_v58 = vmul.f32 %v7675_v39, %v11930_v15  ;;  %v11937_v15 = vld [vmem:[#allocation172_spill] sm:$0xff] }
 0x98c   : > { %v7800_v12 = vpop.permute.xlu1 %2029  ;;  %v7802_v63 = vpop.permute.xlu0 %2031 }
 0x98d   : > { %11927 = vst [vmem:[#allocation9_spill] sm:$0xff] %v7800_v12  ;;  %11928 = vst [vmem:[#allocation8_spill] sm:$0xff] %v7802_v63  ;;  %v2332_v63 = vmul.f32 %v7694_v2, %v11933_v55 }
 0x98e   : > { %2345 = vrot.lane.b32.xlu1 %v2327_v43, %s5889_s7  ;;  %2347 = vrot.lane.b32.xlu0 %v2328_v31, %s5889_s7  ;;  %v11934_v43 = vld [vmem:[#allocation164_spill] sm:$0xff] }
 0x98f   : > { %v2331_v31 = vmul.f32 %v7691_v25, %v11934_v43  ;;  %v11941_v43 = vld [vmem:[#allocation174_spill] sm:$0xff] }
 0x990   : > { %v7810_v35 = vpop.permute.xlu1 %2033  ;;  %v7812_v30 = vpop.permute.xlu0 %2035 }
 0x991   : > { %11931 = vst [vmem:[#allocation11_spill] sm:$0xff] %v7810_v35  ;;  %11932 = vst [vmem:[#allocation10_spill] sm:$0xff] %v7812_v30  ;;  %v2373_v30 = vmul.f32 %v7637_v24, %v11937_v15 }
 0x992   : > { %2349 = vrot.lane.b32.xlu1 %v2329_v58, %s5889_s7  ;;  %2351 = vrot.lane.b32.xlu0 %v2330_v38, %s5889_s7  ;;  %v11938_v58 = vld [vmem:[#allocation173_spill] sm:$0xff] }
 0x993   : > { %v2374_v38 = vmul.f32 %v7640_v50, %v11938_v58  ;;  %v11945_v58 = vld [vmem:[#allocation175_spill] sm:$0xff] }
 0x994   : > { %v7820_v12 = vpop.permute.xlu1 %2037  ;;  %v7822_v11 = vpop.permute.xlu0 %2039 }
 0x995   : > { %11935 = vst [vmem:[#allocation13_spill] sm:$0xff] %v7820_v12  ;;  %11936 = vst [vmem:[#allocation12_spill] sm:$0xff] %v7822_v11  ;;  %v2375_v11 = vmul.f32 %v7655_v34, %v11941_v43 }
 0x996   : > { %2353 = vrot.lane.b32.xlu1 %v2331_v31, %s5889_s7  ;;  %2355 = vrot.lane.b32.xlu0 %v2332_v63, %s5889_s7  ;;  %v11942_v31 = vld [vmem:[#allocation176_spill] sm:$0xff] }
 0x997   : > { %v2376_v63 = vmul.f32 %v7658_v42, %v11942_v31  ;;  %v11949_v31 = vld [vmem:[#allocation177_spill] sm:$0xff] }
 0x998   : > { %v7830_v35 = vpop.permute.xlu1 %2041  ;;  %v7832_v55 = vpop.permute.xlu0 %2043 }
 0x999   : > { %11939 = vst [vmem:[#allocation15_spill] sm:$0xff] %v7830_v35  ;;  %11940 = vst [vmem:[#allocation14_spill] sm:$0xff] %v7832_v55  ;;  %v2377_v55 = vmul.f32 %v7675_v39, %v11945_v58 }
 0x99a   : > { %2389 = vrot.lane.b32.xlu1 %v2373_v30, %s5867_s23  ;;  %2391 = vrot.lane.b32.xlu0 %v2374_v38, %s5867_s23  ;;  %v11946_v30 = vld [vmem:[#allocation178_spill] sm:$0xff] }
 0x99b   : > { %v2378_v38 = vmul.f32 %v7678_v36, %v11946_v30  ;;  %v11953_v30 = vld [vmem:[#allocation187_spill] sm:$0xff] }
 0x99c   : > { %v7840_v12 = vpop.permute.xlu1 %2061  ;;  %v7842_v15 = vpop.permute.xlu0 %2063 }
 0x99d   : > { %11943 = vst [vmem:[#allocation16_spill] sm:$0xff] %v7840_v12  ;;  %11944 = vst [vmem:[#allocation18_spill] sm:$0xff] %v7842_v15  ;;  %v2379_v15 = vmul.f32 %v7691_v25, %v11949_v31 }
 0x99e   : > { %2393 = vrot.lane.b32.xlu1 %v2375_v11, %s5867_s23  ;;  %2395 = vrot.lane.b32.xlu0 %v2376_v63, %s5867_s23  ;;  %v11950_v11 = vld [vmem:[#allocation179_spill] sm:$0xff] }
 0x99f   : > { %v2380_v63 = vmul.f32 %v7694_v2, %v11950_v11  ;;  %v11957_v11 = vld [vmem:[#allocation189_spill] sm:$0xff] }
 0x9a0   : > { %v7850_v35 = vpop.permute.xlu1 %2065  ;;  %v7852_v43 = vpop.permute.xlu0 %2067 }
 0x9a1   : > { %11947 = vst [vmem:[#allocation17_spill] sm:$0xff] %v7850_v35  ;;  %11948 = vst [vmem:[#allocation20_spill] sm:$0xff] %v7852_v43  ;;  %v2421_v43 = vmul.f32 %v7637_v24, %v11953_v30 }
 0x9a2   : > { %2397 = vrot.lane.b32.xlu1 %v2377_v55, %s5867_s23  ;;  %2399 = vrot.lane.b32.xlu0 %v2378_v38, %s5867_s23  ;;  %v11954_v55 = vld [vmem:[#allocation188_spill] sm:$0xff] }
 0x9a3   : > { %v2422_v38 = vmul.f32 %v7640_v50, %v11954_v55  ;;  %v11961_v55 = vld [vmem:[#allocation191_spill] sm:$0xff] }
 0x9a4   : > { %v7860_v12 = vpop.permute.xlu1 %2069  ;;  %v7862_v58 = vpop.permute.xlu0 %2071 }
 0x9a5   : > { %11951 = vst [vmem:[#allocation19_spill] sm:$0xff] %v7860_v12  ;;  %11952 = vst [vmem:[#allocation21_spill] sm:$0xff] %v7862_v58  ;;  %v2424_v58 = vmul.f32 %v7658_v42, %v11957_v11 }
 0x9a6   : > { %2401 = vrot.lane.b32.xlu1 %v2379_v15, %s5867_s23  ;;  %2403 = vrot.lane.b32.xlu0 %v2380_v63, %s5867_s23  ;;  %v11958_v15 = vld [vmem:[#allocation190_spill] sm:$0xff] }
 0x9a7   : > { %v2423_v63 = vmul.f32 %v7655_v34, %v11958_v15  ;;  %v11965_v15 = vld [vmem:[#allocation193_spill] sm:$0xff] }
 0x9a8   : > { %v7870_v35 = vpop.permute.xlu1 %2073  ;;  %v7872_v31 = vpop.permute.xlu0 %2075 }
 0x9a9   : > { %11955 = vst [vmem:[#allocation22_spill] sm:$0xff] %v7870_v35  ;;  %11956 = vst [vmem:[#allocation23_spill] sm:$0xff] %v7872_v31  ;;  %v2426_v31 = vmul.f32 %v7678_v36, %v11961_v55 }
 0x9aa   : > { %2437 = vrot.lane.b32.xlu1 %v2421_v43, %s5890_s8  ;;  %2439 = vrot.lane.b32.xlu0 %v2422_v38, %s5890_s8  ;;  %v11962_v43 = vld [vmem:[#allocation192_spill] sm:$0xff] }
 0x9ab   : > { %v2425_v38 = vmul.f32 %v7675_v39, %v11962_v43  ;;  %v11969_v43 = vld [vmem:[#allocation209_spill] sm:$0xff] }
 0x9ac   : > { %v7880_v12 = vpop.permute.xlu1 %2093  ;;  %v7882_v30 = vpop.permute.xlu0 %2095 }
 0x9ad   : > { %11959 = vst [vmem:[#allocation25_spill] sm:$0xff] %v7880_v12  ;;  %11960 = vst [vmem:[#allocation24_spill] sm:$0xff] %v7882_v30  ;;  %v2428_v30 = vmul.f32 %v7694_v2, %v11965_v15 }
 0x9ae   : > { %2441 = vrot.lane.b32.xlu1 %v2423_v63, %s5890_s8  ;;  %2443 = vrot.lane.b32.xlu0 %v2424_v58, %s5890_s8  ;;  %v11966_v63 = vld [vmem:[#allocation194_spill] sm:$0xff] }
 0x9af   : > { %v2427_v58 = vmul.f32 %v7691_v25, %v11966_v63  ;;  %v11973_v63 = vld [vmem:[#allocation211_spill] sm:$0xff] }
 0x9b0   : > { %v7890_v35 = vpop.permute.xlu1 %2097  ;;  %v7892_v11 = vpop.permute.xlu0 %2099 }
 0x9b1   : > { %11963 = vst [vmem:[#allocation27_spill] sm:$0xff] %v7890_v35  ;;  %11964 = vst [vmem:[#allocation26_spill] sm:$0xff] %v7892_v11  ;;  %v2477_v11 = vmul.f32 %v7637_v24, %v11969_v43 }
 0x9b2   : > { %2445 = vrot.lane.b32.xlu1 %v2425_v38, %s5890_s8  ;;  %2447 = vrot.lane.b32.xlu0 %v2426_v31, %s5890_s8  ;;  %v11970_v38 = vld [vmem:[#allocation212_spill] sm:$0xff] }
 0x9b3   : > { %v2478_v31 = vmul.f32 %v7640_v50, %v11970_v38  ;;  %v11977_v38 = vld [vmem:[#allocation213_spill] sm:$0xff] }
 0x9b4   : > { %v7900_v12 = vpop.permute.xlu1 %2101  ;;  %v7902_v55 = vpop.permute.xlu0 %2103 }
 0x9b5   : > { %11967 = vst [vmem:[#allocation29_spill] sm:$0xff] %v7900_v12  ;;  %11968 = vst [vmem:[#allocation28_spill] sm:$0xff] %v7902_v55  ;;  %v2480_v55 = vmul.f32 %v7658_v42, %v11973_v63 }
 0x9b6   : > { %2449 = vrot.lane.b32.xlu1 %v2427_v58, %s5890_s8  ;;  %2451 = vrot.lane.b32.xlu0 %v2428_v30, %s5890_s8  ;;  %v11974_v58 = vld [vmem:[#allocation214_spill] sm:$0xff] }
 0x9b7   : > { %v2479_v30 = vmul.f32 %v7655_v34, %v11974_v58  ;;  %v11981_v58 = vld [vmem:[#allocation216_spill] sm:$0xff] }
 0x9b8   : > { %v7910_v35 = vpop.permute.xlu1 %2105  ;;  %v7912_v15 = vpop.permute.xlu0 %2107 }
 0x9b9   : > { %11971 = vst [vmem:[#allocation31_spill] sm:$0xff] %v7910_v35  ;;  %11972 = vst [vmem:[#allocation30_spill] sm:$0xff] %v7912_v15  ;;  %v2482_v15 = vmul.f32 %v7678_v36, %v11977_v38 }
 0x9ba   : > { %2493 = vrot.lane.b32.xlu1 %v2477_v11, %s5889_s7  ;;  %2495 = vrot.lane.b32.xlu0 %v2478_v31, %s5889_s7  ;;  %v11978_v11 = vld [vmem:[#allocation215_spill] sm:$0xff] }
 0x9bb   : > { %v2481_v31 = vmul.f32 %v7675_v39, %v11978_v11  ;;  %v11985_v11 = vld [vmem:[#allocation223_spill] sm:$0xff] }
 0x9bc   : > { %v7920_v12 = vpop.permute.xlu1 %2125  ;;  %v7922_v43 = vpop.permute.xlu0 %2127 }
 0x9bd   : > { %11975 = vst [vmem:[#allocation244_spill] sm:$0xff] %v7920_v12  ;;  %11976 = vst [vmem:[#allocation32_spill] sm:$0xff] %v7922_v43  ;;  %v2484_v43 = vmul.f32 %v7694_v2, %v11981_v58 }
 0x9be   : > { %2497 = vrot.lane.b32.xlu1 %v2479_v30, %s5889_s7  ;;  %2499 = vrot.lane.b32.xlu0 %v2480_v55, %s5889_s7  ;;  %v11982_v30 = vld [vmem:[#allocation217_spill] sm:$0xff] }
 0x9bf   : > { %v2483_v55 = vmul.f32 %v7691_v25, %v11982_v30  ;;  %v11989_v30 = vld [vmem:[#allocation225_spill] sm:$0xff] }
 0x9c0   : > { %v7930_v35 = vpop.permute.xlu1 %2129  ;;  %v7932_v63 = vpop.permute.xlu0 %2131 }
 0x9c1   : > { %11979 = vst [vmem:[#allocation34_spill] sm:$0xff] %v7930_v35  ;;  %11980 = vst [vmem:[#allocation38_spill] sm:$0xff] %v7932_v63  ;;  %v2525_v63 = vmul.f32 %v7637_v24, %v11985_v11 }
 0x9c2   : > { %2501 = vrot.lane.b32.xlu1 %v2481_v31, %s5889_s7  ;;  %2503 = vrot.lane.b32.xlu0 %v2482_v15, %s5889_s7  ;;  %v11986_v31 = vld [vmem:[#allocation224_spill] sm:$0xff] }
 0x9c3   : > { %v2526_v15 = vmul.f32 %v7640_v50, %v11986_v31  ;;  %v11991_v31 = vld [vmem:[#allocation226_spill] sm:$0xff] }
 0x9c4   : > { %v7940_v12 = vpop.permute.xlu1 %2133  ;;  %v7942_v38 = vpop.permute.xlu0 %2135 }
 0x9c5   : > { %11983 = vst [vmem:[#allocation33_spill] sm:$0xff] %v7940_v12  ;;  %11984 = vst [vmem:[#allocation36_spill] sm:$0xff] %v7942_v38  ;;  %v2527_v38 = vmul.f32 %v7655_v34, %v11989_v30 }
 0x9c6   : > { %2505 = vrot.lane.b32.xlu1 %v2483_v55, %s5889_s7  ;;  %2507 = vrot.lane.b32.xlu0 %v2484_v43, %s5889_s7  ;;  %v11990_v55 = vld [vmem:[#allocation227_spill] sm:$0xff] }
 0x9c7   : > { %v2528_v43 = vmul.f32 %v7658_v42, %v11990_v55  ;;  %v11993_v55 = vld [vmem:[#allocation228_spill] sm:$0xff] }
 0x9c8   : > { %v7950_v35 = vpop.permute.xlu1 %2137  ;;  %v7952_v58 = vpop.permute.xlu0 %2139  ;;  %v2531_v54 = vmul.f32 %v7691_v25, %v11993_v55 }
 0x9c9   : > { %11987 = vst [vmem:[#allocation46_spill] sm:$0xff] %v7950_v35  ;;  %11988 = vst [vmem:[#allocation35_spill] sm:$0xff] %v7952_v58  ;;  %v2529_v58 = vmul.f32 %v7675_v39, %v11991_v31 }
 0x9ca   : > { %2541 = vrot.lane.b32.xlu1 %v2525_v63, %s5867_s23  ;;  %2543 = vrot.lane.b32.xlu0 %v2526_v15, %s5867_s23  ;;  %v11992_v63 = vld [vmem:[#allocation229_spill] sm:$0xff] }
 0x9cb   : > { %v2530_v15 = vmul.f32 %v7678_v36, %v11992_v63  ;;  %v11995_v63 = vld [vmem:[#allocation236_spill] sm:$0xff] }
 0x9cc   : > { %v7960_v12 = vpop.permute.xlu1 %2189  ;;  %v7962_v11 = vpop.permute.xlu0 %2191  ;;  %v2573_v57 = vmul.f32 %v7637_v24, %v11995_v63 }
 0x9ce   : > { %2545 = vrot.lane.b32.xlu1 %v2527_v38, %s5867_s23  ;;  %2547 = vrot.lane.b32.xlu0 %v2528_v43, %s5867_s23  ;;  %v11994_v38 = vld [vmem:[#allocation230_spill] sm:$0xff] }
 0x9cf   : > { %v2532_v43 = vmul.f32 %v7694_v2, %v11994_v38  ;;  %v11997_v38 = vld [vmem:[#allocation238_spill] sm:$0xff] }
 0x9d0   : > { %v7970_v35 = vpop.permute.xlu1 %2193  ;;  %v7972_v30 = vpop.permute.xlu0 %2195  ;;  %v2576_v48 = vmul.f32 %v7658_v42, %v11997_v38 }
 0x9d2   : > { %2549 = vrot.lane.b32.xlu1 %v2529_v58, %s5867_s23  ;;  %2551 = vrot.lane.b32.xlu0 %v2530_v15, %s5867_s23  ;;  %v11996_v58 = vld [vmem:[#allocation237_spill] sm:$0xff] }
 0x9d3   : > { %v2574_v15 = vmul.f32 %v7640_v50, %v11996_v58  ;;  %v11999_v58 = vld [vmem:[#allocation240_spill] sm:$0xff] }
 0x9d4   : > { %v7980_v22 = vpop.permute.xlu1 %2197  ;;  %v7982_v31 = vpop.permute.xlu0 %2199 }
 0x9d6   : > { %2553 = vrot.lane.b32.xlu1 %v2531_v54, %s5867_s23  ;;  %2555 = vrot.lane.b32.xlu0 %v2532_v43, %s5867_s23  ;;  %v11998_v54 = vld [vmem:[#allocation239_spill] sm:$0xff] }
 0x9d7   : > { %v2575_v43 = vmul.f32 %v7655_v34, %v11998_v54  ;;  %v12001_v54 = vld [vmem:[#allocation242_spill] sm:$0xff] }
 0x9d8   : > { %v7990_v37 = vpop.permute.xlu1 %2201  ;;  %v7992_v55 = vpop.permute.xlu0 %2203 }
 0x9da   : > { %2589 = vrot.lane.b32.xlu1 %v2573_v57, %s5890_s8  ;;  %2591 = vrot.lane.b32.xlu0 %v2574_v15, %s5890_s8  ;;  %v2578_v57 = vmul.f32 %v7678_v36, %v11999_v58  ;;  %v2577_v15 = vmul.f32 %v7675_v39, %v12000_v60 }
 0x9dc   : > { %v8000_v10 = vpop.permute.xlu1 %2237  ;;  %v8002_v63 = vpop.permute.xlu0 %2239 }
 0x9de   : > { %2593 = vrot.lane.b32.xlu1 %v2575_v43, %s5890_s8  ;;  %2595 = vrot.lane.b32.xlu0 %v2576_v48, %s5890_s8  ;;  %v2580_v43 = vmul.f32 %v7694_v2, %v12001_v54  ;;  %v12002_v48 = vld [vmem:[#allocation243_spill] sm:$0xff] }
 0x9df   : > { %v2579_v58 = vmul.f32 %v7691_v25, %v12002_v48  ;;  %v8035_v54 = vld [vmem:[%s5963_s18 + $0x8] sm:$0xff] }
 0x9e0   : > { %v8010_v38 = vpop.permute.xlu1 %2241  ;;  %v8012_v49 = vpop.permute.xlu0 %2243  ;;  %12006 = vst [vmem:[#allocation71_spill] sm:$0xff] %v8035_v54 }
 0x9e2   : > { %2597 = vrot.lane.b32.xlu1 %v2577_v15, %s5890_s8  ;;  %2599 = vrot.lane.b32.xlu0 %v2578_v57, %s5890_s8  ;;  %v8031_v15 = vld [vmem:[%s5963_s18] sm:$0xff] }
 0x9e3   : > { %12005 = vst [vmem:[#allocation70_spill] sm:$0xff] %v8031_v15 }
 0x9e4   : > { %v8020_v21 = vpop.permute.xlu1 %2245  ;;  %v8022_v32 = vpop.permute.xlu0 %2247 }
 0x9e6   : > { %2601 = vrot.lane.b32.xlu1 %v2579_v58, %s5890_s8  ;;  %2603 = vrot.lane.b32.xlu0 %v2580_v43, %s5890_s8  ;;  %v8047_v43 = vld [vmem:[%s5963_s18 + $0x20] sm:$0xff] }
 0x9e7   : > { %12008 = vst [vmem:[#allocation245_spill] sm:$0xff] %v8047_v43 }
 0x9e8   : > { %v8026_v60 = vpop.permute.xlu1 %2249  ;;  %v8028_v57 = vpop.permute.xlu0 %2251 }
 0x9e9   : > { %12003 = vst [vmem:[#allocation37_spill] sm:$0xff] %v8026_v60  ;;  %12004 = vst [vmem:[#allocation55_spill] sm:$0xff] %v8028_v57  ;;  %v12021_v57 = vld [vmem:[#allocation121_spill] sm:$0xff]  ;;  %v12022_v60 = vld [vmem:[#allocation122_spill] sm:$0xff] }
 0x9ea   : > { %2622 = vperm.xlu1 %5766, %v8031_v15   ;;  %2626 = vperm.xlu0 %5767, %v8035_v54  }
 0x9ec   : > { %v8038_v48 = vpop.permute.xlu1 %2285  ;;  %v8040_v58 = vpop.permute.xlu0 %2287 }
 0x9ee   : > { %2630 = vperm.xlu1 %5766, %v8043_v19   ;;  %2638 = vperm.xlu0 %5767, %v8047_v43  }
 0x9f0   : > { %v8050_v14 = vpop.permute.xlu1 %2289  ;;  %v8052_v53 = vpop.permute.xlu0 %2291 }
 0x9f2   : > { %2634 = vperm.xlu1 %5766, %v8055_v26   ;;  %2646 = vperm.xlu0 %5767, %v8059_v40  }
 0x9f4   : > { %v8062_v18 = vpop.permute.xlu1 %2293  ;;  %v8064_v13 = vpop.permute.xlu0 %2295 }
 0x9f6   : > { %2642 = vperm.xlu1 %5766, %v8067_v17   ;;  %5768 = vset.pattern.permute.xlu0 %v5894_v4 }
 0x9f7   : > { %2662 = vperm.xlu0 %5768, %v8031_v15  }
 0x9f8   : > { %v8071_v5 = vpop.permute.xlu1 %2297  ;;  %v8073_v47 = vpop.permute.xlu0 %2299 }
 0x9f9   : > { %12012 = vst [vmem:[#allocation78_spill] sm:$0xff] %v8071_v5  ;;  %12013 = vst [vmem:[#allocation75_spill] sm:$0xff] %v8073_v47  ;;  %v2166_v47 = vmul.f32 %v7640_v50, %v6486_v56  ;;  %v12019_v5 = vld [vmem:[#allocation119_spill] sm:$0xff] }
 0x9fa   : > { %2650 = vperm.xlu1 %5766, %v8076_v16  }
 0x9fb   : > { %2674 = vperm.xlu0 %5768, %v8055_v26   ;;  %v2214_v51 = vadd.f32 %v7962_v11, %v2166_v47 }
 0x9fc   : > { %v2342_v29 = vpop.permute.xlu1 %2341  ;;  %v2344_v52 = vpop.permute.xlu0 %2343 }
 0x9fd   : > { %v2262_v47 = vadd.f32 %v8002_v63, %v2214_v51 }
 0x9fe   : > { %5769 = vset.pattern.permute.xlu1 %v5894_v4 }
 0x9ff   : > { %2666 = vperm.xlu1 %5769, %v8035_v54   ;;  %2682 = vperm.xlu0 %5768, %v8067_v17   ;;  %v5895_v54 = vmov 26  }
 0xa00   : > { %v2346_v1 = vpop.permute.xlu1 %2345  ;;  %v2348_v28 = vpop.permute.xlu0 %2347 }
 0xa03   : > { %2670 = vperm.xlu1 %5769, %v8043_v19   ;;  %2690 = vperm.xlu0 %5768, %v8076_v16  }
 0xa04   : > { %v8084_v15 = vpop.permute.xlu1 %2349  ;;  %v8086_v41 = vpop.permute.xlu0 %2351 }
 0xa07   : > { %2678 = vperm.xlu1 %5769, %v8047_v43   ;;  %5771 = vset.pattern.permute.xlu0 %v5895_v54  ;;  %v2165_v43 = vmul.f32 %v7637_v24, %v12018_v0  ;;  %v2318_v0 = vmul.f32 %v7640_v50, %v6702_v59 }
 0xa08   : > { %v8089_v26 = vpop.permute.xlu1 %2353  ;;  %v8091_v45 = vpop.permute.xlu0 %2355 }
 0xa09   : > { %12015 = vst [vmem:[#allocation47_spill] sm:$0xff] %v8089_v26  ;;  %12016 = vst [vmem:[#allocation246_spill] sm:$0xff] %v8091_v45  ;;  %v2171_v45 = vmul.f32 %v7691_v25, %v12022_v60  ;;  %v12023_v26 = vld [vmem:[#allocation151_spill] sm:$0xff]  ;;  %v2213_v56 = vadd.f32 %v7960_v12, %v2165_v43  ;;  %v2321_v60 = vmul.f32 %v7675_v39, %v11669_v46  ;;  %v12026_v46 = vld [vmem:[#allocation157_spill] sm:$0xff] }
 0xa0a   : > { %v2317_v8 = vmul.f32 %v7637_v24, %v12023_v26  ;;  %v2366_v11 = vadd.f32 %v2344_v52, %v2318_v0  ;;  %v2320_v43 = vmul.f32 %v7658_v42, %v11670_v44 }
 0xa0b   : > { %2686 = vperm.xlu1 %5769, %v8059_v40   ;;  %v2167_v40 = vmul.f32 %v7655_v34, %v12019_v5  ;;  %v12024_v5 = vld [vmem:[#allocation123_spill] sm:$0xff]  ;;  %v2261_v59 = vadd.f32 %v8000_v10, %v2213_v56  ;;  %v8142_v10 = vadd.f32 %v8040_v58, %v2262_v47 }
 0xa0c   : > { %v2390_v4 = vpop.permute.xlu1 %2389  ;;  %v2392_v17 = vpop.permute.xlu0 %2391  ;;  %v2170_v20 = vmul.f32 %v7678_v36, %v12024_v5  ;;  %v2365_v12 = vadd.f32 %v2342_v29, %v2317_v8  ;;  %v2323_v5 = vmul.f32 %v7691_v25, %v11671_v3  ;;  %v2217_v3 = vadd.f32 %v7980_v22, %v2169_v27  ;;  %v12031_v22 = vld [vmem:[#allocation272_spill] sm:$0xff] }
 0xa0d   : > { %v8139_v39 = vadd.f32 %v8038_v48, %v2261_v59  ;;  %12028 = vst [vmem:[#allocation76_spill] sm:$0xff] %v8142_v10  ;;  %v2414_v51 = vadd.f32 %v2392_v17, %v2366_v11  ;;  %v2215_v52 = vadd.f32 %v7970_v35, %v2167_v40  ;;  %v2368_v56 = vadd.f32 %v2348_v28, %v2320_v43 }
 0xa0e   : > { %v2413_v8 = vadd.f32 %v2390_v4, %v2365_v12  ;;  %v2218_v29 = vadd.f32 %v7982_v31, %v2170_v20  ;;  %v2265_v35 = vadd.f32 %v8020_v21, %v2217_v3 }
 0xa0f   : > { %5770 = vset.pattern.permute.xlu1 %v5895_v54  ;;  %v2168_v54 = vmul.f32 %v7658_v42, %v12021_v57  ;;  %v2319_v57 = vmul.f32 %v7655_v34, %v6704_v23  ;;  %v2322_v23 = vmul.f32 %v7678_v36, %v11672_v7  ;;  %12027 = vst [vmem:[#allocation77_spill] sm:$0xff] %v8139_v39 }
 0xa10   : > { %v2394_v19 = vpop.permute.xlu1 %2393  ;;  %v2396_v9 = vpop.permute.xlu0 %2395  ;;  %v2263_v58 = vadd.f32 %v8010_v38, %v2215_v52  ;;  %v2266_v40 = vadd.f32 %v8022_v32, %v2218_v29  ;;  %v8158_v20 = vmul.f32 %v8139_v39, %v12031_v22  ;;  %v12036_v38 = vld [vmem:[#allocation261_spill] sm:$0xff]  ;;  %v2369_v32 = vadd.f32 %v8084_v15, %v2321_v60 }
 0xa11   : > { %v2216_v44 = vadd.f32 %v7972_v30, %v2168_v54  ;;  %v2367_v0 = vadd.f32 %v2346_v1, %v2319_v57  ;;  %v2416_v27 = vadd.f32 %v2396_v9, %v2368_v56  ;;  %v8162_v1 = vmul.f32 %v8142_v10, %v7216_v6  ;;  %v12057_v56 = vld [vmem:[#allocation55_spill] sm:$0xff] }
 0xa12   : > { %12032 = vst [vmem:[#allocation247_spill] sm:$0xff] %v8158_v20  ;;  %v8165_v28 = vadd.f32 %v8050_v14, %v2263_v58  ;;  %v2370_v4 = vadd.f32 %v8086_v41, %v2322_v23  ;;  %v8191_v12 = vadd.f32 %v8062_v18, %v2265_v35  ;;  %v8194_v15 = vadd.f32 %v8064_v13, %v2266_v40  ;;  %v12050_v13 = vld [vmem:[#allocation263_spill] sm:$0xff]  ;;  %v12084_v20 = vld [vmem:[#allocation206_spill] sm:$0xff] }
 0xa13   : > { %v2264_v17 = vadd.f32 %v8012_v49, %v2216_v44  ;;  %v2415_v30 = vadd.f32 %v2394_v19, %v2367_v0  ;;  %12033 = vst [vmem:[#allocation110_spill] sm:$0xff] %v8162_v1  ;;  %v12053_v44 = vld [vmem:[#allocation246_spill] sm:$0xff]  ;;  %v12082_v1 = vld [vmem:[#allocation203_spill] sm:$0xff] }
 0xa14   : > { %v8094_v16 = vpop.permute.xlu1 %2397  ;;  %v8096_v61 = vpop.permute.xlu0 %2399  ;;  %12034 = vst [vmem:[#allocation86_spill] sm:$0xff] %v8165_v28  ;;  %12041 = vst [vmem:[#allocation88_spill] sm:$0xff] %v8191_v12 }
 0xa15   : > { %12017 = vst [vmem:[#allocation94_spill] sm:$0xff] %v8096_v61  ;;  %v2172_v61 = vmul.f32 %v7694_v2, %v12025_v33  ;;  %v2324_v33 = vmul.f32 %v7694_v2, %v12026_v46  ;;  %v8168_v31 = vadd.f32 %v8052_v53, %v2264_v17  ;;  %v2219_v53 = vadd.f32 %v7990_v37, %v2171_v45  ;;  %v12044_v37 = vld [vmem:[#allocation274_spill] sm:$0xff] }
 0xa16   : > { %12042 = vst [vmem:[#allocation90_spill] sm:$0xff] %v8194_v15  ;;  %v2417_v41 = vadd.f32 %v8094_v16, %v2369_v32  ;;  %v12052_v16 = vld [vmem:[#allocation47_spill] sm:$0xff] }
 0xa17   : > { %12035 = vst [vmem:[#allocation87_spill] sm:$0xff] %v8168_v31  ;;  %v2220_v57 = vadd.f32 %v7992_v55, %v2172_v61  ;;  %v8200_v61 = vmul.f32 %v8165_v28, %v12044_v37  ;;  %v12046_v55 = vld [vmem:[#allocation266_spill] sm:$0xff]  ;;  %v2371_v52 = vadd.f32 %v12052_v16, %v2323_v5  ;;  %v2372_v3 = vadd.f32 %v12053_v44, %v2324_v33 }
 0xa18   : > { %v8124_v26 = vpop.permute.xlu1 %2401  ;;  %v8126_v24 = vpop.permute.xlu0 %2403 }
 0xa19   : > { %12045 = vst [vmem:[#allocation4_spill] sm:$0xff] %v8200_v61  ;;  %v2268_v58 = vadd.f32 %v12057_v56, %v2220_v57  ;;  %v2419_v40 = vadd.f32 %v8124_v26, %v2371_v52  ;;  %v2420_v5 = vadd.f32 %v8126_v24, %v2372_v3  ;;  %v12068_v24 = vld [vmem:[#allocation265_spill] sm:$0xff]  ;;  %v12074_v56 = vld [vmem:[#allocation270_spill] sm:$0xff] }
 0xa1a   : > { %v12081_v61 = vld [vmem:[#allocation185_spill] sm:$0xff] }
 0xa1c   : > { %v2438_v7 = vpop.permute.xlu1 %2437  ;;  %v2440_v63 = vpop.permute.xlu0 %2439  ;;  %v12043_v60 = vld [vmem:[#allocation94_spill] sm:$0xff] }
 0xa1d   : > { %v8148_v46 = vadd.f32 %v2438_v7, %v2413_v8  ;;  %v8150_v48 = vadd.f32 %v2440_v63, %v2414_v51  ;;  %v2418_v11 = vadd.f32 %v12043_v60, %v2370_v4  ;;  %v12048_v8 = vld [vmem:[#allocation276_spill] sm:$0xff]  ;;  %v12056_v63 = vld [vmem:[#allocation37_spill] sm:$0xff]  ;;  %v12064_v4 = vld [vmem:[#allocation75_spill] sm:$0xff] }
 0xa1e   : > { %v8208_v18 = vmul.f32 %v8168_v31, %v12048_v8  ;;  %v2267_v0 = vadd.f32 %v12056_v63, %v2219_v53  ;;  %v8240_v53 = vadd.f32 %v12064_v4, %v2268_v58  ;;  %v12066_v60 = vld [vmem:[#allocation268_spill] sm:$0xff]  ;;  %v12072_v63 = vld [vmem:[#allocation273_spill] sm:$0xff] }
 0xa1f   : > { %12029 = vst [vmem:[#allocation54_spill] sm:$0xff] %v8148_v46  ;;  %12030 = vst [vmem:[#allocation43_spill] sm:$0xff] %v8150_v48  ;;  %v8172_v19 = vmul.f32 %v8148_v46, %v12036_v38  ;;  %v8176_v9 = vmul.f32 %v8150_v48, %v11711_v62 }
 0xa20   : > { %v2442_v49 = vpop.permute.xlu1 %2441  ;;  %v2444_v21 = vpop.permute.xlu0 %2443  ;;  %12049 = vst [vmem:[#allocation41_spill] sm:$0xff] %v8208_v18  ;;  %12065 = vst [vmem:[#allocation92_spill] sm:$0xff] %v8240_v53 }
 0xa21   : > { %12037 = vst [vmem:[#allocation63_spill] sm:$0xff] %v8172_v19  ;;  %12038 = vst [vmem:[#allocation50_spill] sm:$0xff] %v8176_v9  ;;  %v8180_v54 = vadd.f32 %v2442_v49, %v2415_v30  ;;  %v8182_v14 = vadd.f32 %v2444_v21, %v2416_v27  ;;  %v12058_v30 = vld [vmem:[#allocation271_spill] sm:$0xff]  ;;  %v12060_v27 = vld [vmem:[#allocation152_spill] sm:$0xff] }
 0xa22   : > { %v8230_v33 = vmul.f32 %v8191_v12, %v12058_v30  ;;  %v8234_v49 = vmul.f32 %v8194_v15, %v12060_v27  ;;  %v12062_v21 = vld [vmem:[#allocation78_spill] sm:$0xff] }
 0xa23   : > { %12039 = vst [vmem:[#allocation45_spill] sm:$0xff] %v8180_v54  ;;  %12040 = vst [vmem:[#allocation2_spill] sm:$0xff] %v8182_v14  ;;  %v8204_v23 = vmul.f32 %v8180_v54, %v12046_v55  ;;  %v8212_v51 = vmul.f32 %v8182_v14, %v12050_v13  ;;  %v8237_v32 = vadd.f32 %v12062_v21, %v2267_v0  ;;  %v12078_v21 = vld [vmem:[#allocation267_spill] sm:$0xff] }
 0xa24   : > { %v2446_v43 = vpop.permute.xlu1 %2445  ;;  %v2448_v45 = vpop.permute.xlu0 %2447  ;;  %12059 = vst [vmem:[#allocation5_spill] sm:$0xff] %v8230_v33  ;;  %12061 = vst [vmem:[#allocation48_spill] sm:$0xff] %v8234_v49 }
 0xa25   : > { %12047 = vst [vmem:[#allocation40_spill] sm:$0xff] %v8204_v23  ;;  %12051 = vst [vmem:[#allocation59_spill] sm:$0xff] %v8212_v51  ;;  %v8216_v29 = vadd.f32 %v2446_v43, %v2417_v41  ;;  %v8218_v7 = vadd.f32 %v2448_v45, %v2418_v11  ;;  %v8260_v0 = vmul.f32 %v8237_v32, %v12072_v63  ;;  %v12080_v23 = vld [vmem:[#allocation202_spill] sm:$0xff] }
 0xa26   : > { %12063 = vst [vmem:[#allocation89_spill] sm:$0xff] %v8237_v32  ;;  %v2469_v9 = vmul.f32 %v12081_v61, %v12080_v23  ;;  %v12088_v61 = vld [vmem:[#allocation208_spill] sm:$0xff] }
 0xa27   : > { %12054 = vst [vmem:[#allocation52_spill] sm:$0xff] %v8216_v29  ;;  %12055 = vst [vmem:[#allocation79_spill] sm:$0xff] %v8218_v7  ;;  %v8244_v26 = vmul.f32 %v8216_v29, %v12066_v60  ;;  %v8248_v11 = vmul.f32 %v8218_v7, %v12068_v24 }
 0xa28   : > { %v2450_v57 = vpop.permute.xlu1 %2449  ;;  %v2452_v41 = vpop.permute.xlu0 %2451  ;;  %12073 = vst [vmem:[#allocation66_spill] sm:$0xff] %v8260_v0  ;;  %v12083_v0 = vld [vmem:[#allocation204_spill] sm:$0xff] }
 0xa29   : > { %12067 = vst [vmem:[#allocation49_spill] sm:$0xff] %v8244_v26  ;;  %12069 = vst [vmem:[#allocation42_spill] sm:$0xff] %v8248_v11  ;;  %v8250_v43 = vadd.f32 %v2450_v57, %v2419_v40  ;;  %v8252_v45 = vadd.f32 %v2452_v41, %v2420_v5  ;;  %v12076_v40 = vld [vmem:[#allocation154_spill] sm:$0xff]  ;;  %v2470_v57 = vmul.f32 %v7640_v50, %v12082_v1 }
 0xa2a   : > { %v8268_v5 = vmul.f32 %v8240_v53, %v12076_v40  ;;  %v2471_v19 = vmul.f32 %v7655_v34, %v12083_v0  ;;  %v2472_v53 = vmul.f32 %v7658_v42, %v12084_v20  ;;  %v12086_v40 = vld [vmem:[#allocation198_spill] sm:$0xff]  ;;  %v2474_v1 = vmul.f32 %v7678_v36, %v12088_v61 }
 0xa2b   : > { %12070 = vst [vmem:[#allocation57_spill] sm:$0xff] %v8250_v43  ;;  %12071 = vst [vmem:[#allocation56_spill] sm:$0xff] %v8252_v45  ;;  %v8264_v58 = vmul.f32 %v8250_v43, %v12074_v56  ;;  %v8272_v4 = vmul.f32 %v8252_v45, %v12078_v21  ;;  %v12085_v56 = vld [vmem:[#allocation205_spill] sm:$0xff]  ;;  %v12087_v45 = vld [vmem:[#allocation207_spill] sm:$0xff] }
 0xa2c   : > { %v2494_v44 = vpop.permute.xlu1 %2493  ;;  %v2496_v3 = vpop.permute.xlu0 %2495  ;;  %12077 = vst [vmem:[#allocation95_spill] sm:$0xff] %v8268_v5  ;;  %v2473_v63 = vmul.f32 %v12086_v40, %v12085_v56  ;;  %v2475_v23 = vmul.f32 %v7691_v25, %v12087_v45  ;;  %v12089_v50 = vld [vmem:[#allocation210_spill] sm:$0xff]  ;;  %v12094_v56 = vld [vmem:[#allocation165_spill] sm:$0xff] }
 0xa2d   : > { %12075 = vst [vmem:[#allocation61_spill] sm:$0xff] %v8264_v58  ;;  %12079 = vst [vmem:[#allocation6_spill] sm:$0xff] %v8272_v4  ;;  %v2517_v4 = vadd.f32 %v2494_v44, %v2469_v9  ;;  %v2518_v5 = vadd.f32 %v2496_v3, %v2470_v57  ;;  %v2476_v9 = vmul.f32 %v7694_v2, %v12089_v50 }
 0xa2e   : > { %v8304_v45 = vmul.f32 %v8150_v48, %v12094_v56  ;;  %v8312_v50 = vmul.f32 %v8142_v10, %v12094_v56 }
 0xa30   : > { %v2498_v52 = vpop.permute.xlu1 %2497  ;;  %v2500_v16 = vpop.permute.xlu0 %2499  ;;  %12095 = vst [vmem:[#allocation93_spill] sm:$0xff] %v8304_v45  ;;  %12097 = vst [vmem:[#allocation44_spill] sm:$0xff] %v8312_v50  ;;  %v12139_v45 = vld [vmem:[#allocation89_spill] sm:$0xff] }
 0xa31   : > { %v2519_v0 = vadd.f32 %v2498_v52, %v2471_v19  ;;  %v2520_v57 = vadd.f32 %v2500_v16, %v2472_v53 }
 0xa34   : > { %v2502_v35 = vpop.permute.xlu1 %2501  ;;  %v2504_v17 = vpop.permute.xlu0 %2503 }
 0xa35   : > { %v2521_v52 = vadd.f32 %v2502_v35, %v2473_v63 }
 0xa38   : > { %v2506_v47 = vpop.permute.xlu1 %2505  ;;  %v2508_v59 = vpop.permute.xlu0 %2507 }
 0xa39   : > { %v2524_v63 = vadd.f32 %v2508_v59, %v2476_v9  ;;  %v12116_v9 = vld [vmem:[#allocation167_spill] sm:$0xff] }
 0xa3c   : > { %v2542_v11 = vpop.permute.xlu1 %2541  ;;  %v2544_v49 = vpop.permute.xlu0 %2543 }
 0xa3d   : > { %v2565_v21 = vadd.f32 %v2542_v11, %v2517_v4  ;;  %v2566_v32 = vadd.f32 %v2544_v49, %v2518_v5  ;;  %v12092_v49 = vld [vmem:[#allocation275_spill] sm:$0xff]  ;;  %v2522_v5 = vadd.f32 %v2504_v17, %v2474_v1  ;;  %v12104_v1 = vld [vmem:[#allocation166_spill] sm:$0xff]  ;;  %v2523_v17 = vadd.f32 %v2506_v47, %v2475_v23 }
 0xa3e   : > { %v8300_v11 = vmul.f32 %v8148_v46, %v12092_v49  ;;  %v8308_v61 = vmul.f32 %v8139_v39, %v12092_v49 }
 0xa40   : > { %v2546_v26 = vpop.permute.xlu1 %2545  ;;  %v2548_v33 = vpop.permute.xlu0 %2547  ;;  %12093 = vst [vmem:[#allocation91_spill] sm:$0xff] %v8300_v11  ;;  %12096 = vst [vmem:[#allocation65_spill] sm:$0xff] %v8308_v61  ;;  %v12141_v11 = vld [vmem:[#allocation267_spill] sm:$0xff] }
 0xa41   : > { %v2567_v19 = vadd.f32 %v2546_v26, %v2519_v0  ;;  %v2568_v53 = vadd.f32 %v2548_v33, %v2520_v57  ;;  %v8344_v57 = vmul.f32 %v8165_v28, %v12104_v1  ;;  %v8352_v0 = vmul.f32 %v8180_v54, %v12104_v1  ;;  %v8552_v1 = vld [vmem:[%s6034_s22 + $0x68] sm:$0xff] }
 0xa43   : > { %12105 = vst [vmem:[#allocation53_spill] sm:$0xff] %v8344_v57  ;;  %12108 = vst [vmem:[#allocation96_spill] sm:$0xff] %v8352_v0  ;;  %v12135_v57 = vld [vmem:[#allocation154_spill] sm:$0xff] }
 0xa44   : > { %v2550_v51 = vpop.permute.xlu1 %2549  ;;  %v2552_v18 = vpop.permute.xlu0 %2551 }
 0xa48   : > { %v2554_v58 = vpop.permute.xlu1 %2553  ;;  %v2556_v41 = vpop.permute.xlu0 %2555 }
 0xa4c   : > { %v2590_v44 = vpop.permute.xlu1 %2589  ;;  %v2592_v3 = vpop.permute.xlu0 %2591 }
 0xa4d   : > { %v8294_v34 = vadd.f32 %v2590_v44, %v2565_v21  ;;  %v8296_v20 = vadd.f32 %v2592_v3, %v2566_v32 }
 0xa4f   : > { %12090 = vst [vmem:[#allocation51_spill] sm:$0xff] %v8294_v34  ;;  %12091 = vst [vmem:[#allocation64_spill] sm:$0xff] %v8296_v20  ;;  %v8316_v32 = vmul.f32 %v8294_v34, %v12031_v22  ;;  %v8320_v16 = vmul.f32 %v8296_v20, %v7216_v6  ;;  %v8324_v44 = vmul.f32 %v8294_v34, %v12036_v38  ;;  %v12147_v34 = vld [vmem:[#allocation195_spill] sm:$0xff] }
 0xa50   : > { %v2594_v21 = vpop.permute.xlu1 %2593  ;;  %v2596_v4 = vpop.permute.xlu0 %2595  ;;  %v8328_v26 = vmul.f32 %v8296_v20, %v11711_v62 }
 0xa51   : > { %12098 = vst [vmem:[#allocation58_spill] sm:$0xff] %v8316_v32  ;;  %12099 = vst [vmem:[#allocation80_spill] sm:$0xff] %v8320_v16  ;;  %v8330_v33 = vadd.f32 %v2594_v21, %v2567_v19  ;;  %v8332_v3 = vadd.f32 %v2596_v4, %v2568_v53  ;;  %v12106_v19 = vld [vmem:[#allocation153_spill] sm:$0xff]  ;;  %v2569_v21 = vadd.f32 %v2550_v51, %v2521_v52 }
 0xa52   : > { %12100 = vst [vmem:[#allocation81_spill] sm:$0xff] %v8324_v44  ;;  %12101 = vst [vmem:[#allocation68_spill] sm:$0xff] %v8328_v26  ;;  %v8348_v53 = vmul.f32 %v8168_v31, %v12106_v19  ;;  %v2570_v4 = vadd.f32 %v2552_v18, %v2522_v5  ;;  %v8356_v35 = vmul.f32 %v8182_v14, %v12106_v19  ;;  %v8531_v14 = vld [vmem:[%s6034_s22 + $0x18] sm:$0xff] }
 0xa53   : > { %12102 = vst [vmem:[#allocation111_spill] sm:$0xff] %v8330_v33  ;;  %12103 = vst [vmem:[#allocation82_spill] sm:$0xff] %v8332_v3  ;;  %v8360_v61 = vmul.f32 %v8330_v33, %v12044_v37  ;;  %v8364_v51 = vmul.f32 %v8332_v3, %v12048_v8  ;;  %v8372_v5 = vmul.f32 %v8330_v33, %v12046_v55 }
 0xa54   : > { %12107 = vst [vmem:[#allocation67_spill] sm:$0xff] %v8348_v53  ;;  %12109 = vst [vmem:[#allocation102_spill] sm:$0xff] %v8356_v35  ;;  %v2598_v50 = vpop.permute.xlu1 %2597  ;;  %v2600_v26 = vpop.permute.xlu0 %2599  ;;  %v8376_v59 = vmul.f32 %v8332_v3, %v12050_v13  ;;  %v2572_v44 = vadd.f32 %v2556_v41, %v2524_v63  ;;  %v12130_v35 = vld [vmem:[#allocation150_spill] sm:$0xff]  ;;  %v12133_v53 = vld [vmem:[#allocation273_spill] sm:$0xff] }
 0xa55   : > { %12110 = vst [vmem:[#allocation103_spill] sm:$0xff] %v8360_v61  ;;  %12111 = vst [vmem:[#allocation97_spill] sm:$0xff] %v8364_v51  ;;  %v8366_v18 = vadd.f32 %v2598_v50, %v2569_v21  ;;  %v8368_v52 = vadd.f32 %v2600_v26, %v2570_v4  ;;  %v8384_v50 = vmul.f32 %v8216_v29, %v12116_v9  ;;  %v12118_v26 = vld [vmem:[#allocation155_spill] sm:$0xff] }
 0xa56   : > { %12114 = vst [vmem:[#allocation112_spill] sm:$0xff] %v8372_v5  ;;  %12115 = vst [vmem:[#allocation113_spill] sm:$0xff] %v8376_v59  ;;  %v8388_v21 = vmul.f32 %v8218_v7, %v12118_v26  ;;  %v2571_v4 = vadd.f32 %v2554_v58, %v2523_v17  ;;  %v8416_v51 = vmul.f32 %v8191_v12, %v12116_v9  ;;  %v12131_v17 = vld [vmem:[#allocation56_spill] sm:$0xff]  ;;  %v8527_v7 = vld [vmem:[%s6034_s22 + $0x8] sm:$0xff] }
 0xa57   : > { %12112 = vst [vmem:[#allocation60_spill] sm:$0xff] %v8366_v18  ;;  %12113 = vst [vmem:[#allocation83_spill] sm:$0xff] %v8368_v52  ;;  %v8392_v16 = vmul.f32 %v8366_v18, %v12058_v30  ;;  %v8396_v47 = vmul.f32 %v8368_v52, %v12060_v27  ;;  %v8412_v63 = vmul.f32 %v8366_v18, %v12066_v60  ;;  %v12143_v18 = vld [vmem:[#allocation92_spill] sm:$0xff]  ;;  %v8546_v9 = vld [vmem:[%s6034_s22 + $0x38] sm:$0xff] }
 0xa58   : > { %12117 = vst [vmem:[#allocation98_spill] sm:$0xff] %v8384_v50  ;;  %12119 = vst [vmem:[#allocation84_spill] sm:$0xff] %v8388_v21  ;;  %v2602_v61 = vpop.permute.xlu1 %2601  ;;  %v2604_v23 = vpop.permute.xlu0 %2603  ;;  %v8432_v41 = vmul.f32 %v12131_v17, %v12130_v35  ;;  %v8460_v3 = vmul.f32 %v12143_v18, %v12130_v35  ;;  %v8537_v35 = vld [vmem:[%s6034_s22 + $0x28] sm:$0xff] }
 0xa59   : > { %12120 = vst [vmem:[#allocation69_spill] sm:$0xff] %v8392_v16  ;;  %12121 = vst [vmem:[#allocation99_spill] sm:$0xff] %v8396_v47  ;;  %v8402_v0 = vadd.f32 %v2602_v61, %v2571_v4  ;;  %v8404_v58 = vadd.f32 %v2604_v23, %v2572_v44  ;;  %v8420_v61 = vmul.f32 %v8368_v52, %v12068_v24  ;;  %v12128_v23 = vld [vmem:[#allocation168_spill] sm:$0xff]  ;;  %v12137_v16 = vld [vmem:[#allocation270_spill] sm:$0xff] }
 0xa5a   : > { %12124 = vst [vmem:[#allocation85_spill] sm:$0xff] %v8412_v63  ;;  %12125 = vst [vmem:[#allocation115_spill] sm:$0xff] %v8416_v51  ;;  %v8424_v44 = vmul.f32 %v8194_v15, %v12118_v26  ;;  %v8428_v4 = vmul.f32 %v8250_v43, %v12128_v23  ;;  %v8452_v32 = vmul.f32 %v12139_v45, %v12128_v23 }
 0xa5b   : > { %12122 = vst [vmem:[#allocation105_spill] sm:$0xff] %v8402_v0  ;;  %12123 = vst [vmem:[#allocation104_spill] sm:$0xff] %v8404_v58  ;;  %v8436_v59 = vmul.f32 %v8402_v0, %v12133_v53  ;;  %v8440_v5 = vmul.f32 %v8404_v58, %v12135_v57  ;;  %v8448_v50 = vmul.f32 %v8402_v0, %v12137_v16 }
 0xa5c   : > { %12126 = vst [vmem:[#allocation114_spill] sm:$0xff] %v8420_v61  ;;  %12127 = vst [vmem:[#allocation100_spill] sm:$0xff] %v8424_v44  ;;  %v8456_v52 = vmul.f32 %v8404_v58, %v12141_v11 }
 0xa5d   : > { %12129 = vst [vmem:[#allocation101_spill] sm:$0xff] %v8428_v4  ;;  %12132 = vst [vmem:[#allocation107_spill] sm:$0xff] %v8432_v41 }
 0xa5e   : > { %12134 = vst [vmem:[#allocation106_spill] sm:$0xff] %v8436_v59  ;;  %12136 = vst [vmem:[#allocation117_spill] sm:$0xff] %v8440_v5  ;;  %v12145_v5 = vld [vmem:[#allocation185_spill] sm:$0xff] }
 0xa5f   : > { %12138 = vst [vmem:[#allocation116_spill] sm:$0xff] %v8448_v50  ;;  %12140 = vst [vmem:[#allocation109_spill] sm:$0xff] %v8452_v32 }
 0xa60   : > { %12142 = vst [vmem:[#allocation108_spill] sm:$0xff] %v8456_v52  ;;  %12144 = vst [vmem:[#allocation124_spill] sm:$0xff] %v8460_v3  ;;  %v12146_v52 = vld [vmem:[#allocation186_spill] sm:$0xff] }
 0xa69   : > { %v8470_v51 = vpop.permute.xlu1 %2622  ;;  %v8472_v63 = vpop.permute.xlu0 %2626 }
 0xa6d   : > { %v8474_v58 = vpop.permute.xlu1 %2630  ;;  %v8476_v0 = vpop.permute.xlu0 %2638 }
 0xa71   : > { %v8478_v33 = vpop.permute.xlu1 %2634  ;;  %v8480_v47 = vpop.permute.xlu0 %2646 }
 0xa75   : > { %v8482_v59 = vpop.permute.xlu1 %2642 }
 0xa76   : > { %v2663_v21 = vpop.permute.xlu0 %2662 }
 0xa77   : > { %v2693_v44 = vmul.f32 %v2663_v21, %v12145_v5 }
 0xa79   : > { %v8485_v32 = vpop.permute.xlu1 %2650  ;;  %2709 = vrot.lane.b32.xlu1 %v2693_v44, %s5889_s7 }
 0xa7a   : > { %v2675_v61 = vpop.permute.xlu0 %2674 }
 0xa7b   : > { %v2696_v20 = vmul.f32 %v2675_v61, %v7658_v42 }
 0xa7e   : > { %v2667_v3 = vpop.permute.xlu1 %2666  ;;  %v2683_v41 = vpop.permute.xlu0 %2682 }
 0xa7f   : > { %v2694_v50 = vmul.f32 %v2667_v3, %v12146_v52  ;;  %v2698_v21 = vmul.f32 %v2683_v41, %v7678_v36  ;;  %v12150_v36 = vld [vmem:[#allocation62_spill] sm:$0xff]  ;;  %v12153_v41 = vld [vmem:[#allocation72_spill] sm:$0xff] }
 0xa81   : > { %2711 = vrot.lane.b32.xlu0 %v2694_v50, %s5889_s7  ;;  %v12152_v50 = vld [vmem:[#allocation73_spill] sm:$0xff] }
 0xa82   : > { %v2671_v4 = vpop.permute.xlu1 %2670  ;;  %v2691_v43 = vpop.permute.xlu0 %2690 }
 0xa83   : > { %v2695_v17 = vmul.f32 %v2671_v4, %v12147_v34  ;;  %v2700_v52 = vmul.f32 %v2691_v43, %v7694_v2  ;;  %v12148_v34 = vld [vmem:[#allocation70_spill] sm:$0xff]  ;;  %v5896_v2 = vmov 29  }
 0xa85   : > { %2713 = vrot.lane.b32.xlu1 %v2695_v17, %s5889_s7  ;;  %2715 = vrot.lane.b32.xlu0 %v2696_v20, %s5889_s7  ;;  %v12149_v20 = vld [vmem:[#allocation71_spill] sm:$0xff] }
 0xa86   : > { %v2679_v5 = vpop.permute.xlu1 %2678  ;;  %v12154_v17 = vld [vmem:[#allocation39_spill] sm:$0xff] }
 0xa87   : > { %v2697_v44 = vmul.f32 %v2679_v5, %v12086_v40  ;;  %v12151_v40 = vld [vmem:[#allocation245_spill] sm:$0xff] }
 0xa89   : > { %2717 = vrot.lane.b32.xlu1 %v2697_v44, %s5889_s7  ;;  %2719 = vrot.lane.b32.xlu0 %v2698_v21, %s5889_s7 }
 0xa8a   : > { %v2687_v3 = vpop.permute.xlu1 %2686 }
 0xa8b   : > { %v2699_v42 = vmul.f32 %v2687_v3, %v7691_v25  ;;  %v12155_v25 = vld [vmem:[#allocation74_spill] sm:$0xff] }
 0xa8d   : > { %2721 = vrot.lane.b32.xlu1 %v2699_v42, %s5889_s7  ;;  %2723 = vrot.lane.b32.xlu0 %v2700_v52, %s5889_s7 }
 0xa91   : > { %2742 = vperm.xlu1 %5770, %v12148_v34   ;;  %2746 = vperm.xlu0 %5771, %v12149_v20  }
 0xa95   : > { %2750 = vperm.xlu1 %5770, %v12150_v36   ;;  %2758 = vperm.xlu0 %5771, %v12151_v40  }
 0xa99   : > { %2754 = vperm.xlu1 %5770, %v12152_v50   ;;  %2766 = vperm.xlu0 %5771, %v12153_v41  }
 0xa9d   : > { %2762 = vperm.xlu1 %5770, %v12154_v17   ;;  %5772 = vset.pattern.permute.xlu0 %v5896_v2 }
 0xaa1   : > { %2770 = vperm.xlu1 %5770, %v12155_v25  }
 0xaa5   : > { %5773 = vset.pattern.permute.xlu1 %v5896_v2 }
 0xaeb   : > { %v8512_v61 = vpop.permute.xlu1 %2709 }
 0xaf3   : > { %v8510_v43 = vpop.permute.xlu0 %2711 }
 0xaf7   : > { %v8514_v4 = vpop.permute.xlu1 %2713  ;;  %v8516_v5 = vpop.permute.xlu0 %2715 }
 0xafb   : > { %v8518_v21 = vpop.permute.xlu1 %2717  ;;  %v8520_v44 = vpop.permute.xlu0 %2719 }
 0xaff   : > { %v8522_v3 = vpop.permute.xlu1 %2721  ;;  %v8524_v52 = vpop.permute.xlu0 %2723 }
 0xb00   : > { %12156 = vst [vmem:[#allocation127_spill] sm:$0xff] %v8524_v52 }
 0xb10   : > { %v2743_v42 = vpop.permute.xlu1 %2742  ;;  %v2747_v2 = vpop.permute.xlu0 %2746 }
 0xb11   : > { %v2773_v29 = vmul.f32 %v8527_v7, %v2743_v42  ;;  %v2774_v54 = vmul.f32 %v8531_v14, %v2747_v2  ;;  %v8542_v42 = vld [vmem:[%s6034_s22 + $0x48] sm:$0xff] }
 0xb13   : > { %2789 = vrot.lane.b32.xlu0 %v2773_v29, %s5867_s23  ;;  %2791 = vrot.lane.b32.xlu1 %v2774_v54, %s5867_s23 }
 0xb14   : > { %v2751_v48 = vpop.permute.xlu1 %2750  ;;  %v2759_v46 = vpop.permute.xlu0 %2758 }
 0xb15   : > { %v2775_v23 = vmul.f32 %v8537_v35, %v2751_v48  ;;  %v2777_v2 = vmul.f32 %v8542_v42, %v2759_v46 }
 0xb17   : > { %2793 = vrot.lane.b32.xlu0 %v2775_v23, %s5867_s23  ;;  %v8556_v23 = vld [vmem:[%s6034_s22 + $0x58] sm:$0xff] }
 0xb18   : > { %v2755_v26 = vpop.permute.xlu1 %2754  ;;  %v2767_v54 = vpop.permute.xlu0 %2766 }
 0xb19   : > { %v2776_v29 = vmul.f32 %v8546_v9, %v2755_v26  ;;  %v2779_v48 = vmul.f32 %v8552_v1, %v2767_v54  ;;  %v8562_v26 = vld [vmem:[%s6034_s22 + $0x78] sm:$0xff] }
 0xb1b   : > { %2795 = vrot.lane.b32.xlu1 %v2776_v29, %s5867_s23  ;;  %2797 = vrot.lane.b32.xlu0 %v2777_v2, %s5867_s23 }
 0xb1c   : > { %v2763_v19 = vpop.permute.xlu1 %2762 }
 0xb1d   : > { %v2778_v56 = vmul.f32 %v8556_v23, %v2763_v19 }
 0xb1f   : > { %2799 = vrot.lane.b32.xlu1 %v2778_v56, %s5867_s23  ;;  %2801 = vrot.lane.b32.xlu0 %v2779_v48, %s5867_s23  ;;  %v5897_v56 = vmov 21  }
 0xb20   : > { %v2771_v46 = vpop.permute.xlu1 %2770 }
 0xb21   : > { %v2780_v29 = vmul.f32 %v8562_v26, %v2771_v46 }
 0xb23   : > { %2803 = vrot.lane.b32.xlu1 %v2780_v29, %s5867_s23  ;;  %2822 = vperm.xlu0 %5772, %v12148_v34  }
 0xb27   : > { %2826 = vperm.xlu1 %5773, %v12149_v20   ;;  %2834 = vperm.xlu0 %5772, %v12152_v50  }
 0xb2b   : > { %2830 = vperm.xlu1 %5773, %v12150_v36   ;;  %2842 = vperm.xlu0 %5772, %v12154_v17  }
 0xb2f   : > { %2838 = vperm.xlu1 %5773, %v12151_v40   ;;  %2850 = vperm.xlu0 %5772, %v12155_v25  }
 0xb33   : > { %2846 = vperm.xlu1 %5773, %v12153_v41   ;;  %5775 = vset.pattern.permute.xlu0 %v5897_v56 }
 0xb37   : > { %5774 = vset.pattern.permute.xlu1 %v5897_v56 }
 0xb85   : > { %v8574_v19 = vpop.permute.xlu0 %2789  ;;  %v8576_v2 = vpop.permute.xlu1 %2791 }
 0xb89   : > { %v8578_v54 = vpop.permute.xlu0 %2793 }
 0xb8d   : > { %v8580_v48 = vpop.permute.xlu1 %2795  ;;  %v8582_v46 = vpop.permute.xlu0 %2797 }
 0xb8e   : > { %12157 = vst [vmem:[#allocation126_spill] sm:$0xff] %v8580_v48  ;;  %12158 = vst [vmem:[#allocation129_spill] sm:$0xff] %v8582_v46 }
 0xb91   : > { %v8584_v29 = vpop.permute.xlu1 %2799  ;;  %v8586_v49 = vpop.permute.xlu0 %2801 }
 0xb92   : > { %12159 = vst [vmem:[#allocation128_spill] sm:$0xff] %v8584_v29  ;;  %12160 = vst [vmem:[#allocation130_spill] sm:$0xff] %v8586_v49 }
 0xb95   : > { %v8588_v18 = vpop.permute.xlu1 %2803 }
 0xb96   : > { %12161 = vst [vmem:[#allocation131_spill] sm:$0xff] %v8588_v18 }
 0xba2   : > { %v2823_v45 = vpop.permute.xlu0 %2822 }
 0xba3   : > { %v2853_v15 = vmul.f32 %v8527_v7, %v2823_v45 }
 0xba5   : > { %2869 = vrot.lane.b32.xlu1 %v2853_v15, %s5890_s8 }
 0xba6   : > { %v2827_v56 = vpop.permute.xlu1 %2826  ;;  %v2835_v12 = vpop.permute.xlu0 %2834 }
 0xba7   : > { %v2854_v31 = vmul.f32 %v8531_v14, %v2827_v56  ;;  %v2856_v39 = vmul.f32 %v8546_v9, %v2835_v12 }
 0xba9   : > { %2871 = vrot.lane.b32.xlu0 %v2854_v31, %s5890_s8 }
 0xbaa   : > { %v2831_v28 = vpop.permute.xlu1 %2830  ;;  %v2843_v10 = vpop.permute.xlu0 %2842 }
 0xbab   : > { %v2855_v57 = vmul.f32 %v8537_v35, %v2831_v28  ;;  %v2858_v45 = vmul.f32 %v8556_v23, %v2843_v10  ;;  %v5899_v10 = vmov 27  }
 0xbad   : > { %2873 = vrot.lane.b32.xlu1 %v2855_v57, %s5890_s8  ;;  %2875 = vrot.lane.b32.xlu0 %v2856_v39, %s5890_s8  ;;  %v5898_v39 = vmov 24  }
 0xbae   : > { %v2839_v11 = vpop.permute.xlu1 %2838  ;;  %v2851_v53 = vpop.permute.xlu0 %2850 }
 0xbaf   : > { %v2857_v15 = vmul.f32 %v8542_v42, %v2839_v11  ;;  %v2860_v56 = vmul.f32 %v8562_v26, %v2851_v53 }
 0xbb1   : > { %2877 = vrot.lane.b32.xlu1 %v2857_v15, %s5890_s8  ;;  %2879 = vrot.lane.b32.xlu0 %v2858_v45, %s5890_s8 }
 0xbb2   : > { %v2847_v31 = vpop.permute.xlu1 %2846 }
 0xbb3   : > { %v2859_v12 = vmul.f32 %v8552_v1, %v2847_v31 }
 0xbb5   : > { %2881 = vrot.lane.b32.xlu1 %v2859_v12, %s5890_s8  ;;  %2883 = vrot.lane.b32.xlu0 %v2860_v56, %s5890_s8 }
 0xbb9   : > { %2902 = vperm.xlu1 %5774, %v12148_v34   ;;  %2906 = vperm.xlu0 %5775, %v12149_v20  }
 0xbbd   : > { %2910 = vperm.xlu1 %5774, %v12150_v36   ;;  %2918 = vperm.xlu0 %5775, %v12151_v40  }
 0xbc1   : > { %2914 = vperm.xlu1 %5774, %v12152_v50   ;;  %2926 = vperm.xlu0 %5775, %v12153_v41  }
 0xbc5   : > { %2922 = vperm.xlu1 %5774, %v12154_v17   ;;  %5776 = vset.pattern.permute.xlu0 %v5898_v39 }
 0xbc6   : > { %2942 = vperm.xlu0 %5776, %v12148_v34  }
 0xbc9   : > { %2930 = vperm.xlu1 %5774, %v12155_v25  }
 0xbca   : > { %2954 = vperm.xlu0 %5776, %v12152_v50  }
 0xbcd   : > { %5777 = vset.pattern.permute.xlu1 %v5898_v39 }
 0xbce   : > { %2946 = vperm.xlu1 %5777, %v12149_v20   ;;  %2962 = vperm.xlu0 %5776, %v12154_v17  }
 0xbd2   : > { %2950 = vperm.xlu1 %5777, %v12150_v36   ;;  %2970 = vperm.xlu0 %5776, %v12155_v25  }
 0xbd6   : > { %2958 = vperm.xlu1 %5777, %v12151_v40   ;;  %5779 = vset.pattern.permute.xlu0 %v5899_v10 }
 0xbda   : > { %2966 = vperm.xlu1 %5777, %v12153_v41  }
 0xbde   : > { %5778 = vset.pattern.permute.xlu1 %v5899_v10 }
 0xc17   : > { %v8624_v11 = vpop.permute.xlu1 %2869 }
 0xc1b   : > { %v8622_v28 = vpop.permute.xlu0 %2871 }
 0xc1f   : > { %v8626_v57 = vpop.permute.xlu1 %2873  ;;  %v8628_v53 = vpop.permute.xlu0 %2875 }
 0xc20   : > { %12162 = vst [vmem:[#allocation132_spill] sm:$0xff] %v8628_v53 }
 0xc23   : > { %v8630_v45 = vpop.permute.xlu1 %2877  ;;  %v8632_v15 = vpop.permute.xlu0 %2879 }
 0xc24   : > { %12163 = vst [vmem:[#allocation133_spill] sm:$0xff] %v8630_v45  ;;  %12164 = vst [vmem:[#allocation134_spill] sm:$0xff] %v8632_v15 }
 0xc27   : > { %v8634_v31 = vpop.permute.xlu1 %2881  ;;  %v8636_v56 = vpop.permute.xlu0 %2883 }
 0xc28   : > { %12165 = vst [vmem:[#allocation135_spill] sm:$0xff] %v8634_v31  ;;  %12166 = vst [vmem:[#allocation137_spill] sm:$0xff] %v8636_v56 }
 0xc38   : > { %v8638_v12 = vpop.permute.xlu1 %2902  ;;  %v8640_v39 = vpop.permute.xlu0 %2906 }
 0xc3c   : > { %v8642_v10 = vpop.permute.xlu1 %2910  ;;  %v8644_v16 = vpop.permute.xlu0 %2918 }
 0xc40   : > { %v8646_v24 = vpop.permute.xlu1 %2914  ;;  %v8648_v60 = vpop.permute.xlu0 %2926 }
 0xc41   : > { %12167 = vst [vmem:[#allocation136_spill] sm:$0xff] %v8648_v60 }
 0xc44   : > { %v8650_v27 = vpop.permute.xlu1 %2922 }
 0xc45   : > { %v2943_v30 = vpop.permute.xlu0 %2942 }
 0xc46   : > { %v2973_v13 = vmul.f32 %v8527_v7, %v2943_v30 }
 0xc48   : > { %v8653_v31 = vpop.permute.xlu1 %2930  ;;  %2989 = vrot.lane.b32.xlu1 %v2973_v13, %s5889_s7 }
 0xc49   : > { %12168 = vst [vmem:[#allocation139_spill] sm:$0xff] %v8653_v31  ;;  %v2955_v56 = vpop.permute.xlu0 %2954 }
 0xc4a   : > { %v2976_v49 = vmul.f32 %v8546_v9, %v2955_v56 }
 0xc4d   : > { %v2947_v15 = vpop.permute.xlu1 %2946  ;;  %v2963_v18 = vpop.permute.xlu0 %2962 }
 0xc4e   : > { %v2974_v45 = vmul.f32 %v8531_v14, %v2947_v15  ;;  %v2978_v37 = vmul.f32 %v8556_v23, %v2963_v18 }
 0xc50   : > { %2991 = vrot.lane.b32.xlu0 %v2974_v45, %s5889_s7 }
 0xc51   : > { %v2951_v8 = vpop.permute.xlu1 %2950  ;;  %v2971_v55 = vpop.permute.xlu0 %2970 }
 0xc52   : > { %v2975_v29 = vmul.f32 %v8537_v35, %v2951_v8  ;;  %v2980_v15 = vmul.f32 %v8562_v26, %v2971_v55 }
 0xc54   : > { %2993 = vrot.lane.b32.xlu1 %v2975_v29, %s5889_s7  ;;  %2995 = vrot.lane.b32.xlu0 %v2976_v49, %s5889_s7 }
 0xc55   : > { %v2959_v30 = vpop.permute.xlu1 %2958 }
 0xc56   : > { %v2977_v13 = vmul.f32 %v8542_v42, %v2959_v30 }
 0xc58   : > { %2997 = vrot.lane.b32.xlu1 %v2977_v13, %s5889_s7  ;;  %2999 = vrot.lane.b32.xlu0 %v2978_v37, %s5889_s7  ;;  %v5900_v37 = vmov 30  }
 0xc59   : > { %v2967_v45 = vpop.permute.xlu1 %2966 }
 0xc5a   : > { %v2979_v56 = vmul.f32 %v8552_v1, %v2967_v45 }
 0xc5c   : > { %3001 = vrot.lane.b32.xlu1 %v2979_v56, %s5889_s7  ;;  %3003 = vrot.lane.b32.xlu0 %v2980_v15, %s5889_s7 }
 0xc60   : > { %3022 = vperm.xlu1 %5778, %v12148_v34   ;;  %3026 = vperm.xlu0 %5779, %v12149_v20  }
 0xc64   : > { %3030 = vperm.xlu1 %5778, %v12150_v36   ;;  %3038 = vperm.xlu0 %5779, %v12151_v40  }
 0xc68   : > { %3034 = vperm.xlu1 %5778, %v12152_v50   ;;  %3046 = vperm.xlu0 %5779, %v12153_v41  }
 0xc6c   : > { %3042 = vperm.xlu1 %5778, %v12154_v17   ;;  %5780 = vset.pattern.permute.xlu0 %v5900_v37 }
 0xc70   : > { %3050 = vperm.xlu1 %5778, %v12155_v25  }
 0xc74   : > { %5781 = vset.pattern.permute.xlu1 %v5900_v37 }
 0xcba   : > { %v8680_v8 = vpop.permute.xlu1 %2989 }
 0xcc2   : > { %v8678_v55 = vpop.permute.xlu0 %2991 }
 0xcc6   : > { %v8682_v49 = vpop.permute.xlu1 %2993  ;;  %v8684_v18 = vpop.permute.xlu0 %2995 }
 0xcca   : > { %v8686_v29 = vpop.permute.xlu1 %2997  ;;  %v8688_v30 = vpop.permute.xlu0 %2999 }
 0xccb   : > { %12169 = vst [vmem:[#allocation138_spill] sm:$0xff] %v8686_v29  ;;  %12170 = vst [vmem:[#allocation140_spill] sm:$0xff] %v8688_v30 }
 0xcce   : > { %v8690_v13 = vpop.permute.xlu1 %3001  ;;  %v8692_v45 = vpop.permute.xlu0 %3003 }
 0xccf   : > { %12171 = vst [vmem:[#allocation141_spill] sm:$0xff] %v8690_v13  ;;  %12172 = vst [vmem:[#allocation142_spill] sm:$0xff] %v8692_v45 }
 0xcdf   : > { %v3023_v15 = vpop.permute.xlu1 %3022  ;;  %v3027_v56 = vpop.permute.xlu0 %3026 }
 0xce0   : > { %v3053_v37 = vmul.f32 %v8527_v7, %v3023_v15  ;;  %v3054_v31 = vmul.f32 %v8531_v14, %v3027_v56 }
 0xce2   : > { %3069 = vrot.lane.b32.xlu0 %v3053_v37, %s5867_s23  ;;  %3071 = vrot.lane.b32.xlu1 %v3054_v31, %s5867_s23 }
 0xce3   : > { %v3031_v60 = vpop.permute.xlu1 %3030  ;;  %v3039_v53 = vpop.permute.xlu0 %3038 }
 0xce4   : > { %v3055_v46 = vmul.f32 %v8537_v35, %v3031_v60  ;;  %v3057_v13 = vmul.f32 %v8542_v42, %v3039_v53  ;;  %v5901_v53 = vmov 22  }
 0xce6   : > { %3073 = vrot.lane.b32.xlu0 %v3055_v46, %s5867_s23 }
 0xce7   : > { %v3035_v30 = vpop.permute.xlu1 %3034  ;;  %v3047_v29 = vpop.permute.xlu0 %3046 }
 0xce8   : > { %v3056_v45 = vmul.f32 %v8546_v9, %v3035_v30  ;;  %v3059_v56 = vmul.f32 %v8552_v1, %v3047_v29 }
 0xcea   : > { %3075 = vrot.lane.b32.xlu1 %v3056_v45, %s5867_s23  ;;  %3077 = vrot.lane.b32.xlu0 %v3057_v13, %s5867_s23 }
 0xceb   : > { %v3043_v15 = vpop.permute.xlu1 %3042 }
 0xcec   : > { %v3058_v31 = vmul.f32 %v8556_v23, %v3043_v15 }
 0xcee   : > { %3079 = vrot.lane.b32.xlu1 %v3058_v31, %s5867_s23  ;;  %3081 = vrot.lane.b32.xlu0 %v3059_v56, %s5867_s23 }
 0xcef   : > { %v3051_v60 = vpop.permute.xlu1 %3050 }
 0xcf0   : > { %v3060_v46 = vmul.f32 %v8562_v26, %v3051_v60 }
 0xcf2   : > { %3083 = vrot.lane.b32.xlu1 %v3060_v46, %s5867_s23  ;;  %3102 = vperm.xlu0 %5780, %v12148_v34  }
 0xcf6   : > { %3106 = vperm.xlu1 %5781, %v12149_v20   ;;  %3114 = vperm.xlu0 %5780, %v12152_v50  }
 0xcfa   : > { %3110 = vperm.xlu1 %5781, %v12150_v36   ;;  %3122 = vperm.xlu0 %5780, %v12154_v17  }
 0xcfe   : > { %3118 = vperm.xlu1 %5781, %v12151_v40   ;;  %3130 = vperm.xlu0 %5780, %v12155_v25  }
 0xd02   : > { %3126 = vperm.xlu1 %5781, %v12153_v41   ;;  %5783 = vset.pattern.permute.xlu0 %v5901_v53 }
 0xd06   : > { %5782 = vset.pattern.permute.xlu1 %v5901_v53 }
 0xd54   : > { %v8718_v29 = vpop.permute.xlu0 %3069  ;;  %v8720_v34 = vpop.permute.xlu1 %3071 }
 0xd58   : > { %v8722_v20 = vpop.permute.xlu0 %3073 }
 0xd5c   : > { %v8724_v30 = vpop.permute.xlu1 %3075  ;;  %v8726_v13 = vpop.permute.xlu0 %3077 }
 0xd60   : > { %v8728_v45 = vpop.permute.xlu1 %3079  ;;  %v8730_v37 = vpop.permute.xlu0 %3081 }
 0xd61   : > { %12173 = vst [vmem:[#allocation143_spill] sm:$0xff] %v8728_v45  ;;  %12174 = vst [vmem:[#allocation144_spill] sm:$0xff] %v8730_v37 }
 0xd64   : > { %v8732_v15 = vpop.permute.xlu1 %3083 }
 0xd65   : > { %12175 = vst [vmem:[#allocation145_spill] sm:$0xff] %v8732_v15 }
 0xd71   : > { %v3103_v56 = vpop.permute.xlu0 %3102 }
 0xd72   : > { %v3133_v31 = vmul.f32 %v8527_v7, %v3103_v56 }
 0xd74   : > { %3149 = vrot.lane.b32.xlu1 %v3133_v31, %s5890_s8 }
 0xd75   : > { %v3107_v60 = vpop.permute.xlu1 %3106  ;;  %v3115_v46 = vpop.permute.xlu0 %3114 }
 0xd76   : > { %v3134_v53 = vmul.f32 %v8531_v14, %v3107_v60  ;;  %v3136_v45 = vmul.f32 %v8546_v9, %v3115_v46 }
 0xd78   : > { %3151 = vrot.lane.b32.xlu0 %v3134_v53, %s5890_s8 }
 0xd79   : > { %v3111_v48 = vpop.permute.xlu1 %3110  ;;  %v3123_v52 = vpop.permute.xlu0 %3122 }
 0xd7a   : > { %v3135_v37 = vmul.f32 %v8537_v35, %v3111_v48  ;;  %v3138_v31 = vmul.f32 %v8556_v23, %v3123_v52  ;;  %v8755_v52 = vld [vmem:[%s5963_s18 + $0x8] sm:$0xff] }
 0xd7b   : > { %12177 = vst [vmem:[#allocation147_spill] sm:$0xff] %v8755_v52 }
 0xd7c   : > { %3153 = vrot.lane.b32.xlu1 %v3135_v37, %s5890_s8  ;;  %3155 = vrot.lane.b32.xlu0 %v3136_v45, %s5890_s8  ;;  %v8751_v45 = vld [vmem:[%s5963_s18] sm:$0xff]  ;;  %v5902_v37 = vmov 25  }
 0xd7d   : > { %v3119_v56 = vpop.permute.xlu1 %3118  ;;  %v3131_v60 = vpop.permute.xlu0 %3130  ;;  %12176 = vst [vmem:[#allocation146_spill] sm:$0xff] %v8751_v45 }
 0xd7e   : > { %v3137_v15 = vmul.f32 %v8542_v42, %v3119_v56  ;;  %v3140_v46 = vmul.f32 %v8562_v26, %v3131_v60  ;;  %v2653_v56 = vmul.f32 %v8527_v7, %v8470_v51  ;;  %v2933_v60 = vmul.f32 %v8527_v7, %v8638_v12 }
 0xd7f   : > { %v2934_v51 = vmul.f32 %v8531_v14, %v8640_v39  ;;  %v2655_v12 = vmul.f32 %v8537_v35, %v8474_v58  ;;  %v2935_v58 = vmul.f32 %v8537_v35, %v8642_v10 }
 0xd80   : > { %3157 = vrot.lane.b32.xlu1 %v3137_v15, %s5890_s8  ;;  %3159 = vrot.lane.b32.xlu0 %v3138_v31, %s5890_s8  ;;  %v8766_v15 = vld [vmem:[%s5963_s18 + $0x18] sm:$0xff]  ;;  %v2733_v31 = vadd.f32 %v8512_v61, %v2653_v56 }
 0xd81   : > { %v3127_v53 = vpop.permute.xlu1 %3126  ;;  %12178 = vst [vmem:[#allocation148_spill] sm:$0xff] %v8766_v15 }
 0xd82   : > { %v3139_v48 = vmul.f32 %v8552_v1, %v3127_v53  ;;  %v2654_v53 = vmul.f32 %v8531_v14, %v8472_v63  ;;  %v3014_v63 = vadd.f32 %v8678_v55, %v2934_v51  ;;  %v12188_v51 = vld [vmem:[#allocation127_spill] sm:$0xff] }
 0xd84   : > { %3161 = vrot.lane.b32.xlu1 %v3139_v48, %s5890_s8  ;;  %3163 = vrot.lane.b32.xlu0 %v3140_v46, %s5890_s8  ;;  %v3013_v46 = vadd.f32 %v8680_v8, %v2933_v60 }
 0xd86   : > { %v3093_v61 = vadd.f32 %v8718_v29, %v3013_v46  ;;  %v2656_v29 = vmul.f32 %v8546_v9, %v8478_v33  ;;  %v2660_v33 = vmul.f32 %v8562_v26, %v8485_v32  ;;  %v2938_v32 = vmul.f32 %v8556_v23, %v8650_v27 }
 0xd88   : > { %3182 = vperm.xlu1 %5782, %v8751_v45   ;;  %3186 = vperm.xlu0 %5783, %v8755_v52  }
 0xd8c   : > { %3190 = vperm.xlu1 %5782, %v12150_v36   ;;  %3198 = vperm.xlu0 %5783, %v12151_v40   ;;  %v8771_v36 = vld [vmem:[%s5963_s18 + $0x28] sm:$0xff]  ;;  %v8775_v40 = vld [vmem:[%s5963_s18 + $0x10] sm:$0xff] }
 0xd8d   : > { %12179 = vst [vmem:[#allocation156_spill] sm:$0xff] %v8771_v36  ;;  %12180 = vst [vmem:[#allocation159_spill] sm:$0xff] %v8775_v40 }
 0xd90   : > { %3194 = vperm.xlu1 %5782, %v12152_v50   ;;  %3206 = vperm.xlu0 %5783, %v12153_v41   ;;  %v8780_v50 = vld [vmem:[%s5963_s18 + $0x20] sm:$0xff]  ;;  %v8784_v41 = vld [vmem:[%s5963_s18 + $0x30] sm:$0xff] }
 0xd91   : > { %12181 = vst [vmem:[#allocation158_spill] sm:$0xff] %v8780_v50  ;;  %12182 = vst [vmem:[#allocation161_spill] sm:$0xff] %v8784_v41 }
 0xd94   : > { %3202 = vperm.xlu1 %5782, %v12154_v17   ;;  %5784 = vset.pattern.permute.xlu0 %v5902_v37  ;;  %v5903_v17 = vmov 28  }
 0xd95   : > { %3222 = vperm.xlu0 %5784, %v8751_v45  }
 0xd98   : > { %3210 = vperm.xlu1 %5782, %v12155_v25  }
 0xd99   : > { %3234 = vperm.xlu0 %5784, %v8766_v15  }
 0xd9c   : > { %5785 = vset.pattern.permute.xlu1 %v5902_v37  ;;  %v2734_v37 = vadd.f32 %v8510_v43, %v2654_v53  ;;  %v2735_v43 = vadd.f32 %v8514_v4, %v2655_v12  ;;  %v2658_v4 = vmul.f32 %v8556_v23, %v8482_v59 }
 0xd9d   : > { %3226 = vperm.xlu1 %5785, %v8755_v52   ;;  %3242 = vperm.xlu0 %5784, %v8771_v36  }
 0xd9e   : > { %v2815_v10 = vadd.f32 %v8578_v54, %v2735_v43  ;;  %v12194_v43 = vld [vmem:[#allocation129_spill] sm:$0xff] }
 0xda0   : > { %v8843_v46 = vadd.f32 %v8626_v57, %v2815_v10 }
 0xda1   : > { %3230 = vperm.xlu1 %5785, %v8775_v40   ;;  %3250 = vperm.xlu0 %5784, %v12155_v25   ;;  %v2813_v25 = vadd.f32 %v8574_v19, %v2733_v31  ;;  %v2814_v19 = vadd.f32 %v8576_v2, %v2734_v37  ;;  %v3094_v2 = vadd.f32 %v8720_v34, %v3014_v63  ;;  %v12192_v63 = vld [vmem:[#allocation140_spill] sm:$0xff] }
 0xda2   : > { %v3015_v34 = vadd.f32 %v8682_v49, %v2935_v58  ;;  %12187 = vst [vmem:[#allocation172_spill] sm:$0xff] %v8843_v46  ;;  %v2937_v37 = vmul.f32 %v8542_v42, %v8644_v16  ;;  %v12195_v58 = vld [vmem:[#allocation132_spill] sm:$0xff] }
 0xda3   : > { %v8797_v48 = vadd.f32 %v8624_v11, %v2813_v25  ;;  %v2657_v11 = vmul.f32 %v8542_v42, %v8476_v0  ;;  %v8815_v8 = vadd.f32 %v8622_v28, %v2814_v19  ;;  %v2659_v0 = vmul.f32 %v8552_v1, %v8480_v47  ;;  %v12191_v19 = vld [vmem:[#allocation138_spill] sm:$0xff] }
 0xda4   : > { %v2936_v28 = vmul.f32 %v8546_v9, %v8646_v24  ;;  %v2736_v47 = vadd.f32 %v8516_v5, %v2656_v29  ;;  %v2738_v24 = vadd.f32 %v8520_v44, %v2658_v4  ;;  %v3095_v54 = vadd.f32 %v8722_v20, %v3015_v34  ;;  %v12198_v29 = vld [vmem:[#allocation139_spill] sm:$0xff] }
 0xda5   : > { %3238 = vperm.xlu1 %5785, %v8780_v50   ;;  %5787 = vset.pattern.permute.xlu0 %v5903_v17  ;;  %12183 = vst [vmem:[#allocation160_spill] sm:$0xff] %v8797_v48  ;;  %v4557_v39 = vmul.f32 %v8797_v48, %v12036_v38  ;;  %12185 = vst [vmem:[#allocation163_spill] sm:$0xff] %v8815_v8  ;;  %v2737_v53 = vadd.f32 %v8518_v21, %v2657_v11 }
 0xda6   : > { %v3016_v59 = vadd.f32 %v8684_v18, %v2936_v28  ;;  %v4558_v49 = vmul.f32 %v8815_v8, %v11711_v62  ;;  %v2739_v57 = vadd.f32 %v8522_v3, %v2659_v0  ;;  %v2740_v20 = vadd.f32 %v12188_v51, %v2660_v33  ;;  %v12197_v3 = vld [vmem:[#allocation136_spill] sm:$0xff]  ;;  %v12199_v28 = vld [vmem:[#allocation143_spill] sm:$0xff]  ;;  %v12200_v33 = vld [vmem:[#allocation266_spill] sm:$0xff] }
 0xda7   : > { %v3017_v16 = vadd.f32 %v12191_v19, %v2937_v37  ;;  %v3018_v11 = vadd.f32 %v12192_v63, %v2938_v32  ;;  %v2940_v0 = vmul.f32 %v8562_v26, %v12198_v29  ;;  %v12203_v37 = vld [vmem:[#allocation130_spill] sm:$0xff] }
 0xda8   : > { %v3096_v5 = vadd.f32 %v8724_v30, %v3016_v59  ;;  %v12201_v59 = vld [vmem:[#allocation274_spill] sm:$0xff]  ;;  %v2819_v32 = vadd.f32 %v12203_v37, %v2739_v57 }
 0xda9   : > { %3246 = vperm.xlu1 %5785, %v8784_v41   ;;  %v3097_v4 = vadd.f32 %v8726_v13, %v3017_v16  ;;  %v12210_v16 = vld [vmem:[#allocation131_spill] sm:$0xff] }
 0xdaa   : > { %v2820_v63 = vadd.f32 %v12210_v16, %v2740_v20 }
 0xdad   : > { %5786 = vset.pattern.permute.xlu1 %v5903_v17 }
 0xde6   : > { %v3150_v17 = vpop.permute.xlu1 %3149 }
 0xde7   : > { %v8807_v56 = vadd.f32 %v3150_v17, %v3093_v61  ;;  %v12189_v61 = vld [vmem:[#allocation126_spill] sm:$0xff] }
 0xde8   : > { %v2816_v12 = vadd.f32 %v12189_v61, %v2736_v47  ;;  %v4559_v47 = vmul.f32 %v8843_v46, %v12200_v33 }
 0xde9   : > { %12184 = vst [vmem:[#allocation162_spill] sm:$0xff] %v8807_v56  ;;  %v4565_v55 = vmul.f32 %v8807_v56, %v12031_v22 }
 0xdea   : > { %v3152_v31 = vpop.permute.xlu0 %3151 }
 0xdeb   : > { %v8832_v60 = vadd.f32 %v3152_v31, %v3094_v2  ;;  %v8834_v25 = vadd.f32 %v4565_v55, %v4557_v39  ;;  %v2817_v39 = vadd.f32 %v12194_v43, %v2737_v53  ;;  %v8868_v2 = vadd.f32 %v12195_v58, %v2816_v12  ;;  %v12209_v12 = vld [vmem:[#allocation276_spill] sm:$0xff] }
 0xdec   : > { %v2939_v55 = vmul.f32 %v8552_v1, %v12197_v3  ;;  %v3098_v31 = vadd.f32 %v12199_v28, %v3018_v11  ;;  %v12211_v11 = vld [vmem:[#allocation133_spill] sm:$0xff]  ;;  %v12215_v58 = vld [vmem:[#allocation144_spill] sm:$0xff]  ;;  %v12217_v28 = vld [vmem:[#allocation263_spill] sm:$0xff] }
 0xded   : > { %12186 = vst [vmem:[#allocation164_spill] sm:$0xff] %v8832_v60  ;;  %v4566_v44 = vmul.f32 %v8832_v60, %v7216_v6  ;;  %12196 = vst [vmem:[#allocation176_spill] sm:$0xff] %v8868_v2  ;;  %v8894_v43 = vadd.f32 %v12211_v11, %v2817_v39 }
 0xdee   : > { %v3154_v21 = vpop.permute.xlu1 %3153  ;;  %v3156_v18 = vpop.permute.xlu0 %3155 }
 0xdef   : > { %v8858_v17 = vadd.f32 %v3154_v21, %v3095_v54  ;;  %v8862_v27 = vadd.f32 %v3156_v18, %v3096_v5  ;;  %v8864_v30 = vadd.f32 %v4566_v44, %v4558_v49  ;;  %v12202_v54 = vld [vmem:[#allocation128_spill] sm:$0xff]  ;;  %v12204_v5 = vld [vmem:[#allocation141_spill] sm:$0xff]  ;;  %v12205_v18 = vld [vmem:[#allocation142_spill] sm:$0xff]  ;;  %12212 = vst [vmem:[#allocation179_spill] sm:$0xff] %v8894_v43 }
 0xdf0   : > { %v2818_v49 = vadd.f32 %v12202_v54, %v2738_v24  ;;  %v3019_v21 = vadd.f32 %v12204_v5, %v2939_v55  ;;  %v3020_v44 = vadd.f32 %v12205_v18, %v2940_v0  ;;  %v12213_v24 = vld [vmem:[#allocation134_spill] sm:$0xff]  ;;  %v12216_v55 = vld [vmem:[#allocation145_spill] sm:$0xff]  ;;  %v12226_v5 = vld [vmem:[#allocation152_spill] sm:$0xff] }
 0xdf1   : > { %12190 = vst [vmem:[#allocation173_spill] sm:$0xff] %v8858_v17  ;;  %12193 = vst [vmem:[#allocation174_spill] sm:$0xff] %v8862_v27  ;;  %v4567_v53 = vmul.f32 %v8858_v17, %v12201_v59  ;;  %v4568_v19 = vmul.f32 %v8862_v27, %v12209_v12  ;;  %v12227_v18 = vld [vmem:[#allocation268_spill] sm:$0xff] }
 0xdf2   : > { %v3158_v10 = vpop.permute.xlu1 %3157  ;;  %v3160_v34 = vpop.permute.xlu0 %3159  ;;  %v8897_v57 = vadd.f32 %v12213_v24, %v2818_v49  ;;  %v3099_v3 = vadd.f32 %v12215_v58, %v3019_v21  ;;  %v3100_v29 = vadd.f32 %v12216_v55, %v3020_v44  ;;  %v12225_v49 = vld [vmem:[#allocation271_spill] sm:$0xff]  ;;  %v4561_v44 = vmul.f32 %v8894_v43, %v12227_v18  ;;  %v12231_v24 = vld [vmem:[#allocation270_spill] sm:$0xff]  ;;  %v12232_v58 = vld [vmem:[#allocation273_spill] sm:$0xff] }
 0xdf3   : > { %v8884_v51 = vadd.f32 %v3158_v10, %v3097_v4  ;;  %v8886_v13 = vadd.f32 %v3160_v34, %v3098_v31  ;;  %v8888_v61 = vadd.f32 %v4567_v53, %v4559_v47  ;;  %v4560_v31 = vmul.f32 %v8868_v2, %v12217_v28  ;;  %v12218_v10 = vld [vmem:[#allocation135_spill] sm:$0xff]  ;;  %v12220_v47 = vld [vmem:[#allocation137_spill] sm:$0xff] }
 0xdf4   : > { %12214 = vst [vmem:[#allocation187_spill] sm:$0xff] %v8897_v57  ;;  %v8904_v34 = vadd.f32 %v12218_v10, %v2819_v32  ;;  %v8907_v20 = vadd.f32 %v12220_v47, %v2820_v63  ;;  %v12228_v32 = vld [vmem:[#allocation265_spill] sm:$0xff]  ;;  %v12233_v55 = vld [vmem:[#allocation267_spill] sm:$0xff] }
 0xdf5   : > { %12206 = vst [vmem:[#allocation175_spill] sm:$0xff] %v8884_v51  ;;  %12207 = vst [vmem:[#allocation178_spill] sm:$0xff] %v8886_v13  ;;  %v8913_v54 = vadd.f32 %v4568_v19, %v4560_v31  ;;  %v4569_v37 = vmul.f32 %v8884_v51, %v12225_v49  ;;  %v4570_v21 = vmul.f32 %v8886_v13, %v12226_v5 }
 0xdf6   : > { %12208 = vst [vmem:[#allocation177_spill] sm:$0xff] %v8888_v61  ;;  %v3162_v0 = vpop.permute.xlu1 %3161  ;;  %v3164_v4 = vpop.permute.xlu0 %3163  ;;  %12219 = vst [vmem:[#allocation188_spill] sm:$0xff] %v8904_v34  ;;  %v4562_v16 = vmul.f32 %v8897_v57, %v12228_v32  ;;  %v4563_v19 = vmul.f32 %v8904_v34, %v12231_v24  ;;  %v12245_v61 = vld [vmem:[#allocation87_spill] sm:$0xff] }
 0xdf7   : > { %12221 = vst [vmem:[#allocation189_spill] sm:$0xff] %v8907_v20  ;;  %v8909_v39 = vadd.f32 %v3162_v0, %v3099_v3  ;;  %v8911_v53 = vadd.f32 %v3164_v4, %v3100_v29  ;;  %12224 = vst [vmem:[#allocation192_spill] sm:$0xff] %v8913_v54  ;;  %v8923_v63 = vadd.f32 %v4569_v37, %v4561_v44  ;;  %v12234_v0 = vld [vmem:[#allocation154_spill] sm:$0xff] }
 0xdf8   : > { %v8925_v11 = vadd.f32 %v4570_v21, %v4562_v16  ;;  %v4564_v29 = vmul.f32 %v8907_v20, %v12233_v55 }
 0xdf9   : > { %12222 = vst [vmem:[#allocation190_spill] sm:$0xff] %v8909_v39  ;;  %12223 = vst [vmem:[#allocation191_spill] sm:$0xff] %v8911_v53  ;;  %v4571_v3 = vmul.f32 %v8909_v39, %v12232_v58  ;;  %v4572_v4 = vmul.f32 %v8911_v53, %v12234_v0  ;;  %v12249_v0 = vld [vmem:[#allocation90_spill] sm:$0xff] }
 0xdfa   : > { %12229 = vst [vmem:[#allocation193_spill] sm:$0xff] %v8923_v63  ;;  %12230 = vst [vmem:[#allocation194_spill] sm:$0xff] %v8925_v11  ;;  %v12241_v63 = vld [vmem:[#allocation76_spill] sm:$0xff] }
 0xdfb   : > { %v8935_v31 = vadd.f32 %v4571_v3, %v4563_v19  ;;  %v8937_v10 = vadd.f32 %v4572_v4, %v4564_v29 }
 0xdfd   : > { %12235 = vst [vmem:[#allocation209_spill] sm:$0xff] %v8935_v31  ;;  %12236 = vst [vmem:[#allocation212_spill] sm:$0xff] %v8937_v10 }
 0xe07   : > { %v8939_v47 = vpop.permute.xlu1 %3182  ;;  %v8941_v37 = vpop.permute.xlu0 %3186 }
 0xe0b   : > { %v8943_v21 = vpop.permute.xlu1 %3190  ;;  %v8945_v44 = vpop.permute.xlu0 %3198 }
 0xe0f   : > { %v8947_v16 = vpop.permute.xlu1 %3194  ;;  %v8949_v34 = vpop.permute.xlu0 %3206 }
 0xe13   : > { %v8951_v20 = vpop.permute.xlu1 %3202 }
 0xe14   : > { %v3223_v55 = vpop.permute.xlu0 %3222 }
 0xe15   : > { %v3253_v19 = vmul.f32 %v8527_v7, %v3223_v55 }
 0xe17   : > { %v8954_v3 = vpop.permute.xlu1 %3210  ;;  %3269 = vrot.lane.b32.xlu1 %v3253_v19, %s5889_s7 }
 0xe18   : > { %v3235_v29 = vpop.permute.xlu0 %3234 }
 0xe19   : > { %v3256_v32 = vmul.f32 %v8546_v9, %v3235_v29 }
 0xe1c   : > { %v3227_v4 = vpop.permute.xlu1 %3226  ;;  %v3243_v57 = vpop.permute.xlu0 %3242 }
 0xe1d   : > { %v3254_v24 = vmul.f32 %v8531_v14, %v3227_v4  ;;  %v3258_v2 = vmul.f32 %v8556_v23, %v3243_v57 }
 0xe1f   : > { %3271 = vrot.lane.b32.xlu0 %v3254_v24, %s5889_s7 }
 0xe20   : > { %v3231_v43 = vpop.permute.xlu1 %3230  ;;  %v3251_v46 = vpop.permute.xlu0 %3250 }
 0xe21   : > { %v3255_v18 = vmul.f32 %v8537_v35, %v3231_v43  ;;  %v3260_v29 = vmul.f32 %v8562_v26, %v3251_v46  ;;  %v8979_v46 = vld [vmem:[%s5963_s18 + $0x38] sm:$0xff] }
 0xe22   : > { %12237 = vst [vmem:[#allocation211_spill] sm:$0xff] %v8979_v46 }
 0xe23   : > { %3273 = vrot.lane.b32.xlu1 %v3255_v18, %s5889_s7  ;;  %3275 = vrot.lane.b32.xlu0 %v3256_v32, %s5889_s7 }
 0xe24   : > { %v3239_v55 = vpop.permute.xlu1 %3238 }
 0xe25   : > { %v3257_v19 = vmul.f32 %v8542_v42, %v3239_v55 }
 0xe27   : > { %3277 = vrot.lane.b32.xlu1 %v3257_v19, %s5889_s7  ;;  %3279 = vrot.lane.b32.xlu0 %v3258_v2, %s5889_s7  ;;  %v5904_v2 = vmov 31  }
 0xe28   : > { %v3247_v24 = vpop.permute.xlu1 %3246 }
 0xe29   : > { %v3259_v43 = vmul.f32 %v8552_v1, %v3247_v24 }
 0xe2b   : > { %3281 = vrot.lane.b32.xlu1 %v3259_v43, %s5889_s7  ;;  %3283 = vrot.lane.b32.xlu0 %v3260_v29, %s5889_s7 }
 0xe2f   : > { %3302 = vperm.xlu1 %5786, %v8751_v45   ;;  %3306 = vperm.xlu0 %5787, %v8755_v52  }
 0xe33   : > { %3310 = vperm.xlu1 %5786, %v8775_v40   ;;  %3318 = vperm.xlu0 %5787, %v8780_v50  }
 0xe37   : > { %3314 = vperm.xlu1 %5786, %v8766_v15   ;;  %3326 = vperm.xlu0 %5787, %v8784_v41  }
 0xe3b   : > { %3322 = vperm.xlu1 %5786, %v8771_v36   ;;  %5788 = vset.pattern.permute.xlu0 %v5904_v2 }
 0xe3f   : > { %3330 = vperm.xlu1 %5786, %v8979_v46  }
 0xe43   : > { %5789 = vset.pattern.permute.xlu1 %v5904_v2 }
 0xe89   : > { %v8984_v18 = vpop.permute.xlu1 %3269 }
 0xe91   : > { %v8982_v57 = vpop.permute.xlu0 %3271 }
 0xe95   : > { %v8986_v32 = vpop.permute.xlu1 %3273  ;;  %v8988_v4 = vpop.permute.xlu0 %3275 }
 0xe99   : > { %v8990_v55 = vpop.permute.xlu1 %3277  ;;  %v8992_v19 = vpop.permute.xlu0 %3279 }
 0xe9d   : > { %v8994_v24 = vpop.permute.xlu1 %3281  ;;  %v8996_v29 = vpop.permute.xlu0 %3283 }
 0xeae   : > { %v3303_v43 = vpop.permute.xlu1 %3302  ;;  %v3307_v28 = vpop.permute.xlu0 %3306 }
 0xeaf   : > { %v3333_v2 = vmul.f32 %v8527_v7, %v3303_v43  ;;  %v3334_v33 = vmul.f32 %v8531_v14, %v3307_v28 }
 0xeb1   : > { %3349 = vrot.lane.b32.xlu0 %v3333_v2, %s5867_s23  ;;  %3351 = vrot.lane.b32.xlu1 %v3334_v33, %s5867_s23 }
 0xeb2   : > { %v3311_v8 = vpop.permute.xlu1 %3310  ;;  %v3319_v48 = vpop.permute.xlu0 %3318 }
 0xeb3   : > { %v3335_v62 = vmul.f32 %v8537_v35, %v3311_v8  ;;  %v3337_v10 = vmul.f32 %v8542_v42, %v3319_v48 }
 0xeb5   : > { %3353 = vrot.lane.b32.xlu0 %v3335_v62, %s5867_s23 }
 0xeb6   : > { %v3315_v38 = vpop.permute.xlu1 %3314  ;;  %v3327_v11 = vpop.permute.xlu0 %3326 }
 0xeb7   : > { %v3336_v31 = vmul.f32 %v8546_v9, %v3315_v38  ;;  %v3339_v43 = vmul.f32 %v8552_v1, %v3327_v11 }
 0xeb9   : > { %3355 = vrot.lane.b32.xlu1 %v3336_v31, %s5867_s23  ;;  %3357 = vrot.lane.b32.xlu0 %v3337_v10, %s5867_s23 }
 0xeba   : > { %v3323_v28 = vpop.permute.xlu1 %3322 }
 0xebb   : > { %v3338_v33 = vmul.f32 %v8556_v23, %v3323_v28 }
 0xebd   : > { %3359 = vrot.lane.b32.xlu1 %v3338_v33, %s5867_s23  ;;  %3361 = vrot.lane.b32.xlu0 %v3339_v43, %s5867_s23 }
 0xebe   : > { %v3331_v62 = vpop.permute.xlu1 %3330 }
 0xebf   : > { %v3340_v8 = vmul.f32 %v8562_v26, %v3331_v62 }
 0xec1   : > { %3363 = vrot.lane.b32.xlu1 %v3340_v8, %s5867_s23  ;;  %3382 = vperm.xlu0 %5788, %v8751_v45  }
 0xec5   : > { %3386 = vperm.xlu1 %5789, %v8755_v52   ;;  %3394 = vperm.xlu0 %5788, %v8766_v15  }
 0xec9   : > { %3390 = vperm.xlu1 %5789, %v8775_v40   ;;  %3402 = vperm.xlu0 %5788, %v8771_v36  }
 0xecd   : > { %3398 = vperm.xlu1 %5789, %v8780_v50   ;;  %3410 = vperm.xlu0 %5788, %v8979_v46  }
 0xed1   : > { %3406 = vperm.xlu1 %5789, %v8784_v41  }
 0xf23   : > { %v3350_v38 = vpop.permute.xlu0 %3349  ;;  %v3352_v48 = vpop.permute.xlu1 %3351 }
 0xf27   : > { %v9022_v11 = vpop.permute.xlu0 %3353 }
 0xf2b   : > { %v9024_v31 = vpop.permute.xlu1 %3355  ;;  %v9026_v10 = vpop.permute.xlu0 %3357 }
 0xf2f   : > { %v9028_v2 = vpop.permute.xlu1 %3359  ;;  %v9030_v28 = vpop.permute.xlu0 %3361 }
 0xf33   : > { %v9032_v43 = vpop.permute.xlu1 %3363 }
 0xf40   : > { %v3383_v33 = vpop.permute.xlu0 %3382 }
 0xf41   : > { %v3413_v62 = vmul.f32 %v8527_v7, %v3383_v33 }
 0xf43   : > { %3429 = vrot.lane.b32.xlu1 %v3413_v62, %s5890_s8 }
 0xf44   : > { %v3387_v8 = vpop.permute.xlu1 %3386  ;;  %v3395_v46 = vpop.permute.xlu0 %3394 }
 0xf45   : > { %v3414_v36 = vmul.f32 %v8531_v14, %v3387_v8  ;;  %v3416_v50 = vmul.f32 %v8546_v9, %v3395_v46 }
 0xf47   : > { %3431 = vrot.lane.b32.xlu0 %v3414_v36, %s5890_s8 }
 0xf48   : > { %v3391_v41 = vpop.permute.xlu1 %3390  ;;  %v3403_v15 = vpop.permute.xlu0 %3402 }
 0xf49   : > { %v3415_v40 = vmul.f32 %v8537_v35, %v3391_v41  ;;  %v3418_v33 = vmul.f32 %v8556_v23, %v3403_v15  ;;  %v12240_v15 = vld [vmem:[#allocation255_spill] sm:$0xff] }
 0xf4b   : > { %3433 = vrot.lane.b32.xlu1 %v3415_v40, %s5890_s8  ;;  %3435 = vrot.lane.b32.xlu0 %v3416_v50, %s5890_s8  ;;  %v12238_v40 = vld [vmem:[#allocation254_spill] sm:$0xff]  ;;  %v12239_v50 = vld [vmem:[#allocation77_spill] sm:$0xff] }
 0xf4c   : > { %v3399_v52 = vpop.permute.xlu1 %3398  ;;  %v3411_v45 = vpop.permute.xlu0 %3410  ;;  %v3469_v41 = vmul.f32 %v12239_v50, %v12238_v40  ;;  %v12248_v40 = vld [vmem:[#allocation260_spill] sm:$0xff] }
 0xf4d   : > { %v3417_v62 = vmul.f32 %v8542_v42, %v3399_v52  ;;  %v3420_v8 = vmul.f32 %v8562_v26, %v3411_v45  ;;  %v3470_v52 = vmul.f32 %v12241_v63, %v12240_v15  ;;  %v12244_v45 = vld [vmem:[#allocation258_spill] sm:$0xff]  ;;  %v3474_v63 = vmul.f32 %v12249_v0, %v12248_v40  ;;  %v12253_v15 = vld [vmem:[#allocation92_spill] sm:$0xff] }
 0xf4e   : > { %v3213_v0 = vmul.f32 %v8527_v7, %v8939_v47  ;;  %v3216_v7 = vmul.f32 %v8546_v9, %v8947_v16  ;;  %v3217_v16 = vmul.f32 %v8542_v42, %v8945_v44 }
 0xf4f   : > { %3437 = vrot.lane.b32.xlu1 %v3417_v62, %s5890_s8  ;;  %3439 = vrot.lane.b32.xlu0 %v3418_v33, %s5890_s8  ;;  %v12242_v33 = vld [vmem:[#allocation256_spill] sm:$0xff]  ;;  %v12243_v62 = vld [vmem:[#allocation86_spill] sm:$0xff] }
 0xf50   : > { %v3407_v36 = vpop.permute.xlu1 %3406  ;;  %v3471_v54 = vmul.f32 %v12243_v62, %v12242_v33  ;;  %v12252_v33 = vld [vmem:[#allocation262_spill] sm:$0xff] }
 0xf51   : > { %v3419_v46 = vmul.f32 %v8552_v1, %v3407_v36  ;;  %v3472_v36 = vmul.f32 %v12245_v61, %v12244_v45  ;;  %v3476_v61 = vmul.f32 %v12253_v15, %v12252_v33 }
 0xf53   : > { %3441 = vrot.lane.b32.xlu1 %v3419_v46, %s5890_s8  ;;  %3443 = vrot.lane.b32.xlu0 %v3420_v8, %s5890_s8  ;;  %v12246_v8 = vld [vmem:[#allocation257_spill] sm:$0xff]  ;;  %v12247_v46 = vld [vmem:[#allocation88_spill] sm:$0xff] }
 0xf54   : > { %v3473_v50 = vmul.f32 %v12247_v46, %v12246_v8  ;;  %v3214_v46 = vmul.f32 %v8531_v14, %v8941_v37 }
 0xf57   : > { %3485 = vrot.lane.b32.xlu1 %v3469_v41, %s5870_s26  ;;  %3487 = vrot.lane.b32.xlu0 %v3470_v52, %s5870_s26  ;;  %v12250_v41 = vld [vmem:[#allocation259_spill] sm:$0xff]  ;;  %v12251_v52 = vld [vmem:[#allocation89_spill] sm:$0xff] }
 0xf58   : > { %v3475_v62 = vmul.f32 %v12251_v52, %v12250_v41  ;;  %v3294_v52 = vadd.f32 %v8982_v57, %v3214_v46 }
 0xf5a   : > { %v3374_v47 = vadd.f32 %v3352_v48, %v3294_v52  ;;  %v3218_v48 = vmul.f32 %v8556_v23, %v8951_v20  ;;  %v3297_v52 = vadd.f32 %v8990_v55, %v3217_v16  ;;  %v3219_v55 = vmul.f32 %v8552_v1, %v8949_v34 }
 0xf5b   : > { %3489 = vrot.lane.b32.xlu1 %v3471_v54, %s5870_s26  ;;  %3491 = vrot.lane.b32.xlu0 %v3472_v36, %s5870_s26  ;;  %v5905_v54 = vmov 32   ;;  %v3293_v36 = vadd.f32 %v8984_v18, %v3213_v0 }
 0xf5c   : > { %5790 = vset.pattern.permute.xlu1 %v5905_v54  ;;  %5791 = vset.pattern.permute.xlu0 %v5905_v54  ;;  %v3215_v54 = vmul.f32 %v8537_v35, %v8943_v21  ;;  %v12258_v21 = vld [vmem:[#allocation165_spill] sm:$0xff]  ;;  %v3298_v23 = vadd.f32 %v8992_v19, %v3218_v48  ;;  %v3377_v19 = vadd.f32 %v9026_v10, %v3297_v52  ;;  %v12267_v48 = vld [vmem:[#allocation155_spill] sm:$0xff] }
 0xf5d   : > { %v3518_v9 = vmul.f32 %v8832_v60, %v12258_v21 }
 0xf5e   : > { %v3295_v37 = vadd.f32 %v8986_v32, %v3215_v54 }
 0xf5f   : > { %3493 = vrot.lane.b32.xlu1 %v3473_v50, %s5870_s26  ;;  %3495 = vrot.lane.b32.xlu0 %v3474_v63, %s5870_s26  ;;  %v3373_v50 = vadd.f32 %v3350_v38, %v3293_v36  ;;  %v3296_v38 = vadd.f32 %v8988_v4, %v3216_v7 }
 0xf60   : > { %v3375_v32 = vadd.f32 %v9022_v11, %v3295_v37 }
 0xf61   : > { %v3376_v46 = vadd.f32 %v9024_v31, %v3296_v38  ;;  %v12262_v31 = vld [vmem:[#allocation153_spill] sm:$0xff]  ;;  %v3299_v38 = vadd.f32 %v8994_v24, %v3219_v55 }
 0xf62   : > { %v3520_v7 = vmul.f32 %v8862_v27, %v12262_v31 }
 0xf63   : > { %3497 = vrot.lane.b32.xlu1 %v3475_v62, %s5870_s26  ;;  %3499 = vrot.lane.b32.xlu0 %v3476_v61, %s5870_s26  ;;  %v12255_v62 = vld [vmem:[#allocation275_spill] sm:$0xff]  ;;  %v3379_v24 = vadd.f32 %v9030_v28, %v3299_v38 }
 0xf64   : > { %v3517_v61 = vmul.f32 %v8807_v56, %v12255_v62 }
 0xfb5   : > { %v3430_v63 = vpop.permute.xlu1 %3429 }
 0xfb6   : > { %v9080_v15 = vadd.f32 %v3430_v63, %v3373_v50  ;;  %v12259_v63 = vld [vmem:[#allocation166_spill] sm:$0xff] }
 0xfb8   : > { %12254 = vst [vmem:[#allocation214_spill] sm:$0xff] %v9080_v15  ;;  %v3525_v18 = vmul.f32 %v9080_v15, %v12031_v22  ;;  %v4581_v14 = vmul.f32 %v9080_v15, %v12255_v62 }
 0xfb9   : > { %v3432_v57 = vpop.permute.xlu0 %3431 }
 0xfba   : > { %v9094_v0 = vadd.f32 %v3432_v57, %v3374_v47  ;;  %v3533_v36 = vsub.f32 %v3517_v61, %v3525_v18  ;;  %v9097_v35 = vadd.f32 %v4581_v14, %v8834_v25  ;;  %v3519_v25 = vmul.f32 %v8858_v17, %v12259_v63 }
 0xfbb   : > { %v3220_v47 = vmul.f32 %v8562_v26, %v8954_v3  ;;  %v3378_v14 = vadd.f32 %v9028_v2, %v3298_v23  ;;  %v12266_v2 = vld [vmem:[#allocation167_spill] sm:$0xff] }
 0xfbc   : > { %12256 = vst [vmem:[#allocation213_spill] sm:$0xff] %v9094_v0  ;;  %12257 = vst [vmem:[#allocation215_spill] sm:$0xff] %v9097_v35  ;;  %v3526_v4 = vmul.f32 %v9094_v0, %v7216_v6  ;;  %v3541_v50 = vmul.f32 0.70710677, %v3533_v36  ;;  %v4582_v42 = vmul.f32 %v9094_v0, %v12258_v21  ;;  %v3521_v16 = vmul.f32 %v8884_v51, %v12266_v2 }
 0xfbd   : > { %v3434_v61 = vpop.permute.xlu1 %3433  ;;  %v3436_v54 = vpop.permute.xlu0 %3435  ;;  %v3300_v1 = vadd.f32 %v8996_v29, %v3220_v47 }
 0xfbe   : > { %v9115_v20 = vadd.f32 %v3434_v61, %v3375_v32  ;;  %v9117_v44 = vadd.f32 %v3436_v54, %v3376_v46  ;;  %3557 = vrot.lane.b32.xlu1 %v3541_v50, %s5874_s28  ;;  %v3534_v11 = vsub.f32 %v3518_v9, %v3526_v4  ;;  %v9127_v18 = vadd.f32 %v4582_v42, %v8864_v30 }
 0xfbf   : > { %v3522_v32 = vmul.f32 %v8886_v13, %v12267_v48  ;;  %v3380_v29 = vadd.f32 %v9032_v43, %v3300_v1  ;;  %v12271_v43 = vld [vmem:[#allocation150_spill] sm:$0xff] }
 0xfc0   : > { %12260 = vst [vmem:[#allocation216_spill] sm:$0xff] %v9115_v20  ;;  %12261 = vst [vmem:[#allocation217_spill] sm:$0xff] %v9117_v44  ;;  %v3527_v37 = vmul.f32 %v9115_v20, %v12201_v59  ;;  %v3528_v57 = vmul.f32 %v9117_v44, %v12209_v12  ;;  %v3542_v26 = vmul.f32 0.70710677, %v3534_v11  ;;  %v3524_v55 = vmul.f32 %v8911_v53, %v12271_v43 }
 0xfc1   : > { %12263 = vst [vmem:[#allocation223_spill] sm:$0xff] %v9127_v18  ;;  %v3438_v34 = vpop.permute.xlu1 %3437  ;;  %v3440_v36 = vpop.permute.xlu0 %3439 }
 0xfc2   : > { %v9137_v3 = vadd.f32 %v3438_v34, %v3377_v19  ;;  %v9139_v30 = vadd.f32 %v3440_v36, %v3378_v14  ;;  %v3535_v10 = vsub.f32 %v3519_v25, %v3527_v37  ;;  %v3536_v9 = vsub.f32 %v3520_v7, %v3528_v57  ;;  %3559 = vrot.lane.b32.xlu0 %v3542_v26, %s5874_s28  ;;  %v12270_v7 = vld [vmem:[#allocation168_spill] sm:$0xff]  ;;  %v12272_v19 = vld [vmem:[#allocation154_spill] sm:$0xff] }
 0xfc3   : > { %v3523_v28 = vmul.f32 %v8909_v39, %v12270_v7  ;;  %v4583_v37 = vmul.f32 %v9115_v20, %v12259_v63 }
 0xfc4   : > { %12264 = vst [vmem:[#allocation224_spill] sm:$0xff] %v9137_v3  ;;  %12265 = vst [vmem:[#allocation225_spill] sm:$0xff] %v9139_v30  ;;  %v3529_v46 = vmul.f32 %v9137_v3, %v12225_v49  ;;  %v3530_v4 = vmul.f32 %v9139_v30, %v12226_v5  ;;  %v3543_v52 = vmul.f32 0.70710677, %v3535_v10  ;;  %v3544_v61 = vmul.f32 0.70710677, %v3536_v9 }
 0xfc5   : > { %v3442_v50 = vpop.permute.xlu1 %3441  ;;  %v3444_v25 = vpop.permute.xlu0 %3443  ;;  %v12273_v10 = vld [vmem:[#allocation177_spill] sm:$0xff] }
 0xfc6   : > { %v9152_v54 = vadd.f32 %v3442_v50, %v3379_v24  ;;  %v9154_v42 = vadd.f32 %v3444_v25, %v3380_v29  ;;  %v3537_v23 = vsub.f32 %v3521_v16, %v3529_v46  ;;  %v3538_v11 = vsub.f32 %v3522_v32, %v3530_v4  ;;  %3561 = vrot.lane.b32.xlu1 %v3543_v52, %s5874_s28  ;;  %v12275_v29 = vld [vmem:[#allocation192_spill] sm:$0xff]  ;;  %v12277_v4 = vld [vmem:[#allocation193_spill] sm:$0xff]  ;;  %v12279_v25 = vld [vmem:[#allocation194_spill] sm:$0xff] }
 0xfc7   : > { %3563 = vrot.lane.b32.xlu0 %v3544_v61, %s5874_s28  ;;  %v9171_v9 = vadd.f32 %v4583_v37, %v12273_v10  ;;  %v4584_v16 = vmul.f32 %v9117_v44, %v12262_v31  ;;  %v4585_v32 = vmul.f32 %v9137_v3, %v12266_v2  ;;  %v4586_v24 = vmul.f32 %v9139_v30, %v12267_v48 }
 0xfc8   : > { %12268 = vst [vmem:[#allocation227_spill] sm:$0xff] %v9152_v54  ;;  %12269 = vst [vmem:[#allocation226_spill] sm:$0xff] %v9154_v42  ;;  %v3531_v47 = vmul.f32 %v9152_v54, %v12232_v58  ;;  %v3532_v14 = vmul.f32 %v9154_v42, %v12272_v19  ;;  %v3545_v57 = vmul.f32 0.70710677, %v3537_v23  ;;  %v3546_v38 = vmul.f32 0.70710677, %v3538_v11 }
 0xfc9   : > { %12274 = vst [vmem:[#allocation229_spill] sm:$0xff] %v9171_v9  ;;  %v9180_v46 = vadd.f32 %v4584_v16, %v12275_v29  ;;  %v9185_v50 = vadd.f32 %v4585_v32, %v12277_v4  ;;  %v9188_v52 = vadd.f32 %v4586_v24, %v12279_v25  ;;  %v4587_v61 = vmul.f32 %v9152_v54, %v12270_v7  ;;  %v12281_v11 = vld [vmem:[#allocation254_spill] sm:$0xff]  ;;  %v12292_v24 = vld [vmem:[#allocation52_spill] sm:$0xff]  ;;  %v12293_v4 = vld [vmem:[#allocation79_spill] sm:$0xff] }
 0xfca   : > { %v3539_v1 = vsub.f32 %v3523_v28, %v3531_v47  ;;  %v3540_v34 = vsub.f32 %v3524_v55, %v3532_v14  ;;  %3565 = vrot.lane.b32.xlu1 %v3545_v57, %s5874_s28  ;;  %v4588_v23 = vmul.f32 %v9154_v42, %v12271_v43  ;;  %v12282_v28 = vld [vmem:[#allocation54_spill] sm:$0xff]  ;;  %v12283_v47 = vld [vmem:[#allocation255_spill] sm:$0xff]  ;;  %v12285_v57 = vld [vmem:[#allocation209_spill] sm:$0xff]  ;;  %v3609_v29 = vmul.f32 %v12292_v24, %v12246_v8 }
 0xfcb   : > { %3567 = vrot.lane.b32.xlu0 %v3546_v38, %s5874_s28  ;;  %12276 = vst [vmem:[#allocation228_spill] sm:$0xff] %v9180_v46  ;;  %12278 = vst [vmem:[#allocation230_spill] sm:$0xff] %v9185_v50  ;;  %v3605_v55 = vmul.f32 %v12282_v28, %v12281_v11  ;;  %v12284_v14 = vld [vmem:[#allocation43_spill] sm:$0xff]  ;;  %v9199_v38 = vadd.f32 %v4587_v61, %v12285_v57  ;;  %v12291_v16 = vld [vmem:[#allocation2_spill] sm:$0xff]  ;;  %v3610_v25 = vmul.f32 %v12293_v4, %v12248_v40 }
 0xfcc   : > { %v3547_v36 = vmul.f32 0.70710677, %v3539_v1  ;;  %v3548_v26 = vmul.f32 0.70710677, %v3540_v34  ;;  %12280 = vst [vmem:[#allocation236_spill] sm:$0xff] %v9188_v52  ;;  %v3606_v37 = vmul.f32 %v12284_v14, %v12283_v47  ;;  %v12287_v1 = vld [vmem:[#allocation212_spill] sm:$0xff]  ;;  %v3608_v32 = vmul.f32 %v12291_v16, %v12244_v45 }
 0xfcd   : > { %12286 = vst [vmem:[#allocation237_spill] sm:$0xff] %v9199_v38  ;;  %v9202_v34 = vadd.f32 %v4588_v23, %v12287_v1  ;;  %v12294_v61 = vld [vmem:[#allocation261_spill] sm:$0xff]  ;;  %v12295_v28 = vld [vmem:[#allocation264_spill] sm:$0xff]  ;;  %v12297_v57 = vld [vmem:[#allocation163_spill] sm:$0xff] }
 0xfce   : > { %3569 = vrot.lane.b32.xlu1 %v3547_v36, %s5874_s28  ;;  %v12289_v36 = vld [vmem:[#allocation256_spill] sm:$0xff]  ;;  %v3653_v23 = vmul.f32 %v9080_v15, %v12294_v61  ;;  %v3662_v1 = vmul.f32 %v12297_v57, %v12258_v21  ;;  %v12299_v16 = vld [vmem:[#allocation263_spill] sm:$0xff]  ;;  %v12300_v24 = vld [vmem:[#allocation57_spill] sm:$0xff] }
 0xfcf   : > { %3571 = vrot.lane.b32.xlu0 %v3548_v26, %s5874_s28  ;;  %12288 = vst [vmem:[#allocation238_spill] sm:$0xff] %v9202_v34  ;;  %v12290_v26 = vld [vmem:[#allocation45_spill] sm:$0xff]  ;;  %v12296_v14 = vld [vmem:[#allocation160_spill] sm:$0xff]  ;;  %v3611_v4 = vmul.f32 %v12300_v24, %v12250_v41  ;;  %v9491_v15 = vld [vmem:[%s6034_s22 + $0x68] sm:$0xff] }
 0xfd0   : > { %v3607_v10 = vmul.f32 %v12290_v26, %v12289_v36  ;;  %v12298_v26 = vld [vmem:[#allocation266_spill] sm:$0xff]  ;;  %v12301_v34 = vld [vmem:[#allocation56_spill] sm:$0xff] }
 0xfd1   : > { %v3612_v38 = vmul.f32 %v12301_v34, %v12252_v33  ;;  %v12302_v46 = vld [vmem:[#allocation172_spill] sm:$0xff] }
 0xfd2   : > { %3621 = vrot.lane.b32.xlu1 %v3605_v55, %s5870_s26  ;;  %v3654_v55 = vmul.f32 %v9094_v0, %v12295_v28  ;;  %v3663_v9 = vmul.f32 %v12302_v46, %v12259_v63  ;;  %v12304_v21 = vld [vmem:[#allocation268_spill] sm:$0xff]  ;;  %v12307_v63 = vld [vmem:[#allocation187_spill] sm:$0xff] }
 0xfd3   : > { %3623 = vrot.lane.b32.xlu0 %v3606_v37, %s5870_s26  ;;  %v3661_v37 = vmul.f32 %v12296_v14, %v12255_v62  ;;  %v3657_v24 = vmul.f32 %v9137_v3, %v12304_v21  ;;  %v12305_v62 = vld [vmem:[#allocation265_spill] sm:$0xff] }
 0xfd4   : > { %v3670_v50 = vsub.f32 %v3654_v55, %v3662_v1  ;;  %v3658_v34 = vmul.f32 %v9139_v30, %v12305_v62  ;;  %v12310_v30 = vld [vmem:[#allocation188_spill] sm:$0xff]  ;;  %v12311_v3 = vld [vmem:[#allocation189_spill] sm:$0xff] }
 0xfd5   : > { %v3669_v52 = vsub.f32 %v3653_v23, %v3661_v37  ;;  %v12306_v37 = vld [vmem:[#allocation179_spill] sm:$0xff] }
 0xfd6   : > { %3625 = vrot.lane.b32.xlu1 %v3607_v10, %s5870_s26  ;;  %v3655_v10 = vmul.f32 %v9115_v20, %v12298_v26  ;;  %v3678_v55 = vmul.f32 0.70710677, %v3670_v50  ;;  %v3665_v1 = vmul.f32 %v12306_v37, %v12266_v2  ;;  %v3667_v2 = vmul.f32 %v12310_v30, %v12270_v7  ;;  %v9481_v20 = vld [vmem:[%s6034_s22 + $0x48] sm:$0xff] }
 0xfd7   : > { %3627 = vrot.lane.b32.xlu0 %v3608_v32, %s5870_s26  ;;  %v3656_v32 = vmul.f32 %v9117_v44, %v12299_v16  ;;  %v3677_v23 = vmul.f32 0.70710677, %v3669_v52  ;;  %v9477_v44 = vld [vmem:[%s6034_s22 + $0x58] sm:$0xff] }
 0xfd8   : > { %v3671_v18 = vsub.f32 %v3655_v10, %v3663_v9  ;;  %v12308_v10 = vld [vmem:[#allocation270_spill] sm:$0xff]  ;;  %v3673_v52 = vsub.f32 %v3657_v24, %v3665_v1 }
 0xfda   : > { %3629 = vrot.lane.b32.xlu1 %v3609_v29, %s5870_s26  ;;  %v12303_v29 = vld [vmem:[#allocation176_spill] sm:$0xff]  ;;  %v3679_v9 = vmul.f32 0.70710677, %v3671_v18  ;;  %v3681_v18 = vmul.f32 0.70710677, %v3673_v52 }
 0xfdb   : > { %3631 = vrot.lane.b32.xlu0 %v3610_v25, %s5870_s26  ;;  %v3664_v25 = vmul.f32 %v12303_v29, %v12262_v31  ;;  %v3666_v31 = vmul.f32 %v12307_v63, %v12267_v48  ;;  %v3668_v48 = vmul.f32 %v12311_v3, %v12271_v43  ;;  %v12316_v52 = vld [vmem:[#allocation60_spill] sm:$0xff] }
 0xfdd   : > { %v3672_v35 = vsub.f32 %v3656_v32, %v3664_v25  ;;  %v3659_v32 = vmul.f32 %v9152_v54, %v12308_v10  ;;  %v3674_v50 = vsub.f32 %v3658_v34, %v3666_v31  ;;  %v12312_v34 = vld [vmem:[#allocation51_spill] sm:$0xff] }
 0xfde   : > { %3633 = vrot.lane.b32.xlu1 %v3611_v4, %s5870_s26  ;;  %v12309_v4 = vld [vmem:[#allocation267_spill] sm:$0xff]  ;;  %v3741_v1 = vmul.f32 %v12312_v34, %v12281_v11  ;;  %v3799_v34 = vmul.f32 %v8858_v17, %v12298_v26 }
 0xfdf   : > { %3635 = vrot.lane.b32.xlu0 %v3612_v38, %s5870_s26  ;;  %v3680_v38 = vmul.f32 0.70710677, %v3672_v35  ;;  %v3660_v25 = vmul.f32 %v9154_v42, %v12309_v4  ;;  %v3682_v35 = vmul.f32 0.70710677, %v3674_v50  ;;  %v3745_v50 = vmul.f32 %v12316_v52, %v12246_v8  ;;  %v9467_v42 = vld [vmem:[%s6034_s22 + $0x38] sm:$0xff]  ;;  %v9471_v54 = vld [vmem:[%s6034_s22 + $0x28] sm:$0xff] }
 0xfe0   : > { %v3791_v52 = vmul.f32 %v12302_v46, %v12201_v59 }
 0xfe2   : > { %3693 = vrot.lane.b32.xlu1 %v3677_v23, %s5874_s28  ;;  %v3675_v23 = vsub.f32 %v3659_v32, %v3667_v2  ;;  %v12314_v2 = vld [vmem:[#allocation111_spill] sm:$0xff]  ;;  %v12315_v32 = vld [vmem:[#allocation82_spill] sm:$0xff] }
 0xfe3   : > { %3695 = vrot.lane.b32.xlu0 %v3678_v55, %s5874_s28  ;;  %v3676_v55 = vsub.f32 %v3660_v25, %v3668_v48  ;;  %v3743_v48 = vmul.f32 %v12314_v2, %v12289_v36  ;;  %v3744_v25 = vmul.f32 %v12315_v32, %v12244_v45  ;;  %v12319_v2 = vld [vmem:[#allocation104_spill] sm:$0xff] }
 0xfe4   : > { %v3683_v24 = vmul.f32 0.70710677, %v3675_v23  ;;  %v3797_v23 = vmul.f32 %v8807_v56, %v12294_v61 }
 0xfe5   : > { %v3684_v31 = vmul.f32 0.70710677, %v3676_v55  ;;  %v3798_v55 = vmul.f32 %v8832_v60, %v12295_v28 }
 0xfe6   : > { %3697 = vrot.lane.b32.xlu1 %v3679_v9, %s5874_s28  ;;  %v12313_v9 = vld [vmem:[#allocation64_spill] sm:$0xff] }
 0xfe7   : > { %3699 = vrot.lane.b32.xlu0 %v3680_v38, %s5874_s28  ;;  %v3742_v38 = vmul.f32 %v12313_v9, %v12283_v47  ;;  %v12318_v9 = vld [vmem:[#allocation105_spill] sm:$0xff] }
 0xfea   : > { %3701 = vrot.lane.b32.xlu1 %v3681_v18, %s5874_s28  ;;  %v12317_v18 = vld [vmem:[#allocation83_spill] sm:$0xff] }
 0xfeb   : > { %3703 = vrot.lane.b32.xlu0 %v3682_v35, %s5874_s28  ;;  %v3746_v35 = vmul.f32 %v12317_v18, %v12248_v40  ;;  %v3807_v18 = vsub.f32 %v3791_v52, %v3799_v34  ;;  %v3795_v52 = vmul.f32 %v12310_v30, %v12232_v58  ;;  %v5850_v58 = vld [vmem:[%s5963_s18 + $0x18] sm:$0xff] }
 0xfed   : > { %v3815_v34 = vmul.f32 0.70710677, %v3807_v18 }
 0xfee   : > { %3705 = vrot.lane.b32.xlu1 %v3683_v24, %s5874_s28  ;;  %v3789_v24 = vmul.f32 %v12296_v14, %v12031_v22 }
 0xfef   : > { %3707 = vrot.lane.b32.xlu0 %v3684_v31, %s5874_s28  ;;  %v3790_v31 = vmul.f32 %v12297_v57, %v7216_v6 }
 0xff0   : > { %v3805_v32 = vsub.f32 %v3789_v24, %v3797_v23  ;;  %v3793_v24 = vmul.f32 %v12306_v37, %v12225_v49 }
 0xff2   : > { %3757 = vrot.lane.b32.xlu1 %v3741_v1, %s5870_s26  ;;  %v3800_v1 = vmul.f32 %v8862_v27, %v12299_v16  ;;  %v3813_v23 = vmul.f32 0.70710677, %v3805_v32 }
 0xff3   : > { %3759 = vrot.lane.b32.xlu0 %v3742_v38, %s5870_s26  ;;  %v3747_v38 = vmul.f32 %v12318_v9, %v12250_v41  ;;  %v3801_v9 = vmul.f32 %v8884_v51, %v12304_v21 }
 0xff5   : > { %v3809_v32 = vsub.f32 %v3793_v24, %v3801_v9  ;;  %v12320_v24 = vld [vmem:[#allocation146_spill] sm:$0xff] }
 0xff6   : > { %3761 = vrot.lane.b32.xlu1 %v3743_v48, %s5870_s26  ;;  %v3748_v48 = vmul.f32 %v12319_v2, %v12252_v33  ;;  %v3802_v2 = vmul.f32 %v8886_v13, %v12305_v62 }
 0xff7   : > { %3763 = vrot.lane.b32.xlu0 %v3744_v25, %s5870_s26  ;;  %v3806_v25 = vsub.f32 %v3790_v31, %v3798_v55  ;;  %v3794_v31 = vmul.f32 %v12307_v63, %v12226_v5  ;;  %v3817_v18 = vmul.f32 0.70710677, %v3809_v32  ;;  %v9334_v32 = vpop.permute.xlu1 %3485  ;;  %v5852_v5 = vld [vmem:[%s5963_s18 + $0x28] sm:$0xff] }
 0xff8   : > { %12326 = vst [vmem:[#allocation239_spill] sm:$0xff] %v9334_v32 }
 0xff9   : > { %v3814_v55 = vmul.f32 0.70710677, %v3806_v25  ;;  %v3810_v25 = vsub.f32 %v3794_v31, %v3802_v2  ;;  %v12321_v31 = vld [vmem:[#allocation147_spill] sm:$0xff] }
 0xffa   : > { %3765 = vrot.lane.b32.xlu1 %v3745_v50, %s5870_s26  ;;  %v3792_v50 = vmul.f32 %v12303_v29, %v12209_v12 }
 0xffb   : > { %3767 = vrot.lane.b32.xlu0 %v3746_v35, %s5870_s26 }
 0xffc   : > { %v3808_v35 = vsub.f32 %v3792_v50, %v3800_v1  ;;  %v3796_v50 = vmul.f32 %v12311_v3, %v12272_v19  ;;  %v5849_v19 = vld [vmem:[%s5963_s18 + $0x20] sm:$0xff] }
 0xffe   : > { %3769 = vrot.lane.b32.xlu1 %v3747_v38, %s5870_s26  ;;  %v3816_v1 = vmul.f32 0.70710677, %v3808_v35  ;;  %v3803_v38 = vmul.f32 %v8909_v39, %v12308_v10  ;;  %v3818_v35 = vmul.f32 0.70710677, %v3810_v25  ;;  %v9336_v25 = vpop.permute.xlu0 %3487 }
 0xfff   : > { %3771 = vrot.lane.b32.xlu0 %v3748_v48, %s5870_s26  ;;  %v3804_v48 = vmul.f32 %v8911_v53, %v12309_v4  ;;  %12327 = vst [vmem:[#allocation240_spill] sm:$0xff] %v9336_v25  ;;  %v9462_v25 = vld [vmem:[%s6034_s22 + $0x18] sm:$0xff] }
0x1002   : > { %3829 = vrot.lane.b32.xlu1 %v3813_v23, %s5874_s28  ;;  %v3811_v23 = vsub.f32 %v3795_v52, %v3803_v38  ;;  %v12324_v38 = vld [vmem:[#allocation148_spill] sm:$0xff] }
0x1003   : > { %3831 = vrot.lane.b32.xlu0 %v3814_v55, %s5874_s28  ;;  %v3812_v55 = vsub.f32 %v3796_v50, %v3804_v48  ;;  %v12325_v48 = vld [vmem:[#allocation161_spill] sm:$0xff]  ;;  %v12328_v52 = vld [vmem:[#allocation156_spill] sm:$0xff]  ;;  %v5906_v50 = vmov 33  }
0x1004   : > { %v3819_v9 = vmul.f32 0.70710677, %v3811_v23  ;;  %v9344_v23 = vpop.permute.xlu0 %3491 }
0x1005   : > { %v3820_v2 = vmul.f32 0.70710677, %v3812_v55  ;;  %12331 = vst [vmem:[#allocation242_spill] sm:$0xff] %v9344_v23 }
0x1006   : > { %3833 = vrot.lane.b32.xlu1 %v3815_v34, %s5874_s28  ;;  %v12322_v34 = vld [vmem:[#allocation159_spill] sm:$0xff] }
0x1007   : > { %3835 = vrot.lane.b32.xlu0 %v3816_v1, %s5874_s28  ;;  %v12323_v1 = vld [vmem:[#allocation158_spill] sm:$0xff] }
0x100a   : > { %3837 = vrot.lane.b32.xlu1 %v3817_v18, %s5874_s28  ;;  %v12329_v18 = vld [vmem:[#allocation211_spill] sm:$0xff] }
0x100b   : > { %3839 = vrot.lane.b32.xlu0 %v3818_v35, %s5874_s28  ;;  %v9342_v35 = vpop.permute.xlu1 %3489 }
0x100c   : > { %12330 = vst [vmem:[#allocation241_spill] sm:$0xff] %v9342_v35 }
0x100e   : > { %3841 = vrot.lane.b32.xlu1 %v3819_v9, %s5874_s28  ;;  %v9350_v9 = vpop.permute.xlu0 %3495 }
0x100f   : > { %3843 = vrot.lane.b32.xlu0 %v3820_v2, %s5874_s28  ;;  %v9348_v55 = vpop.permute.xlu1 %3493  ;;  %12333 = vst [vmem:[#allocation118_spill] sm:$0xff] %v9350_v9 }
0x1010   : > { %12332 = vst [vmem:[#allocation243_spill] sm:$0xff] %v9348_v55 }
0x1012   : > { %3870 = vperm.xlu1 %5790, %v12320_v24  }
0x1013   : > { %3874 = vperm.xlu0 %5791, %v12321_v31   ;;  %v9355_v2 = vpop.permute.xlu1 %3497 }
0x1014   : > { %12334 = vst [vmem:[#allocation119_spill] sm:$0xff] %v9355_v2 }
0x1016   : > { %3878 = vperm.xlu1 %5790, %v12322_v34  }
0x1017   : > { %3886 = vperm.xlu0 %5791, %v12323_v1  }
0x101a   : > { %3882 = vperm.xlu1 %5790, %v12324_v38  }
0x101b   : > { %3894 = vperm.xlu0 %5791, %v12325_v48  }
0x101e   : > { %3890 = vperm.xlu1 %5790, %v12328_v52  }
0x101f   : > { %5792 = vset.pattern.permute.xlu0 %v5906_v50 }
0x1020   : > { %3910 = vperm.xlu0 %5792, %v12320_v24   ;;  %v9357_v24 = vpop.permute.xlu0 %3499 }
0x1021   : > { %12335 = vst [vmem:[#allocation120_spill] sm:$0xff] %v9357_v24 }
0x1022   : > { %3898 = vperm.xlu1 %5790, %v12329_v18  }
0x1024   : > { %3922 = vperm.xlu0 %5792, %v12324_v38  }
0x1026   : > { %5793 = vset.pattern.permute.xlu1 %v5906_v50 }
0x1027   : > { %3914 = vperm.xlu1 %5793, %v12321_v31  }
0x1028   : > { %3930 = vperm.xlu0 %5792, %v12328_v52   ;;  %v5907_v52 = vmov 34  }
0x102b   : > { %3918 = vperm.xlu1 %5793, %v12322_v34  }
0x102c   : > { %3938 = vperm.xlu0 %5792, %v12329_v18  }
0x102f   : > { %3926 = vperm.xlu1 %5793, %v12323_v1  }
0x1030   : > { %v9360_v38 = vpop.permute.xlu1 %3557  ;;  %5795 = vset.pattern.permute.xlu0 %v5907_v52 }
0x1031   : > { %12336 = vst [vmem:[#allocation121_spill] sm:$0xff] %v9360_v38 }
0x1033   : > { %3934 = vperm.xlu1 %5793, %v12325_v48  }
0x1034   : > { %v9362_v31 = vpop.permute.xlu0 %3559 }
0x1035   : > { %12337 = vst [vmem:[#allocation122_spill] sm:$0xff] %v9362_v31 }
0x1037   : > { %5794 = vset.pattern.permute.xlu1 %v5907_v52 }
0x1038   : > { %v9364_v50 = vpop.permute.xlu1 %3561 }
0x1039   : > { %12338 = vst [vmem:[#allocation151_spill] sm:$0xff] %v9364_v50  ;;  %v9366_v34 = vpop.permute.xlu0 %3563 }
0x103a   : > { %12339 = vst [vmem:[#allocation123_spill] sm:$0xff] %v9366_v34 }
0x103c   : > { %v9368_v9 = vpop.permute.xlu1 %3565 }
0x103d   : > { %12340 = vst [vmem:[#allocation125_spill] sm:$0xff] %v9368_v9  ;;  %v9370_v1 = vpop.permute.xlu0 %3567 }
0x103e   : > { %12341 = vst [vmem:[#allocation157_spill] sm:$0xff] %v9370_v1 }
0x1040   : > { %v9372_v2 = vpop.permute.xlu1 %3569 }
0x1041   : > { %12342 = vst [vmem:[#allocation94_spill] sm:$0xff] %v9372_v2  ;;  %v9374_v24 = vpop.permute.xlu0 %3571 }
0x1042   : > { %12343 = vst [vmem:[#allocation47_spill] sm:$0xff] %v9374_v24 }
0x1044   : > { %v9376_v48 = vpop.permute.xlu1 %3621 }
0x1045   : > { %12344 = vst [vmem:[#allocation246_spill] sm:$0xff] %v9376_v48  ;;  %v9378_v55 = vpop.permute.xlu0 %3623 }
0x1046   : > { %12345 = vst [vmem:[#allocation37_spill] sm:$0xff] %v9378_v55 }
0x1048   : > { %v9380_v23 = vpop.permute.xlu1 %3625 }
0x1049   : > { %12346 = vst [vmem:[#allocation55_spill] sm:$0xff] %v9380_v23  ;;  %v9382_v35 = vpop.permute.xlu0 %3627 }
0x104a   : > { %12347 = vst [vmem:[#allocation78_spill] sm:$0xff] %v9382_v35 }
0x104c   : > { %v9384_v52 = vpop.permute.xlu1 %3629 }
0x104d   : > { %12348 = vst [vmem:[#allocation75_spill] sm:$0xff] %v9384_v52  ;;  %v9386_v50 = vpop.permute.xlu0 %3631 }
0x104e   : > { %12349 = vst [vmem:[#allocation202_spill] sm:$0xff] %v9386_v50 }
0x1050   : > { %v9388_v34 = vpop.permute.xlu1 %3633 }
0x1051   : > { %12350 = vst [vmem:[#allocation203_spill] sm:$0xff] %v9388_v34  ;;  %v9390_v9 = vpop.permute.xlu0 %3635 }
0x1052   : > { %12351 = vst [vmem:[#allocation204_spill] sm:$0xff] %v9390_v9 }
0x1054   : > { %v9392_v1 = vpop.permute.xlu1 %3693 }
0x1055   : > { %12352 = vst [vmem:[#allocation206_spill] sm:$0xff] %v9392_v1  ;;  %v9394_v2 = vpop.permute.xlu0 %3695 }
0x1056   : > { %12353 = vst [vmem:[#allocation205_spill] sm:$0xff] %v9394_v2 }
0x1058   : > { %v9396_v24 = vpop.permute.xlu1 %3697 }
0x1059   : > { %12354 = vst [vmem:[#allocation198_spill] sm:$0xff] %v9396_v24  ;;  %v9398_v48 = vpop.permute.xlu0 %3699 }
0x105a   : > { %12355 = vst [vmem:[#allocation207_spill] sm:$0xff] %v9398_v48 }
0x105c   : > { %v9400_v55 = vpop.permute.xlu1 %3701 }
0x105d   : > { %12356 = vst [vmem:[#allocation208_spill] sm:$0xff] %v9400_v55  ;;  %v9402_v23 = vpop.permute.xlu0 %3703 }
0x105e   : > { %12357 = vst [vmem:[#allocation210_spill] sm:$0xff] %v9402_v23 }
0x1060   : > { %v9404_v35 = vpop.permute.xlu1 %3705 }
0x1061   : > { %12358 = vst [vmem:[#allocation185_spill] sm:$0xff] %v9404_v35  ;;  %v9406_v52 = vpop.permute.xlu0 %3707 }
0x1062   : > { %12359 = vst [vmem:[#allocation186_spill] sm:$0xff] %v9406_v52 }
0x1064   : > { %v9408_v50 = vpop.permute.xlu1 %3757 }
0x1065   : > { %12360 = vst [vmem:[#allocation195_spill] sm:$0xff] %v9408_v50  ;;  %v9410_v34 = vpop.permute.xlu0 %3759 }
0x1066   : > { %12361 = vst [vmem:[#allocation70_spill] sm:$0xff] %v9410_v34 }
0x1068   : > { %v9412_v9 = vpop.permute.xlu1 %3761 }
0x1069   : > { %12362 = vst [vmem:[#allocation71_spill] sm:$0xff] %v9412_v9  ;;  %v9414_v1 = vpop.permute.xlu0 %3763 }
0x106a   : > { %12363 = vst [vmem:[#allocation62_spill] sm:$0xff] %v9414_v1 }
0x106c   : > { %v9416_v2 = vpop.permute.xlu1 %3765 }
0x106d   : > { %12364 = vst [vmem:[#allocation245_spill] sm:$0xff] %v9416_v2  ;;  %v9418_v24 = vpop.permute.xlu0 %3767 }
0x106e   : > { %12365 = vst [vmem:[#allocation73_spill] sm:$0xff] %v9418_v24 }
0x1070   : > { %v9420_v48 = vpop.permute.xlu1 %3769 }
0x1071   : > { %12366 = vst [vmem:[#allocation72_spill] sm:$0xff] %v9420_v48  ;;  %v9422_v55 = vpop.permute.xlu0 %3771 }
0x1072   : > { %12367 = vst [vmem:[#allocation39_spill] sm:$0xff] %v9422_v55 }
0x1074   : > { %v9424_v23 = vpop.permute.xlu1 %3829 }
0x1075   : > { %12368 = vst [vmem:[#allocation74_spill] sm:$0xff] %v9424_v23  ;;  %v9426_v52 = vpop.permute.xlu0 %3831 }
0x1076   : > { %12369 = vst [vmem:[#allocation127_spill] sm:$0xff] %v9426_v52 }
0x1078   : > { %v9428_v50 = vpop.permute.xlu1 %3833 }
0x1079   : > { %12370 = vst [vmem:[#allocation126_spill] sm:$0xff] %v9428_v50  ;;  %v9430_v34 = vpop.permute.xlu0 %3835 }
0x107a   : > { %12371 = vst [vmem:[#allocation138_spill] sm:$0xff] %v9430_v34 }
0x107c   : > { %v9432_v9 = vpop.permute.xlu1 %3837 }
0x107d   : > { %12372 = vst [vmem:[#allocation140_spill] sm:$0xff] %v9432_v9  ;;  %v9434_v1 = vpop.permute.xlu0 %3839  ;;  %v9455_v9 = vld [vmem:[%s6034_s22 + $0x8] sm:$0xff] }
0x107e   : > { %12373 = vst [vmem:[#allocation129_spill] sm:$0xff] %v9434_v1 }
0x1080   : > { %v9436_v2 = vpop.permute.xlu1 %3841 }
0x1081   : > { %12374 = vst [vmem:[#allocation132_spill] sm:$0xff] %v9436_v2  ;;  %v9438_v24 = vpop.permute.xlu0 %3843 }
0x1082   : > { %12375 = vst [vmem:[#allocation136_spill] sm:$0xff] %v9438_v24 }
0x1091   : > { %v9440_v48 = vpop.permute.xlu1 %3870 }
0x1092   : > { %v9442_v55 = vpop.permute.xlu0 %3874 }
0x1095   : > { %v9444_v23 = vpop.permute.xlu1 %3878 }
0x1096   : > { %v9446_v52 = vpop.permute.xlu0 %3886 }
0x1099   : > { %v9448_v50 = vpop.permute.xlu1 %3882 }
0x109a   : > { %v9450_v34 = vpop.permute.xlu0 %3894 }
0x109d   : > { %v9452_v1 = vpop.permute.xlu1 %3890 }
0x109f   : > { %v3911_v2 = vpop.permute.xlu0 %3910 }
0x10a0   : > { %v3941_v24 = vmul.f32 %v9455_v9, %v3911_v2 }
0x10a1   : > { %v9458_v35 = vpop.permute.xlu1 %3898 }
0x10a2   : > { %3957 = vrot.lane.b32.xlu1 %v3941_v24, %s5889_s7 }
0x10a3   : > { %v3923_v31 = vpop.permute.xlu0 %3922 }
0x10a4   : > { %v3944_v2 = vmul.f32 %v9467_v42, %v3923_v31 }
0x10a6   : > { %v3915_v38 = vpop.permute.xlu1 %3914 }
0x10a7   : > { %v3942_v32 = vmul.f32 %v9462_v25, %v3915_v38  ;;  %v3931_v43 = vpop.permute.xlu0 %3930 }
0x10a9   : > { %3959 = vrot.lane.b32.xlu0 %v3942_v32, %s5889_s7  ;;  %v3946_v32 = vmul.f32 %v9477_v44, %v3931_v43 }
0x10aa   : > { %v3919_v7 = vpop.permute.xlu1 %3918 }
0x10ab   : > { %v3943_v24 = vmul.f32 %v9471_v54, %v3919_v7  ;;  %v3939_v0 = vpop.permute.xlu0 %3938 }
0x10ad   : > { %3961 = vrot.lane.b32.xlu1 %v3943_v24, %s5889_s7  ;;  %3963 = vrot.lane.b32.xlu0 %v3944_v2, %s5889_s7  ;;  %v9487_v2 = vld [vmem:[%s6034_s22 + $0x78] sm:$0xff]  ;;  %s5916_s22 = smov 47  }
0x10ae   : > { %v3927_v38 = vpop.permute.xlu1 %3926  ;;  %v3948_v24 = vmul.f32 %v9487_v2, %v3939_v0  ;;  %v5851_v0 = vld [vmem:[%s5963_s18 + $0x30] sm:$0xff] }
0x10af   : > { %v3945_v31 = vmul.f32 %v9481_v20, %v3927_v38  ;;  %v5846_v38 = vld [vmem:[%s5963_s18] sm:$0xff] }
0x10b1   : > { %3965 = vrot.lane.b32.xlu1 %v3945_v31, %s5889_s7  ;;  %3967 = vrot.lane.b32.xlu0 %v3946_v32, %s5889_s7  ;;  %v5847_v31 = vld [vmem:[%s5963_s18 + $0x8] sm:$0xff]  ;;  %v5848_v32 = vld [vmem:[%s5963_s18 + $0x10] sm:$0xff]  ;;  %s5912_s18 = smov 43  }
0x10b2   : > { %v3935_v7 = vpop.permute.xlu1 %3934 }
0x10b3   : > { %v3947_v43 = vmul.f32 %v9491_v15, %v3935_v7  ;;  %v5908_v7 = vmov 35  }
0x10b5   : > { %3969 = vrot.lane.b32.xlu1 %v3947_v43, %s5889_s7  ;;  %3971 = vrot.lane.b32.xlu0 %v3948_v24, %s5889_s7 }
0x10b9   : > { %3990 = vperm.xlu1 %5794, %v5846_v38   ;;  %3994 = vperm.xlu0 %5795, %v5847_v31  }
0x10bd   : > { %3998 = vperm.xlu1 %5794, %v5848_v32   ;;  %4006 = vperm.xlu0 %5795, %v5849_v19  }
0x10c1   : > { %4002 = vperm.xlu1 %5794, %v5850_v58   ;;  %4014 = vperm.xlu0 %5795, %v5851_v0  }
0x10c5   : > { %4010 = vperm.xlu1 %5794, %v5852_v5   ;;  %5796 = vset.pattern.permute.xlu0 %v5908_v7 }
0x10c9   : > { %4018 = vperm.xlu1 %5794, %v12329_v18  }
0x10cd   : > { %5797 = vset.pattern.permute.xlu1 %v5908_v7 }
0x1114   : > { %v9506_v43 = vpop.permute.xlu1 %3957 }
0x111b   : > { %v9504_v24 = vpop.permute.xlu0 %3959 }
0x111f   : > { %v9508_v49 = vpop.permute.xlu1 %3961  ;;  %v9510_v12 = vpop.permute.xlu0 %3963 }
0x1123   : > { %v9512_v59 = vpop.permute.xlu1 %3965  ;;  %v9514_v6 = vpop.permute.xlu0 %3967 }
0x1127   : > { %v9516_v22 = vpop.permute.xlu1 %3969  ;;  %v9518_v53 = vpop.permute.xlu0 %3971 }
0x1138   : > { %v3991_v39 = vpop.permute.xlu1 %3990  ;;  %v3995_v13 = vpop.permute.xlu0 %3994 }
0x1139   : > { %v4021_v7 = vmul.f32 %v9455_v9, %v3991_v39  ;;  %v4022_v51 = vmul.f32 %v9462_v25, %v3995_v13 }
0x113b   : > { %4037 = vrot.lane.b32.xlu0 %v4021_v7, %s5867_s23  ;;  %4039 = vrot.lane.b32.xlu1 %v4022_v51, %s5867_s23 }
0x113c   : > { %v3999_v27 = vpop.permute.xlu1 %3998  ;;  %v4007_v17 = vpop.permute.xlu0 %4006 }
0x113d   : > { %v4023_v60 = vmul.f32 %v9471_v54, %v3999_v27  ;;  %v4025_v4 = vmul.f32 %v9481_v20, %v4007_v17 }
0x113f   : > { %4041 = vrot.lane.b32.xlu0 %v4023_v60, %s5867_s23 }
0x1140   : > { %v4003_v56 = vpop.permute.xlu1 %4002  ;;  %v4015_v62 = vpop.permute.xlu0 %4014 }
0x1141   : > { %v4024_v10 = vmul.f32 %v9467_v42, %v4003_v56  ;;  %v4027_v39 = vmul.f32 %v9491_v15, %v4015_v62 }
0x1143   : > { %4043 = vrot.lane.b32.xlu1 %v4024_v10, %s5867_s23  ;;  %4045 = vrot.lane.b32.xlu0 %v4025_v4, %s5867_s23 }
0x1144   : > { %v4011_v13 = vpop.permute.xlu1 %4010 }
0x1145   : > { %v4026_v51 = vmul.f32 %v9477_v44, %v4011_v13 }
0x1147   : > { %4047 = vrot.lane.b32.xlu1 %v4026_v51, %s5867_s23  ;;  %4049 = vrot.lane.b32.xlu0 %v4027_v39, %s5867_s23 }
0x1148   : > { %v4019_v60 = vpop.permute.xlu1 %4018 }
0x1149   : > { %v4028_v27 = vmul.f32 %v9487_v2, %v4019_v60 }
0x114b   : > { %4051 = vrot.lane.b32.xlu1 %v4028_v27, %s5867_s23  ;;  %4070 = vperm.xlu0 %5796, %v5846_v38  }
0x114f   : > { %4074 = vperm.xlu1 %5797, %v5847_v31   ;;  %4082 = vperm.xlu0 %5796, %v5850_v58  }
0x1153   : > { %4078 = vperm.xlu1 %5797, %v5848_v32   ;;  %4090 = vperm.xlu0 %5796, %v5852_v5  }
0x1157   : > { %4086 = vperm.xlu1 %5797, %v5849_v19   ;;  %4098 = vperm.xlu0 %5796, %v12329_v18  }
0x115b   : > { %4094 = vperm.xlu1 %5797, %v5851_v0  }
0x11ad   : > { %v4038_v56 = vpop.permute.xlu0 %4037  ;;  %v4040_v17 = vpop.permute.xlu1 %4039 }
0x11b1   : > { %v9537_v62 = vpop.permute.xlu0 %4041 }
0x11b5   : > { %v9539_v10 = vpop.permute.xlu1 %4043  ;;  %v9541_v4 = vpop.permute.xlu0 %4045 }
0x11b9   : > { %v9543_v7 = vpop.permute.xlu1 %4047  ;;  %v9545_v13 = vpop.permute.xlu0 %4049 }
0x11bd   : > { %v9547_v38 = vpop.permute.xlu1 %4051 }
0x11ca   : > { %v4071_v58 = vpop.permute.xlu0 %4070 }
0x11cb   : > { %v4101_v5 = vmul.f32 %v9455_v9, %v4071_v58 }
0x11cd   : > { %4117 = vrot.lane.b32.xlu1 %v4101_v5, %s5890_s8 }
0x11ce   : > { %v4075_v19 = vpop.permute.xlu1 %4074  ;;  %v4083_v18 = vpop.permute.xlu0 %4082 }
0x11cf   : > { %v4102_v31 = vmul.f32 %v9462_v25, %v4075_v19  ;;  %v4104_v39 = vmul.f32 %v9467_v42, %v4083_v18 }
0x11d1   : > { %4119 = vrot.lane.b32.xlu0 %v4102_v31, %s5890_s8 }
0x11d2   : > { %v4079_v32 = vpop.permute.xlu1 %4078  ;;  %v4091_v0 = vpop.permute.xlu0 %4090 }
0x11d3   : > { %v4103_v51 = vmul.f32 %v9471_v54, %v4079_v32  ;;  %v4106_v27 = vmul.f32 %v9477_v44, %v4091_v0  ;;  %v4181_v32 = vmul.f32 %v12296_v14, %v12281_v11  ;;  %v4182_v0 = vmul.f32 %v12297_v57, %v12283_v47 }
0x11d4   : > { %v4185_v14 = vmul.f32 %v12306_v37, %v12246_v8  ;;  %v4186_v57 = vmul.f32 %v12307_v63, %v12248_v40  ;;  %v3901_v37 = vmul.f32 %v9455_v9, %v9440_v48  ;;  %v3902_v63 = vmul.f32 %v9462_v25, %v9442_v55 }
0x11d5   : > { %4121 = vrot.lane.b32.xlu1 %v4103_v51, %s5890_s8  ;;  %4123 = vrot.lane.b32.xlu0 %v4104_v39, %s5890_s8  ;;  %v4183_v39 = vmul.f32 %v12302_v46, %v12289_v36  ;;  %v4184_v51 = vmul.f32 %v12303_v29, %v12244_v45  ;;  %v4187_v46 = vmul.f32 %v12310_v30, %v12250_v41 }
0x11d6   : > { %v4087_v60 = vpop.permute.xlu1 %4086  ;;  %v4099_v5 = vpop.permute.xlu0 %4098  ;;  %v4188_v29 = vmul.f32 %v12311_v3, %v12252_v33  ;;  %v3903_v3 = vmul.f32 %v9471_v54, %v9444_v23  ;;  %v3906_v54 = vmul.f32 %v9477_v44, %v9452_v1  ;;  %v3908_v44 = vmul.f32 %v9487_v2, %v9458_v35 }
0x11d7   : > { %v4105_v58 = vmul.f32 %v9481_v20, %v4087_v60  ;;  %v4108_v31 = vmul.f32 %v9487_v2, %v4099_v5  ;;  %v3981_v60 = vadd.f32 %v9506_v43, %v3901_v37  ;;  %v3982_v5 = vadd.f32 %v9504_v24, %v3902_v63  ;;  %v12379_v37 = vld [vmem:[#allocation162_spill] sm:$0xff]  ;;  %v12380_v63 = vld [vmem:[#allocation164_spill] sm:$0xff] }
0x11d8   : > { %v3983_v43 = vadd.f32 %v9508_v49, %v3903_v3  ;;  %v3905_v24 = vmul.f32 %v9481_v20, %v9446_v52  ;;  %v3907_v20 = vmul.f32 %v9491_v15, %v9450_v34  ;;  %v12382_v3 = vld [vmem:[#allocation174_spill] sm:$0xff] }
0x11d9   : > { %4125 = vrot.lane.b32.xlu1 %v4105_v58, %s5890_s8  ;;  %4127 = vrot.lane.b32.xlu0 %v4106_v27, %s5890_s8  ;;  %v4061_v27 = vadd.f32 %v4038_v56, %v3981_v60  ;;  %v4317_v60 = vmul.f32 %v12379_v37, %v12281_v11  ;;  %v12399_v37 = vld [vmem:[#allocation224_spill] sm:$0xff] }
0x11da   : > { %v4095_v19 = vpop.permute.xlu1 %4094 }
0x11db   : > { %v4107_v18 = vmul.f32 %v9491_v15, %v4095_v19  ;;  %v3904_v19 = vmul.f32 %v9467_v42, %v9448_v50  ;;  %v4063_v42 = vadd.f32 %v9537_v62, %v3983_v43  ;;  %v3987_v62 = vadd.f32 %v9516_v22, %v3907_v20  ;;  %v12376_v22 = vld [vmem:[#allocation265_spill] sm:$0xff]  ;;  %v12390_v20 = vld [vmem:[#allocation276_spill] sm:$0xff] }
0x11dd   : > { %4129 = vrot.lane.b32.xlu1 %v4107_v18, %s5890_s8  ;;  %4131 = vrot.lane.b32.xlu0 %v4108_v31, %s5890_s8  ;;  %v4062_v31 = vadd.f32 %v4040_v17, %v3982_v5  ;;  %v3984_v25 = vadd.f32 %v9510_v12, %v3904_v19  ;;  %v3985_v12 = vadd.f32 %v9512_v59, %v3905_v24 }
0x11de   : > { %v3986_v17 = vadd.f32 %v9514_v6, %v3906_v54  ;;  %v4067_v35 = vadd.f32 %v9545_v13, %v3987_v62  ;;  %v4320_v19 = vmul.f32 %v12382_v3, %v12244_v45  ;;  %v12386_v54 = vld [vmem:[#allocation191_spill] sm:$0xff]  ;;  %v12393_v62 = vld [vmem:[#allocation273_spill] sm:$0xff]  ;;  %v12402_v3 = vld [vmem:[#allocation226_spill] sm:$0xff] }
0x11df   : > { %v4064_v23 = vadd.f32 %v9539_v10, %v3984_v25  ;;  %v4065_v1 = vadd.f32 %v9541_v4, %v3985_v12  ;;  %v12385_v25 = vld [vmem:[#allocation190_spill] sm:$0xff] }
0x11e0   : > { %v4066_v52 = vadd.f32 %v9543_v7, %v3986_v17  ;;  %v4323_v24 = vmul.f32 %v12385_v25, %v12250_v41  ;;  %v12389_v12 = vld [vmem:[#allocation274_spill] sm:$0xff] }
0x11e1   : > { %4197 = vrot.lane.b32.xlu1 %v4181_v32, %s5868_s24  ;;  %4199 = vrot.lane.b32.xlu0 %v4182_v0, %s5868_s24  ;;  %v12405_v25 = vld [vmem:[#allocation166_spill] sm:$0xff] }
0x11e5   : > { %4201 = vrot.lane.b32.xlu1 %v4183_v39, %s5868_s24  ;;  %4203 = vrot.lane.b32.xlu0 %v4184_v51, %s5868_s24  ;;  %v3988_v39 = vadd.f32 %v9518_v53, %v3908_v44 }
0x11e7   : > { %v4068_v2 = vadd.f32 %v9547_v38, %v3988_v39  ;;  %v12378_v38 = vld [vmem:[#allocation267_spill] sm:$0xff] }
0x11e9   : > { %4205 = vrot.lane.b32.xlu1 %v4185_v14, %s5868_s24  ;;  %4207 = vrot.lane.b32.xlu0 %v4186_v57, %s5868_s24 }
0x11ed   : > { %4209 = vrot.lane.b32.xlu1 %v4187_v46, %s5868_s24  ;;  %4211 = vrot.lane.b32.xlu0 %v4188_v29, %s5868_s24  ;;  %v12377_v46 = vld [vmem:[#allocation270_spill] sm:$0xff] }
0x123f   : > { %v4118_v58 = vpop.permute.xlu1 %4117 }
0x1240   : > { %v9595_v30 = vadd.f32 %v4118_v58, %v4061_v27  ;;  %v4318_v27 = vmul.f32 %v12380_v63, %v12283_v47  ;;  %v12381_v58 = vld [vmem:[#allocation173_spill] sm:$0xff] }
0x1241   : > { %v4319_v5 = vmul.f32 %v12381_v58, %v12289_v36  ;;  %v12400_v63 = vld [vmem:[#allocation225_spill] sm:$0xff]  ;;  %v12401_v58 = vld [vmem:[#allocation227_spill] sm:$0xff] }
0x1242   : > { %v4229_v9 = vmul.f32 %v9595_v30, %v12294_v61 }
0x1243   : > { %v4120_v48 = vpop.permute.xlu0 %4119 }
0x1244   : > { %v9605_v55 = vadd.f32 %v4120_v48, %v4062_v31  ;;  %4245 = vrot.lane.b32.xlu1 %v4229_v9, %s5870_s26  ;;  %v12383_v31 = vld [vmem:[#allocation175_spill] sm:$0xff]  ;;  %v12384_v48 = vld [vmem:[#allocation178_spill] sm:$0xff] }
0x1245   : > { %v4321_v9 = vmul.f32 %v12383_v31, %v12246_v8  ;;  %v4322_v43 = vmul.f32 %v12384_v48, %v12248_v40  ;;  %v12403_v31 = vld [vmem:[#allocation275_spill] sm:$0xff]  ;;  %v12404_v48 = vld [vmem:[#allocation165_spill] sm:$0xff] }
0x1246   : > { %v4230_v50 = vmul.f32 %v9605_v55, %v12295_v28 }
0x1247   : > { %v4122_v49 = vpop.permute.xlu1 %4121  ;;  %v4124_v56 = vpop.permute.xlu0 %4123 }
0x1248   : > { %v9618_v18 = vadd.f32 %v4122_v49, %v4063_v42  ;;  %v9620_v32 = vadd.f32 %v4124_v56, %v4064_v23  ;;  %4247 = vrot.lane.b32.xlu0 %v4230_v50, %s5870_s26  ;;  %v4324_v42 = vmul.f32 %v12386_v54, %v12252_v33  ;;  %v12387_v23 = vld [vmem:[#allocation272_spill] sm:$0xff]  ;;  %v12388_v49 = vld [vmem:[#allocation269_spill] sm:$0xff] }
0x1249   : > { %v4365_v50 = vmul.f32 %v9595_v30, %v12387_v23  ;;  %v4366_v56 = vmul.f32 %v9605_v55, %v12388_v49  ;;  %v12406_v54 = vld [vmem:[#allocation153_spill] sm:$0xff] }
0x124a   : > { %v4231_v59 = vmul.f32 %v9618_v18, %v12298_v26  ;;  %v4232_v6 = vmul.f32 %v9620_v32, %v12299_v16  ;;  %v4367_v17 = vmul.f32 %v9618_v18, %v12389_v12  ;;  %v4368_v44 = vmul.f32 %v9620_v32, %v12390_v20 }
0x124b   : > { %v4126_v10 = vpop.permute.xlu1 %4125  ;;  %v4128_v0 = vpop.permute.xlu0 %4127 }
0x124c   : > { %v9635_v15 = vadd.f32 %v4126_v10, %v4065_v1  ;;  %v9637_v34 = vadd.f32 %v4128_v0, %v4066_v52  ;;  %4249 = vrot.lane.b32.xlu1 %v4231_v59, %s5870_s26  ;;  %4251 = vrot.lane.b32.xlu0 %v4232_v6, %s5870_s26  ;;  %v12391_v1 = vld [vmem:[#allocation271_spill] sm:$0xff]  ;;  %v12392_v59 = vld [vmem:[#allocation152_spill] sm:$0xff]  ;;  %v12394_v0 = vld [vmem:[#allocation154_spill] sm:$0xff] }
0x124e   : > { %v4233_v4 = vmul.f32 %v9635_v15, %v12304_v21  ;;  %v4234_v7 = vmul.f32 %v9637_v34, %v12376_v22  ;;  %v4369_v52 = vmul.f32 %v9635_v15, %v12391_v1  ;;  %v4370_v6 = vmul.f32 %v9637_v34, %v12392_v59 }
0x124f   : > { %v4130_v51 = vpop.permute.xlu1 %4129  ;;  %v4132_v53 = vpop.permute.xlu0 %4131 }
0x1250   : > { %v9647_v14 = vadd.f32 %v4130_v51, %v4067_v35  ;;  %v9649_v57 = vadd.f32 %v4132_v53, %v4068_v2  ;;  %4253 = vrot.lane.b32.xlu1 %v4233_v4, %s5870_s26  ;;  %4255 = vrot.lane.b32.xlu0 %v4234_v7, %s5870_s26  ;;  %v12395_v35 = vld [vmem:[#allocation214_spill] sm:$0xff]  ;;  %v12396_v4 = vld [vmem:[#allocation213_spill] sm:$0xff]  ;;  %v12397_v51 = vld [vmem:[#allocation216_spill] sm:$0xff] }
0x1251   : > { %v4453_v2 = vmul.f32 %v12395_v35, %v12281_v11  ;;  %v4454_v7 = vmul.f32 %v12396_v4, %v12283_v47  ;;  %v4455_v53 = vmul.f32 %v12397_v51, %v12289_v36  ;;  %v4605_v35 = vmul.f32 %v9595_v30, %v12281_v11 }
0x1252   : > { %v4235_v13 = vmul.f32 %v9647_v14, %v12377_v46  ;;  %v4236_v29 = vmul.f32 %v9649_v57, %v12378_v38  ;;  %v4371_v10 = vmul.f32 %v9647_v14, %v12393_v62  ;;  %v4372_v39 = vmul.f32 %v9649_v57, %v12394_v0 }
0x1253   : > { %v4607_v4 = vmul.f32 %v9618_v18, %v12289_v36  ;;  %v4609_v11 = vmul.f32 %v9635_v15, %v12246_v8  ;;  %v4611_v36 = vmul.f32 %v9647_v14, %v12250_v41 }
0x1254   : > { %4257 = vrot.lane.b32.xlu1 %v4235_v13, %s5870_s26  ;;  %4259 = vrot.lane.b32.xlu0 %v4236_v29, %s5870_s26  ;;  %v12398_v13 = vld [vmem:[#allocation217_spill] sm:$0xff] }
0x1255   : > { %v4456_v29 = vmul.f32 %v12398_v13, %v12244_v45 }
0x1258   : > { %4333 = vrot.lane.b32.xlu1 %v4317_v60, %s5868_s24  ;;  %4335 = vrot.lane.b32.xlu0 %v4318_v27, %s5868_s24  ;;  %v4457_v60 = vmul.f32 %v12399_v37, %v12246_v8  ;;  %v4458_v27 = vmul.f32 %v12400_v63, %v12248_v40 }
0x125c   : > { %4337 = vrot.lane.b32.xlu1 %v4319_v5, %s5868_s24  ;;  %4339 = vrot.lane.b32.xlu0 %v4320_v19, %s5868_s24  ;;  %v4459_v5 = vmul.f32 %v12401_v58, %v12250_v41  ;;  %v4460_v19 = vmul.f32 %v12402_v3, %v12252_v33 }
0x1260   : > { %4341 = vrot.lane.b32.xlu1 %v4321_v9, %s5868_s24  ;;  %4343 = vrot.lane.b32.xlu0 %v4322_v43, %s5868_s24  ;;  %v4501_v9 = vmul.f32 %v9595_v30, %v12403_v31  ;;  %v4502_v43 = vmul.f32 %v9605_v55, %v12404_v48  ;;  %v9777_v30 = vpop.permute.xlu1 %4197 }
0x1264   : > { %4345 = vrot.lane.b32.xlu1 %v4323_v24, %s5868_s24  ;;  %4347 = vrot.lane.b32.xlu0 %v4324_v42, %s5868_s24  ;;  %v4503_v24 = vmul.f32 %v9618_v18, %v12405_v25  ;;  %v4504_v42 = vmul.f32 %v9620_v32, %v12406_v54  ;;  %v9783_v8 = vpop.permute.xlu1 %4201 }
0x1268   : > { %4381 = vrot.lane.b32.xlu1 %v4365_v50, %s5870_s26  ;;  %4383 = vrot.lane.b32.xlu0 %v4366_v56, %s5870_s26  ;;  %v12407_v50 = vld [vmem:[#allocation167_spill] sm:$0xff]  ;;  %v9787_v18 = vpop.permute.xlu1 %4205 }
0x1269   : > { %v4505_v56 = vmul.f32 %v9635_v15, %v12407_v50  ;;  %12411 = vst [vmem:[#allocation139_spill] sm:$0xff] %v9787_v18 }
0x126c   : > { %4385 = vrot.lane.b32.xlu1 %v4367_v17, %s5870_s26  ;;  %4387 = vrot.lane.b32.xlu0 %v4368_v44, %s5870_s26  ;;  %v12408_v17 = vld [vmem:[#allocation155_spill] sm:$0xff]  ;;  %v9791_v41 = vpop.permute.xlu1 %4209 }
0x126d   : > { %v4506_v44 = vmul.f32 %v9637_v34, %v12408_v17  ;;  %12413 = vst [vmem:[#allocation128_spill] sm:$0xff] %v9791_v41  ;;  %v12480_v41 = vld [vmem:[#allocation253_spill] sm:$0xff] }
0x1270   : > { %4389 = vrot.lane.b32.xlu1 %v4369_v52, %s5870_s26  ;;  %4391 = vrot.lane.b32.xlu0 %v4370_v6, %s5870_s26  ;;  %v12409_v52 = vld [vmem:[#allocation168_spill] sm:$0xff] }
0x1271   : > { %v4507_v6 = vmul.f32 %v9647_v14, %v12409_v52 }
0x1274   : > { %4393 = vrot.lane.b32.xlu1 %v4371_v10, %s5870_s26  ;;  %4395 = vrot.lane.b32.xlu0 %v4372_v39, %s5870_s26  ;;  %v12410_v10 = vld [vmem:[#allocation150_spill] sm:$0xff] }
0x1275   : > { %v4508_v39 = vmul.f32 %v9649_v57, %v12410_v10 }
0x1278   : > { %4469 = vrot.lane.b32.xlu1 %v4453_v2, %s5868_s24  ;;  %4471 = vrot.lane.b32.xlu0 %v4454_v7, %s5868_s24  ;;  %v4606_v2 = vmul.f32 %v9605_v55, %v12283_v47  ;;  %v4608_v7 = vmul.f32 %v9620_v32, %v12244_v45  ;;  %v4610_v47 = vmul.f32 %v9637_v34, %v12248_v40  ;;  %v9779_v55 = vpop.permute.xlu0 %4199 }
0x1279   : > { %v4612_v45 = vmul.f32 %v9649_v57, %v12252_v33 }
0x127c   : > { %4473 = vrot.lane.b32.xlu1 %v4455_v53, %s5868_s24  ;;  %4475 = vrot.lane.b32.xlu0 %v4456_v29, %s5868_s24  ;;  %v9785_v40 = vpop.permute.xlu0 %4203 }
0x1280   : > { %4477 = vrot.lane.b32.xlu1 %v4457_v60, %s5868_s24  ;;  %4479 = vrot.lane.b32.xlu0 %v4458_v27, %s5868_s24  ;;  %v9789_v32 = vpop.permute.xlu0 %4207 }
0x1281   : > { %12412 = vst [vmem:[#allocation143_spill] sm:$0xff] %v9789_v32  ;;  %v12491_v32 = vld [vmem:[#allocation16_spill] sm:$0xff] }
0x1284   : > { %4481 = vrot.lane.b32.xlu1 %v4459_v5, %s5868_s24  ;;  %4483 = vrot.lane.b32.xlu0 %v4460_v19, %s5868_s24  ;;  %v9793_v15 = vpop.permute.xlu0 %4211 }
0x1285   : > { %12414 = vst [vmem:[#allocation130_spill] sm:$0xff] %v9793_v15  ;;  %v12475_v15 = vld [vmem:[#allocation249_spill] sm:$0xff] }
0x1288   : > { %4517 = vrot.lane.b32.xlu1 %v4501_v9, %s5870_s26  ;;  %4519 = vrot.lane.b32.xlu0 %v4502_v43, %s5870_s26 }
0x128c   : > { %4521 = vrot.lane.b32.xlu1 %v4503_v24, %s5870_s26  ;;  %4523 = vrot.lane.b32.xlu0 %v4504_v42, %s5870_s26 }
0x1290   : > { %4525 = vrot.lane.b32.xlu1 %v4505_v56, %s5870_s26  ;;  %4527 = vrot.lane.b32.xlu0 %v4506_v44, %s5870_s26 }
0x1294   : > { %4529 = vrot.lane.b32.xlu1 %v4507_v6, %s5870_s26  ;;  %4531 = vrot.lane.b32.xlu0 %v4508_v39, %s5870_s26  ;;  %s5919_s26 = smov 118  }
0x1298   : > { %4621 = vrot.lane.b32.xlu1 %v4605_v35, %s5868_s24  ;;  %4623 = vrot.lane.b32.xlu0 %v4606_v2, %s5868_s24 }
0x129c   : > { %4625 = vrot.lane.b32.xlu1 %v4607_v4, %s5868_s24  ;;  %4627 = vrot.lane.b32.xlu0 %v4608_v7, %s5868_s24 }
0x12a0   : > { %4629 = vrot.lane.b32.xlu1 %v4609_v11, %s5868_s24  ;;  %4631 = vrot.lane.b32.xlu0 %v4610_v47, %s5868_s24 }
0x12a4   : > { %4633 = vrot.lane.b32.xlu1 %v4611_v36, %s5868_s24  ;;  %4635 = vrot.lane.b32.xlu0 %v4612_v45, %s5868_s24  ;;  %s5917_s24 = smov 48  }
0x12b6   : > { %v9795_v33 = vpop.permute.xlu1 %4245 }
0x12ba   : > { %v9797_v34 = vpop.permute.xlu0 %4247 }
0x12be   : > { %v9799_v14 = vpop.permute.xlu1 %4249  ;;  %v9801_v57 = vpop.permute.xlu0 %4251 }
0x12bf   : > { %12415 = vst [vmem:[#allocation141_spill] sm:$0xff] %v9801_v57  ;;  %v12495_v57 = vld [vmem:[#allocation12_spill] sm:$0xff] }
0x12c2   : > { %v9803_v51 = vpop.permute.xlu1 %4253  ;;  %v9805_v53 = vpop.permute.xlu0 %4255 }
0x12c3   : > { %12416 = vst [vmem:[#allocation142_spill] sm:$0xff] %v9803_v51  ;;  %12417 = vst [vmem:[#allocation131_spill] sm:$0xff] %v9805_v53  ;;  %v12481_v53 = vld [vmem:[#allocation215_spill] sm:$0xff]  ;;  %v12490_v51 = vld [vmem:[#allocation13_spill] sm:$0xff] }
0x12c6   : > { %v9807_v13 = vpop.permute.xlu1 %4257  ;;  %v9809_v29 = vpop.permute.xlu0 %4259 }
0x12c7   : > { %12418 = vst [vmem:[#allocation133_spill] sm:$0xff] %v9807_v13  ;;  %12419 = vst [vmem:[#allocation134_spill] sm:$0xff] %v9809_v29 }
0x12ca   : > { %v9811_v37 = vpop.permute.xlu1 %4333  ;;  %v9813_v60 = vpop.permute.xlu0 %4335 }
0x12cb   : > { %12420 = vst [vmem:[#allocation144_spill] sm:$0xff] %v9811_v37  ;;  %12421 = vst [vmem:[#allocation145_spill] sm:$0xff] %v9813_v60  ;;  %v12466_v60 = vld [vmem:[#allocation248_spill] sm:$0xff] }
0x12ce   : > { %v9815_v63 = vpop.permute.xlu1 %4337  ;;  %v9817_v27 = vpop.permute.xlu0 %4339 }
0x12cf   : > { %12422 = vst [vmem:[#allocation135_spill] sm:$0xff] %v9815_v63  ;;  %12423 = vst [vmem:[#allocation137_spill] sm:$0xff] %v9817_v27  ;;  %v12461_v27 = vld [vmem:[#allocation220_spill] sm:$0xff] }
0x12d0   : > { %v12462_v63 = vld [vmem:[#allocation180_spill] sm:$0xff] }
0x12d2   : > { %v9819_v58 = vpop.permute.xlu1 %4341  ;;  %v9821_v5 = vpop.permute.xlu0 %4343 }
0x12d3   : > { %12424 = vst [vmem:[#allocation77_spill] sm:$0xff] %v9819_v58  ;;  %12425 = vst [vmem:[#allocation76_spill] sm:$0xff] %v9821_v5  ;;  %v12457_v58 = vld [vmem:[#allocation201_spill] sm:$0xff] }
0x12d6   : > { %v9823_v3 = vpop.permute.xlu1 %4345  ;;  %v9825_v19 = vpop.permute.xlu0 %4347 }
0x12d7   : > { %12426 = vst [vmem:[#allocation86_spill] sm:$0xff] %v9823_v3  ;;  %12427 = vst [vmem:[#allocation258_spill] sm:$0xff] %v9825_v19 }
0x12da   : > { %v9827_v9 = vpop.permute.xlu1 %4381  ;;  %v9829_v43 = vpop.permute.xlu0 %4383 }
0x12db   : > { %12428 = vst [vmem:[#allocation87_spill] sm:$0xff] %v9827_v9  ;;  %12429 = vst [vmem:[#allocation257_spill] sm:$0xff] %v9829_v43  ;;  %v12464_v9 = vld [vmem:[#allocation184_spill] sm:$0xff] }
0x12de   : > { %v9831_v24 = vpop.permute.xlu1 %4385  ;;  %v9833_v42 = vpop.permute.xlu0 %4387 }
0x12df   : > { %12430 = vst [vmem:[#allocation88_spill] sm:$0xff] %v9831_v24  ;;  %12431 = vst [vmem:[#allocation260_spill] sm:$0xff] %v9833_v42  ;;  %v12458_v42 = vld [vmem:[#allocation171_spill] sm:$0xff] }
0x12e2   : > { %v9835_v56 = vpop.permute.xlu1 %4389  ;;  %v9837_v44 = vpop.permute.xlu0 %4391 }
0x12e3   : > { %12432 = vst [vmem:[#allocation90_spill] sm:$0xff] %v9835_v56  ;;  %12433 = vst [vmem:[#allocation259_spill] sm:$0xff] %v9837_v44  ;;  %v12453_v44 = vld [vmem:[#allocation197_spill] sm:$0xff] }
0x12e4   : > { %v12454_v56 = vld [vmem:[#allocation181_spill] sm:$0xff] }
0x12e6   : > { %v9839_v6 = vpop.permute.xlu1 %4393  ;;  %v9841_v39 = vpop.permute.xlu0 %4395 }
0x12e7   : > { %12434 = vst [vmem:[#allocation89_spill] sm:$0xff] %v9839_v6  ;;  %12435 = vst [vmem:[#allocation262_spill] sm:$0xff] %v9841_v39 }
0x12ea   : > { %v9843_v35 = vpop.permute.xlu1 %4469  ;;  %v9845_v2 = vpop.permute.xlu0 %4471 }
0x12eb   : > { %12436 = vst [vmem:[#allocation92_spill] sm:$0xff] %v9843_v35  ;;  %12437 = vst [vmem:[#allocation177_spill] sm:$0xff] %v9845_v2 }
0x12ee   : > { %v9847_v4 = vpop.permute.xlu1 %4473  ;;  %v9849_v7 = vpop.permute.xlu0 %4475 }
0x12ef   : > { %12438 = vst [vmem:[#allocation192_spill] sm:$0xff] %v9847_v4  ;;  %12439 = vst [vmem:[#allocation193_spill] sm:$0xff] %v9849_v7  ;;  %v12450_v7 = vld [vmem:[#allocation169_spill] sm:$0xff] }
0x12f2   : > { %v9851_v11 = vpop.permute.xlu1 %4477  ;;  %v9853_v47 = vpop.permute.xlu0 %4479 }
0x12f3   : > { %12440 = vst [vmem:[#allocation194_spill] sm:$0xff] %v9851_v11  ;;  %12441 = vst [vmem:[#allocation254_spill] sm:$0xff] %v9853_v47  ;;  %v12451_v11 = vld [vmem:[#allocation196_spill] sm:$0xff]  ;;  %v12452_v47 = vld [vmem:[#allocation170_spill] sm:$0xff] }
0x12f4   : > { %v1957_v3 = vadd.f32 %v12451_v11, %v12450_v7  ;;  %v12465_v7 = vld [vmem:[#allocation222_spill] sm:$0xff] }
0x12f5   : > { %v1964_v11 = vadd.f32 %v12465_v7, %v12464_v9  ;;  %v12476_v7 = vld [vmem:[#allocation149_spill] sm:$0xff] }
0x12f6   : > { %v9855_v36 = vpop.permute.xlu1 %4481  ;;  %v9857_v45 = vpop.permute.xlu0 %4483 }
0x12f7   : > { %12442 = vst [vmem:[#allocation54_spill] sm:$0xff] %v9855_v36  ;;  %12443 = vst [vmem:[#allocation255_spill] sm:$0xff] %v9857_v45  ;;  %v1958_v36 = vadd.f32 %v12453_v44, %v12452_v47  ;;  %v12455_v45 = vld [vmem:[#allocation199_spill] sm:$0xff]  ;;  %v1989_v44 = vadd.f32 %v12466_v60, %v1957_v3  ;;  %v12467_v47 = vld [vmem:[#allocation233_spill] sm:$0xff]  ;;  %v1996_v9 = vadd.f32 %v12475_v15, %v1964_v11 }
0x12f8   : > { %v1959_v5 = vadd.f32 %v12455_v45, %v12454_v56  ;;  %v12468_v56 = vld [vmem:[#allocation231_spill] sm:$0xff]  ;;  %v12477_v3 = vld [vmem:[#allocation200_spill] sm:$0xff]  ;;  %v12486_v11 = vld [vmem:[#allocation9_spill] sm:$0xff] }
0x12f9   : > { %v1990_v37 = vadd.f32 %v12467_v47, %v1958_v36  ;;  %v2021_v60 = vadd.f32 %v12476_v7, %v1989_v44  ;;  %v12478_v47 = vld [vmem:[#allocation234_spill] sm:$0xff] }
0x12fa   : > { %v9859_v19 = vpop.permute.xlu1 %4517  ;;  %v9861_v6 = vpop.permute.xlu0 %4519  ;;  %v1991_v45 = vadd.f32 %v12468_v56, %v1959_v5  ;;  %v12479_v56 = vld [vmem:[#allocation250_spill] sm:$0xff] }
0x12fb   : > { %12444 = vst [vmem:[#allocation43_spill] sm:$0xff] %v9859_v19  ;;  %12445 = vst [vmem:[#allocation209_spill] sm:$0xff] %v9861_v6  ;;  %v12456_v19 = vld [vmem:[#allocation182_spill] sm:$0xff]  ;;  %v2022_v36 = vadd.f32 %v12477_v3, %v1990_v37  ;;  %v2053_v44 = vadd.f32 %v12486_v11, %v2021_v60  ;;  %v12487_v3 = vld [vmem:[#allocation8_spill] sm:$0xff] }
0x12fc   : > { %v1960_v6 = vadd.f32 %v12457_v58, %v12456_v19  ;;  %v12471_v19 = vld [vmem:[#allocation221_spill] sm:$0xff]  ;;  %v2023_v5 = vadd.f32 %v12478_v47, %v1991_v45  ;;  %v12488_v47 = vld [vmem:[#allocation11_spill] sm:$0xff]  ;;  %v12494_v11 = vld [vmem:[#allocation228_spill] sm:$0xff] }
0x12fd   : > { %v2054_v45 = vadd.f32 %v12487_v3, %v2022_v36  ;;  %v4600_v18 = vmul.f32 0.57735026, %v12494_v11  ;;  %v12496_v3 = vld [vmem:[#allocation15_spill] sm:$0xff] }
0x12fe   : > { %v9863_v39 = vpop.permute.xlu1 %4521  ;;  %v9865_v35 = vpop.permute.xlu0 %4523  ;;  %v12506_v11 = vld [vmem:[#allocation19_spill] sm:$0xff] }
0x12ff   : > { %12446 = vst [vmem:[#allocation212_spill] sm:$0xff] %v9863_v39  ;;  %12447 = vst [vmem:[#allocation256_spill] sm:$0xff] %v9865_v35  ;;  %v12459_v39 = vld [vmem:[#allocation218_spill] sm:$0xff]  ;;  %v12460_v35 = vld [vmem:[#allocation183_spill] sm:$0xff] }
0x1300   : > { %v1961_v24 = vadd.f32 %v12459_v39, %v12458_v42  ;;  %v1992_v42 = vadd.f32 %v12471_v19, %v1960_v6  ;;  %v12472_v39 = vld [vmem:[#allocation232_spill] sm:$0xff]  ;;  %v4597_v6 = vmul.f32 0.57735026, %v12481_v53  ;;  %v12482_v19 = vld [vmem:[#allocation223_spill] sm:$0xff] }
0x1302   : > { %v9867_v2 = vpop.permute.xlu1 %4525  ;;  %v9869_v4 = vpop.permute.xlu0 %4527 }
0x1303   : > { %12448 = vst [vmem:[#allocation45_spill] sm:$0xff] %v9867_v2  ;;  %12449 = vst [vmem:[#allocation2_spill] sm:$0xff] %v9869_v4  ;;  %v1962_v2 = vadd.f32 %v12461_v27, %v12460_v35  ;;  %v12463_v4 = vld [vmem:[#allocation219_spill] sm:$0xff]  ;;  %v1993_v27 = vadd.f32 %v12472_v39, %v1961_v24  ;;  %v4598_v24 = vmul.f32 0.57735026, %v12482_v19  ;;  %v12483_v39 = vld [vmem:[#allocation252_spill] sm:$0xff] }
0x1304   : > { %v1963_v43 = vadd.f32 %v12463_v4, %v12462_v63  ;;  %v12473_v35 = vld [vmem:[#allocation251_spill] sm:$0xff] }
0x1305   : > { %v1994_v13 = vadd.f32 %v12473_v35, %v1962_v2  ;;  %v12474_v63 = vld [vmem:[#allocation235_spill] sm:$0xff] }
0x1306   : > { %v9890_v29 = vpop.permute.xlu1 %4529  ;;  %v9892_v58 = vpop.permute.xlu0 %4531  ;;  %v1995_v4 = vadd.f32 %v12474_v63, %v1963_v43  ;;  %v12484_v35 = vld [vmem:[#allocation3_spill] sm:$0xff] }
0x1307   : > { %12469 = vst [vmem:[#allocation52_spill] sm:$0xff] %v9890_v29  ;;  %12470 = vst [vmem:[#allocation79_spill] sm:$0xff] %v9892_v58  ;;  %v2024_v29 = vadd.f32 %v12479_v56, %v1992_v42  ;;  %v2025_v58 = vadd.f32 %v12480_v41, %v1993_v27  ;;  %v2026_v2 = vadd.f32 %v12483_v39, %v1994_v13  ;;  %v12485_v63 = vld [vmem:[#allocation7_spill] sm:$0xff]  ;;  %v12489_v27 = vld [vmem:[#allocation10_spill] sm:$0xff] }
0x1308   : > { %v2027_v43 = vadd.f32 %v12484_v35, %v1995_v4  ;;  %v2028_v15 = vadd.f32 %v12485_v63, %v1996_v9  ;;  %v2055_v42 = vadd.f32 %v12488_v47, %v2023_v5  ;;  %v2085_v13 = vadd.f32 %v12491_v32, %v2053_v44  ;;  %v12492_v39 = vld [vmem:[#allocation229_spill] sm:$0xff]  ;;  %v12493_v35 = vld [vmem:[#allocation18_spill] sm:$0xff] }
0x1309   : > { %v2056_v53 = vadd.f32 %v12489_v27, %v2024_v29  ;;  %v2057_v19 = vadd.f32 %v12490_v51, %v2025_v58  ;;  %v4599_v4 = vmul.f32 0.57735026, %v12492_v39  ;;  %v2086_v9 = vadd.f32 %v12493_v35, %v2054_v45  ;;  %v12499_v58 = vld [vmem:[#allocation24_spill] sm:$0xff]  ;;  %v12500_v45 = vld [vmem:[#allocation17_spill] sm:$0xff] }
0x130a   : > { %v4622_v7 = vpop.permute.xlu1 %4621  ;;  %v4624_v37 = vpop.permute.xlu0 %4623  ;;  %v2058_v36 = vadd.f32 %v12495_v57, %v2026_v2  ;;  %v2059_v5 = vadd.f32 %v12496_v3, %v2027_v43  ;;  %v12502_v2 = vld [vmem:[#allocation244_spill] sm:$0xff]  ;;  %v12507_v3 = vld [vmem:[#allocation21_spill] sm:$0xff] }
0x130b   : > { %v4645_v56 = vadd.f32 %v4622_v7, %v4597_v6  ;;  %v4646_v41 = vadd.f32 %v4624_v37, %v4598_v24  ;;  %v12497_v6 = vld [vmem:[#allocation14_spill] sm:$0xff]  ;;  %v12498_v7 = vld [vmem:[#allocation25_spill] sm:$0xff]  ;;  %v2118_v32 = vadd.f32 %v12499_v58, %v2086_v9 }
0x130c   : > { %v2060_v24 = vadd.f32 %v12497_v6, %v2028_v15  ;;  %v2117_v29 = vadd.f32 %v12498_v7, %v2085_v13  ;;  %v12503_v15 = vld [vmem:[#allocation230_spill] sm:$0xff]  ;;  %v12504_v13 = vld [vmem:[#allocation32_spill] sm:$0xff]  ;;  %v12508_v6 = vld [vmem:[#allocation27_spill] sm:$0xff] }
0x130d   : > { %v4653_v63 = vmul.f32 0.35355338, %v4645_v56  ;;  %v4654_v60 = vmul.f32 0.35355338, %v4646_v41  ;;  %v2087_v56 = vadd.f32 %v12500_v45, %v2055_v42  ;;  %v12501_v41 = vld [vmem:[#allocation20_spill] sm:$0xff]  ;;  %v9932_v39 = vadd.f32 %v12504_v13, %v2118_v32  ;;  %v12509_v7 = vld [vmem:[#allocation26_spill] sm:$0xff] }
0x130e   : > { %v4626_v37 = vpop.permute.xlu1 %4625  ;;  %v4628_v51 = vpop.permute.xlu0 %4627  ;;  %v2088_v57 = vadd.f32 %v12501_v41, %v2056_v53  ;;  %v9928_v43 = vadd.f32 %v12502_v2, %v2117_v29  ;;  %v4601_v27 = vmul.f32 0.57735026, %v12503_v15  ;;  %v12511_v32 = vld [vmem:[#allocation34_spill] sm:$0xff] }
0x130f   : > { %v4647_v44 = vadd.f32 %v4626_v37, %v4599_v4  ;;  %v4648_v47 = vadd.f32 %v4628_v51, %v4600_v18  ;;  %4678 = vrot.lane.b32.xlu1 %v4653_v63, %s5874_s28  ;;  %4680 = vrot.lane.b32.xlu0 %v4654_v60, %s5874_s28  ;;  %v12505_v4 = vld [vmem:[#allocation236_spill] sm:$0xff]  ;;  %v2089_v63 = vadd.f32 %v12506_v11, %v2057_v19  ;;  %v12510_v51 = vld [vmem:[#allocation22_spill] sm:$0xff] }
0x1310   : > { %v4602_v18 = vmul.f32 0.57735026, %v12505_v4  ;;  %v2090_v60 = vadd.f32 %v12507_v3, %v2058_v36  ;;  %v2119_v42 = vadd.f32 %v12508_v6, %v2087_v56  ;;  %v2120_v53 = vadd.f32 %v12509_v7, %v2088_v57  ;;  %v12512_v19 = vld [vmem:[#allocation38_spill] sm:$0xff]  ;;  %v12513_v56 = vld [vmem:[#allocation237_spill] sm:$0xff]  ;;  %v12517_v11 = vld [vmem:[#allocation28_spill] sm:$0xff] }
0x1311   : > { %v4655_v35 = vmul.f32 0.35355338, %v4647_v44  ;;  %v4656_v9 = vmul.f32 0.35355338, %v4648_v47  ;;  %v2091_v58 = vadd.f32 %v12510_v51, %v2059_v5  ;;  %v3461_v36 = vmul.f32 %v9928_v43, %v12294_v61  ;;  %v12516_v4 = vld [vmem:[#allocation29_spill] sm:$0xff]  ;;  %v12518_v6 = vld [vmem:[#allocation239_spill] sm:$0xff] }
0x1312   : > { %v4630_v37 = vpop.permute.xlu1 %4629  ;;  %v4632_v29 = vpop.permute.xlu0 %4631  ;;  %v9943_v44 = vadd.f32 %v12511_v32, %v2119_v42  ;;  %v9946_v47 = vadd.f32 %v12512_v19, %v2120_v53  ;;  %v4603_v57 = vmul.f32 0.57735026, %v12513_v56  ;;  %v3462_v5 = vmul.f32 %v9932_v39, %v12295_v28  ;;  %v12519_v61 = vld [vmem:[#allocation240_spill] sm:$0xff]  ;;  %v12520_v28 = vld [vmem:[#allocation33_spill] sm:$0xff] }
0x1313   : > { %v4649_v45 = vadd.f32 %v4630_v37, %v4601_v27  ;;  %v4650_v41 = vadd.f32 %v4632_v29, %v4602_v18  ;;  %4682 = vrot.lane.b32.xlu1 %v4655_v35, %s5874_s28  ;;  %4684 = vrot.lane.b32.xlu0 %v4656_v9, %s5874_s28  ;;  %v12514_v27 = vld [vmem:[#allocation238_spill] sm:$0xff]  ;;  %v12515_v35 = vld [vmem:[#allocation23_spill] sm:$0xff]  ;;  %v2121_v18 = vadd.f32 %v12516_v4, %v2089_v63  ;;  %v12522_v32 = vld [vmem:[#allocation121_spill] sm:$0xff] }
0x1314   : > { %v4604_v13 = vmul.f32 0.57735026, %v12514_v27  ;;  %v2092_v9 = vadd.f32 %v12515_v35, %v2060_v24  ;;  %v2122_v3 = vadd.f32 %v12517_v11, %v2090_v60  ;;  %v3509_v42 = vadd.f32 %v12518_v6, %v3461_v36  ;;  %v12521_v24 = vld [vmem:[#allocation36_spill] sm:$0xff]  ;;  %v12523_v36 = vld [vmem:[#allocation122_spill] sm:$0xff]  ;;  %v12526_v35 = vld [vmem:[#allocation241_spill] sm:$0xff] }
0x1315   : > { %v4657_v2 = vmul.f32 0.35355338, %v4649_v45  ;;  %v4658_v15 = vmul.f32 0.35355338, %v4650_v41  ;;  %v3510_v37 = vadd.f32 %v12519_v61, %v3462_v5  ;;  %v9962_v45 = vadd.f32 %v12520_v28, %v2121_v18  ;;  %v12525_v27 = vld [vmem:[#allocation30_spill] sm:$0xff] }
0x1316   : > { %v4634_v7 = vpop.permute.xlu1 %4633  ;;  %v4636_v53 = vpop.permute.xlu0 %4635  ;;  %v9965_v41 = vadd.f32 %v12521_v24, %v2122_v3  ;;  %v3463_v63 = vmul.f32 %v9943_v44, %v12298_v26  ;;  %v3464_v60 = vmul.f32 %v9946_v47, %v12299_v16  ;;  %v3581_v19 = vadd.f32 %v12522_v32, %v3509_v42  ;;  %v12527_v18 = vld [vmem:[#allocation242_spill] sm:$0xff]  ;;  %v12529_v3 = vld [vmem:[#allocation35_spill] sm:$0xff] }
0x1317   : > { %v4651_v29 = vadd.f32 %v4634_v7, %v4603_v57  ;;  %v4652_v51 = vadd.f32 %v4636_v53, %v4604_v13  ;;  %4686 = vrot.lane.b32.xlu1 %v4657_v2, %s5874_s28  ;;  %4688 = vrot.lane.b32.xlu0 %v4658_v15, %s5874_s28  ;;  %v3582_v56 = vadd.f32 %v12523_v36, %v3510_v37  ;;  %v12524_v2 = vld [vmem:[#allocation31_spill] sm:$0xff]  ;;  %v12528_v26 = vld [vmem:[#allocation46_spill] sm:$0xff] }
0x1318   : > { %v2123_v15 = vadd.f32 %v12524_v2, %v2091_v58  ;;  %v2124_v13 = vadd.f32 %v12525_v27, %v2092_v9  ;;  %v3511_v4 = vadd.f32 %v12526_v35, %v3463_v63  ;;  %v3512_v11 = vadd.f32 %v12527_v18, %v3464_v60  ;;  %v12530_v53 = vld [vmem:[#allocation151_spill] sm:$0xff]  ;;  %v12533_v24 = vld [vmem:[#allocation118_spill] sm:$0xff] }
0x1319   : > { %v4659_v57 = vmul.f32 0.35355338, %v4651_v29  ;;  %v4660_v5 = vmul.f32 0.35355338, %v4652_v51  ;;  %v3465_v42 = vmul.f32 %v9962_v45, %v12304_v21  ;;  %v3466_v58 = vmul.f32 %v9965_v41, %v12376_v22  ;;  %v12531_v37 = vld [vmem:[#allocation123_spill] sm:$0xff] }
0x131a   : > { %v9980_v16 = vadd.f32 %v12528_v26, %v2123_v15  ;;  %v9983_v6 = vadd.f32 %v12529_v3, %v2124_v13  ;;  %v9989_v9 = vmul.f32 0.25, %v3581_v19  ;;  %v9991_v7 = vmul.f32 0.25, %v3582_v56  ;;  %v12532_v51 = vld [vmem:[#allocation243_spill] sm:$0xff]  ;;  %v12534_v19 = vld [vmem:[#allocation125_spill] sm:$0xff]  ;;  %v12537_v15 = vld [vmem:[#allocation120_spill] sm:$0xff] }
0x131b   : > { %4690 = vrot.lane.b32.xlu1 %v4659_v57, %s5874_s28  ;;  %4692 = vrot.lane.b32.xlu0 %v4660_v5, %s5874_s28  ;;  %v3583_v61 = vadd.f32 %v12530_v53, %v3511_v4  ;;  %v3584_v29 = vadd.f32 %v12531_v37, %v3512_v11  ;;  %v3513_v28 = vadd.f32 %v12532_v51, %v3465_v42  ;;  %v12535_v56 = vld [vmem:[#allocation157_spill] sm:$0xff]  ;;  %v12536_v5 = vld [vmem:[#allocation119_spill] sm:$0xff]  ;;  %v12538_v4 = vld [vmem:[#allocation94_spill] sm:$0xff]  ;;  %s5921_s28 = smov 121  }
0x131c   : > { %v3514_v63 = vadd.f32 %v12533_v24, %v3466_v58  ;;  %v3467_v21 = vmul.f32 %v9980_v16, %v12377_v46  ;;  %v3468_v22 = vmul.f32 %v9983_v6, %v12378_v38  ;;  %v3597_v46 = vmul.f32 %v9928_v43, %v12387_v23  ;;  %v12539_v11 = vld [vmem:[#allocation47_spill] sm:$0xff]  ;;  %v12540_v3 = vld [vmem:[#allocation246_spill] sm:$0xff]  ;;  %v12541_v58 = vld [vmem:[#allocation37_spill] sm:$0xff] }
0x131d   : > { %v10005_v60 = vmul.f32 0.25, %v3583_v61  ;;  %v10007_v32 = vmul.f32 0.25, %v3584_v29  ;;  %v3585_v36 = vadd.f32 %v12534_v19, %v3513_v28  ;;  %v3598_v38 = vmul.f32 %v9932_v39, %v12388_v49  ;;  %v12542_v29 = vld [vmem:[#allocation206_spill] sm:$0xff]  ;;  %v12543_v28 = vld [vmem:[#allocation205_spill] sm:$0xff] }
0x131e   : > { %v3586_v57 = vadd.f32 %v12535_v56, %v3514_v63  ;;  %v3515_v2 = vadd.f32 %v12536_v5, %v3467_v21  ;;  %v3516_v27 = vadd.f32 %v12537_v15, %v3468_v22  ;;  %v3645_v42 = vadd.f32 %v12540_v3, %v3597_v46  ;;  %v12544_v63 = vld [vmem:[#allocation55_spill] sm:$0xff]  ;;  %v12545_v22 = vld [vmem:[#allocation78_spill] sm:$0xff] }
0x131f   : > { %4719 = vrot.lane.b32.xlu1 %v9989_v9, %s5909_s15  ;;  %4721 = vrot.lane.b32.xlu0 %v9991_v7, %s5909_s15  ;;  %v10021_v13 = vmul.f32 0.25, %v3585_v36  ;;  %v3646_v53 = vadd.f32 %v12541_v58, %v3598_v38  ;;  %v3599_v23 = vmul.f32 %v9943_v44, %v12389_v12  ;;  %v3600_v49 = vmul.f32 %v9946_v47, %v12390_v20  ;;  %v12549_v38 = vld [vmem:[#allocation202_spill] sm:$0xff] }
0x1320   : > { %v10023_v35 = vmul.f32 0.25, %v3586_v57  ;;  %v3587_v18 = vadd.f32 %v12538_v4, %v3515_v2  ;;  %v3588_v26 = vadd.f32 %v12539_v11, %v3516_v27  ;;  %v3717_v51 = vadd.f32 %v12542_v29, %v3645_v42  ;;  %v12546_v57 = vld [vmem:[#allocation198_spill] sm:$0xff]  ;;  %v12547_v2 = vld [vmem:[#allocation207_spill] sm:$0xff] }
0x1321   : > { %v3718_v24 = vadd.f32 %v12543_v28, %v3646_v53  ;;  %v3647_v21 = vadd.f32 %v12544_v63, %v3599_v23  ;;  %v3648_v19 = vadd.f32 %v12545_v22, %v3600_v49  ;;  %v3601_v12 = vmul.f32 %v9962_v45, %v12391_v1  ;;  %v12548_v27 = vld [vmem:[#allocation75_spill] sm:$0xff]  ;;  %v12551_v42 = vld [vmem:[#allocation210_spill] sm:$0xff]  ;;  %v12553_v49 = vld [vmem:[#allocation204_spill] sm:$0xff] }
0x1322   : > { %v10037_v61 = vmul.f32 0.25, %v3587_v18  ;;  %v10039_v37 = vmul.f32 0.25, %v3588_v26  ;;  %v3602_v20 = vmul.f32 %v9965_v41, %v12392_v59  ;;  %v10053_v36 = vmul.f32 0.25, %v3717_v51  ;;  %v12550_v26 = vld [vmem:[#allocation208_spill] sm:$0xff]  ;;  %v12552_v53 = vld [vmem:[#allocation203_spill] sm:$0xff] }
0x1323   : > { %4723 = vrot.lane.b32.xlu1 %v10005_v60, %s5909_s15  ;;  %4725 = vrot.lane.b32.xlu0 %v10007_v32, %s5909_s15  ;;  %v10055_v56 = vmul.f32 0.25, %v3718_v24  ;;  %v3719_v5 = vadd.f32 %v12546_v57, %v3647_v21  ;;  %v3720_v15 = vadd.f32 %v12547_v2, %v3648_v19  ;;  %v3649_v46 = vadd.f32 %v12548_v27, %v3601_v12  ;;  %v12554_v24 = vld [vmem:[#allocation185_spill] sm:$0xff]  ;;  %v12555_v21 = vld [vmem:[#allocation186_spill] sm:$0xff]  ;;  %v12556_v19 = vld [vmem:[#allocation195_spill] sm:$0xff] }
0x1324   : > { %v3650_v4 = vadd.f32 %v12549_v38, %v3602_v20  ;;  %v3603_v1 = vmul.f32 %v9980_v16, %v12393_v62  ;;  %v3604_v59 = vmul.f32 %v9983_v6, %v12394_v0  ;;  %v3733_v62 = vmul.f32 %v9928_v43, %v12403_v31  ;;  %v12557_v20 = vld [vmem:[#allocation70_spill] sm:$0xff] }
0x1325   : > { %v10069_v18 = vmul.f32 0.25, %v3719_v5  ;;  %v10071_v11 = vmul.f32 0.25, %v3720_v15  ;;  %v3721_v3 = vadd.f32 %v12550_v26, %v3649_v46  ;;  %v3734_v0 = vmul.f32 %v9932_v39, %v12404_v48  ;;  %v12558_v5 = vld [vmem:[#allocation74_spill] sm:$0xff]  ;;  %v12559_v15 = vld [vmem:[#allocation127_spill] sm:$0xff] }
0x1326   : > { %v3722_v58 = vadd.f32 %v12551_v42, %v3650_v4  ;;  %v3651_v23 = vadd.f32 %v12552_v53, %v3603_v1  ;;  %v3652_v29 = vadd.f32 %v12553_v49, %v3604_v59  ;;  %v3781_v12 = vadd.f32 %v12556_v19, %v3733_v62  ;;  %v12560_v46 = vld [vmem:[#allocation71_spill] sm:$0xff]  ;;  %v12561_v4 = vld [vmem:[#allocation62_spill] sm:$0xff] }
0x1327   : > { %4727 = vrot.lane.b32.xlu1 %v10021_v13, %s5909_s15  ;;  %4729 = vrot.lane.b32.xlu0 %v10023_v35, %s5909_s15  ;;  %v10085_v51 = vmul.f32 0.25, %v3721_v3  ;;  %v3782_v57 = vadd.f32 %v12557_v20, %v3734_v0  ;;  %v3735_v31 = vmul.f32 %v9943_v44, %v12405_v25  ;;  %v3736_v48 = vmul.f32 %v9946_v47, %v12406_v54  ;;  %v12562_v59 = vld [vmem:[#allocation126_spill] sm:$0xff]  ;;  %v12567_v0 = vld [vmem:[#allocation129_spill] sm:$0xff] }
0x1328   : > { %v10087_v28 = vmul.f32 0.25, %v3722_v58  ;;  %v3723_v63 = vadd.f32 %v12554_v24, %v3651_v23  ;;  %v3724_v22 = vadd.f32 %v12555_v21, %v3652_v29  ;;  %v3853_v2 = vadd.f32 %v12558_v5, %v3781_v12  ;;  %v12563_v3 = vld [vmem:[#allocation138_spill] sm:$0xff]  ;;  %v12564_v58 = vld [vmem:[#allocation245_spill] sm:$0xff]  ;;  %v12566_v29 = vld [vmem:[#allocation140_spill] sm:$0xff] }
0x1329   : > { %v3854_v27 = vadd.f32 %v12559_v15, %v3782_v57  ;;  %v3783_v38 = vadd.f32 %v12560_v46, %v3735_v31  ;;  %v3784_v1 = vadd.f32 %v12561_v4, %v3736_v48  ;;  %v3737_v25 = vmul.f32 %v9962_v45, %v12407_v50  ;;  %v12565_v23 = vld [vmem:[#allocation73_spill] sm:$0xff]  ;;  %v12571_v12 = vld [vmem:[#allocation136_spill] sm:$0xff] }
0x132a   : > { %v10101_v43 = vmul.f32 0.25, %v3723_v63  ;;  %v10103_v39 = vmul.f32 0.25, %v3724_v22  ;;  %v3738_v54 = vmul.f32 %v9965_v41, %v12408_v17  ;;  %v10117_v44 = vmul.f32 0.25, %v3853_v2  ;;  %v12568_v63 = vld [vmem:[#allocation72_spill] sm:$0xff]  ;;  %v12569_v22 = vld [vmem:[#allocation39_spill] sm:$0xff] }
0x132b   : > { %4731 = vrot.lane.b32.xlu1 %v10037_v61, %s5909_s15  ;;  %4733 = vrot.lane.b32.xlu0 %v10039_v37, %s5909_s15  ;;  %v10119_v47 = vmul.f32 0.25, %v3854_v27  ;;  %v3855_v26 = vadd.f32 %v12562_v59, %v3783_v38  ;;  %v3856_v42 = vadd.f32 %v12563_v3, %v3784_v1  ;;  %v3785_v53 = vadd.f32 %v12564_v58, %v3737_v25 }
0x132c   : > { %v3786_v49 = vadd.f32 %v12565_v23, %v3738_v54  ;;  %v3739_v50 = vmul.f32 %v9980_v16, %v12409_v52  ;;  %v3740_v17 = vmul.f32 %v9983_v6, %v12410_v10  ;;  %v12570_v10 = vld [vmem:[#allocation132_spill] sm:$0xff] }
0x132d   : > { %v10131_v45 = vmul.f32 0.25, %v3855_v26  ;;  %v10133_v41 = vmul.f32 0.25, %v3856_v42  ;;  %v3857_v62 = vadd.f32 %v12566_v29, %v3785_v53 }
0x132e   : > { %v3858_v24 = vadd.f32 %v12567_v0, %v3786_v49  ;;  %v3787_v21 = vadd.f32 %v12568_v63, %v3739_v50  ;;  %v3788_v19 = vadd.f32 %v12569_v22, %v3740_v17 }
0x132f   : > { %4760 = vrot.lane.b32.xlu1 %v10053_v36, %s5910_s16  ;;  %4762 = vrot.lane.b32.xlu0 %v10055_v56, %s5910_s16  ;;  %v10141_v52 = vmul.f32 0.25, %v3857_v62 }
0x1330   : > { %v10143_v16 = vmul.f32 0.25, %v3858_v24  ;;  %v3859_v6 = vadd.f32 %v12570_v10, %v3787_v21  ;;  %v3860_v20 = vadd.f32 %v12571_v12, %v3788_v19  ;;  %v12575_v10 = vld [vmem:[#allocation93_spill] sm:$0xff] }
0x1332   : > { %v10149_v57 = vmul.f32 0.25, %v3859_v6  ;;  %v10151_v31 = vmul.f32 0.25, %v3860_v20  ;;  %v12576_v6 = vld [vmem:[#allocation80_spill] sm:$0xff] }
0x1333   : > { %4764 = vrot.lane.b32.xlu1 %v10069_v18, %s5910_s16  ;;  %4766 = vrot.lane.b32.xlu0 %v10071_v11, %s5910_s16 }
0x1337   : > { %4768 = vrot.lane.b32.xlu1 %v10085_v51, %s5910_s16  ;;  %4770 = vrot.lane.b32.xlu0 %v10087_v28, %s5910_s16 }
0x133b   : > { %4772 = vrot.lane.b32.xlu1 %v10101_v43, %s5910_s16  ;;  %4774 = vrot.lane.b32.xlu0 %v10103_v39, %s5910_s16 }
0x133f   : > { %4801 = vrot.lane.b32.xlu1 %v10117_v44, %s5911_s17  ;;  %4803 = vrot.lane.b32.xlu0 %v10119_v47, %s5911_s17 }
0x1343   : > { %4805 = vrot.lane.b32.xlu1 %v10131_v45, %s5911_s17  ;;  %4807 = vrot.lane.b32.xlu0 %v10133_v41, %s5911_s17 }
0x1347   : > { %4809 = vrot.lane.b32.xlu1 %v10141_v52, %s5911_s17  ;;  %4811 = vrot.lane.b32.xlu0 %v10143_v16, %s5911_s17 }
0x134b   : > { %4813 = vrot.lane.b32.xlu1 %v10149_v57, %s5911_s17  ;;  %4815 = vrot.lane.b32.xlu0 %v10151_v31, %s5911_s17 }
0x134f   : > { %4834 = vrot.lane.b32.xlu1 %v9989_v9, %s5911_s17  ;;  %4836 = vrot.lane.b32.xlu0 %v9991_v7, %s5911_s17 }
0x1353   : > { %4838 = vrot.lane.b32.xlu1 %v10005_v60, %s5911_s17  ;;  %4840 = vrot.lane.b32.xlu0 %v10007_v32, %s5911_s17 }
0x1357   : > { %4842 = vrot.lane.b32.xlu1 %v10021_v13, %s5911_s17  ;;  %4844 = vrot.lane.b32.xlu0 %v10023_v35, %s5911_s17 }
0x135b   : > { %4846 = vrot.lane.b32.xlu1 %v10037_v61, %s5911_s17  ;;  %4848 = vrot.lane.b32.xlu0 %v10039_v37, %s5911_s17 }
0x135f   : > { %4867 = vrot.lane.b32.xlu1 %v10053_v36, %s5912_s18  ;;  %4869 = vrot.lane.b32.xlu0 %v10055_v56, %s5912_s18 }
0x1363   : > { %4871 = vrot.lane.b32.xlu1 %v10069_v18, %s5912_s18  ;;  %4873 = vrot.lane.b32.xlu0 %v10071_v11, %s5912_s18 }
0x1367   : > { %4875 = vrot.lane.b32.xlu1 %v10085_v51, %s5912_s18  ;;  %4877 = vrot.lane.b32.xlu0 %v10087_v28, %s5912_s18 }
0x136b   : > { %4879 = vrot.lane.b32.xlu1 %v10101_v43, %s5912_s18  ;;  %4881 = vrot.lane.b32.xlu0 %v10103_v39, %s5912_s18 }
0x136f   : > { %4900 = vrot.lane.b32.xlu1 %v10117_v44, %s5913_s19  ;;  %4902 = vrot.lane.b32.xlu0 %v10119_v47, %s5913_s19 }
0x1373   : > { %4904 = vrot.lane.b32.xlu1 %v10131_v45, %s5913_s19  ;;  %4906 = vrot.lane.b32.xlu0 %v10133_v41, %s5913_s19 }
0x1377   : > { %4908 = vrot.lane.b32.xlu1 %v10141_v52, %s5913_s19  ;;  %4910 = vrot.lane.b32.xlu0 %v10143_v16, %s5913_s19 }
0x137b   : > { %4912 = vrot.lane.b32.xlu1 %v10149_v57, %s5913_s19  ;;  %4914 = vrot.lane.b32.xlu0 %v10151_v31, %s5913_s19 }
0x137f   : > { %4933 = vrot.lane.b32.xlu1 %v9989_v9, %s5913_s19  ;;  %4935 = vrot.lane.b32.xlu0 %v9991_v7, %s5913_s19 }
0x1381   : > { %v4679_v48 = vpop.permute.xlu1 %4678  ;;  %v4681_v5 = vpop.permute.xlu0 %4680 }
0x1382   : > { %4703 = vst.msk [vmem:[%s7531_s13] sm:$0xff] %vm4702_vm1, %v4679_v48  ;;  %4704 = vst.msk [vmem:[%s7531_s13 + $0x8] sm:$0xff] %vm4702_vm1, %v4681_v5  ;;  %v12578_v5 = vld [vmem:[#allocation96_spill] sm:$0xff] }
0x1383   : > { %4937 = vrot.lane.b32.xlu1 %v10005_v60, %s5913_s19  ;;  %4939 = vrot.lane.b32.xlu0 %v10007_v32, %s5913_s19 }
0x1385   : > { %v4683_v2 = vpop.permute.xlu1 %4682  ;;  %v4685_v15 = vpop.permute.xlu0 %4684 }
0x1386   : > { %4705 = vst.msk [vmem:[%s7531_s13 + $0x10] sm:$0xff] %vm4702_vm1, %v4683_v2  ;;  %4706 = vst.msk [vmem:[%s7531_s13 + $0x18] sm:$0xff] %vm4702_vm1, %v4685_v15  ;;  %v12579_v2 = vld [vmem:[#allocation103_spill] sm:$0xff] }
0x1387   : > { %4941 = vrot.lane.b32.xlu1 %v10021_v13, %s5913_s19  ;;  %4943 = vrot.lane.b32.xlu0 %v10023_v35, %s5913_s19  ;;  %v12580_v15 = vsub.f32 %v12578_v5, %v12579_v2  ;;  %v12610_v2 = vld [vmem:[#allocation134_spill] sm:$0xff] }
0x1389   : > { %v4687_v27 = vpop.permute.xlu1 %4686  ;;  %v4689_v46 = vpop.permute.xlu0 %4688 }
0x138a   : > { %4707 = vst.msk [vmem:[%s7531_s13 + $0x20] sm:$0xff] %vm4702_vm1, %v4687_v27  ;;  %4708 = vst.msk [vmem:[%s7531_s13 + $0x28] sm:$0xff] %vm4702_vm1, %v4689_v46  ;;  %v4175_v27 = vmul.f32 0.70710677, %v12580_v15  ;;  %v12581_v46 = vld [vmem:[#allocation102_spill] sm:$0xff] }
0x138b   : > { %4945 = vrot.lane.b32.xlu1 %v10037_v61, %s5913_s19  ;;  %4947 = vrot.lane.b32.xlu0 %v10039_v37, %s5913_s19 }
0x138d   : > { %v4691_v38 = vpop.permute.xlu1 %4690  ;;  %v4693_v4 = vpop.permute.xlu0 %4692 }
0x138e   : > { %4709 = vst.msk [vmem:[%s7531_s13 + $0x30] sm:$0xff] %vm4702_vm1, %v4691_v38  ;;  %4710 = vst.msk [vmem:[%s7531_s13 + $0x38] sm:$0xff] %vm4702_vm1, %v4693_v4  ;;  %v12582_v38 = vld [vmem:[#allocation97_spill] sm:$0xff]  ;;  %vm5278_vm1 = vcmask 195768  }
0x138f   : > { %4966 = vrot.lane.b32.xlu1 %v10053_v36, %s5914_s20  ;;  %4968 = vrot.lane.b32.xlu0 %v10055_v56, %s5914_s20  ;;  %v12583_v4 = vsub.f32 %v12581_v46, %v12582_v38  ;;  %v12611_v38 = vld [vmem:[#allocation144_spill] sm:$0xff] }
0x1391   : > { %v4720_v1 = vpop.permute.xlu1 %4719  ;;  %v4722_v25 = vpop.permute.xlu0 %4721 }
0x1392   : > { %4744 = vst.msk [vmem:[%s7531_s13] sm:$0xff] %vm4743_vm2, %v4720_v1  ;;  %4745 = vst.msk [vmem:[%s7531_s13 + $0x8] sm:$0xff] %vm4743_vm2, %v4722_v25  ;;  %v4176_v1 = vmul.f32 0.70710677, %v12583_v4 }
0x1393   : > { %4970 = vrot.lane.b32.xlu1 %v10069_v18, %s5914_s20  ;;  %4972 = vrot.lane.b32.xlu0 %v10071_v11, %s5914_s20 }
0x1395   : > { %v4724_v54 = vpop.permute.xlu1 %4723  ;;  %v4726_v59 = vpop.permute.xlu0 %4725 }
0x1396   : > { %4746 = vst.msk [vmem:[%s7531_s13 + $0x10] sm:$0xff] %vm4743_vm2, %v4724_v54  ;;  %4747 = vst.msk [vmem:[%s7531_s13 + $0x18] sm:$0xff] %vm4743_vm2, %v4726_v59 }
0x1397   : > { %4974 = vrot.lane.b32.xlu1 %v10085_v51, %s5914_s20  ;;  %4976 = vrot.lane.b32.xlu0 %v10087_v28, %s5914_s20 }
0x1399   : > { %v4728_v26 = vpop.permute.xlu1 %4727  ;;  %v4730_v3 = vpop.permute.xlu0 %4729 }
0x139a   : > { %4748 = vst.msk [vmem:[%s7531_s13 + $0x20] sm:$0xff] %vm4743_vm2, %v4728_v26  ;;  %4749 = vst.msk [vmem:[%s7531_s13 + $0x28] sm:$0xff] %vm4743_vm2, %v4730_v3  ;;  %v12587_v3 = vld [vmem:[#allocation84_spill] sm:$0xff] }
0x139b   : > { %4978 = vrot.lane.b32.xlu1 %v10101_v43, %s5914_s20  ;;  %4980 = vrot.lane.b32.xlu0 %v10103_v39, %s5914_s20 }
0x139d   : > { %v4732_v42 = vpop.permute.xlu1 %4731  ;;  %v4734_v58 = vpop.permute.xlu0 %4733 }
0x139e   : > { %4750 = vst.msk [vmem:[%s7531_s13 + $0x30] sm:$0xff] %vm4743_vm2, %v4732_v42  ;;  %4751 = vst.msk [vmem:[%s7531_s13 + $0x38] sm:$0xff] %vm4743_vm2, %v4734_v58  ;;  %v12588_v42 = vld [vmem:[#allocation99_spill] sm:$0xff]  ;;  %vm5311_vm2 = vcmask 203968  }
0x139f   : > { %4999 = vrot.lane.b32.xlu1 %v10117_v44, %s5915_s21  ;;  %5001 = vrot.lane.b32.xlu0 %v10119_v47, %s5915_s21  ;;  %v12589_v58 = vsub.f32 %v12587_v3, %v12588_v42  ;;  %v12619_v42 = vld [vmem:[#allocation87_spill] sm:$0xff] }
0x13a1   : > { %v4761_v53 = vpop.permute.xlu1 %4760  ;;  %v4763_v23 = vpop.permute.xlu0 %4762 }
0x13a2   : > { %4785 = vst.msk [vmem:[%s7531_s13] sm:$0xff] %vm4784_vm3, %v4761_v53  ;;  %4786 = vst.msk [vmem:[%s7531_s13 + $0x8] sm:$0xff] %vm4784_vm3, %v4763_v23  ;;  %v4178_v53 = vmul.f32 0.70710677, %v12589_v58 }
0x13a3   : > { %5003 = vrot.lane.b32.xlu1 %v10131_v45, %s5915_s21  ;;  %5005 = vrot.lane.b32.xlu0 %v10133_v41, %s5915_s21 }
0x13a5   : > { %v4765_v49 = vpop.permute.xlu1 %4764  ;;  %v4767_v50 = vpop.permute.xlu0 %4766 }
0x13a6   : > { %4787 = vst.msk [vmem:[%s7531_s13 + $0x10] sm:$0xff] %vm4784_vm3, %v4765_v49  ;;  %4788 = vst.msk [vmem:[%s7531_s13 + $0x18] sm:$0xff] %vm4784_vm3, %v4767_v50 }
0x13a7   : > { %5007 = vrot.lane.b32.xlu1 %v10141_v52, %s5915_s21  ;;  %5009 = vrot.lane.b32.xlu0 %v10143_v16, %s5915_s21 }
0x13a9   : > { %v4769_v17 = vpop.permute.xlu1 %4768  ;;  %v4771_v29 = vpop.permute.xlu0 %4770 }
0x13aa   : > { %4789 = vst.msk [vmem:[%s7531_s13 + $0x20] sm:$0xff] %vm4784_vm3, %v4769_v17  ;;  %4790 = vst.msk [vmem:[%s7531_s13 + $0x28] sm:$0xff] %vm4784_vm3, %v4771_v29 }
0x13ab   : > { %5011 = vrot.lane.b32.xlu1 %v10149_v57, %s5915_s21  ;;  %5013 = vrot.lane.b32.xlu0 %v10151_v31, %s5915_s21 }
0x13ad   : > { %v4773_v62 = vpop.permute.xlu1 %4772  ;;  %v4775_v0 = vpop.permute.xlu0 %4774 }
0x13ae   : > { %4791 = vst.msk [vmem:[%s7531_s13 + $0x30] sm:$0xff] %vm4784_vm3, %v4773_v62  ;;  %4792 = vst.msk [vmem:[%s7531_s13 + $0x38] sm:$0xff] %vm4784_vm3, %v4775_v0  ;;  %v12592_v62 = vld [vmem:[#allocation143_spill] sm:$0xff]  ;;  %vm5344_vm3 = vcmask 212168  }
0x13af   : > { %5032 = vrot.lane.b32.xlu1 %v9989_v9, %s5915_s21  ;;  %5034 = vrot.lane.b32.xlu0 %v9991_v7, %s5915_s21  ;;  %v4226_v0 = vadd.f32 %v12592_v62, %v4178_v53  ;;  %v12620_v53 = vld [vmem:[#allocation257_spill] sm:$0xff] }
0x13b0   : > { %v12623_v62 = vld [vmem:[#allocation85_spill] sm:$0xff] }
0x13b1   : > { %v4802_v24 = vpop.permute.xlu1 %4801  ;;  %v4804_v63 = vpop.permute.xlu0 %4803 }
0x13b2   : > { %4826 = vst.msk [vmem:[%s7531_s13] sm:$0xff] %vm4825_vm4, %v4802_v24  ;;  %4827 = vst.msk [vmem:[%s7531_s13 + $0x8] sm:$0xff] %vm4825_vm4, %v4804_v63  ;;  %v12594_v24 = vld [vmem:[#allocation106_spill] sm:$0xff] }
0x13b3   : > { %5036 = vrot.lane.b32.xlu1 %v10005_v60, %s5915_s21  ;;  %5038 = vrot.lane.b32.xlu0 %v10007_v32, %s5915_s21 }
0x13b5   : > { %v4806_v9 = vpop.permute.xlu1 %4805  ;;  %v4808_v21 = vpop.permute.xlu0 %4807 }
0x13b6   : > { %4828 = vst.msk [vmem:[%s7531_s13 + $0x10] sm:$0xff] %vm4825_vm4, %v4806_v9  ;;  %4829 = vst.msk [vmem:[%s7531_s13 + $0x18] sm:$0xff] %vm4825_vm4, %v4808_v21  ;;  %v12596_v21 = vld [vmem:[#allocation107_spill] sm:$0xff] }
0x13b7   : > { %5040 = vrot.lane.b32.xlu1 %v10021_v13, %s5915_s21  ;;  %5042 = vrot.lane.b32.xlu0 %v10023_v35, %s5915_s21 }
0x13b9   : > { %v4810_v7 = vpop.permute.xlu1 %4809  ;;  %v4812_v60 = vpop.permute.xlu0 %4811 }
0x13ba   : > { %4830 = vst.msk [vmem:[%s7531_s13 + $0x20] sm:$0xff] %vm4825_vm4, %v4810_v7  ;;  %4831 = vst.msk [vmem:[%s7531_s13 + $0x28] sm:$0xff] %vm4825_vm4, %v4812_v60  ;;  %v12597_v7 = vld [vmem:[#allocation117_spill] sm:$0xff] }
0x13bb   : > { %5044 = vrot.lane.b32.xlu1 %v10037_v61, %s5915_s21  ;;  %5046 = vrot.lane.b32.xlu0 %v10039_v37, %s5915_s21  ;;  %v12598_v60 = vsub.f32 %v12596_v21, %v12597_v7 }
0x13bd   : > { %v4814_v32 = vpop.permute.xlu1 %4813  ;;  %v4816_v13 = vpop.permute.xlu0 %4815 }
0x13be   : > { %4832 = vst.msk [vmem:[%s7531_s13 + $0x30] sm:$0xff] %vm4825_vm4, %v4814_v32  ;;  %4833 = vst.msk [vmem:[%s7531_s13 + $0x38] sm:$0xff] %vm4825_vm4, %v4816_v13  ;;  %v4180_v32 = vmul.f32 0.70710677, %v12598_v60  ;;  %vm5377_vm4 = vcmask 220368  }
0x13bf   : > { %5065 = vrot.lane.b32.xlu1 %v10053_v36, %s5916_s22  ;;  %5067 = vrot.lane.b32.xlu0 %v10055_v56, %s5916_s22 }
0x13c1   : > { %v4835_v35 = vpop.permute.xlu1 %4834  ;;  %v4837_v61 = vpop.permute.xlu0 %4836 }
0x13c2   : > { %4859 = vst.msk [vmem:[%s7531_s13] sm:$0xff] %vm4858_vm5, %v4835_v35  ;;  %4860 = vst.msk [vmem:[%s7531_s13 + $0x8] sm:$0xff] %vm4858_vm5, %v4837_v61  ;;  %v12599_v61 = vld [vmem:[#allocation142_spill] sm:$0xff] }
0x13c3   : > { %5069 = vrot.lane.b32.xlu1 %v10069_v18, %s5916_s22  ;;  %5071 = vrot.lane.b32.xlu0 %v10071_v11, %s5916_s22 }
0x13c5   : > { %v4839_v37 = vpop.permute.xlu1 %4838  ;;  %v4841_v22 = vpop.permute.xlu0 %4840 }
0x13c6   : > { %4861 = vst.msk [vmem:[%s7531_s13 + $0x10] sm:$0xff] %vm4858_vm5, %v4839_v37  ;;  %4862 = vst.msk [vmem:[%s7531_s13 + $0x18] sm:$0xff] %vm4858_vm5, %v4841_v22  ;;  %v12600_v22 = vld [vmem:[#allocation131_spill] sm:$0xff] }
0x13c7   : > { %5073 = vrot.lane.b32.xlu1 %v10085_v51, %s5916_s22  ;;  %5075 = vrot.lane.b32.xlu0 %v10087_v28, %s5916_s22 }
0x13c9   : > { %v4843_v36 = vpop.permute.xlu1 %4842  ;;  %v4845_v56 = vpop.permute.xlu0 %4844 }
0x13ca   : > { %4863 = vst.msk [vmem:[%s7531_s13 + $0x20] sm:$0xff] %vm4858_vm5, %v4843_v36  ;;  %4864 = vst.msk [vmem:[%s7531_s13 + $0x28] sm:$0xff] %vm4858_vm5, %v4845_v56  ;;  %v4274_v36 = vadd.f32 %v12600_v22, %v4226_v0  ;;  %v12624_v0 = vld [vmem:[#allocation115_spill] sm:$0xff]  ;;  %v12630_v22 = vld [vmem:[#allocation260_spill] sm:$0xff] }
0x13cb   : > { %5077 = vrot.lane.b32.xlu1 %v10101_v43, %s5916_s22  ;;  %5079 = vrot.lane.b32.xlu0 %v10103_v39, %s5916_s22  ;;  %v12572_v43 = vld [vmem:[#allocation91_spill] sm:$0xff]  ;;  %v12573_v39 = vld [vmem:[#allocation58_spill] sm:$0xff] }
0x13cc   : > { %v12574_v19 = vsub.f32 %v12572_v43, %v12573_v39  ;;  %v12603_v39 = vld [vmem:[#allocation81_spill] sm:$0xff] }
0x13cd   : > { %v4847_v18 = vpop.permute.xlu1 %4846  ;;  %v4849_v11 = vpop.permute.xlu0 %4848 }
0x13ce   : > { %4865 = vst.msk [vmem:[%s7531_s13 + $0x30] sm:$0xff] %vm4858_vm5, %v4847_v18  ;;  %4866 = vst.msk [vmem:[%s7531_s13 + $0x38] sm:$0xff] %vm4858_vm5, %v4849_v11  ;;  %v12601_v11 = vld [vmem:[#allocation128_spill] sm:$0xff]  ;;  %vm5410_vm5 = vcmask 228568  }
0x13cf   : > { %5098 = vrot.lane.b32.xlu1 %v10117_v44, %s5917_s24  ;;  %5100 = vrot.lane.b32.xlu0 %v10119_v47, %s5917_s24  ;;  %v4173_v44 = vmul.f32 0.70710677, %v12574_v19  ;;  %v12577_v47 = vsub.f32 %v12575_v10, %v12576_v6  ;;  %v12604_v19 = vld [vmem:[#allocation65_spill] sm:$0xff]  ;;  %v12606_v6 = vld [vmem:[#allocation68_spill] sm:$0xff] }
0x13d1   : > { %v4868_v51 = vpop.permute.xlu1 %4867  ;;  %v4870_v28 = vpop.permute.xlu0 %4869  ;;  %v4174_v12 = vmul.f32 0.70710677, %v12577_v47  ;;  %v12607_v47 = vld [vmem:[#allocation44_spill] sm:$0xff] }
0x13d2   : > { %4892 = vst.msk [vmem:[%s7531_s13] sm:$0xff] %vm4891_vm6, %v4868_v51  ;;  %4893 = vst.msk [vmem:[%s7531_s13 + $0x8] sm:$0xff] %vm4891_vm6, %v4870_v28  ;;  %v12602_v28 = vld [vmem:[#allocation130_spill] sm:$0xff] }
0x13d3   : > { %5102 = vrot.lane.b32.xlu1 %v10131_v45, %s5917_s24  ;;  %5104 = vrot.lane.b32.xlu0 %v10133_v41, %s5917_s24  ;;  %v4221_v45 = vadd.f32 %v9777_v30, %v4173_v44  ;;  %v4222_v41 = vadd.f32 %v9779_v55, %v4174_v12  ;;  %v4228_v43 = vadd.f32 %v12602_v28, %v4180_v32  ;;  %v12632_v28 = vld [vmem:[#allocation76_spill] sm:$0xff] }
0x13d4   : > { %v12605_v44 = vsub.f32 %v12603_v39, %v12604_v19  ;;  %v12608_v12 = vsub.f32 %v12606_v6, %v12607_v47  ;;  %v12633_v39 = vld [vmem:[#allocation116_spill] sm:$0xff]  ;;  %v12634_v19 = vld [vmem:[#allocation109_spill] sm:$0xff] }
0x13d5   : > { %v4872_v20 = vpop.permute.xlu1 %4871  ;;  %v4874_v48 = vpop.permute.xlu0 %4873  ;;  %v4269_v25 = vadd.f32 %v9795_v33, %v4221_v45  ;;  %v4270_v30 = vadd.f32 %v9797_v34, %v4222_v41  ;;  %v12584_v33 = vld [vmem:[#allocation98_spill] sm:$0xff]  ;;  %v12585_v34 = vld [vmem:[#allocation69_spill] sm:$0xff]  ;;  %v10413_v45 = vmul.f32 0.28867513, %v4274_v36  ;;  %v4276_v15 = vadd.f32 %v12610_v2, %v4228_v43  ;;  %v12636_v6 = vld [vmem:[#allocation108_spill] sm:$0xff] }
0x13d6   : > { %4894 = vst.msk [vmem:[%s7531_s13 + $0x10] sm:$0xff] %vm4891_vm6, %v4872_v20  ;;  %4895 = vst.msk [vmem:[%s7531_s13 + $0x18] sm:$0xff] %vm4891_vm6, %v4874_v48  ;;  %v12586_v59 = vsub.f32 %v12584_v33, %v12585_v34  ;;  %v4309_v10 = vmul.f32 0.70710677, %v12605_v44  ;;  %v4310_v20 = vmul.f32 0.70710677, %v12608_v12  ;;  %v12635_v44 = vsub.f32 %v12633_v39, %v12634_v19 }
0x13d7   : > { %5106 = vrot.lane.b32.xlu1 %v10141_v52, %s5917_s24  ;;  %5108 = vrot.lane.b32.xlu0 %v10143_v16, %s5917_s24  ;;  %v4223_v52 = vadd.f32 %v9783_v8, %v4175_v27  ;;  %v4224_v16 = vadd.f32 %v9785_v40, %v4176_v1  ;;  %v10367_v23 = vmul.f32 0.28867513, %v4269_v25  ;;  %v10369_v49 = vmul.f32 0.28867513, %v4270_v30  ;;  %v12590_v40 = vld [vmem:[#allocation141_spill] sm:$0xff]  ;;  %v12613_v30 = vld [vmem:[#allocation112_spill] sm:$0xff] }
0x13d8   : > { %v4177_v26 = vmul.f32 0.70710677, %v12586_v59  ;;  %v12609_v41 = vld [vmem:[#allocation133_spill] sm:$0xff]  ;;  %v4357_v4 = vadd.f32 %v12611_v38, %v4309_v10  ;;  %v12617_v33 = vld [vmem:[#allocation67_spill] sm:$0xff]  ;;  %v10435_v3 = vmul.f32 0.28867513, %v4276_v15 }
0x13d9   : > { %v4876_v54 = vpop.permute.xlu1 %4875  ;;  %v4878_v55 = vpop.permute.xlu0 %4877  ;;  %v4271_v8 = vadd.f32 %v9799_v14, %v4223_v52  ;;  %v4272_v50 = vadd.f32 %v12590_v40, %v4224_v16  ;;  %v12593_v14 = vld [vmem:[#allocation101_spill] sm:$0xff]  ;;  %v4315_v10 = vmul.f32 0.70710677, %v12635_v44  ;;  %v12637_v47 = vld [vmem:[#allocation124_spill] sm:$0xff]  ;;  %v12639_v2 = vld [vmem:[#allocation90_spill] sm:$0xff] }
0x13da   : > { %4896 = vst.msk [vmem:[%s7531_s13 + $0x20] sm:$0xff] %vm4891_vm6, %v4876_v54  ;;  %4897 = vst.msk [vmem:[%s7531_s13 + $0x28] sm:$0xff] %vm4891_vm6, %v4878_v55  ;;  %v12595_v63 = vsub.f32 %v12593_v14, %v12594_v24  ;;  %v12612_v1 = vld [vmem:[#allocation145_spill] sm:$0xff]  ;;  %v4405_v58 = vadd.f32 %v12619_v42, %v4357_v4  ;;  %v12625_v14 = vsub.f32 %v12623_v62, %v12624_v0  ;;  %v12651_v62 = vld [vmem:[#allocation92_spill] sm:$0xff] }
0x13db   : > { %5110 = vrot.lane.b32.xlu1 %v10149_v57, %s5917_s24  ;;  %5112 = vrot.lane.b32.xlu0 %v10151_v31, %s5917_s24  ;;  %v12591_v31 = vld [vmem:[#allocation139_spill] sm:$0xff]  ;;  %v10389_v13 = vmul.f32 0.28867513, %v4271_v8  ;;  %v10391_v35 = vmul.f32 0.28867513, %v4272_v50  ;;  %v4358_v25 = vadd.f32 %v12612_v1, %v4310_v20  ;;  %v12614_v54 = vld [vmem:[#allocation53_spill] sm:$0xff]  ;;  %v12638_v12 = vsub.f32 %v12636_v6, %v12637_v47 }
0x13dc   : > { %v4225_v29 = vadd.f32 %v12591_v31, %v4177_v26  ;;  %v4179_v9 = vmul.f32 0.70710677, %v12595_v63  ;;  %v12615_v55 = vsub.f32 %v12613_v30, %v12614_v54  ;;  %v12616_v16 = vld [vmem:[#allocation113_spill] sm:$0xff]  ;;  %v4313_v24 = vmul.f32 0.70710677, %v12625_v14  ;;  %v12626_v63 = vld [vmem:[#allocation114_spill] sm:$0xff] }
0x13dd   : > { %v4880_v57 = vpop.permute.xlu1 %4879  ;;  %v4882_v17 = vpop.permute.xlu0 %4881  ;;  %v12618_v34 = vsub.f32 %v12616_v16, %v12617_v33  ;;  %v4406_v8 = vadd.f32 %v12620_v53, %v4358_v25  ;;  %v12622_v31 = vld [vmem:[#allocation137_spill] sm:$0xff]  ;;  %v10455_v60 = vmul.f32 0.28867513, %v4405_v58  ;;  %v4316_v20 = vmul.f32 0.70710677, %v12638_v12  ;;  %v12641_v1 = vld [vmem:[#allocation86_spill] sm:$0xff] }
0x13de   : > { %4898 = vst.msk [vmem:[%s7531_s13 + $0x30] sm:$0xff] %vm4891_vm6, %v4880_v57  ;;  %4899 = vst.msk [vmem:[%s7531_s13 + $0x38] sm:$0xff] %vm4891_vm6, %v4882_v17  ;;  %v4273_v37 = vadd.f32 %v12599_v61, %v4225_v29  ;;  %v4227_v51 = vadd.f32 %v12601_v11, %v4179_v9  ;;  %v4311_v52 = vmul.f32 0.70710677, %v12615_v55  ;;  %v12621_v57 = vld [vmem:[#allocation135_spill] sm:$0xff]  ;;  %v12627_v9 = vld [vmem:[#allocation100_spill] sm:$0xff]  ;;  %v4363_v25 = vadd.f32 %v12641_v1, %v4315_v10 }
0x13df   : > { %5139 = vrot.lane.b32.xlu1 %v10367_v23, %s5890_s8  ;;  %5141 = vrot.lane.b32.xlu0 %v10369_v49, %s5890_s8  ;;  %v4312_v59 = vmul.f32 0.70710677, %v12618_v34  ;;  %v12628_v21 = vsub.f32 %v12626_v63, %v12627_v9  ;;  %v10457_v32 = vmul.f32 0.28867513, %v4406_v8  ;;  %v12629_v61 = vld [vmem:[#allocation88_spill] sm:$0xff]  ;;  %v12631_v11 = vld [vmem:[#allocation77_spill] sm:$0xff] }
0x13e0   : > { %v10411_v48 = vmul.f32 0.28867513, %v4273_v37  ;;  %v4275_v5 = vadd.f32 %v12609_v41, %v4227_v51  ;;  %v4359_v17 = vadd.f32 %v12621_v57, %v4311_v52  ;;  %v4361_v51 = vadd.f32 %v12631_v11, %v4313_v24  ;;  %v12642_v30 = vld [vmem:[#allocation258_spill] sm:$0xff]  ;;  %v12643_v55 = vld [vmem:[#allocation247_spill] sm:$0xff]  ;;  %v12652_v14 = vld [vmem:[#allocation177_spill] sm:$0xff] }
0x13e1   : > { %v4901_v56 = vpop.permute.xlu1 %4900  ;;  %v4903_v18 = vpop.permute.xlu0 %4902  ;;  %v4360_v29 = vadd.f32 %v12622_v31, %v4312_v59  ;;  %v4314_v7 = vmul.f32 0.70710677, %v12628_v21  ;;  %v4364_v54 = vadd.f32 %v12642_v30, %v4316_v20  ;;  %v12644_v52 = vld [vmem:[#allocation63_spill] sm:$0xff]  ;;  %v12646_v34 = vld [vmem:[#allocation110_spill] sm:$0xff]  ;;  %v12653_v63 = vld [vmem:[#allocation4_spill] sm:$0xff]  ;;  %vm5443_vm6 = vcmask 236768  }
0x13e2   : > { %4925 = vst.msk [vmem:[%s7531_s13] sm:$0xff] %vm4924_vm7, %v4901_v56  ;;  %4926 = vst.msk [vmem:[%s7531_s13 + $0x8] sm:$0xff] %vm4924_vm7, %v4903_v18  ;;  %v10433_v26 = vmul.f32 0.28867513, %v4275_v5  ;;  %v4407_v37 = vadd.f32 %v12629_v61, %v4359_v17  ;;  %v4409_v15 = vadd.f32 %v12639_v2, %v4361_v51  ;;  %v12645_v16 = vsub.f32 %v12643_v55, %v12644_v52  ;;  %v12647_v59 = vld [vmem:[#allocation50_spill] sm:$0xff]  ;;  %v12654_v9 = vld [vmem:[#allocation40_spill] sm:$0xff] }
0x13e3   : > { %5143 = vrot.lane.b32.xlu1 %v10389_v13, %s5890_s8  ;;  %5145 = vrot.lane.b32.xlu0 %v10391_v35, %s5890_s8  ;;  %v4408_v36 = vadd.f32 %v12630_v22, %v4360_v29  ;;  %v4362_v43 = vadd.f32 %v12632_v28, %v4314_v7  ;;  %v12648_v42 = vsub.f32 %v12646_v34, %v12647_v59  ;;  %v12650_v57 = vld [vmem:[#allocation262_spill] sm:$0xff]  ;;  %v12656_v61 = vld [vmem:[#allocation41_spill] sm:$0xff]  ;;  %v12659_v11 = vld [vmem:[#allocation43_spill] sm:$0xff] }
0x13e4   : > { %v10477_v41 = vmul.f32 0.28867513, %v4407_v37  ;;  %v4445_v33 = vmul.f32 0.70710677, %v12645_v16  ;;  %v10499_v53 = vmul.f32 0.28867513, %v4409_v15  ;;  %v4412_v17 = vadd.f32 %v12650_v57, %v4364_v54 }
0x13e5   : > { %v4905_v27 = vpop.permute.xlu1 %4904  ;;  %v4907_v46 = vpop.permute.xlu0 %4906  ;;  %v10479_v5 = vmul.f32 0.28867513, %v4408_v36  ;;  %v4446_v58 = vmul.f32 0.70710677, %v12648_v42  ;;  %v12655_v21 = vsub.f32 %v12653_v63, %v12654_v9  ;;  %v12657_v37 = vld [vmem:[#allocation59_spill] sm:$0xff]  ;;  %v12660_v28 = vld [vmem:[#allocation209_spill] sm:$0xff] }
0x13e6   : > { %4927 = vst.msk [vmem:[%s7531_s13 + $0x10] sm:$0xff] %vm4924_vm7, %v4905_v27  ;;  %4928 = vst.msk [vmem:[%s7531_s13 + $0x18] sm:$0xff] %vm4924_vm7, %v4907_v46  ;;  %v12640_v27 = vld [vmem:[#allocation259_spill] sm:$0xff]  ;;  %v4493_v0 = vadd.f32 %v12651_v62, %v4445_v33  ;;  %v12658_v22 = vsub.f32 %v12656_v61, %v12657_v37  ;;  %v12661_v44 = vld [vmem:[#allocation192_spill] sm:$0xff] }
0x13e7   : > { %5147 = vrot.lane.b32.xlu1 %v10411_v48, %s5890_s8  ;;  %5149 = vrot.lane.b32.xlu0 %v10413_v45, %s5890_s8  ;;  %v4410_v46 = vadd.f32 %v12640_v27, %v4362_v43  ;;  %v4494_v24 = vadd.f32 %v12652_v14, %v4446_v58  ;;  %v4447_v7 = vmul.f32 0.70710677, %v12655_v21  ;;  %v12662_v6 = vld [vmem:[#allocation193_spill] sm:$0xff]  ;;  %v12666_v27 = vld [vmem:[#allocation48_spill] sm:$0xff]  ;;  %v12671_v34 = vld [vmem:[#allocation194_spill] sm:$0xff] }
0x13e8   : > { %v4448_v36 = vmul.f32 0.70710677, %v12658_v22  ;;  %v4541_v51 = vadd.f32 %v12659_v11, %v4493_v0  ;;  %v12663_v12 = vld [vmem:[#allocation5_spill] sm:$0xff]  ;;  %v12669_v30 = vld [vmem:[#allocation212_spill] sm:$0xff]  ;;  %v12672_v42 = vld [vmem:[#allocation254_spill] sm:$0xff] }
0x13e9   : > { %v4909_v40 = vpop.permute.xlu1 %4908  ;;  %v4911_v50 = vpop.permute.xlu0 %4910  ;;  %v10501_v8 = vmul.f32 0.28867513, %v4410_v46  ;;  %v4542_v43 = vadd.f32 %v12660_v28, %v4494_v24  ;;  %v4495_v10 = vadd.f32 %v12661_v44, %v4447_v7  ;;  %v12664_v20 = vld [vmem:[#allocation49_spill] sm:$0xff]  ;;  %v12667_v46 = vld [vmem:[#allocation42_spill] sm:$0xff]  ;;  %v12670_v55 = vld [vmem:[#allocation256_spill] sm:$0xff] }
0x13ea   : > { %4929 = vst.msk [vmem:[%s7531_s13 + $0x20] sm:$0xff] %vm4924_vm7, %v4909_v40  ;;  %4930 = vst.msk [vmem:[%s7531_s13 + $0x28] sm:$0xff] %vm4924_vm7, %v4911_v50  ;;  %v12649_v40 = vld [vmem:[#allocation89_spill] sm:$0xff]  ;;  %v4496_v47 = vadd.f32 %v12662_v6, %v4448_v36  ;;  %v12665_v2 = vsub.f32 %v12663_v12, %v12664_v20  ;;  %v10543_v1 = vmul.f32 0.28867513, %v4541_v51  ;;  %v12680_v21 = vld [vmem:[#allocation2_spill] sm:$0xff] }
0x13eb   : > { %5151 = vrot.lane.b32.xlu1 %v10433_v26, %s5890_s8  ;;  %5153 = vrot.lane.b32.xlu0 %v10435_v3, %s5890_s8  ;;  %v4411_v50 = vadd.f32 %v12649_v40, %v4363_v25  ;;  %v10545_v25 = vmul.f32 0.28867513, %v4542_v43  ;;  %v4543_v54 = vadd.f32 %v12669_v30, %v4495_v10  ;;  %v12673_v40 = vld [vmem:[#allocation66_spill] sm:$0xff]  ;;  %v12679_v63 = vld [vmem:[#allocation45_spill] sm:$0xff]  ;;  %v12682_v11 = vld [vmem:[#allocation255_spill] sm:$0xff] }
0x13ec   : > { %v4449_v15 = vmul.f32 0.70710677, %v12665_v2  ;;  %v4544_v52 = vadd.f32 %v12670_v55, %v4496_v47  ;;  %v12681_v22 = vld [vmem:[#allocation54_spill] sm:$0xff]  ;;  %v12684_v44 = vld [vmem:[#allocation79_spill] sm:$0xff] }
0x13ed   : > { %v4913_v56 = vpop.permute.xlu1 %4912  ;;  %v4915_v18 = vpop.permute.xlu0 %4914  ;;  %v10565_v14 = vmul.f32 0.28867513, %v4543_v54 }
0x13ee   : > { %4931 = vst.msk [vmem:[%s7531_s13 + $0x30] sm:$0xff] %vm4924_vm7, %v4913_v56  ;;  %4932 = vst.msk [vmem:[%s7531_s13 + $0x38] sm:$0xff] %vm4924_vm7, %v4915_v18  ;;  %v10521_v56 = vmul.f32 0.28867513, %v4411_v50  ;;  %v10523_v18 = vmul.f32 0.28867513, %v4412_v17  ;;  %v4497_v59 = vadd.f32 %v12671_v34, %v4449_v15 }
0x13ef   : > { %5180 = vrot.lane.b32.xlu1 %v10455_v60, %s5918_s25  ;;  %5182 = vrot.lane.b32.xlu0 %v10457_v32, %s5918_s25  ;;  %v12674_v50 = vld [vmem:[#allocation61_spill] sm:$0xff]  ;;  %v10567_v24 = vmul.f32 0.28867513, %v4544_v52  ;;  %vm5476_vm7 = vcmask 244968  }
0x13f0   : > { %v12675_v57 = vsub.f32 %v12673_v40, %v12674_v50  ;;  %v4545_v9 = vadd.f32 %v12679_v63, %v4497_v59 }
0x13f1   : > { %v4934_v38 = vpop.permute.xlu1 %4933  ;;  %v4936_v4 = vpop.permute.xlu0 %4935 }
0x13f2   : > { %4958 = vst.msk [vmem:[%s7531_s13] sm:$0xff] %vm4957_vm8, %v4934_v38  ;;  %4959 = vst.msk [vmem:[%s7531_s13 + $0x8] sm:$0xff] %vm4957_vm8, %v4936_v4  ;;  %v12668_v38 = vsub.f32 %v12666_v27, %v12667_v46  ;;  %v4451_v17 = vmul.f32 0.70710677, %v12675_v57  ;;  %v10581_v28 = vmul.f32 0.28867513, %v4545_v9 }
0x13f3   : > { %5184 = vrot.lane.b32.xlu1 %v10477_v41, %s5918_s25  ;;  %5186 = vrot.lane.b32.xlu0 %v10479_v5, %s5918_s25 }
0x13f4   : > { %v4450_v4 = vmul.f32 0.70710677, %v12668_v38  ;;  %v4499_v36 = vadd.f32 %v12681_v22, %v4451_v17 }
0x13f5   : > { %v4938_v31 = vpop.permute.xlu1 %4937  ;;  %v4940_v29 = vpop.permute.xlu0 %4939 }
0x13f6   : > { %4960 = vst.msk [vmem:[%s7531_s13 + $0x10] sm:$0xff] %vm4957_vm8, %v4938_v31  ;;  %4961 = vst.msk [vmem:[%s7531_s13 + $0x18] sm:$0xff] %vm4957_vm8, %v4940_v29  ;;  %v4498_v58 = vadd.f32 %v12672_v42, %v4450_v4  ;;  %v12676_v31 = vld [vmem:[#allocation95_spill] sm:$0xff]  ;;  %v12677_v29 = vld [vmem:[#allocation6_spill] sm:$0xff] }
0x13f7   : > { %5188 = vrot.lane.b32.xlu1 %v10499_v53, %s5918_s25  ;;  %5190 = vrot.lane.b32.xlu0 %v10501_v8, %s5918_s25  ;;  %v12678_v62 = vsub.f32 %v12676_v31, %v12677_v29 }
0x13f8   : > { %v4546_v7 = vadd.f32 %v12680_v21, %v4498_v58 }
0x13f9   : > { %v4942_v39 = vpop.permute.xlu1 %4941  ;;  %v4944_v19 = vpop.permute.xlu0 %4943  ;;  %v4452_v0 = vmul.f32 0.70710677, %v12678_v62 }
0x13fa   : > { %4962 = vst.msk [vmem:[%s7531_s13 + $0x20] sm:$0xff] %vm4957_vm8, %v4942_v39  ;;  %4963 = vst.msk [vmem:[%s7531_s13 + $0x28] sm:$0xff] %vm4957_vm8, %v4944_v19  ;;  %v10583_v43 = vmul.f32 0.28867513, %v4546_v7  ;;  %v12683_v39 = vld [vmem:[#allocation52_spill] sm:$0xff] }
0x13fb   : > { %5192 = vrot.lane.b32.xlu1 %v10521_v56, %s5918_s25  ;;  %5194 = vrot.lane.b32.xlu0 %v10523_v18, %s5918_s25  ;;  %v4500_v51 = vadd.f32 %v12682_v11, %v4452_v0  ;;  %v4547_v19 = vadd.f32 %v12683_v39, %v4499_v36 }
0x13fd   : > { %v4946_v16 = vpop.permute.xlu1 %4945  ;;  %v4948_v33 = vpop.permute.xlu0 %4947  ;;  %v4548_v10 = vadd.f32 %v12684_v44, %v4500_v51  ;;  %v10595_v12 = vmul.f32 0.28867513, %v4547_v19 }
0x13fe   : > { %4964 = vst.msk [vmem:[%s7531_s13 + $0x30] sm:$0xff] %vm4957_vm8, %v4946_v16  ;;  %4965 = vst.msk [vmem:[%s7531_s13 + $0x38] sm:$0xff] %vm4957_vm8, %v4948_v33  ;;  %vm5509_vm8 = vcmask 253168  }
0x13ff   : > { %5221 = vrot.lane.b32.xlu1 %v10543_v1, %s5919_s26  ;;  %5223 = vrot.lane.b32.xlu0 %v10545_v25, %s5919_s26  ;;  %v10597_v20 = vmul.f32 0.28867513, %v4548_v10 }
0x1401   : > { %v4967_v61 = vpop.permute.xlu1 %4966  ;;  %v4969_v37 = vpop.permute.xlu0 %4968 }
0x1402   : > { %4991 = vst.msk [vmem:[%s7531_s13] sm:$0xff] %vm4990_vm9, %v4967_v61  ;;  %4992 = vst.msk [vmem:[%s7531_s13 + $0x8] sm:$0xff] %vm4990_vm9, %v4969_v37 }
0x1403   : > { %5225 = vrot.lane.b32.xlu1 %v10565_v14, %s5919_s26  ;;  %5227 = vrot.lane.b32.xlu0 %v10567_v24, %s5919_s26 }
0x1405   : > { %v4971_v6 = vpop.permute.xlu1 %4970  ;;  %v4973_v47 = vpop.permute.xlu0 %4972 }
0x1406   : > { %4993 = vst.msk [vmem:[%s7531_s13 + $0x10] sm:$0xff] %vm4990_vm9, %v4971_v6  ;;  %4994 = vst.msk [vmem:[%s7531_s13 + $0x18] sm:$0xff] %vm4990_vm9, %v4973_v47 }
0x1407   : > { %5229 = vrot.lane.b32.xlu1 %v10581_v28, %s5919_s26  ;;  %5231 = vrot.lane.b32.xlu0 %v10583_v43, %s5919_s26 }
0x1409   : > { %v4975_v2 = vpop.permute.xlu1 %4974  ;;  %v4977_v15 = vpop.permute.xlu0 %4976 }
0x140a   : > { %4995 = vst.msk [vmem:[%s7531_s13 + $0x20] sm:$0xff] %vm4990_vm9, %v4975_v2  ;;  %4996 = vst.msk [vmem:[%s7531_s13 + $0x28] sm:$0xff] %vm4990_vm9, %v4977_v15 }
0x140b   : > { %5233 = vrot.lane.b32.xlu1 %v10595_v12, %s5919_s26  ;;  %5235 = vrot.lane.b32.xlu0 %v10597_v20, %s5919_s26 }
0x140d   : > { %v4979_v27 = vpop.permute.xlu1 %4978  ;;  %v4981_v46 = vpop.permute.xlu0 %4980 }
0x140e   : > { %4997 = vst.msk [vmem:[%s7531_s13 + $0x30] sm:$0xff] %vm4990_vm9, %v4979_v27  ;;  %4998 = vst.msk [vmem:[%s7531_s13 + $0x38] sm:$0xff] %vm4990_vm9, %v4981_v46  ;;  %vm5542_vm9 = vcmask 261368  }
0x140f   : > { %5254 = vrot.lane.b32.xlu1 %v10367_v23, %s5919_s26  ;;  %5256 = vrot.lane.b32.xlu0 %v10369_v49, %s5919_s26 }
0x1411   : > { %v5000_v38 = vpop.permute.xlu1 %4999  ;;  %v5002_v4 = vpop.permute.xlu0 %5001 }
0x1412   : > { %5024 = vst.msk [vmem:[%s7531_s13] sm:$0xff] %vm5023_vm10, %v5000_v38  ;;  %5025 = vst.msk [vmem:[%s7531_s13 + $0x8] sm:$0xff] %vm5023_vm10, %v5002_v4 }
0x1413   : > { %5258 = vrot.lane.b32.xlu1 %v10389_v13, %s5919_s26  ;;  %5260 = vrot.lane.b32.xlu0 %v10391_v35, %s5919_s26 }
0x1415   : > { %v5004_v30 = vpop.permute.xlu1 %5003  ;;  %v5006_v54 = vpop.permute.xlu0 %5005 }
0x1416   : > { %5026 = vst.msk [vmem:[%s7531_s13 + $0x10] sm:$0xff] %vm5023_vm10, %v5004_v30  ;;  %5027 = vst.msk [vmem:[%s7531_s13 + $0x18] sm:$0xff] %vm5023_vm10, %v5006_v54 }
0x1417   : > { %5262 = vrot.lane.b32.xlu1 %v10411_v48, %s5919_s26  ;;  %5264 = vrot.lane.b32.xlu0 %v10413_v45, %s5919_s26 }
0x1419   : > { %v5008_v55 = vpop.permute.xlu1 %5007  ;;  %v5010_v52 = vpop.permute.xlu0 %5009 }
0x141a   : > { %5028 = vst.msk [vmem:[%s7531_s13 + $0x20] sm:$0xff] %vm5023_vm10, %v5008_v55  ;;  %5029 = vst.msk [vmem:[%s7531_s13 + $0x28] sm:$0xff] %vm5023_vm10, %v5010_v52 }
0x141b   : > { %5266 = vrot.lane.b32.xlu1 %v10433_v26, %s5919_s26  ;;  %5268 = vrot.lane.b32.xlu0 %v10435_v3, %s5919_s26 }
0x141d   : > { %v5012_v16 = vpop.permute.xlu1 %5011  ;;  %v5014_v33 = vpop.permute.xlu0 %5013 }
0x141e   : > { %5030 = vst.msk [vmem:[%s7531_s13 + $0x30] sm:$0xff] %vm5023_vm10, %v5012_v16  ;;  %5031 = vst.msk [vmem:[%s7531_s13 + $0x38] sm:$0xff] %vm5023_vm10, %v5014_v33 }
0x141f   : > { %5287 = vrot.lane.b32.xlu1 %v10455_v60, %s5920_s27  ;;  %5289 = vrot.lane.b32.xlu0 %v10457_v32, %s5920_s27 }
0x1421   : > { %v5033_v34 = vpop.permute.xlu1 %5032  ;;  %v5035_v59 = vpop.permute.xlu0 %5034 }
0x1422   : > { %5057 = vst.msk [vmem:[%s7531_s13] sm:$0xff] %vm5056_vm11, %v5033_v34  ;;  %5058 = vst.msk [vmem:[%s7531_s13 + $0x8] sm:$0xff] %vm5056_vm11, %v5035_v59 }
0x1423   : > { %5291 = vrot.lane.b32.xlu1 %v10477_v41, %s5920_s27  ;;  %5293 = vrot.lane.b32.xlu0 %v10479_v5, %s5920_s27 }
0x1425   : > { %v5037_v42 = vpop.permute.xlu1 %5036  ;;  %v5039_v58 = vpop.permute.xlu0 %5038 }
0x1426   : > { %5059 = vst.msk [vmem:[%s7531_s13 + $0x10] sm:$0xff] %vm5056_vm11, %v5037_v42  ;;  %5060 = vst.msk [vmem:[%s7531_s13 + $0x18] sm:$0xff] %vm5056_vm11, %v5039_v58 }
0x1427   : > { %5295 = vrot.lane.b32.xlu1 %v10499_v53, %s5920_s27  ;;  %5297 = vrot.lane.b32.xlu0 %v10501_v8, %s5920_s27 }
0x1429   : > { %v5041_v40 = vpop.permute.xlu1 %5040  ;;  %v5043_v50 = vpop.permute.xlu0 %5042 }
0x142a   : > { %5061 = vst.msk [vmem:[%s7531_s13 + $0x20] sm:$0xff] %vm5056_vm11, %v5041_v40  ;;  %5062 = vst.msk [vmem:[%s7531_s13 + $0x28] sm:$0xff] %vm5056_vm11, %v5043_v50 }
0x142b   : > { %5299 = vrot.lane.b32.xlu1 %v10521_v56, %s5920_s27  ;;  %5301 = vrot.lane.b32.xlu0 %v10523_v18, %s5920_s27 }
0x142d   : > { %v5045_v57 = vpop.permute.xlu1 %5044  ;;  %v5047_v17 = vpop.permute.xlu0 %5046 }
0x142e   : > { %5063 = vst.msk [vmem:[%s7531_s13 + $0x30] sm:$0xff] %vm5056_vm11, %v5045_v57  ;;  %5064 = vst.msk [vmem:[%s7531_s13 + $0x38] sm:$0xff] %vm5056_vm11, %v5047_v17 }
0x142f   : > { %5320 = vrot.lane.b32.xlu1 %v10543_v1, %s5867_s23  ;;  %5322 = vrot.lane.b32.xlu0 %v10545_v25, %s5867_s23 }
0x1431   : > { %v5066_v31 = vpop.permute.xlu1 %5065  ;;  %v5068_v29 = vpop.permute.xlu0 %5067 }
0x1432   : > { %5090 = vst.msk [vmem:[%s7531_s13] sm:$0xff] %vm5089_vm12, %v5066_v31  ;;  %5091 = vst.msk [vmem:[%s7531_s13 + $0x8] sm:$0xff] %vm5089_vm12, %v5068_v29 }
0x1433   : > { %5324 = vrot.lane.b32.xlu1 %v10565_v14, %s5867_s23  ;;  %5326 = vrot.lane.b32.xlu0 %v10567_v24, %s5867_s23 }
0x1435   : > { %v5070_v62 = vpop.permute.xlu1 %5069  ;;  %v5072_v0 = vpop.permute.xlu0 %5071 }
0x1436   : > { %5092 = vst.msk [vmem:[%s7531_s13 + $0x10] sm:$0xff] %vm5089_vm12, %v5070_v62  ;;  %5093 = vst.msk [vmem:[%s7531_s13 + $0x18] sm:$0xff] %vm5089_vm12, %v5072_v0 }
0x1437   : > { %5328 = vrot.lane.b32.xlu1 %v10581_v28, %s5867_s23  ;;  %5330 = vrot.lane.b32.xlu0 %v10583_v43, %s5867_s23 }
0x1439   : > { %v5074_v63 = vpop.permute.xlu1 %5073  ;;  %v5076_v9 = vpop.permute.xlu0 %5075 }
0x143a   : > { %5094 = vst.msk [vmem:[%s7531_s13 + $0x20] sm:$0xff] %vm5089_vm12, %v5074_v63  ;;  %5095 = vst.msk [vmem:[%s7531_s13 + $0x28] sm:$0xff] %vm5089_vm12, %v5076_v9 }
0x143b   : > { %5332 = vrot.lane.b32.xlu1 %v10595_v12, %s5867_s23  ;;  %5334 = vrot.lane.b32.xlu0 %v10597_v20, %s5867_s23 }
0x143d   : > { %v5078_v21 = vpop.permute.xlu1 %5077  ;;  %v5080_v7 = vpop.permute.xlu0 %5079 }
0x143e   : > { %5096 = vst.msk [vmem:[%s7531_s13 + $0x30] sm:$0xff] %vm5089_vm12, %v5078_v21  ;;  %5097 = vst.msk [vmem:[%s7531_s13 + $0x38] sm:$0xff] %vm5089_vm12, %v5080_v7 }
0x143f   : > { %5353 = vrot.lane.b32.xlu1 %v10367_v23, %s5867_s23  ;;  %5355 = vrot.lane.b32.xlu0 %v10369_v49, %s5867_s23 }
0x1441   : > { %v5099_v61 = vpop.permute.xlu1 %5098  ;;  %v5101_v37 = vpop.permute.xlu0 %5100 }
0x1442   : > { %5123 = vst.msk [vmem:[%s7531_s13] sm:$0xff] %vm5122_vm13, %v5099_v61  ;;  %5124 = vst.msk [vmem:[%s7531_s13 + $0x8] sm:$0xff] %vm5122_vm13, %v5101_v37 }
0x1443   : > { %5357 = vrot.lane.b32.xlu1 %v10389_v13, %s5867_s23  ;;  %5359 = vrot.lane.b32.xlu0 %v10391_v35, %s5867_s23 }
0x1445   : > { %v5103_v22 = vpop.permute.xlu1 %5102  ;;  %v5105_v36 = vpop.permute.xlu0 %5104 }
0x1446   : > { %5125 = vst.msk [vmem:[%s7531_s13 + $0x10] sm:$0xff] %vm5122_vm13, %v5103_v22  ;;  %5126 = vst.msk [vmem:[%s7531_s13 + $0x18] sm:$0xff] %vm5122_vm13, %v5105_v36 }
0x1447   : > { %5361 = vrot.lane.b32.xlu1 %v10411_v48, %s5867_s23  ;;  %5363 = vrot.lane.b32.xlu0 %v10413_v45, %s5867_s23 }
0x1449   : > { %v5107_v11 = vpop.permute.xlu1 %5106  ;;  %v5109_v51 = vpop.permute.xlu0 %5108 }
0x144a   : > { %5127 = vst.msk [vmem:[%s7531_s13 + $0x20] sm:$0xff] %vm5122_vm13, %v5107_v11  ;;  %5128 = vst.msk [vmem:[%s7531_s13 + $0x28] sm:$0xff] %vm5122_vm13, %v5109_v51 }
0x144b   : > { %5365 = vrot.lane.b32.xlu1 %v10433_v26, %s5867_s23  ;;  %5367 = vrot.lane.b32.xlu0 %v10435_v3, %s5867_s23  ;;  %s5922_s23 = smov 122  }
0x144d   : > { %v5111_v39 = vpop.permute.xlu1 %5110  ;;  %v5113_v19 = vpop.permute.xlu0 %5112 }
0x144e   : > { %5129 = vst.msk [vmem:[%s7531_s13 + $0x30] sm:$0xff] %vm5122_vm13, %v5111_v39  ;;  %5130 = vst.msk [vmem:[%s7531_s13 + $0x38] sm:$0xff] %vm5122_vm13, %v5113_v19 }
0x144f   : > { %5386 = vrot.lane.b32.xlu1 %v10455_v60, %s5921_s28  ;;  %5388 = vrot.lane.b32.xlu0 %v10457_v32, %s5921_s28 }
0x1451   : > { %v5140_v44 = vpop.permute.xlu1 %5139  ;;  %v5142_v10 = vpop.permute.xlu0 %5141 }
0x1452   : > { %5164 = vst.msk [vmem:[%s7531_s13] sm:$0xff] %vm5163_vm14, %v5140_v44  ;;  %5165 = vst.msk [vmem:[%s7531_s13 + $0x8] sm:$0xff] %vm5163_vm14, %v5142_v10 }
0x1453   : > { %5390 = vrot.lane.b32.xlu1 %v10477_v41, %s5921_s28  ;;  %5392 = vrot.lane.b32.xlu0 %v10479_v5, %s5921_s28 }
0x1455   : > { %v5144_v6 = vpop.permute.xlu1 %5143  ;;  %v5146_v47 = vpop.permute.xlu0 %5145 }
0x1456   : > { %5166 = vst.msk [vmem:[%s7531_s13 + $0x10] sm:$0xff] %vm5163_vm14, %v5144_v6  ;;  %5167 = vst.msk [vmem:[%s7531_s13 + $0x18] sm:$0xff] %vm5163_vm14, %v5146_v47 }
0x1457   : > { %5394 = vrot.lane.b32.xlu1 %v10499_v53, %s5921_s28  ;;  %5396 = vrot.lane.b32.xlu0 %v10501_v8, %s5921_s28 }
0x1459   : > { %v5148_v2 = vpop.permute.xlu1 %5147  ;;  %v5150_v15 = vpop.permute.xlu0 %5149 }
0x145a   : > { %5168 = vst.msk [vmem:[%s7531_s13 + $0x20] sm:$0xff] %vm5163_vm14, %v5148_v2  ;;  %5169 = vst.msk [vmem:[%s7531_s13 + $0x28] sm:$0xff] %vm5163_vm14, %v5150_v15 }
0x145b   : > { %5398 = vrot.lane.b32.xlu1 %v10521_v56, %s5921_s28  ;;  %5400 = vrot.lane.b32.xlu0 %v10523_v18, %s5921_s28 }
0x145d   : > { %v5152_v27 = vpop.permute.xlu1 %5151  ;;  %v5154_v46 = vpop.permute.xlu0 %5153 }
0x145e   : > { %5170 = vst.msk [vmem:[%s7531_s13 + $0x30] sm:$0xff] %vm5163_vm14, %v5152_v27  ;;  %5171 = vst.msk [vmem:[%s7531_s13 + $0x38] sm:$0xff] %vm5163_vm14, %v5154_v46 }
0x145f   : > { %5419 = vrot.lane.b32.xlu1 %v10543_v1, %s5922_s23  ;;  %5421 = vrot.lane.b32.xlu0 %v10545_v25, %s5922_s23 }
0x1461   : > { %v5181_v38 = vpop.permute.xlu1 %5180  ;;  %v5183_v4 = vpop.permute.xlu0 %5182 }
0x1462   : > { %5205 = vst.msk [vmem:[%s7531_s13] sm:$0xff] %vm5204_vm15, %v5181_v38  ;;  %5206 = vst.msk [vmem:[%s7531_s13 + $0x8] sm:$0xff] %vm5204_vm15, %v5183_v4 }
0x1463   : > { %5423 = vrot.lane.b32.xlu1 %v10565_v14, %s5922_s23  ;;  %5425 = vrot.lane.b32.xlu0 %v10567_v24, %s5922_s23 }
0x1465   : > { %v5185_v30 = vpop.permute.xlu1 %5184  ;;  %v5187_v54 = vpop.permute.xlu0 %5186 }
0x1466   : > { %5207 = vst.msk [vmem:[%s7531_s13 + $0x10] sm:$0xff] %vm5204_vm15, %v5185_v30  ;;  %5208 = vst.msk [vmem:[%s7531_s13 + $0x18] sm:$0xff] %vm5204_vm15, %v5187_v54 }
0x1467   : > { %5427 = vrot.lane.b32.xlu1 %v10581_v28, %s5922_s23  ;;  %5429 = vrot.lane.b32.xlu0 %v10583_v43, %s5922_s23 }
0x1469   : > { %v5189_v55 = vpop.permute.xlu1 %5188  ;;  %v5191_v52 = vpop.permute.xlu0 %5190 }
0x146a   : > { %5209 = vst.msk [vmem:[%s7531_s13 + $0x20] sm:$0xff] %vm5204_vm15, %v5189_v55  ;;  %5210 = vst.msk [vmem:[%s7531_s13 + $0x28] sm:$0xff] %vm5204_vm15, %v5191_v52 }
0x146b   : > { %5431 = vrot.lane.b32.xlu1 %v10595_v12, %s5922_s23  ;;  %5433 = vrot.lane.b32.xlu0 %v10597_v20, %s5922_s23 }
0x146d   : > { %v5193_v16 = vpop.permute.xlu1 %5192  ;;  %v5195_v33 = vpop.permute.xlu0 %5194 }
0x146e   : > { %5211 = vst.msk [vmem:[%s7531_s13 + $0x30] sm:$0xff] %vm5204_vm15, %v5193_v16  ;;  %5212 = vst.msk [vmem:[%s7531_s13 + $0x38] sm:$0xff] %vm5204_vm15, %v5195_v33 }
0x146f   : > { %5452 = vrot.lane.b32.xlu1 %v10367_v23, %s5922_s23  ;;  %5454 = vrot.lane.b32.xlu0 %v10369_v49, %s5922_s23 }
0x1471   : > { %v5222_v34 = vpop.permute.xlu1 %5221  ;;  %v5224_v59 = vpop.permute.xlu0 %5223 }
0x1472   : > { %5246 = vst.msk [vmem:[%s7531_s13] sm:$0xff] %vm5245_vm0, %v5222_v34  ;;  %5247 = vst.msk [vmem:[%s7531_s13 + $0x8] sm:$0xff] %vm5245_vm0, %v5224_v59 }
0x1473   : > { %5456 = vrot.lane.b32.xlu1 %v10389_v13, %s5922_s23  ;;  %5458 = vrot.lane.b32.xlu0 %v10391_v35, %s5922_s23 }
0x1475   : > { %v5226_v23 = vpop.permute.xlu1 %5225  ;;  %v5228_v42 = vpop.permute.xlu0 %5227 }
0x1476   : > { %5248 = vst.msk [vmem:[%s7531_s13 + $0x10] sm:$0xff] %vm5245_vm0, %v5226_v23  ;;  %5249 = vst.msk [vmem:[%s7531_s13 + $0x18] sm:$0xff] %vm5245_vm0, %v5228_v42 }
0x1477   : > { %5460 = vrot.lane.b32.xlu1 %v10411_v48, %s5922_s23  ;;  %5462 = vrot.lane.b32.xlu0 %v10413_v45, %s5922_s23 }
0x1479   : > { %v5230_v49 = vpop.permute.xlu1 %5229  ;;  %v5232_v13 = vpop.permute.xlu0 %5231 }
0x147a   : > { %5250 = vst.msk [vmem:[%s7531_s13 + $0x20] sm:$0xff] %vm5245_vm0, %v5230_v49  ;;  %5251 = vst.msk [vmem:[%s7531_s13 + $0x28] sm:$0xff] %vm5245_vm0, %v5232_v13 }
0x147b   : > { %5464 = vrot.lane.b32.xlu1 %v10433_v26, %s5922_s23  ;;  %5466 = vrot.lane.b32.xlu0 %v10435_v3, %s5922_s23 }
0x147d   : > { %v5234_v35 = vpop.permute.xlu1 %5233  ;;  %v5236_v48 = vpop.permute.xlu0 %5235 }
0x147e   : > { %5252 = vst.msk [vmem:[%s7531_s13 + $0x30] sm:$0xff] %vm5245_vm0, %v5234_v35  ;;  %5253 = vst.msk [vmem:[%s7531_s13 + $0x38] sm:$0xff] %vm5245_vm0, %v5236_v48 }
0x147f   : > { %5485 = vrot.lane.b32.xlu1 %v10455_v60, %s5923_s29  ;;  %5487 = vrot.lane.b32.xlu0 %v10457_v32, %s5923_s29 }
0x1481   : > { %v5255_v45 = vpop.permute.xlu1 %5254  ;;  %v5257_v26 = vpop.permute.xlu0 %5256 }
0x1482   : > { %5279 = vst.msk [vmem:[%s7531_s13] sm:$0xff] %vm5278_vm1, %v5255_v45  ;;  %5280 = vst.msk [vmem:[%s7531_s13 + $0x8] sm:$0xff] %vm5278_vm1, %v5257_v26 }
0x1483   : > { %5489 = vrot.lane.b32.xlu1 %v10477_v41, %s5923_s29  ;;  %5491 = vrot.lane.b32.xlu0 %v10479_v5, %s5923_s29 }
0x1485   : > { %v5259_v3 = vpop.permute.xlu1 %5258  ;;  %v5261_v58 = vpop.permute.xlu0 %5260 }
0x1486   : > { %5281 = vst.msk [vmem:[%s7531_s13 + $0x10] sm:$0xff] %vm5278_vm1, %v5259_v3  ;;  %5282 = vst.msk [vmem:[%s7531_s13 + $0x18] sm:$0xff] %vm5278_vm1, %v5261_v58 }
0x1487   : > { %5493 = vrot.lane.b32.xlu1 %v10499_v53, %s5923_s29  ;;  %5495 = vrot.lane.b32.xlu0 %v10501_v8, %s5923_s29 }
0x1489   : > { %v5263_v60 = vpop.permute.xlu1 %5262  ;;  %v5265_v32 = vpop.permute.xlu0 %5264 }
0x148a   : > { %5283 = vst.msk [vmem:[%s7531_s13 + $0x20] sm:$0xff] %vm5278_vm1, %v5263_v60  ;;  %5284 = vst.msk [vmem:[%s7531_s13 + $0x28] sm:$0xff] %vm5278_vm1, %v5265_v32 }
0x148b   : > { %5497 = vrot.lane.b32.xlu1 %v10521_v56, %s5923_s29  ;;  %5499 = vrot.lane.b32.xlu0 %v10523_v18, %s5923_s29 }
0x148d   : > { %v5267_v41 = vpop.permute.xlu1 %5266  ;;  %v5269_v5 = vpop.permute.xlu0 %5268 }
0x148e   : > { %5285 = vst.msk [vmem:[%s7531_s13 + $0x30] sm:$0xff] %vm5278_vm1, %v5267_v41  ;;  %5286 = vst.msk [vmem:[%s7531_s13 + $0x38] sm:$0xff] %vm5278_vm1, %v5269_v5 }
0x148f   : > { %5518 = vrot.lane.b32.xlu1 %v10543_v1, %s5889_s7  ;;  %5520 = vrot.lane.b32.xlu0 %v10545_v25, %s5889_s7 }
0x1491   : > { %v5288_v53 = vpop.permute.xlu1 %5287  ;;  %v5290_v8 = vpop.permute.xlu0 %5289 }
0x1492   : > { %5312 = vst.msk [vmem:[%s7531_s13] sm:$0xff] %vm5311_vm2, %v5288_v53  ;;  %5313 = vst.msk [vmem:[%s7531_s13 + $0x8] sm:$0xff] %vm5311_vm2, %v5290_v8 }
0x1493   : > { %5522 = vrot.lane.b32.xlu1 %v10565_v14, %s5889_s7  ;;  %5524 = vrot.lane.b32.xlu0 %v10567_v24, %s5889_s7 }
0x1495   : > { %v5292_v56 = vpop.permute.xlu1 %5291  ;;  %v5294_v18 = vpop.permute.xlu0 %5293 }
0x1496   : > { %5314 = vst.msk [vmem:[%s7531_s13 + $0x10] sm:$0xff] %vm5311_vm2, %v5292_v56  ;;  %5315 = vst.msk [vmem:[%s7531_s13 + $0x18] sm:$0xff] %vm5311_vm2, %v5294_v18 }
0x1497   : > { %5526 = vrot.lane.b32.xlu1 %v10581_v28, %s5889_s7  ;;  %5528 = vrot.lane.b32.xlu0 %v10583_v43, %s5889_s7 }
0x1499   : > { %v5296_v1 = vpop.permute.xlu1 %5295  ;;  %v5298_v25 = vpop.permute.xlu0 %5297 }
0x149a   : > { %5316 = vst.msk [vmem:[%s7531_s13 + $0x20] sm:$0xff] %vm5311_vm2, %v5296_v1  ;;  %5317 = vst.msk [vmem:[%s7531_s13 + $0x28] sm:$0xff] %vm5311_vm2, %v5298_v25 }
0x149b   : > { %5530 = vrot.lane.b32.xlu1 %v10595_v12, %s5889_s7  ;;  %5532 = vrot.lane.b32.xlu0 %v10597_v20, %s5889_s7 }
0x149d   : > { %v5300_v14 = vpop.permute.xlu1 %5299  ;;  %v5302_v24 = vpop.permute.xlu0 %5301 }
0x149e   : > { %5318 = vst.msk [vmem:[%s7531_s13 + $0x30] sm:$0xff] %vm5311_vm2, %v5300_v14  ;;  %5319 = vst.msk [vmem:[%s7531_s13 + $0x38] sm:$0xff] %vm5311_vm2, %v5302_v24 }
0x14a1   : > { %v5321_v28 = vpop.permute.xlu1 %5320  ;;  %v5323_v43 = vpop.permute.xlu0 %5322 }
0x14a2   : > { %5345 = vst.msk [vmem:[%s7531_s13] sm:$0xff] %vm5344_vm3, %v5321_v28  ;;  %5346 = vst.msk [vmem:[%s7531_s13 + $0x8] sm:$0xff] %vm5344_vm3, %v5323_v43 }
0x14a5   : > { %v5325_v12 = vpop.permute.xlu1 %5324  ;;  %v5327_v20 = vpop.permute.xlu0 %5326 }
0x14a6   : > { %5347 = vst.msk [vmem:[%s7531_s13 + $0x10] sm:$0xff] %vm5344_vm3, %v5325_v12  ;;  %5348 = vst.msk [vmem:[%s7531_s13 + $0x18] sm:$0xff] %vm5344_vm3, %v5327_v20 }
0x14a9   : > { %v5329_v40 = vpop.permute.xlu1 %5328  ;;  %v5331_v50 = vpop.permute.xlu0 %5330 }
0x14aa   : > { %5349 = vst.msk [vmem:[%s7531_s13 + $0x20] sm:$0xff] %vm5344_vm3, %v5329_v40  ;;  %5350 = vst.msk [vmem:[%s7531_s13 + $0x28] sm:$0xff] %vm5344_vm3, %v5331_v50 }
0x14ad   : > { %v5333_v57 = vpop.permute.xlu1 %5332  ;;  %v5335_v17 = vpop.permute.xlu0 %5334 }
0x14ae   : > { %5351 = vst.msk [vmem:[%s7531_s13 + $0x30] sm:$0xff] %vm5344_vm3, %v5333_v57  ;;  %5352 = vst.msk [vmem:[%s7531_s13 + $0x38] sm:$0xff] %vm5344_vm3, %v5335_v17 }
0x14b1   : > { %v5354_v31 = vpop.permute.xlu1 %5353  ;;  %v5356_v29 = vpop.permute.xlu0 %5355 }
0x14b2   : > { %5378 = vst.msk [vmem:[%s7531_s13] sm:$0xff] %vm5377_vm4, %v5354_v31  ;;  %5379 = vst.msk [vmem:[%s7531_s13 + $0x8] sm:$0xff] %vm5377_vm4, %v5356_v29 }
0x14b5   : > { %v5358_v62 = vpop.permute.xlu1 %5357  ;;  %v5360_v0 = vpop.permute.xlu0 %5359 }
0x14b6   : > { %5380 = vst.msk [vmem:[%s7531_s13 + $0x10] sm:$0xff] %vm5377_vm4, %v5358_v62  ;;  %5381 = vst.msk [vmem:[%s7531_s13 + $0x18] sm:$0xff] %vm5377_vm4, %v5360_v0 }
0x14b9   : > { %v5362_v63 = vpop.permute.xlu1 %5361  ;;  %v5364_v9 = vpop.permute.xlu0 %5363 }
0x14ba   : > { %5382 = vst.msk [vmem:[%s7531_s13 + $0x20] sm:$0xff] %vm5377_vm4, %v5362_v63  ;;  %5383 = vst.msk [vmem:[%s7531_s13 + $0x28] sm:$0xff] %vm5377_vm4, %v5364_v9 }
0x14bd   : > { %v5366_v21 = vpop.permute.xlu1 %5365  ;;  %v5368_v7 = vpop.permute.xlu0 %5367 }
0x14be   : > { %5384 = vst.msk [vmem:[%s7531_s13 + $0x30] sm:$0xff] %vm5377_vm4, %v5366_v21  ;;  %5385 = vst.msk [vmem:[%s7531_s13 + $0x38] sm:$0xff] %vm5377_vm4, %v5368_v7 }
0x14c1   : > { %v5387_v61 = vpop.permute.xlu1 %5386  ;;  %v5389_v37 = vpop.permute.xlu0 %5388 }
0x14c2   : > { %5411 = vst.msk [vmem:[%s7531_s13] sm:$0xff] %vm5410_vm5, %v5387_v61  ;;  %5412 = vst.msk [vmem:[%s7531_s13 + $0x8] sm:$0xff] %vm5410_vm5, %v5389_v37 }
0x14c5   : > { %v5391_v22 = vpop.permute.xlu1 %5390  ;;  %v5393_v36 = vpop.permute.xlu0 %5392 }
0x14c6   : > { %5413 = vst.msk [vmem:[%s7531_s13 + $0x10] sm:$0xff] %vm5410_vm5, %v5391_v22  ;;  %5414 = vst.msk [vmem:[%s7531_s13 + $0x18] sm:$0xff] %vm5410_vm5, %v5393_v36 }
0x14c9   : > { %v5395_v11 = vpop.permute.xlu1 %5394  ;;  %v5397_v51 = vpop.permute.xlu0 %5396 }
0x14ca   : > { %5415 = vst.msk [vmem:[%s7531_s13 + $0x20] sm:$0xff] %vm5410_vm5, %v5395_v11  ;;  %5416 = vst.msk [vmem:[%s7531_s13 + $0x28] sm:$0xff] %vm5410_vm5, %v5397_v51 }
0x14cd   : > { %v5399_v39 = vpop.permute.xlu1 %5398  ;;  %v5401_v19 = vpop.permute.xlu0 %5400 }
0x14ce   : > { %5417 = vst.msk [vmem:[%s7531_s13 + $0x30] sm:$0xff] %vm5410_vm5, %v5399_v39  ;;  %5418 = vst.msk [vmem:[%s7531_s13 + $0x38] sm:$0xff] %vm5410_vm5, %v5401_v19 }
0x14d1   : > { %v5420_v44 = vpop.permute.xlu1 %5419  ;;  %v5422_v10 = vpop.permute.xlu0 %5421 }
0x14d2   : > { %5444 = vst.msk [vmem:[%s7531_s13] sm:$0xff] %vm5443_vm6, %v5420_v44  ;;  %5445 = vst.msk [vmem:[%s7531_s13 + $0x8] sm:$0xff] %vm5443_vm6, %v5422_v10 }
0x14d5   : > { %v5424_v6 = vpop.permute.xlu1 %5423  ;;  %v5426_v47 = vpop.permute.xlu0 %5425 }
0x14d6   : > { %5446 = vst.msk [vmem:[%s7531_s13 + $0x10] sm:$0xff] %vm5443_vm6, %v5424_v6  ;;  %5447 = vst.msk [vmem:[%s7531_s13 + $0x18] sm:$0xff] %vm5443_vm6, %v5426_v47 }
0x14d9   : > { %v5428_v2 = vpop.permute.xlu1 %5427  ;;  %v5430_v15 = vpop.permute.xlu0 %5429 }
0x14da   : > { %5448 = vst.msk [vmem:[%s7531_s13 + $0x20] sm:$0xff] %vm5443_vm6, %v5428_v2  ;;  %5449 = vst.msk [vmem:[%s7531_s13 + $0x28] sm:$0xff] %vm5443_vm6, %v5430_v15 }
0x14dd   : > { %v5432_v27 = vpop.permute.xlu1 %5431  ;;  %v5434_v46 = vpop.permute.xlu0 %5433 }
0x14de   : > { %5450 = vst.msk [vmem:[%s7531_s13 + $0x30] sm:$0xff] %vm5443_vm6, %v5432_v27  ;;  %5451 = vst.msk [vmem:[%s7531_s13 + $0x38] sm:$0xff] %vm5443_vm6, %v5434_v46 }
0x14e1   : > { %v5453_v38 = vpop.permute.xlu1 %5452  ;;  %v5455_v4 = vpop.permute.xlu0 %5454 }
0x14e2   : > { %5477 = vst.msk [vmem:[%s7531_s13] sm:$0xff] %vm5476_vm7, %v5453_v38  ;;  %5478 = vst.msk [vmem:[%s7531_s13 + $0x8] sm:$0xff] %vm5476_vm7, %v5455_v4 }
0x14e5   : > { %v5457_v30 = vpop.permute.xlu1 %5456  ;;  %v5459_v54 = vpop.permute.xlu0 %5458 }
0x14e6   : > { %5479 = vst.msk [vmem:[%s7531_s13 + $0x10] sm:$0xff] %vm5476_vm7, %v5457_v30  ;;  %5480 = vst.msk [vmem:[%s7531_s13 + $0x18] sm:$0xff] %vm5476_vm7, %v5459_v54 }
0x14e9   : > { %v5461_v55 = vpop.permute.xlu1 %5460  ;;  %v5463_v52 = vpop.permute.xlu0 %5462 }
0x14ea   : > { %5481 = vst.msk [vmem:[%s7531_s13 + $0x20] sm:$0xff] %vm5476_vm7, %v5461_v55  ;;  %5482 = vst.msk [vmem:[%s7531_s13 + $0x28] sm:$0xff] %vm5476_vm7, %v5463_v52 }
0x14ed   : > { %v5465_v16 = vpop.permute.xlu1 %5464  ;;  %v5467_v33 = vpop.permute.xlu0 %5466 }
0x14ee   : > { %5483 = vst.msk [vmem:[%s7531_s13 + $0x30] sm:$0xff] %vm5476_vm7, %v5465_v16  ;;  %5484 = vst.msk [vmem:[%s7531_s13 + $0x38] sm:$0xff] %vm5476_vm7, %v5467_v33 }
0x14f1   : > { %v5486_v34 = vpop.permute.xlu1 %5485  ;;  %v5488_v59 = vpop.permute.xlu0 %5487 }
0x14f2   : > { %5510 = vst.msk [vmem:[%s7531_s13] sm:$0xff] %vm5509_vm8, %v5486_v34  ;;  %5511 = vst.msk [vmem:[%s7531_s13 + $0x8] sm:$0xff] %vm5509_vm8, %v5488_v59 }
0x14f5   : > { %v5490_v23 = vpop.permute.xlu1 %5489  ;;  %v5492_v42 = vpop.permute.xlu0 %5491 }
0x14f6   : > { %5512 = vst.msk [vmem:[%s7531_s13 + $0x10] sm:$0xff] %vm5509_vm8, %v5490_v23  ;;  %5513 = vst.msk [vmem:[%s7531_s13 + $0x18] sm:$0xff] %vm5509_vm8, %v5492_v42 }
0x14f9   : > { %v5494_v49 = vpop.permute.xlu1 %5493  ;;  %v5496_v13 = vpop.permute.xlu0 %5495 }
0x14fa   : > { %5514 = vst.msk [vmem:[%s7531_s13 + $0x20] sm:$0xff] %vm5509_vm8, %v5494_v49  ;;  %5515 = vst.msk [vmem:[%s7531_s13 + $0x28] sm:$0xff] %vm5509_vm8, %v5496_v13 }
0x14fd   : > { %v5498_v35 = vpop.permute.xlu1 %5497  ;;  %v5500_v48 = vpop.permute.xlu0 %5499 }
0x14fe   : > { %5516 = vst.msk [vmem:[%s7531_s13 + $0x30] sm:$0xff] %vm5509_vm8, %v5498_v35  ;;  %5517 = vst.msk [vmem:[%s7531_s13 + $0x38] sm:$0xff] %vm5509_vm8, %v5500_v48 }
0x1501   : > { %v5519_v45 = vpop.permute.xlu1 %5518  ;;  %v5521_v26 = vpop.permute.xlu0 %5520 }
0x1502   : > { %5543 = vst.msk [vmem:[%s7531_s13] sm:$0xff] %vm5542_vm9, %v5519_v45  ;;  %5544 = vst.msk [vmem:[%s7531_s13 + $0x8] sm:$0xff] %vm5542_vm9, %v5521_v26 }
0x1505   : > { %v5523_v3 = vpop.permute.xlu1 %5522  ;;  %v5525_v58 = vpop.permute.xlu0 %5524 }
0x1506   : > { %5545 = vst.msk [vmem:[%s7531_s13 + $0x10] sm:$0xff] %vm5542_vm9, %v5523_v3  ;;  %5546 = vst.msk [vmem:[%s7531_s13 + $0x18] sm:$0xff] %vm5542_vm9, %v5525_v58 }
0x1509   : > { %v5527_v60 = vpop.permute.xlu1 %5526  ;;  %v5529_v32 = vpop.permute.xlu0 %5528 }
0x150a   : > { %5547 = vst.msk [vmem:[%s7531_s13 + $0x20] sm:$0xff] %vm5542_vm9, %v5527_v60  ;;  %5548 = vst.msk [vmem:[%s7531_s13 + $0x28] sm:$0xff] %vm5542_vm9, %v5529_v32 }
0x150d   : > { %v5531_v41 = vpop.permute.xlu1 %5530  ;;  %v5533_v5 = vpop.permute.xlu0 %5532 }
0x150e   : > { %5549 = vst.msk [vmem:[%s7531_s13 + $0x30] sm:$0xff] %vm5542_vm9, %v5531_v41  ;;  %5550 = vst.msk [vmem:[%s7531_s13 + $0x38] sm:$0xff] %vm5542_vm9, %v5533_v5 }
0x150f PF: > { %s13_s12 = sadd.s32 1, %s5859_s12  }
0x1510   : > { %p10_p4 = scmp.ge.s32.totalorder %s13_s12, 6  }
0x1512   :  { %12 = sbr.rel (!%p10_p4) target bundleno = 1 (0x1), region = 68 }

</bundles_post_ra>
